<compile_context>
chip_gen: v5e
topology: v5e:2x2
jax: 0.10.0
libtpu: 0.0.40
codegen_flags: <defaults>
</compile_context>

<pallas_src>
import functools

import jax
import jax.numpy as jnp
from jax.experimental import pallas as pl
from jax.experimental.pallas import tpu as pltpu

IMAGE_H = 16
IMAGE_W = 16


# ---------------------------------------------------------------------------
# Fused forward kernel: one grid step == B_BLK images, everything in VMEM.
# Activation layout inside the kernel: (spatial..., batch, channel).
# ---------------------------------------------------------------------------
def fused_forward_kernel(p_ref, w1_ref, b1_ref, w2_ref, b2_ref,
                         wf1_ref, bf1_ref, wf2_ref, bf2_ref, wo_ref, bo_ref,
                         o_ref, xp2_ref, *, image_h, image_w):
    # p_ref  : (H*W, B_BLK, 27)  conv1 im2col patches, rows ordered (y, x)
    # w1_ref : (27, 16)          b1_ref: (1, 16)
    # w2_ref : (3, 3, 16, 32)    b2_ref: (1, 32)
    # wf1_ref: (16, 32, 128)     fc1 weight, rows permuted to (spatial, chan)
    # wf2_ref: (128, 128)        wo_ref: (128, 1)
    # o_ref  : (B_BLK, 1)
    # xp2_ref: VMEM (H/2+2, W/2+2, B_BLK, 16) padded conv2 input scratch
    H, W = image_h, image_w
    HW, b_blk, _ = p_ref.shape
    C1 = w1_ref.shape[1]
    C2 = w2_ref.shape[3]
    H2, W2 = H // 2, W // 2
    H4, W4 = H // 4, W // 4

    # ---- stage 1: conv1 as ONE im2col matmul (+bias+ReLU) -------------------
    patches = p_ref[...].reshape(HW * b_blk, 9 * 3)          # tile-aligned merge
    a1 = jnp.dot(patches, w1_ref[...], preferred_element_type=jnp.float32)
    a1 = jnp.maximum(a1 + b1_ref[...], 0.0)                  # (H*W*b, C1)

    # maxpool 2x2: spatial dims are MAJOR dims -> pure slab maxes, no relayout
    a1 = a1.reshape(H, W, b_blk, C1)
    a1 = a1.reshape(H2, 2, W, b_blk, C1).max(axis=1)
    a1 = a1.reshape(H2, W2, 2, b_blk, C1).max(axis=2)        # (H2, W2, b, C1)

    # ---- stage 2: conv2 (3x3, pad=1) + ReLU + maxpool 2x2 -------------------
    # Zero only the 1-pixel halo each step; the interior is fully rewritten.
    zr = jnp.zeros((1, W2 + 2, b_blk, C1), jnp.float32)
    zc = jnp.zeros((H2, 1, b_blk, C1), jnp.float32)
    xp2_ref[0:1, :, :, :] = zr
    xp2_ref[H2 + 1:H2 + 2, :, :, :] = zr
    xp2_ref[1:H2 + 1, 0:1, :, :] = zc
    xp2_ref[1:H2 + 1, W2 + 1:W2 + 2, :, :] = zc
    xp2_ref[1:H2 + 1, 1:W2 + 1, :, :] = a1

    # 9 tap dots; slices offset only major dims -> aligned, copy-free loads.
    acc = [None, None, None]
    for t in range(9):
        kh, kw = t // 3, t % 3
        win = xp2_ref[kh:kh + H2, kw:kw + W2, :, :].reshape(H2 * W2 * b_blk, C1)
        d = jnp.dot(win, w2_ref[kh, kw], preferred_element_type=jnp.float32)
        acc[t % 3] = d if acc[t % 3] is None else acc[t % 3] + d
    a2 = jnp.maximum(acc[0] + acc[1] + acc[2] + b2_ref[...], 0.0)  # (H2*W2*b, C2)

    a2 = a2.reshape(H2, W2, b_blk, C2)
    a2 = a2.reshape(H4, 2, W2, b_blk, C2).max(axis=1)
    a2 = a2.reshape(H4, W4, 2, b_blk, C2).max(axis=2)         # (H4, W4, b, C2)
    feat = a2.reshape(H4 * W4, b_blk, C2)                     # (16, b, C2)

    # ---- stage 3: MLP head ---------------------------------------------------
    # fc1 = sum over the 16 spatial rows of (b, C2) @ (C2, 128); rows are a
    # free major-dim index, and 4 independent accumulators break the serial
    # dependency chain of the old M=1 loop.
    fc1_acc = [None, None, None, None]
    for r in range(H4 * W4):
        d = jnp.dot(feat[r], wf1_ref[r], preferred_element_type=jnp.float32)
        j = r % 4
        fc1_acc[j] = d if fc1_acc[j] is None else fc1_acc[j] + d
    h = (fc1_acc[0] + fc1_acc[1]) + (fc1_acc[2] + fc1_acc[3]) + bf1_ref[...]
    h = jnp.maximum(h, 0.0)                                   # (b, 128)
    h = jnp.dot(h, wf2_ref[...], preferred_element_type=jnp.float32) + bf2_ref[...]
    h = jnp.maximum(h, 0.0)
    out = jnp.dot(h, wo_ref[...], preferred_element_type=jnp.float32) + bo_ref[...]
    o_ref[...] = out.astype(o_ref.dtype)                      # (b, 1)


# ---------------------------------------------------------------------------
# Wrapper: im2col for conv1 + single pallas_call over batch blocks.
# ---------------------------------------------------------------------------
def _batch_block(B):
    # Multiple of 8 keeps every (..., batch, channel) sublane split/merge in
    # the kernel tile-aligned (no relayout copies).  One fat step for small
    # batches (best on single-TC v5e/v6e); 16-image steps for larger batches
    # so B>=32 yields >=2 "parallel" steps feeding both v7x TensorCores while
    # staying under the default scoped-VMEM limits (16 MiB on v5e).
    return 8 if B <= 8 else 16


@jax.jit
def model_forward(img_nchw, kp):
    img = img_nchw.astype(jnp.float32)
    B, C0, H, W = img.shape
    b_blk = _batch_block(B)
    n_steps = pl.cdiv(B, b_blk)
    B_pad = n_steps * b_blk

    # NCHW -> (H, W, B, C): spatial-major, batch on sublanes, channels on lanes.
    x = jnp.transpose(img, (2, 3, 0, 1))
    if B_pad != B:
        x = jnp.pad(x, ((0, 0), (0, 0), (0, B_pad - B), (0, 0)))

    # conv1 im2col in XLA (cheap: 27 KB/image): (H*W, B_pad, 27), K=(kh,kw,cin)
    xp = jnp.pad(x, ((1, 1), (1, 1), (0, 0), (0, 0)))
    wins = [xp[kh:kh + H, kw:kw + W] for kh in range(3) for kw in range(3)]
    patches = jnp.stack(wins, axis=3).reshape(H * W, B_pad, 9 * C0)

    C1 = kp["w2"].shape[2]
    kernel = functools.partial(fused_forward_kernel, image_h=H, image_w=W)

    out = pl.pallas_call(
        kernel,
        out_shape=jax.ShapeDtypeStruct((B_pad, 1), jnp.float32),
        grid=(n_steps,),
        in_specs=[
            pl.BlockSpec((H * W, b_blk, 9 * C0), lambda i: (0, i, 0)),
            pl.BlockSpec(kp["w1"].shape, lambda i: (0, 0)),
            pl.BlockSpec(kp["b1"].shape, lambda i: (0, 0)),
            pl.BlockSpec(kp["w2"].shape, lambda i: (0, 0, 0, 0)),
            pl.BlockSpec(kp["b2"].shape, lambda i: (0, 0)),
            pl.BlockSpec(kp["wf1"].shape, lambda i: (0, 0, 0)),
            pl.BlockSpec(kp["bf1"].shape, lambda i: (0, 0)),
            pl.BlockSpec(kp["wf2"].shape, lambda i: (0, 0)),
            pl.BlockSpec(kp["bf2"].shape, lambda i: (0, 0)),
            pl.BlockSpec(kp["wo"].shape, lambda i: (0, 0)),
            pl.BlockSpec(kp["bo"].shape, lambda i: (0, 0)),
        ],
        out_specs=pl.BlockSpec((b_blk, 1), lambda i: (i, 0)),
        scratch_shapes=[
            pltpu.VMEM((H // 2 + 2, W // 2 + 2, b_blk, C1), jnp.float32),
        ],
        compiler_params=pltpu.CompilerParams(
            dimension_semantics=("parallel",)),
    )(patches, kp["w1"], kp["b1"], kp["w2"], kp["b2"], kp["wf1"], kp["bf1"],
      kp["wf2"], kp["bf2"], kp["wo"], kp["bo"])
    return out[:B]


# ---------------------------------------------------------------------------
# Parameter handling
# ---------------------------------------------------------------------------
def init_params(key):
    """Torch-equivalent params in JAX-friendly storage:
       conv weights (kh,kw,Cin,Cout)  (torch: (Cout,Cin,kh,kw));
       linear weights (in,out)        (torch: (out,in));
       w_fc1 rows are in torch's CHW flatten order."""
    ks = jax.random.split(key, 10)
    flat_dim = 32 * (IMAGE_W // 4) * (IMAGE_H // 4)   # 512

    def rnd(k, shape, scale):
        return jax.random.normal(k, shape, jnp.float32) * scale

    return {
        "w_conv1": rnd(ks[0], (3, 3, 3, 16), 0.1),
        "b_conv1": rnd(ks[1], (16,), 0.1),
        "w_conv2": rnd(ks[2], (3, 3, 16, 32), 0.05),
        "b_conv2": rnd(ks[3], (32,), 0.05),
        "w_fc1": rnd(ks[4], (flat_dim, 128), 0.03),
        "b_fc1": rnd(ks[5], (128,), 0.03),
        "w_fc2": rnd(ks[6], (128, 128), 0.05),
        "b_fc2": rnd(ks[7], (128,), 0.05),
        "w_out": rnd(ks[8], (128, 1), 0.05),
        "b_out": rnd(ks[9], (1,), 0.05),
    }


def prepare_params(params, image_h=IMAGE_H, image_w=IMAGE_W):
    """One-time kernel-side weight prep:
       * conv1 weight flattened to (27, 16) with K ordered (kh, kw, cin)
         to match the wrapper's im2col patches;
       * fc1 rows permuted from torch's CHW flatten order to (spatial, chan)
         so the kernel needs no flatten transpose."""
    H4, W4 = image_h // 4, image_w // 4
    c2 = params["w_conv2"].shape[-1]
    n1 = params["w_fc1"].shape[-1]
    wf1 = jnp.transpose(params["w_fc1"].reshape(c2, H4 * W4, n1), (1, 0, 2))
    return {
        "w1": params["w_conv1"].reshape(27, 16),
        "b1": params["b_conv1"].reshape(1, -1),
        "w2": params["w_conv2"],
        "b2": params["b_conv2"].reshape(1, -1),
        "wf1": wf1,
        "bf1": params["b_fc1"].reshape(1, -1),
        "wf2": params["w_fc2"],
        "bf2": params["b_fc2"].reshape(1, -1),
        "wo": params["w_out"],
        "bo": params["b_out"].reshape(1, -1),
    }


# ---------------------------------------------------------------------------
# Pure-JAX reference (mirrors the PyTorch forward exactly)
# ---------------------------------------------------------------------------
def reference_forward(img_nchw, params):
    x = img_nchw.astype(jnp.float32)
    w1 = jnp.transpose(params["w_conv1"], (3, 2, 0, 1))   # OIHW
    x = jax.lax.conv_general_dilated(x, w1, (1, 1), ((1, 1), (1, 1)),
                                     dimension_numbers=("NCHW", "OIHW", "NCHW"))
    x = jnp.maximum(x + params["b_conv1"][None, :, None, None], 0.0)
    x = jax.lax.reduce_window(x, -jnp.inf, jax.lax.max,
                              (1, 1, 2, 2), (1, 1, 2, 2), "VALID")
    w2 = jnp.transpose(params["w_conv2"], (3, 2, 0, 1))
    x = jax.lax.conv_general_dilated(x, w2, (1, 1), ((1, 1), (1, 1)),
                                     dimension_numbers=("NCHW", "OIHW", "NCHW"))
    x = jnp.maximum(x + params["b_conv2"][None, :, None, None], 0.0)
    x = jax.lax.reduce_window(x, -jnp.inf, jax.lax.max,
                              (1, 1, 2, 2), (1, 1, 2, 2), "VALID")
    x = x.reshape(x.shape[0], -1)                          # torch img.view(B,-1)
    x = jnp.maximum(x @ params["w_fc1"] + params["b_fc1"], 0.0)
    x = jnp.maximum(x @ params["w_fc2"] + params["b_fc2"], 0.0)
    return x @ params["w_out"] + params["b_out"]


if __name__ == "__main__":
    key = jax.random.PRNGKey(0)
    k_img, k_par = jax.random.split(key)
    # NCHW input as in PyTorch: batch=2, channels=3, 16x16 image
    img = jax.random.normal(k_img, (2, 3, IMAGE_H, IMAGE_W), jnp.float32)
    params = init_params(k_par)
    kparams = prepare_params(params)

    out = model_forward(img, kparams)
    out = jax.block_until_ready(out)
    assert out.shape == (2, 1) and out.dtype == jnp.float32

    ref = reference_forward(img, params)
    if not bool(jnp.allclose(out, ref, rtol=2e-3, atol=2e-3)):
        raise AssertionError(
            f"mismatch vs reference, max err={float(jnp.max(jnp.abs(out - ref)))}")
    print("KERNEL_OK")
</pallas_src>

<mosaic_0001>
module attributes {stable_mosaic.version = 11 : i64} {
  func.func @fused_forward_kernel(%arg0: i32, %arg1: memref<256x8x27xf32, #tpu.memory_space<vmem>>, %arg2: memref<27x16xf32, #tpu.memory_space<vmem>>, %arg3: memref<1x16xf32, #tpu.memory_space<vmem>>, %arg4: memref<3x3x16x32xf32, #tpu.memory_space<vmem>>, %arg5: memref<1x32xf32, #tpu.memory_space<vmem>>, %arg6: memref<16x32x128xf32, #tpu.memory_space<vmem>>, %arg7: memref<1x128xf32, #tpu.memory_space<vmem>>, %arg8: memref<128x128xf32, #tpu.memory_space<vmem>>, %arg9: memref<1x128xf32, #tpu.memory_space<vmem>>, %arg10: memref<128x1xf32, #tpu.memory_space<vmem>>, %arg11: memref<1x1xf32, #tpu.memory_space<vmem>>, %arg12: memref<8x1xf32, #tpu.memory_space<vmem>>, %arg13: memref<10x10x8x16xf32, #tpu.memory_space<vmem>>) attributes {dimension_semantics = [#tpu.dimension_semantics<parallel>], iteration_bounds = array<i64: 1>, scalar_prefetch = 0 : i64, scratch_operands = 1 : i64, tpu.core_type = #tpu.core_type<tc>, window_params = [{transform_indices = @transform_0, window_bounds = array<i64: 256, 8, 27>}, {pipeline_mode = #tpu.pipeline_mode<synchronous>, transform_indices = @transform_1, window_bounds = array<i64: 27, 16>}, {pipeline_mode = #tpu.pipeline_mode<synchronous>, transform_indices = @transform_2, window_bounds = array<i64: 1, 16>}, {pipeline_mode = #tpu.pipeline_mode<synchronous>, transform_indices = @transform_3, window_bounds = array<i64: 3, 3, 16, 32>}, {pipeline_mode = #tpu.pipeline_mode<synchronous>, transform_indices = @transform_4, window_bounds = array<i64: 1, 32>}, {pipeline_mode = #tpu.pipeline_mode<synchronous>, transform_indices = @transform_5, window_bounds = array<i64: 16, 32, 128>}, {pipeline_mode = #tpu.pipeline_mode<synchronous>, transform_indices = @transform_6, window_bounds = array<i64: 1, 128>}, {pipeline_mode = #tpu.pipeline_mode<synchronous>, transform_indices = @transform_7, window_bounds = array<i64: 128, 128>}, {pipeline_mode = #tpu.pipeline_mode<synchronous>, transform_indices = @transform_8, window_bounds = array<i64: 1, 128>}, {pipeline_mode = #tpu.pipeline_mode<synchronous>, transform_indices = @transform_9, window_bounds = array<i64: 128, 1>}, {pipeline_mode = #tpu.pipeline_mode<synchronous>, transform_indices = @transform_10, window_bounds = array<i64: 1, 1>}, {transform_indices = @transform_11, window_bounds = array<i64: 8, 1>}]} {
    %c0 = arith.constant 0 : index
    %c0_0 = arith.constant 0 : index
    %c0_1 = arith.constant 0 : index
    %0 = vector.load %arg1[%c0, %c0_0, %c0_1] : memref<256x8x27xf32, #tpu.memory_space<vmem>>, vector<256x8x27xf32>
    %1 = vector.shape_cast %0 : vector<256x8x27xf32> to vector<2048x27xf32>
    %c0_2 = arith.constant 0 : index
    %c0_3 = arith.constant 0 : index
    %2 = vector.load %arg2[%c0_2, %c0_3] : memref<27x16xf32, #tpu.memory_space<vmem>>, vector<27x16xf32>
    %cst = arith.constant dense<0.000000e+00> : vector<2048x16xf32>
    %3 = tpu.matmul %1, %2, %cst {dimension_numbers = #tpu.dot_dimension_numbers<[1], [0], [0], [1], [0, 0, 1, 1], [], []>} : vector<2048x27xf32>, vector<27x16xf32>, vector<2048x16xf32> -> vector<2048x16xf32>
    %c0_4 = arith.constant 0 : index
    %c0_5 = arith.constant 0 : index
    %4 = vector.load %arg3[%c0_4, %c0_5] : memref<1x16xf32, #tpu.memory_space<vmem>>, vector<1x16xf32>
    %5 = vector.broadcast %4 : vector<1x16xf32> to vector<2048x16xf32>
    %6 = arith.addf %3, %5 : vector<2048x16xf32>
    %cst_6 = arith.constant 0.000000e+00 : f32
    %7 = vector.broadcast %cst_6 : f32 to vector<2048x16xf32>
    %8 = arith.maximumf %6, %7 : vector<2048x16xf32>
    %9 = vector.shape_cast %8 : vector<2048x16xf32> to vector<16x16x8x16xf32>
    %10 = vector.shape_cast %9 : vector<16x16x8x16xf32> to vector<8x2x16x8x16xf32>
    %cst_7 = arith.constant dense<0xFF800000> : vector<8x16x8x16xf32>
    %11 = vector.multi_reduction <maximumf>, %10, %cst_7 [1] : vector<8x2x16x8x16xf32> to vector<8x16x8x16xf32>
    %12 = vector.shape_cast %11 : vector<8x16x8x16xf32> to vector<8x8x2x8x16xf32>
    %cst_8 = arith.constant dense<0xFF800000> : vector<8x8x8x16xf32>
    %13 = vector.multi_reduction <maximumf>, %12, %cst_8 [2] : vector<8x8x2x8x16xf32> to vector<8x8x8x16xf32>
    %cst_9 = arith.constant 0.000000e+00 : f32
    %14 = vector.broadcast %cst_9 : f32 to vector<1x10x8x16xf32>
    %cst_10 = arith.constant 0.000000e+00 : f32
    %15 = vector.broadcast %cst_10 : f32 to vector<8x1x8x16xf32>
    %c0_11 = arith.constant 0 : index
    %c0_12 = arith.constant 0 : index
    %c0_13 = arith.constant 0 : index
    %c0_14 = arith.constant 0 : index
    %16 = vector.load %arg13[%c0_11, %c0_12, %c0_13, %c0_14] : memref<10x10x8x16xf32, #tpu.memory_space<vmem>>, vector<1x10x8x16xf32>
    tpu.vector_store %arg13[%c0_11, %c0_12, %c0_13, %c0_14], %14 {strides = array<i32>} : memref<10x10x8x16xf32, #tpu.memory_space<vmem>>, vector<1x10x8x16xf32>,
    %c9 = arith.constant 9 : index
    %c0_15 = arith.constant 0 : index
    %c0_16 = arith.constant 0 : index
    %c0_17 = arith.constant 0 : index
    %17 = vector.load %arg13[%c9, %c0_15, %c0_16, %c0_17] : memref<10x10x8x16xf32, #tpu.memory_space<vmem>>, vector<1x10x8x16xf32>
    tpu.vector_store %arg13[%c9, %c0_15, %c0_16, %c0_17], %14 {strides = array<i32>} : memref<10x10x8x16xf32, #tpu.memory_space<vmem>>, vector<1x10x8x16xf32>,
    %c1 = arith.constant 1 : index
    %c0_18 = arith.constant 0 : index
    %c0_19 = arith.constant 0 : index
    %c0_20 = arith.constant 0 : index
    %18 = vector.load %arg13[%c1, %c0_18, %c0_19, %c0_20] : memref<10x10x8x16xf32, #tpu.memory_space<vmem>>, vector<8x1x8x16xf32>
    tpu.vector_store %arg13[%c1, %c0_18, %c0_19, %c0_20], %15 {strides = array<i32>} : memref<10x10x8x16xf32, #tpu.memory_space<vmem>>, vector<8x1x8x16xf32>,
    %c1_21 = arith.constant 1 : index
    %c9_22 = arith.constant 9 : index
    %c0_23 = arith.constant 0 : index
    %c0_24 = arith.constant 0 : index
    %19 = vector.load %arg13[%c1_21, %c9_22, %c0_23, %c0_24] : memref<10x10x8x16xf32, #tpu.memory_space<vmem>>, vector<8x1x8x16xf32>
    tpu.vector_store %arg13[%c1_21, %c9_22, %c0_23, %c0_24], %15 {strides = array<i32>} : memref<10x10x8x16xf32, #tpu.memory_space<vmem>>, vector<8x1x8x16xf32>,
    %c1_25 = arith.constant 1 : index
    %c1_26 = arith.constant 1 : index
    %c0_27 = arith.constant 0 : index
    %c0_28 = arith.constant 0 : index
    %20 = vector.load %arg13[%c1_25, %c1_26, %c0_27, %c0_28] : memref<10x10x8x16xf32, #tpu.memory_space<vmem>>, vector<8x8x8x16xf32>
    tpu.vector_store %arg13[%c1_25, %c1_26, %c0_27, %c0_28], %13 {strides = array<i32>} : memref<10x10x8x16xf32, #tpu.memory_space<vmem>>, vector<8x8x8x16xf32>,
    %c0_29 = arith.constant 0 : index
    %c0_30 = arith.constant 0 : index
    %c0_31 = arith.constant 0 : index
    %c0_32 = arith.constant 0 : index
    %21 = vector.load %arg13[%c0_29, %c0_30, %c0_31, %c0_32] : memref<10x10x8x16xf32, #tpu.memory_space<vmem>>, vector<8x8x8x16xf32>
    %22 = vector.shape_cast %21 : vector<8x8x8x16xf32> to vector<512x16xf32>
    %c0_33 = arith.constant 0 : index
    %c0_34 = arith.constant 0 : index
    %c0_35 = arith.constant 0 : index
    %c0_36 = arith.constant 0 : index
    %23 = vector.load %arg4[%c0_33, %c0_34, %c0_35, %c0_36] : memref<3x3x16x32xf32, #tpu.memory_space<vmem>>, vector<1x1x16x32xf32>
    %24 = vector.shape_cast %23 : vector<1x1x16x32xf32> to vector<16x32xf32>
    %cst_37 = arith.constant dense<0.000000e+00> : vector<512x32xf32>
    %25 = tpu.matmul %22, %24, %cst_37 {dimension_numbers = #tpu.dot_dimension_numbers<[1], [0], [0], [1], [0, 0, 1, 1], [], []>} : vector<512x16xf32>, vector<16x32xf32>, vector<512x32xf32> -> vector<512x32xf32>
    %c0_38 = arith.constant 0 : index
    %c1_39 = arith.constant 1 : index
    %c0_40 = arith.constant 0 : index
    %c0_41 = arith.constant 0 : index
    %26 = vector.load %arg13[%c0_38, %c1_39, %c0_40, %c0_41] : memref<10x10x8x16xf32, #tpu.memory_space<vmem>>, vector<8x8x8x16xf32>
    %27 = vector.shape_cast %26 : vector<8x8x8x16xf32> to vector<512x16xf32>
    %c0_42 = arith.constant 0 : index
    %c1_43 = arith.constant 1 : index
    %c0_44 = arith.constant 0 : index
    %c0_45 = arith.constant 0 : index
    %28 = vector.load %arg4[%c0_42, %c1_43, %c0_44, %c0_45] : memref<3x3x16x32xf32, #tpu.memory_space<vmem>>, vector<1x1x16x32xf32>
    %29 = vector.shape_cast %28 : vector<1x1x16x32xf32> to vector<16x32xf32>
    %cst_46 = arith.constant dense<0.000000e+00> : vector<512x32xf32>
    %30 = tpu.matmul %27, %29, %cst_46 {dimension_numbers = #tpu.dot_dimension_numbers<[1], [0], [0], [1], [0, 0, 1, 1], [], []>} : vector<512x16xf32>, vector<16x32xf32>, vector<512x32xf32> -> vector<512x32xf32>
    %c0_47 = arith.constant 0 : index
    %c2 = arith.constant 2 : index
    %c0_48 = arith.constant 0 : index
    %c0_49 = arith.constant 0 : index
    %31 = vector.load %arg13[%c0_47, %c2, %c0_48, %c0_49] : memref<10x10x8x16xf32, #tpu.memory_space<vmem>>, vector<8x8x8x16xf32>
    %32 = vector.shape_cast %31 : vector<8x8x8x16xf32> to vector<512x16xf32>
    %c0_50 = arith.constant 0 : index
    %c2_51 = arith.constant 2 : index
    %c0_52 = arith.constant 0 : index
    %c0_53 = arith.constant 0 : index
    %33 = vector.load %arg4[%c0_50, %c2_51, %c0_52, %c0_53] : memref<3x3x16x32xf32, #tpu.memory_space<vmem>>, vector<1x1x16x32xf32>
    %34 = vector.shape_cast %33 : vector<1x1x16x32xf32> to vector<16x32xf32>
    %cst_54 = arith.constant dense<0.000000e+00> : vector<512x32xf32>
    %35 = tpu.matmul %32, %34, %cst_54 {dimension_numbers = #tpu.dot_dimension_numbers<[1], [0], [0], [1], [0, 0, 1, 1], [], []>} : vector<512x16xf32>, vector<16x32xf32>, vector<512x32xf32> -> vector<512x32xf32>
    %c1_55 = arith.constant 1 : index
    %c0_56 = arith.constant 0 : index
    %c0_57 = arith.constant 0 : index
    %c0_58 = arith.constant 0 : index
    %36 = vector.load %arg13[%c1_55, %c0_56, %c0_57, %c0_58] : memref<10x10x8x16xf32, #tpu.memory_space<vmem>>, vector<8x8x8x16xf32>
    %37 = vector.shape_cast %36 : vector<8x8x8x16xf32> to vector<512x16xf32>
    %c1_59 = arith.constant 1 : index
    %c0_60 = arith.constant 0 : index
    %c0_61 = arith.constant 0 : index
    %c0_62 = arith.constant 0 : index
    %38 = vector.load %arg4[%c1_59, %c0_60, %c0_61, %c0_62] : memref<3x3x16x32xf32, #tpu.memory_space<vmem>>, vector<1x1x16x32xf32>
    %39 = vector.shape_cast %38 : vector<1x1x16x32xf32> to vector<16x32xf32>
    %cst_63 = arith.constant dense<0.000000e+00> : vector<512x32xf32>
    %40 = tpu.matmul %37, %39, %cst_63 {dimension_numbers = #tpu.dot_dimension_numbers<[1], [0], [0], [1], [0, 0, 1, 1], [], []>} : vector<512x16xf32>, vector<16x32xf32>, vector<512x32xf32> -> vector<512x32xf32>
    %41 = arith.addf %25, %40 : vector<512x32xf32>
    %c1_64 = arith.constant 1 : index
    %c1_65 = arith.constant 1 : index
    %c0_66 = arith.constant 0 : index
    %c0_67 = arith.constant 0 : index
    %42 = vector.load %arg13[%c1_64, %c1_65, %c0_66, %c0_67] : memref<10x10x8x16xf32, #tpu.memory_space<vmem>>, vector<8x8x8x16xf32>
    %43 = vector.shape_cast %42 : vector<8x8x8x16xf32> to vector<512x16xf32>
    %c1_68 = arith.constant 1 : index
    %c1_69 = arith.constant 1 : index
    %c0_70 = arith.constant 0 : index
    %c0_71 = arith.constant 0 : index
    %44 = vector.load %arg4[%c1_68, %c1_69, %c0_70, %c0_71] : memref<3x3x16x32xf32, #tpu.memory_space<vmem>>, vector<1x1x16x32xf32>
    %45 = vector.shape_cast %44 : vector<1x1x16x32xf32> to vector<16x32xf32>
    %cst_72 = arith.constant dense<0.000000e+00> : vector<512x32xf32>
    %46 = tpu.matmul %43, %45, %cst_72 {dimension_numbers = #tpu.dot_dimension_numbers<[1], [0], [0], [1], [0, 0, 1, 1], [], []>} : vector<512x16xf32>, vector<16x32xf32>, vector<512x32xf32> -> vector<512x32xf32>
    %47 = arith.addf %30, %46 : vector<512x32xf32>
    %c1_73 = arith.constant 1 : index
    %c2_74 = arith.constant 2 : index
    %c0_75 = arith.constant 0 : index
    %c0_76 = arith.constant 0 : index
    %48 = vector.load %arg13[%c1_73, %c2_74, %c0_75, %c0_76] : memref<10x10x8x16xf32, #tpu.memory_space<vmem>>, vector<8x8x8x16xf32>
    %49 = vector.shape_cast %48 : vector<8x8x8x16xf32> to vector<512x16xf32>
    %c1_77 = arith.constant 1 : index
    %c2_78 = arith.constant 2 : index
    %c0_79 = arith.constant 0 : index
    %c0_80 = arith.constant 0 : index
    %50 = vector.load %arg4[%c1_77, %c2_78, %c0_79, %c0_80] : memref<3x3x16x32xf32, #tpu.memory_space<vmem>>, vector<1x1x16x32xf32>
    %51 = vector.shape_cast %50 : vector<1x1x16x32xf32> to vector<16x32xf32>
    %cst_81 = arith.constant dense<0.000000e+00> : vector<512x32xf32>
    %52 = tpu.matmul %49, %51, %cst_81 {dimension_numbers = #tpu.dot_dimension_numbers<[1], [0], [0], [1], [0, 0, 1, 1], [], []>} : vector<512x16xf32>, vector<16x32xf32>, vector<512x32xf32> -> vector<512x32xf32>
    %53 = arith.addf %35, %52 : vector<512x32xf32>
    %c2_82 = arith.constant 2 : index
    %c0_83 = arith.constant 0 : index
    %c0_84 = arith.constant 0 : index
    %c0_85 = arith.constant 0 : index
    %54 = vector.load %arg13[%c2_82, %c0_83, %c0_84, %c0_85] : memref<10x10x8x16xf32, #tpu.memory_space<vmem>>, vector<8x8x8x16xf32>
    %55 = vector.shape_cast %54 : vector<8x8x8x16xf32> to vector<512x16xf32>
    %c2_86 = arith.constant 2 : index
    %c0_87 = arith.constant 0 : index
    %c0_88 = arith.constant 0 : index
    %c0_89 = arith.constant 0 : index
    %56 = vector.load %arg4[%c2_86, %c0_87, %c0_88, %c0_89] : memref<3x3x16x32xf32, #tpu.memory_space<vmem>>, vector<1x1x16x32xf32>
    %57 = vector.shape_cast %56 : vector<1x1x16x32xf32> to vector<16x32xf32>
    %cst_90 = arith.constant dense<0.000000e+00> : vector<512x32xf32>
    %58 = tpu.matmul %55, %57, %cst_90 {dimension_numbers = #tpu.dot_dimension_numbers<[1], [0], [0], [1], [0, 0, 1, 1], [], []>} : vector<512x16xf32>, vector<16x32xf32>, vector<512x32xf32> -> vector<512x32xf32>
    %59 = arith.addf %41, %58 : vector<512x32xf32>
    %c2_91 = arith.constant 2 : index
    %c1_92 = arith.constant 1 : index
    %c0_93 = arith.constant 0 : index
    %c0_94 = arith.constant 0 : index
    %60 = vector.load %arg13[%c2_91, %c1_92, %c0_93, %c0_94] : memref<10x10x8x16xf32, #tpu.memory_space<vmem>>, vector<8x8x8x16xf32>
    %61 = vector.shape_cast %60 : vector<8x8x8x16xf32> to vector<512x16xf32>
    %c2_95 = arith.constant 2 : index
    %c1_96 = arith.constant 1 : index
    %c0_97 = arith.constant 0 : index
    %c0_98 = arith.constant 0 : index
    %62 = vector.load %arg4[%c2_95, %c1_96, %c0_97, %c0_98] : memref<3x3x16x32xf32, #tpu.memory_space<vmem>>, vector<1x1x16x32xf32>
    %63 = vector.shape_cast %62 : vector<1x1x16x32xf32> to vector<16x32xf32>
    %cst_99 = arith.constant dense<0.000000e+00> : vector<512x32xf32>
    %64 = tpu.matmul %61, %63, %cst_99 {dimension_numbers = #tpu.dot_dimension_numbers<[1], [0], [0], [1], [0, 0, 1, 1], [], []>} : vector<512x16xf32>, vector<16x32xf32>, vector<512x32xf32> -> vector<512x32xf32>
    %65 = arith.addf %47, %64 : vector<512x32xf32>
    %c2_100 = arith.constant 2 : index
    %c2_101 = arith.constant 2 : index
    %c0_102 = arith.constant 0 : index
    %c0_103 = arith.constant 0 : index
    %66 = vector.load %arg13[%c2_100, %c2_101, %c0_102, %c0_103] : memref<10x10x8x16xf32, #tpu.memory_space<vmem>>, vector<8x8x8x16xf32>
    %67 = vector.shape_cast %66 : vector<8x8x8x16xf32> to vector<512x16xf32>
    %c2_104 = arith.constant 2 : index
    %c2_105 = arith.constant 2 : index
    %c0_106 = arith.constant 0 : index
    %c0_107 = arith.constant 0 : index
    %68 = vector.load %arg4[%c2_104, %c2_105, %c0_106, %c0_107] : memref<3x3x16x32xf32, #tpu.memory_space<vmem>>, vector<1x1x16x32xf32>
    %69 = vector.shape_cast %68 : vector<1x1x16x32xf32> to vector<16x32xf32>
    %cst_108 = arith.constant dense<0.000000e+00> : vector<512x32xf32>
    %70 = tpu.matmul %67, %69, %cst_108 {dimension_numbers = #tpu.dot_dimension_numbers<[1], [0], [0], [1], [0, 0, 1, 1], [], []>} : vector<512x16xf32>, vector<16x32xf32>, vector<512x32xf32> -> vector<512x32xf32>
    %71 = arith.addf %53, %70 : vector<512x32xf32>
    %72 = arith.addf %59, %65 : vector<512x32xf32>
    %73 = arith.addf %72, %71 : vector<512x32xf32>
    %c0_109 = arith.constant 0 : index
    %c0_110 = arith.constant 0 : index
    %74 = vector.load %arg5[%c0_109, %c0_110] : memref<1x32xf32, #tpu.memory_space<vmem>>, vector<1x32xf32>
    %75 = vector.broadcast %74 : vector<1x32xf32> to vector<512x32xf32>
    %76 = arith.addf %73, %75 : vector<512x32xf32>
    %cst_111 = arith.constant 0.000000e+00 : f32
    %77 = vector.broadcast %cst_111 : f32 to vector<512x32xf32>
    %78 = arith.maximumf %76, %77 : vector<512x32xf32>
    %79 = vector.shape_cast %78 : vector<512x32xf32> to vector<8x8x8x32xf32>
    %80 = vector.shape_cast %79 : vector<8x8x8x32xf32> to vector<4x2x8x8x32xf32>
    %cst_112 = arith.constant dense<0xFF800000> : vector<4x8x8x32xf32>
    %81 = vector.multi_reduction <maximumf>, %80, %cst_112 [1] : vector<4x2x8x8x32xf32> to vector<4x8x8x32xf32>
    %82 = vector.shape_cast %81 : vector<4x8x8x32xf32> to vector<4x4x2x8x32xf32>
    %cst_113 = arith.constant dense<0xFF800000> : vector<4x4x8x32xf32>
    %83 = vector.multi_reduction <maximumf>, %82, %cst_113 [2] : vector<4x4x2x8x32xf32> to vector<4x4x8x32xf32>
    %84 = vector.shape_cast %83 : vector<4x4x8x32xf32> to vector<16x8x32xf32>
    %85 = vector.extract_strided_slice %84 {offsets = [0, 0, 0], sizes = [1, 8, 32], strides = [1, 1, 1]} : vector<16x8x32xf32> to vector<1x8x32xf32>
    %86 = vector.shape_cast %85 : vector<1x8x32xf32> to vector<8x32xf32>
    %c0_114 = arith.constant 0 : index
    %c0_115 = arith.constant 0 : index
    %c0_116 = arith.constant 0 : index
    %87 = vector.load %arg6[%c0_114, %c0_115, %c0_116] : memref<16x32x128xf32, #tpu.memory_space<vmem>>, vector<1x32x128xf32>
    %88 = vector.shape_cast %87 : vector<1x32x128xf32> to vector<32x128xf32>
    %cst_117 = arith.constant dense<0.000000e+00> : vector<8x128xf32>
    %89 = tpu.matmul %86, %88, %cst_117 {dimension_numbers = #tpu.dot_dimension_numbers<[1], [0], [0], [1], [0, 0, 1, 1], [], []>} : vector<8x32xf32>, vector<32x128xf32>, vector<8x128xf32> -> vector<8x128xf32>
    %90 = vector.extract_strided_slice %84 {offsets = [1, 0, 0], sizes = [1, 8, 32], strides = [1, 1, 1]} : vector<16x8x32xf32> to vector<1x8x32xf32>
    %91 = vector.shape_cast %90 : vector<1x8x32xf32> to vector<8x32xf32>
    %c1_118 = arith.constant 1 : index
    %c0_119 = arith.constant 0 : index
    %c0_120 = arith.constant 0 : index
    %92 = vector.load %arg6[%c1_118, %c0_119, %c0_120] : memref<16x32x128xf32, #tpu.memory_space<vmem>>, vector<1x32x128xf32>
    %93 = vector.shape_cast %92 : vector<1x32x128xf32> to vector<32x128xf32>
    %cst_121 = arith.constant dense<0.000000e+00> : vector<8x128xf32>
    %94 = tpu.matmul %91, %93, %cst_121 {dimension_numbers = #tpu.dot_dimension_numbers<[1], [0], [0], [1], [0, 0, 1, 1], [], []>} : vector<8x32xf32>, vector<32x128xf32>, vector<8x128xf32> -> vector<8x128xf32>
    %95 = vector.extract_strided_slice %84 {offsets = [2, 0, 0], sizes = [1, 8, 32], strides = [1, 1, 1]} : vector<16x8x32xf32> to vector<1x8x32xf32>
    %96 = vector.shape_cast %95 : vector<1x8x32xf32> to vector<8x32xf32>
    %c2_122 = arith.constant 2 : index
    %c0_123 = arith.constant 0 : index
    %c0_124 = arith.constant 0 : index
    %97 = vector.load %arg6[%c2_122, %c0_123, %c0_124] : memref<16x32x128xf32, #tpu.memory_space<vmem>>, vector<1x32x128xf32>
    %98 = vector.shape_cast %97 : vector<1x32x128xf32> to vector<32x128xf32>
    %cst_125 = arith.constant dense<0.000000e+00> : vector<8x128xf32>
    %99 = tpu.matmul %96, %98, %cst_125 {dimension_numbers = #tpu.dot_dimension_numbers<[1], [0], [0], [1], [0, 0, 1, 1], [], []>} : vector<8x32xf32>, vector<32x128xf32>, vector<8x128xf32> -> vector<8x128xf32>
    %100 = vector.extract_strided_slice %84 {offsets = [3, 0, 0], sizes = [1, 8, 32], strides = [1, 1, 1]} : vector<16x8x32xf32> to vector<1x8x32xf32>
    %101 = vector.shape_cast %100 : vector<1x8x32xf32> to vector<8x32xf32>
    %c3 = arith.constant 3 : index
    %c0_126 = arith.constant 0 : index
    %c0_127 = arith.constant 0 : index
    %102 = vector.load %arg6[%c3, %c0_126, %c0_127] : memref<16x32x128xf32, #tpu.memory_space<vmem>>, vector<1x32x128xf32>
    %103 = vector.shape_cast %102 : vector<1x32x128xf32> to vector<32x128xf32>
    %cst_128 = arith.constant dense<0.000000e+00> : vector<8x128xf32>
    %104 = tpu.matmul %101, %103, %cst_128 {dimension_numbers = #tpu.dot_dimension_numbers<[1], [0], [0], [1], [0, 0, 1, 1], [], []>} : vector<8x32xf32>, vector<32x128xf32>, vector<8x128xf32> -> vector<8x128xf32>
    %105 = vector.extract_strided_slice %84 {offsets = [4, 0, 0], sizes = [1, 8, 32], strides = [1, 1, 1]} : vector<16x8x32xf32> to vector<1x8x32xf32>
    %106 = vector.shape_cast %105 : vector<1x8x32xf32> to vector<8x32xf32>
    %c4 = arith.constant 4 : index
    %c0_129 = arith.constant 0 : index
    %c0_130 = arith.constant 0 : index
    %107 = vector.load %arg6[%c4, %c0_129, %c0_130] : memref<16x32x128xf32, #tpu.memory_space<vmem>>, vector<1x32x128xf32>
    %108 = vector.shape_cast %107 : vector<1x32x128xf32> to vector<32x128xf32>
    %cst_131 = arith.constant dense<0.000000e+00> : vector<8x128xf32>
    %109 = tpu.matmul %106, %108, %cst_131 {dimension_numbers = #tpu.dot_dimension_numbers<[1], [0], [0], [1], [0, 0, 1, 1], [], []>} : vector<8x32xf32>, vector<32x128xf32>, vector<8x128xf32> -> vector<8x128xf32>
    %110 = arith.addf %89, %109 : vector<8x128xf32>
    %111 = vector.extract_strided_slice %84 {offsets = [5, 0, 0], sizes = [1, 8, 32], strides = [1, 1, 1]} : vector<16x8x32xf32> to vector<1x8x32xf32>
    %112 = vector.shape_cast %111 : vector<1x8x32xf32> to vector<8x32xf32>
    %c5 = arith.constant 5 : index
    %c0_132 = arith.constant 0 : index
    %c0_133 = arith.constant 0 : index
    %113 = vector.load %arg6[%c5, %c0_132, %c0_133] : memref<16x32x128xf32, #tpu.memory_space<vmem>>, vector<1x32x128xf32>
    %114 = vector.shape_cast %113 : vector<1x32x128xf32> to vector<32x128xf32>
    %cst_134 = arith.constant dense<0.000000e+00> : vector<8x128xf32>
    %115 = tpu.matmul %112, %114, %cst_134 {dimension_numbers = #tpu.dot_dimension_numbers<[1], [0], [0], [1], [0, 0, 1, 1], [], []>} : vector<8x32xf32>, vector<32x128xf32>, vector<8x128xf32> -> vector<8x128xf32>
    %116 = arith.addf %94, %115 : vector<8x128xf32>
    %117 = vector.extract_strided_slice %84 {offsets = [6, 0, 0], sizes = [1, 8, 32], strides = [1, 1, 1]} : vector<16x8x32xf32> to vector<1x8x32xf32>
    %118 = vector.shape_cast %117 : vector<1x8x32xf32> to vector<8x32xf32>
    %c6 = arith.constant 6 : index
    %c0_135 = arith.constant 0 : index
    %c0_136 = arith.constant 0 : index
    %119 = vector.load %arg6[%c6, %c0_135, %c0_136] : memref<16x32x128xf32, #tpu.memory_space<vmem>>, vector<1x32x128xf32>
    %120 = vector.shape_cast %119 : vector<1x32x128xf32> to vector<32x128xf32>
    %cst_137 = arith.constant dense<0.000000e+00> : vector<8x128xf32>
    %121 = tpu.matmul %118, %120, %cst_137 {dimension_numbers = #tpu.dot_dimension_numbers<[1], [0], [0], [1], [0, 0, 1, 1], [], []>} : vector<8x32xf32>, vector<32x128xf32>, vector<8x128xf32> -> vector<8x128xf32>
    %122 = arith.addf %99, %121 : vector<8x128xf32>
    %123 = vector.extract_strided_slice %84 {offsets = [7, 0, 0], sizes = [1, 8, 32], strides = [1, 1, 1]} : vector<16x8x32xf32> to vector<1x8x32xf32>
    %124 = vector.shape_cast %123 : vector<1x8x32xf32> to vector<8x32xf32>
    %c7 = arith.constant 7 : index
    %c0_138 = arith.constant 0 : index
    %c0_139 = arith.constant 0 : index
    %125 = vector.load %arg6[%c7, %c0_138, %c0_139] : memref<16x32x128xf32, #tpu.memory_space<vmem>>, vector<1x32x128xf32>
    %126 = vector.shape_cast %125 : vector<1x32x128xf32> to vector<32x128xf32>
    %cst_140 = arith.constant dense<0.000000e+00> : vector<8x128xf32>
    %127 = tpu.matmul %124, %126, %cst_140 {dimension_numbers = #tpu.dot_dimension_numbers<[1], [0], [0], [1], [0, 0, 1, 1], [], []>} : vector<8x32xf32>, vector<32x128xf32>, vector<8x128xf32> -> vector<8x128xf32>
    %128 = arith.addf %104, %127 : vector<8x128xf32>
    %129 = vector.extract_strided_slice %84 {offsets = [8, 0, 0], sizes = [1, 8, 32], strides = [1, 1, 1]} : vector<16x8x32xf32> to vector<1x8x32xf32>
    %130 = vector.shape_cast %129 : vector<1x8x32xf32> to vector<8x32xf32>
    %c8 = arith.constant 8 : index
    %c0_141 = arith.constant 0 : index
    %c0_142 = arith.constant 0 : index
    %131 = vector.load %arg6[%c8, %c0_141, %c0_142] : memref<16x32x128xf32, #tpu.memory_space<vmem>>, vector<1x32x128xf32>
    %132 = vector.shape_cast %131 : vector<1x32x128xf32> to vector<32x128xf32>
    %cst_143 = arith.constant dense<0.000000e+00> : vector<8x128xf32>
    %133 = tpu.matmul %130, %132, %cst_143 {dimension_numbers = #tpu.dot_dimension_numbers<[1], [0], [0], [1], [0, 0, 1, 1], [], []>} : vector<8x32xf32>, vector<32x128xf32>, vector<8x128xf32> -> vector<8x128xf32>
    %134 = arith.addf %110, %133 : vector<8x128xf32>
    %135 = vector.extract_strided_slice %84 {offsets = [9, 0, 0], sizes = [1, 8, 32], strides = [1, 1, 1]} : vector<16x8x32xf32> to vector<1x8x32xf32>
    %136 = vector.shape_cast %135 : vector<1x8x32xf32> to vector<8x32xf32>
    %c9_144 = arith.constant 9 : index
    %c0_145 = arith.constant 0 : index
    %c0_146 = arith.constant 0 : index
    %137 = vector.load %arg6[%c9_144, %c0_145, %c0_146] : memref<16x32x128xf32, #tpu.memory_space<vmem>>, vector<1x32x128xf32>
    %138 = vector.shape_cast %137 : vector<1x32x128xf32> to vector<32x128xf32>
    %cst_147 = arith.constant dense<0.000000e+00> : vector<8x128xf32>
    %139 = tpu.matmul %136, %138, %cst_147 {dimension_numbers = #tpu.dot_dimension_numbers<[1], [0], [0], [1], [0, 0, 1, 1], [], []>} : vector<8x32xf32>, vector<32x128xf32>, vector<8x128xf32> -> vector<8x128xf32>
    %140 = arith.addf %116, %139 : vector<8x128xf32>
    %141 = vector.extract_strided_slice %84 {offsets = [10, 0, 0], sizes = [1, 8, 32], strides = [1, 1, 1]} : vector<16x8x32xf32> to vector<1x8x32xf32>
    %142 = vector.shape_cast %141 : vector<1x8x32xf32> to vector<8x32xf32>
    %c10 = arith.constant 10 : index
    %c0_148 = arith.constant 0 : index
    %c0_149 = arith.constant 0 : index
    %143 = vector.load %arg6[%c10, %c0_148, %c0_149] : memref<16x32x128xf32, #tpu.memory_space<vmem>>, vector<1x32x128xf32>
    %144 = vector.shape_cast %143 : vector<1x32x128xf32> to vector<32x128xf32>
    %cst_150 = arith.constant dense<0.000000e+00> : vector<8x128xf32>
    %145 = tpu.matmul %142, %144, %cst_150 {dimension_numbers = #tpu.dot_dimension_numbers<[1], [0], [0], [1], [0, 0, 1, 1], [], []>} : vector<8x32xf32>, vector<32x128xf32>, vector<8x128xf32> -> vector<8x128xf32>
    %146 = arith.addf %122, %145 : vector<8x128xf32>
    %147 = vector.extract_strided_slice %84 {offsets = [11, 0, 0], sizes = [1, 8, 32], strides = [1, 1, 1]} : vector<16x8x32xf32> to vector<1x8x32xf32>
    %148 = vector.shape_cast %147 : vector<1x8x32xf32> to vector<8x32xf32>
    %c11 = arith.constant 11 : index
    %c0_151 = arith.constant 0 : index
    %c0_152 = arith.constant 0 : index
    %149 = vector.load %arg6[%c11, %c0_151, %c0_152] : memref<16x32x128xf32, #tpu.memory_space<vmem>>, vector<1x32x128xf32>
    %150 = vector.shape_cast %149 : vector<1x32x128xf32> to vector<32x128xf32>
    %cst_153 = arith.constant dense<0.000000e+00> : vector<8x128xf32>
    %151 = tpu.matmul %148, %150, %cst_153 {dimension_numbers = #tpu.dot_dimension_numbers<[1], [0], [0], [1], [0, 0, 1, 1], [], []>} : vector<8x32xf32>, vector<32x128xf32>, vector<8x128xf32> -> vector<8x128xf32>
    %152 = arith.addf %128, %151 : vector<8x128xf32>
    %153 = vector.extract_strided_slice %84 {offsets = [12, 0, 0], sizes = [1, 8, 32], strides = [1, 1, 1]} : vector<16x8x32xf32> to vector<1x8x32xf32>
    %154 = vector.shape_cast %153 : vector<1x8x32xf32> to vector<8x32xf32>
    %c12 = arith.constant 12 : index
    %c0_154 = arith.constant 0 : index
    %c0_155 = arith.constant 0 : index
    %155 = vector.load %arg6[%c12, %c0_154, %c0_155] : memref<16x32x128xf32, #tpu.memory_space<vmem>>, vector<1x32x128xf32>
    %156 = vector.shape_cast %155 : vector<1x32x128xf32> to vector<32x128xf32>
    %cst_156 = arith.constant dense<0.000000e+00> : vector<8x128xf32>
    %157 = tpu.matmul %154, %156, %cst_156 {dimension_numbers = #tpu.dot_dimension_numbers<[1], [0], [0], [1], [0, 0, 1, 1], [], []>} : vector<8x32xf32>, vector<32x128xf32>, vector<8x128xf32> -> vector<8x128xf32>
    %158 = arith.addf %134, %157 : vector<8x128xf32>
    %159 = vector.extract_strided_slice %84 {offsets = [13, 0, 0], sizes = [1, 8, 32], strides = [1, 1, 1]} : vector<16x8x32xf32> to vector<1x8x32xf32>
    %160 = vector.shape_cast %159 : vector<1x8x32xf32> to vector<8x32xf32>
    %c13 = arith.constant 13 : index
    %c0_157 = arith.constant 0 : index
    %c0_158 = arith.constant 0 : index
    %161 = vector.load %arg6[%c13, %c0_157, %c0_158] : memref<16x32x128xf32, #tpu.memory_space<vmem>>, vector<1x32x128xf32>
    %162 = vector.shape_cast %161 : vector<1x32x128xf32> to vector<32x128xf32>
    %cst_159 = arith.constant dense<0.000000e+00> : vector<8x128xf32>
    %163 = tpu.matmul %160, %162, %cst_159 {dimension_numbers = #tpu.dot_dimension_numbers<[1], [0], [0], [1], [0, 0, 1, 1], [], []>} : vector<8x32xf32>, vector<32x128xf32>, vector<8x128xf32> -> vector<8x128xf32>
    %164 = arith.addf %140, %163 : vector<8x128xf32>
    %165 = vector.extract_strided_slice %84 {offsets = [14, 0, 0], sizes = [1, 8, 32], strides = [1, 1, 1]} : vector<16x8x32xf32> to vector<1x8x32xf32>
    %166 = vector.shape_cast %165 : vector<1x8x32xf32> to vector<8x32xf32>
    %c14 = arith.constant 14 : index
    %c0_160 = arith.constant 0 : index
    %c0_161 = arith.constant 0 : index
    %167 = vector.load %arg6[%c14, %c0_160, %c0_161] : memref<16x32x128xf32, #tpu.memory_space<vmem>>, vector<1x32x128xf32>
    %168 = vector.shape_cast %167 : vector<1x32x128xf32> to vector<32x128xf32>
    %cst_162 = arith.constant dense<0.000000e+00> : vector<8x128xf32>
    %169 = tpu.matmul %166, %168, %cst_162 {dimension_numbers = #tpu.dot_dimension_numbers<[1], [0], [0], [1], [0, 0, 1, 1], [], []>} : vector<8x32xf32>, vector<32x128xf32>, vector<8x128xf32> -> vector<8x128xf32>
    %170 = arith.addf %146, %169 : vector<8x128xf32>
    %171 = vector.extract_strided_slice %84 {offsets = [15, 0, 0], sizes = [1, 8, 32], strides = [1, 1, 1]} : vector<16x8x32xf32> to vector<1x8x32xf32>
    %172 = vector.shape_cast %171 : vector<1x8x32xf32> to vector<8x32xf32>
    %c15 = arith.constant 15 : index
    %c0_163 = arith.constant 0 : index
    %c0_164 = arith.constant 0 : index
    %173 = vector.load %arg6[%c15, %c0_163, %c0_164] : memref<16x32x128xf32, #tpu.memory_space<vmem>>, vector<1x32x128xf32>
    %174 = vector.shape_cast %173 : vector<1x32x128xf32> to vector<32x128xf32>
    %cst_165 = arith.constant dense<0.000000e+00> : vector<8x128xf32>
    %175 = tpu.matmul %172, %174, %cst_165 {dimension_numbers = #tpu.dot_dimension_numbers<[1], [0], [0], [1], [0, 0, 1, 1], [], []>} : vector<8x32xf32>, vector<32x128xf32>, vector<8x128xf32> -> vector<8x128xf32>
    %176 = arith.addf %152, %175 : vector<8x128xf32>
    %177 = arith.addf %158, %164 : vector<8x128xf32>
    %178 = arith.addf %170, %176 : vector<8x128xf32>
    %179 = arith.addf %177, %178 : vector<8x128xf32>
    %c0_166 = arith.constant 0 : index
    %c0_167 = arith.constant 0 : index
    %180 = vector.load %arg7[%c0_166, %c0_167] : memref<1x128xf32, #tpu.memory_space<vmem>>, vector<1x128xf32>
    %181 = vector.broadcast %180 : vector<1x128xf32> to vector<8x128xf32>
    %182 = arith.addf %179, %181 : vector<8x128xf32>
    %cst_168 = arith.constant 0.000000e+00 : f32
    %183 = vector.broadcast %cst_168 : f32 to vector<8x128xf32>
    %184 = arith.maximumf %182, %183 : vector<8x128xf32>
    %c0_169 = arith.constant 0 : index
    %c0_170 = arith.constant 0 : index
    %185 = vector.load %arg8[%c0_169, %c0_170] : memref<128x128xf32, #tpu.memory_space<vmem>>, vector<128x128xf32>
    %cst_171 = arith.constant dense<0.000000e+00> : vector<8x128xf32>
    %186 = tpu.matmul %184, %185, %cst_171 {dimension_numbers = #tpu.dot_dimension_numbers<[1], [0], [0], [1], [0, 0, 1, 1], [], []>} : vector<8x128xf32>, vector<128x128xf32>, vector<8x128xf32> -> vector<8x128xf32>
    %c0_172 = arith.constant 0 : index
    %c0_173 = arith.constant 0 : index
    %187 = vector.load %arg9[%c0_172, %c0_173] : memref<1x128xf32, #tpu.memory_space<vmem>>, vector<1x128xf32>
    %188 = vector.broadcast %187 : vector<1x128xf32> to vector<8x128xf32>
    %189 = arith.addf %186, %188 : vector<8x128xf32>
    %cst_174 = arith.constant 0.000000e+00 : f32
    %190 = vector.broadcast %cst_174 : f32 to vector<8x128xf32>
    %191 = arith.maximumf %189, %190 : vector<8x128xf32>
    %c0_175 = arith.constant 0 : index
    %c0_176 = arith.constant 0 : index
    %192 = vector.load %arg10[%c0_175, %c0_176] : memref<128x1xf32, #tpu.memory_space<vmem>>, vector<128x1xf32>
    %cst_177 = arith.constant dense<0.000000e+00> : vector<8x1xf32>
    %193 = tpu.matmul %191, %192, %cst_177 {dimension_numbers = #tpu.dot_dimension_numbers<[1], [0], [0], [1], [0, 0, 1, 1], [], []>} : vector<8x128xf32>, vector<128x1xf32>, vector<8x1xf32> -> vector<8x1xf32>
    %c0_178 = arith.constant 0 : index
    %c0_179 = arith.constant 0 : index
    %194 = vector.load %arg11[%c0_178, %c0_179] : memref<1x1xf32, #tpu.memory_space<vmem>>, vector<1x1xf32>
    %195 = vector.broadcast %194 : vector<1x1xf32> to vector<8x1xf32>
    %196 = arith.addf %193, %195 : vector<8x1xf32>
    %c0_180 = arith.constant 0 : index
    %c0_181 = arith.constant 0 : index
    %197 = vector.load %arg12[%c0_180, %c0_181] : memref<8x1xf32, #tpu.memory_space<vmem>>, vector<8x1xf32>
    tpu.vector_store %arg12[%c0_180, %c0_181], %196 {strides = array<i32>} : memref<8x1xf32, #tpu.memory_space<vmem>>, vector<8x1xf32>,
    return
  }
  func.func @transform_0(%arg0: i32) -> (i32, i32, i32) {
    %c0_i32 = arith.constant 0 : i32
    %c0_i32_0 = arith.constant 0 : i32
    %c0_i32_1 = arith.constant 0 : i32
    return %c0_i32, %arg0, %c0_i32_0 : i32, i32, i32
  }
  func.func @transform_1(%arg0: i32) -> (i32, i32) {
    %c0_i32 = arith.constant 0 : i32
    %c0_i32_0 = arith.constant 0 : i32
    %c0_i32_1 = arith.constant 0 : i32
    return %c0_i32, %c0_i32_0 : i32, i32
  }
  func.func @transform_2(%arg0: i32) -> (i32, i32) {
    %c0_i32 = arith.constant 0 : i32
    %c0_i32_0 = arith.constant 0 : i32
    %c0_i32_1 = arith.constant 0 : i32
    return %c0_i32, %c0_i32_0 : i32, i32
  }
  func.func @transform_3(%arg0: i32) -> (i32, i32, i32, i32) {
    %c0_i32 = arith.constant 0 : i32
    %c0_i32_0 = arith.constant 0 : i32
    %c0_i32_1 = arith.constant 0 : i32
    %c0_i32_2 = arith.constant 0 : i32
    %c0_i32_3 = arith.constant 0 : i32
    return %c0_i32, %c0_i32_0, %c0_i32_1, %c0_i32_2 : i32, i32, i32, i32
  }
  func.func @transform_4(%arg0: i32) -> (i32, i32) {
    %c0_i32 = arith.constant 0 : i32
    %c0_i32_0 = arith.constant 0 : i32
    %c0_i32_1 = arith.constant 0 : i32
    return %c0_i32, %c0_i32_0 : i32, i32
  }
  func.func @transform_5(%arg0: i32) -> (i32, i32, i32) {
    %c0_i32 = arith.constant 0 : i32
    %c0_i32_0 = arith.constant 0 : i32
    %c0_i32_1 = arith.constant 0 : i32
    %c0_i32_2 = arith.constant 0 : i32
    return %c0_i32, %c0_i32_0, %c0_i32_1 : i32, i32, i32
  }
  func.func @transform_6(%arg0: i32) -> (i32, i32) {
    %c0_i32 = arith.constant 0 : i32
    %c0_i32_0 = arith.constant 0 : i32
    %c0_i32_1 = arith.constant 0 : i32
    return %c0_i32, %c0_i32_0 : i32, i32
  }
  func.func @transform_7(%arg0: i32) -> (i32, i32) {
    %c0_i32 = arith.constant 0 : i32
    %c0_i32_0 = arith.constant 0 : i32
    %c0_i32_1 = arith.constant 0 : i32
    return %c0_i32, %c0_i32_0 : i32, i32
  }
  func.func @transform_8(%arg0: i32) -> (i32, i32) {
    %c0_i32 = arith.constant 0 : i32
    %c0_i32_0 = arith.constant 0 : i32
    %c0_i32_1 = arith.constant 0 : i32
    return %c0_i32, %c0_i32_0 : i32, i32
  }
  func.func @transform_9(%arg0: i32) -> (i32, i32) {
    %c0_i32 = arith.constant 0 : i32
    %c0_i32_0 = arith.constant 0 : i32
    %c0_i32_1 = arith.constant 0 : i32
    return %c0_i32, %c0_i32_0 : i32, i32
  }
  func.func @transform_10(%arg0: i32) -> (i32, i32) {
    %c0_i32 = arith.constant 0 : i32
    %c0_i32_0 = arith.constant 0 : i32
    %c0_i32_1 = arith.constant 0 : i32
    return %c0_i32, %c0_i32_0 : i32, i32
  }
  func.func @transform_11(%arg0: i32) -> (i32, i32) {
    %c0_i32 = arith.constant 0 : i32
    %c0_i32_0 = arith.constant 0 : i32
    return %arg0, %c0_i32 : i32, i32
  }
}

</mosaic_0001>

<bundles_post_ra>
// kernel: model_forward.1
= control target key start
LH: loop header
LB: loop body
LE: loop exit
PB: predicated region body
PF: predicated region fallthrough
CT: control target
= control target key end

     0   :  { %vm1073_vm0 = vcmask 1042432   ;;  %vm304_vm1 = vcmask 220160   ;;  %vm2118_vm2 = vcmask 130048   ;;  %vm7468_vm3 = vcmask 261120   ;;  %s14282_s1 = inlined_call_operand.vmem [shape: f32[27,16], index: 1, kind: input, shape index: {}]   ;;  %s14283_s0 = inlined_call_operand.vmem [shape: f32[256,8,27], index: 0, kind: input, shape index: {}]   ;;  %s14284_s2 = inlined_call_operand.vmem [shape: f32[1,16], index: 2, kind: input, shape index: {}]   ;;  %s14285_s3 = inlined_call_operand.vmem [shape: f32[3,3,16,32], index: 3, kind: input, shape index: {}]   ;;  %s14286_s4 = inlined_call_operand.vmem [shape: f32[1,32], index: 4, kind: input, shape index: {}]   ;;  %s14287_s5 = inlined_call_operand.vmem [shape: f32[16,32,128], index: 5, kind: input, shape index: {}]   ;;  %s14288_s6 = inlined_call_operand.vmem [shape: f32[1,128], index: 6, kind: input, shape index: {}]   ;;  %s14289_s8 = inlined_call_operand.vmem [shape: f32[1,128], index: 8, kind: input, shape index: {}]   ;;  %s14290_s7 = inlined_call_operand.vmem [shape: f32[128,128], index: 7, kind: input, shape index: {}]   ;;  %s14291_s9 = inlined_call_operand.vmem [shape: f32[128,1], index: 9, kind: input, shape index: {}]   ;;  %s14292_s10 = inlined_call_operand.<no memory space> [shape: f32[1,1], index: 10, kind: input, shape index: {}]   ;;  %s14293_s11 = inlined_call_operand.vmem [shape: f32[8,1], index: 11, kind: output, shape index: {}]  }
   0x1   :  { %v299_v0 = vld [vmem:[%s14282_s1 + $0x18] sm:$0x7]  ;;  %v298_v1 = vld [vmem:[%s14282_s1 + $0x10] sm:$0xff]  ;;  %v297_v2 = vld [vmem:[%s14282_s1 + $0x8] sm:$0xff]  ;;  %vm8158_vm4 = vcmask 7168  }
   0x2   :  { %8164 = vmatpush.msk.msra.mxu0 %vm1073_vm0, %v299_v0  ;;  %9089 = vmatpush.msk.msra.mxu1 %vm1073_vm0, %v299_v0  ;;  %v296_v3 = vld [vmem:[%s14282_s1] sm:$0xff]  ;;  %v254_v5 = vld [vmem:[%s14283_s0 + $0x6b0] sm:$0xff]  ;;  %v41_v6 = vld [vmem:[%s14283_s0 + $0x8] sm:$0xff] }
   0x3   :  { %v40_v4 = vld [vmem:[%s14283_s0] sm:$0xff]  ;;  %v255_v7 = vld [vmem:[%s14283_s0 + $0x6b8] sm:$0xff]  ;;  %v42_v8 = vld [vmem:[%s14283_s0 + $0x10] sm:$0xff] }
   0x4   :  { %1090 = vmatpush.msra.mxu0 %v298_v1  ;;  %9090 = vmatpush.msra.mxu1 %v298_v1  ;;  %v256_v9 = vld [vmem:[%s14283_s0 + $0x6c0] sm:$0xff]  ;;  %v43_v10 = vld [vmem:[%s14283_s0 + $0x18] sm:$0xff]  ;;  %v257_v11 = vld [vmem:[%s14283_s0 + $0x6c8] sm:$0xff] }
   0x5   :  { %v44_v12 = vld [vmem:[%s14283_s0 + $0x20] sm:$0xff]  ;;  %v258_v13 = vld [vmem:[%s14283_s0 + $0x6d0] sm:$0xff]  ;;  %v45_v14 = vld [vmem:[%s14283_s0 + $0x28] sm:$0xff] }
   0x6   :  { %1091 = vmatpush.msra.mxu0 %v297_v2  ;;  %9091 = vmatpush.msra.mxu1 %v297_v2  ;;  %v259_v15 = vld [vmem:[%s14283_s0 + $0x6d8] sm:$0xff]  ;;  %v46_v16 = vld [vmem:[%s14283_s0 + $0x30] sm:$0xff]  ;;  %v260_v17 = vld [vmem:[%s14283_s0 + $0x6e0] sm:$0xff] }
   0x7   :  { %v47_v18 = vld [vmem:[%s14283_s0 + $0x38] sm:$0xff]  ;;  %v261_v19 = vld [vmem:[%s14283_s0 + $0x6e8] sm:$0xff]  ;;  %v48_v20 = vld [vmem:[%s14283_s0 + $0x40] sm:$0xff] }
   0x8   :  { %1092 = vmatpush.msra.mxu0 %v296_v3  ;;  %9092 = vmatpush.msra.mxu1 %v296_v3  ;;  %v262_v21 = vld [vmem:[%s14283_s0 + $0x6f0] sm:$0xff]  ;;  %v49_v22 = vld [vmem:[%s14283_s0 + $0x48] sm:$0xff]  ;;  %v263_v23 = vld [vmem:[%s14283_s0 + $0x6f8] sm:$0xff] }
   0x9   :  { %8165 = vmatmul.msk.f32.vlgmr.msra.gmra.mxu0 %vm304_vm1, %v40_v4  ;;  %8379 = vmatmul.msk.f32.vlgmr.msra.gmra.mxu1 %vm304_vm1, %v254_v5  ;;  %v50_v24 = vld [vmem:[%s14283_s0 + $0x50] sm:$0xff]  ;;  %v264_v25 = vld [vmem:[%s14283_s0 + $0x700] sm:$0xff]  ;;  %v51_v26 = vld [vmem:[%s14283_s0 + $0x58] sm:$0xff] }
   0xa   :  { %v265_v27 = vld [vmem:[%s14283_s0 + $0x708] sm:$0xff]  ;;  %v52_v28 = vld [vmem:[%s14283_s0 + $0x60] sm:$0xff]  ;;  %v266_v29 = vld [vmem:[%s14283_s0 + $0x710] sm:$0xff] }
   0xb   :  { %v53_v30 = vld [vmem:[%s14283_s0 + $0x68] sm:$0xff]  ;;  %v267_v31 = vld [vmem:[%s14283_s0 + $0x718] sm:$0xff]  ;;  %v54_v32 = vld [vmem:[%s14283_s0 + $0x70] sm:$0xff] }
   0xc   :  { %v268_v33 = vld [vmem:[%s14283_s0 + $0x720] sm:$0xff]  ;;  %v55_v34 = vld [vmem:[%s14283_s0 + $0x78] sm:$0xff]  ;;  %v269_v35 = vld [vmem:[%s14283_s0 + $0x728] sm:$0xff] }
   0xd   :  { %v56_v38 = vld [vmem:[%s14283_s0 + $0x80] sm:$0xff]  ;;  %v270_v39 = vld [vmem:[%s14283_s0 + $0x730] sm:$0xff]  ;;  %v57_v42 = vld [vmem:[%s14283_s0 + $0x88] sm:$0xff] }
   0xe   :  { %v271_v43 = vld [vmem:[%s14283_s0 + $0x738] sm:$0xff]  ;;  %v58_v46 = vld [vmem:[%s14283_s0 + $0x90] sm:$0xff]  ;;  %v272_v47 = vld [vmem:[%s14283_s0 + $0x740] sm:$0xff] }
   0xf   :  { %v59_v50 = vld [vmem:[%s14283_s0 + $0x98] sm:$0xff]  ;;  %v273_v51 = vld [vmem:[%s14283_s0 + $0x748] sm:$0xff]  ;;  %v60_v54 = vld [vmem:[%s14283_s0 + $0xa0] sm:$0xff] }
  0x10   :  { %v274_v55 = vld [vmem:[%s14283_s0 + $0x750] sm:$0xff]  ;;  %v61_v58 = vld [vmem:[%s14283_s0 + $0xa8] sm:$0xff]  ;;  %v275_v59 = vld [vmem:[%s14283_s0 + $0x758] sm:$0xff] }
  0x11   :  { %8166 = vmatmul.msk.f32.gmra.mxu0 %vm304_vm1, %v41_v6  ;;  %8380 = vmatmul.msk.f32.gmra.mxu1 %vm304_vm1, %v255_v7  ;;  %v62_v62 = vld [vmem:[%s14283_s0 + $0xb0] sm:$0xff]  ;;  %v276_v63 = vld [vmem:[%s14283_s0 + $0x760] sm:$0xff]  ;;  %v63_v2 = vld [vmem:[%s14283_s0 + $0xb8] sm:$0xff] }
  0x12   :  { %v277_v3 = vld [vmem:[%s14283_s0 + $0x768] sm:$0xff]  ;;  %v64_v6 = vld [vmem:[%s14283_s0 + $0xc0] sm:$0xff]  ;;  %v278_v7 = vld [vmem:[%s14283_s0 + $0x770] sm:$0xff] }
  0x19   :  { %8167 = vmatmul.msk.f32.gmra.mxu0 %vm304_vm1, %v42_v8  ;;  %8381 = vmatmul.msk.f32.gmra.mxu1 %vm304_vm1, %v256_v9 }
  0x21   :  { %8168 = vmatmul.msk.f32.gmra.mxu0 %vm304_vm1, %v43_v10  ;;  %8382 = vmatmul.msk.f32.gmra.mxu1 %vm304_vm1, %v257_v11  ;;  %v65_v10 = vld [vmem:[%s14283_s0 + $0xc8] sm:$0xff]  ;;  %v279_v11 = vld [vmem:[%s14283_s0 + $0x778] sm:$0xff] }
  0x29   :  { %8169 = vmatmul.msk.f32.gmra.mxu0 %vm304_vm1, %v44_v12  ;;  %8383 = vmatmul.msk.f32.gmra.mxu1 %vm304_vm1, %v258_v13 }
  0x31   :  { %8170 = vmatmul.msk.f32.gmra.mxu0 %vm304_vm1, %v45_v14  ;;  %8384 = vmatmul.msk.f32.gmra.mxu1 %vm304_vm1, %v259_v15  ;;  %v66_v14 = vld [vmem:[%s14283_s0 + $0xd0] sm:$0xff]  ;;  %v280_v15 = vld [vmem:[%s14283_s0 + $0x780] sm:$0xff] }
  0x39   :  { %8171 = vmatmul.msk.f32.gmra.mxu0 %vm304_vm1, %v46_v16  ;;  %8385 = vmatmul.msk.f32.gmra.mxu1 %vm304_vm1, %v260_v17 }
  0x41   :  { %8172 = vmatmul.msk.f32.gmra.mxu0 %vm304_vm1, %v47_v18  ;;  %8386 = vmatmul.msk.f32.gmra.mxu1 %vm304_vm1, %v261_v19  ;;  %v67_v18 = vld [vmem:[%s14283_s0 + $0xd8] sm:$0xff]  ;;  %v281_v19 = vld [vmem:[%s14283_s0 + $0x788] sm:$0xff] }
  0x49   :  { %8173 = vmatmul.msk.f32.gmra.mxu0 %vm304_vm1, %v48_v20  ;;  %8387 = vmatmul.msk.f32.gmra.mxu1 %vm304_vm1, %v262_v21 }
  0x51   :  { %8174 = vmatmul.msk.f32.gmra.mxu0 %vm304_vm1, %v49_v22  ;;  %8388 = vmatmul.msk.f32.gmra.mxu1 %vm304_vm1, %v263_v23  ;;  %v68_v22 = vld [vmem:[%s14283_s0 + $0xe0] sm:$0xff]  ;;  %v282_v23 = vld [vmem:[%s14283_s0 + $0x790] sm:$0xff] }
  0x59   :  { %8175 = vmatmul.msk.f32.gmra.mxu0 %vm304_vm1, %v50_v24  ;;  %8389 = vmatmul.msk.f32.gmra.mxu1 %vm304_vm1, %v264_v25 }
  0x61   :  { %8176 = vmatmul.msk.f32.gmra.mxu0 %vm304_vm1, %v51_v26  ;;  %8390 = vmatmul.msk.f32.gmra.mxu1 %vm304_vm1, %v265_v27  ;;  %v69_v26 = vld [vmem:[%s14283_s0 + $0xe8] sm:$0xff]  ;;  %v283_v27 = vld [vmem:[%s14283_s0 + $0x798] sm:$0xff] }
  0x69   :  { %8177 = vmatmul.msk.f32.gmra.mxu0 %vm304_vm1, %v52_v28  ;;  %8391 = vmatmul.msk.f32.gmra.mxu1 %vm304_vm1, %v266_v29 }
  0x71   :  { %8178 = vmatmul.msk.f32.gmra.mxu0 %vm304_vm1, %v53_v30  ;;  %8392 = vmatmul.msk.f32.gmra.mxu1 %vm304_vm1, %v267_v31  ;;  %v70_v30 = vld [vmem:[%s14283_s0 + $0xf0] sm:$0xff]  ;;  %v284_v31 = vld [vmem:[%s14283_s0 + $0x7a0] sm:$0xff] }
  0x79   :  { %8179 = vmatmul.msk.f32.gmra.mxu0 %vm304_vm1, %v54_v32  ;;  %8393 = vmatmul.msk.f32.gmra.mxu1 %vm304_vm1, %v268_v33 }
  0x81   :  { %8180 = vmatmul.msk.f32.gmra.mxu0 %vm304_vm1, %v55_v34  ;;  %8394 = vmatmul.msk.f32.gmra.mxu1 %vm304_vm1, %v269_v35  ;;  %v71_v34 = vld [vmem:[%s14283_s0 + $0xf8] sm:$0xff]  ;;  %v285_v35 = vld [vmem:[%s14283_s0 + $0x7a8] sm:$0xff] }
  0x86   :  { %v9309_v36 = vpop.f32.mrf.mxu0  ;;  %v9311_v37 = vpop.f32.mrf.mxu1 }
  0x89   :  { %8181 = vmatmul.msk.f32.gmra.mxu0 %vm304_vm1, %v56_v38  ;;  %8395 = vmatmul.msk.f32.gmra.mxu1 %vm304_vm1, %v270_v39  ;;  %v9504_v38 = vld [vmem:[%s14284_s2] ss:$0 sm:$0xff] }
  0x8e   :  { %v9321_v40 = vpop.f32.mrf.mxu0  ;;  %v9323_v41 = vpop.f32.mrf.mxu1 }
  0x91   :  { %8182 = vmatmul.msk.f32.gmra.mxu0 %vm304_vm1, %v57_v42  ;;  %8396 = vmatmul.msk.f32.gmra.mxu1 %vm304_vm1, %v271_v43  ;;  %v72_v43 = vld [vmem:[%s14283_s0 + $0x100] sm:$0xff] }
  0x96   :  { %v9333_v44 = vpop.f32.mrf.mxu0  ;;  %v9335_v45 = vpop.f32.mrf.mxu1 }
  0x99   :  { %8183 = vmatmul.msk.f32.gmra.mxu0 %vm304_vm1, %v58_v46  ;;  %8397 = vmatmul.msk.f32.gmra.mxu1 %vm304_vm1, %v272_v47  ;;  %v286_v46 = vld [vmem:[%s14283_s0 + $0x7b0] sm:$0xff] }
  0x9e   :  { %v9345_v48 = vpop.f32.mrf.mxu0  ;;  %v9347_v49 = vpop.f32.mrf.mxu1 }
  0xa1   :  { %8184 = vmatmul.msk.f32.gmra.mxu0 %vm304_vm1, %v59_v50  ;;  %8398 = vmatmul.msk.f32.gmra.mxu1 %vm304_vm1, %v273_v51  ;;  %v1095_v50 = vadd.f32 %v9504_v38, %v9309_v36  ;;  %v1098_v51 = vadd.f32 %v9504_v38, %v9321_v40  ;;  %v287_v36 = vld [vmem:[%s14283_s0 + $0x7b8] sm:$0xff] }
  0xa6   :  { %v9357_v52 = vpop.f32.mrf.mxu0  ;;  %v9359_v53 = vpop.f32.mrf.mxu1 }
  0xa9   :  { %8185 = vmatmul.msk.f32.gmra.mxu0 %vm304_vm1, %v60_v54  ;;  %8399 = vmatmul.msk.f32.gmra.mxu1 %vm304_vm1, %v274_v55  ;;  %v1862_v55 = vmax.f32 %v1095_v50, 0.0 }
  0xab   :  { %v2119_v40 = vsel %vm2118_vm2, %v1862_v55, -inf }
  0xae   :  { %v9369_v56 = vpop.f32.mrf.mxu0  ;;  %v9371_v57 = vpop.f32.mrf.mxu1 }
  0xb1   :  { %8186 = vmatmul.msk.f32.gmra.mxu0 %vm304_vm1, %v61_v58  ;;  %8400 = vmatmul.msk.f32.gmra.mxu1 %vm304_vm1, %v275_v59 }
  0xb6   :  { %v9381_v60 = vpop.f32.mrf.mxu0  ;;  %v9383_v61 = vpop.f32.mrf.mxu1 }
  0xb9   :  { %8187 = vmatmul.msk.f32.gmra.mxu0 %vm304_vm1, %v62_v62  ;;  %8401 = vmatmul.msk.f32.gmra.mxu1 %vm304_vm1, %v276_v63  ;;  %v73_v62 = vld [vmem:[%s14283_s0 + $0x108] sm:$0xff]  ;;  %v1863_v63 = vmax.f32 %v1098_v51, 0.0 }
  0xbe   :  { %v9393_v0 = vpop.f32.mrf.mxu0  ;;  %v9395_v1 = vpop.f32.mrf.mxu1 }
  0xc1   :  { %8188 = vmatmul.msk.f32.gmra.mxu0 %vm304_vm1, %v63_v2  ;;  %8402 = vmatmul.msk.f32.gmra.mxu1 %vm304_vm1, %v277_v3 }
  0xc6   :  { %v9405_v4 = vpop.f32.mrf.mxu0  ;;  %v9407_v5 = vpop.f32.mrf.mxu1 }
  0xc9   :  { %8189 = vmatmul.msk.f32.gmra.mxu0 %vm304_vm1, %v64_v6  ;;  %8403 = vmatmul.msk.f32.gmra.mxu1 %vm304_vm1, %v278_v7 }
  0xce   :  { %v9417_v8 = vpop.f32.mrf.mxu0  ;;  %v9419_v9 = vpop.f32.mrf.mxu1 }
  0xd1   :  { %8190 = vmatmul.msk.f32.gmra.mxu0 %vm304_vm1, %v65_v10  ;;  %8404 = vmatmul.msk.f32.gmra.mxu1 %vm304_vm1, %v279_v11  ;;  %v2122_v10 = vsel %vm2118_vm2, %v1863_v63, -inf }
  0xd6   :  { %v9429_v12 = vpop.f32.mrf.mxu0  ;;  %v9431_v13 = vpop.f32.mrf.mxu1 }
  0xd9   :  { %8191 = vmatmul.msk.f32.gmra.mxu0 %vm304_vm1, %v66_v14  ;;  %8405 = vmatmul.msk.f32.gmra.mxu1 %vm304_vm1, %v280_v15 }
  0xde   :  { %v9441_v16 = vpop.f32.mrf.mxu0  ;;  %v9443_v17 = vpop.f32.mrf.mxu1 }
  0xe1   :  { %8192 = vmatmul.msk.f32.gmra.mxu0 %vm304_vm1, %v67_v18  ;;  %8406 = vmatmul.msk.f32.gmra.mxu1 %vm304_vm1, %v281_v19 }
  0xe6   :  { %v9453_v20 = vpop.f32.mrf.mxu0  ;;  %v9455_v21 = vpop.f32.mrf.mxu1 }
  0xe9   :  { %8193 = vmatmul.msk.f32.gmra.mxu0 %vm304_vm1, %v68_v22  ;;  %8407 = vmatmul.msk.f32.gmra.mxu1 %vm304_vm1, %v282_v23  ;;  %v74_v23 = vld [vmem:[%s14283_s0 + $0x110] sm:$0xff] }
  0xee   :  { %v9465_v24 = vpop.f32.mrf.mxu0  ;;  %v9467_v25 = vpop.f32.mrf.mxu1 }
  0xf1   :  { %8194 = vmatmul.msk.f32.gmra.mxu0 %vm304_vm1, %v69_v26  ;;  %8408 = vmatmul.msk.f32.gmra.mxu1 %vm304_vm1, %v283_v27  ;;  %v288_v26 = vld [vmem:[%s14283_s0 + $0x7c0] sm:$0xff] }
  0xf6   :  { %v9477_v28 = vpop.f32.mrf.mxu0  ;;  %v9479_v29 = vpop.f32.mrf.mxu1 }
  0xf9   :  { %8195 = vmatmul.msk.f32.gmra.mxu0 %vm304_vm1, %v70_v30  ;;  %8409 = vmatmul.msk.f32.gmra.mxu1 %vm304_vm1, %v284_v31  ;;  %v1101_v31 = vadd.f32 %v9504_v38, %v9333_v44  ;;  %v289_v44 = vld [vmem:[%s14283_s0 + $0x7c8] sm:$0xff] }
  0xfe   :  { %v9489_v32 = vpop.f32.mrf.mxu0  ;;  %v9491_v33 = vpop.f32.mrf.mxu1 }
 0x101   :  { %8196 = vmatmul.msk.f32.gmra.mxu0 %vm304_vm1, %v71_v34  ;;  %8410 = vmatmul.msk.f32.gmra.mxu1 %vm304_vm1, %v285_v35  ;;  %v1104_v34 = vadd.f32 %v9504_v38, %v9345_v48 }
 0x103   :  { %v1865_v50 = vmax.f32 %v1104_v34, 0.0 }
 0x106   :  { %v1142_v39 = vpop.f32.mrf.mxu0  ;;  %v9506_v42 = vpop.f32.mrf.mxu1 }
 0x107   :  { %v1143_v47 = vadd.f32 %v9504_v38, %v1142_v39  ;;  %v1864_v39 = vmax.f32 %v1101_v31, 0.0 }
 0x109   :  { %8197 = vmatmul.msk.f32.gmra.mxu0 %vm304_vm1, %v72_v43  ;;  %8411 = vmatmul.msk.f32.gmra.mxu1 %vm304_vm1, %v286_v46  ;;  %v1878_v54 = vmax.f32 %v1143_v47, 0.0  ;;  %v75_v47 = vld [vmem:[%s14283_s0 + $0x118] sm:$0xff]  ;;  %v2125_v48 = vsel %vm2118_vm2, %v1864_v39, -inf }
 0x10b   :  { %v2120_v2 = vsel %vm2118_vm2, %v1878_v54, -inf }
 0x10c   :  { %v2121_v7 = vmax.f32 %v2119_v40, %v2120_v2 }
 0x10e   :  { %v1145_v58 = vpop.f32.mrf.mxu0  ;;  %v9521_v59 = vpop.f32.mrf.mxu1  ;;  %v2503_v15 = vsel %vm2118_vm2, %v2121_v7, -inf  ;;  %v76_v7 = vld [vmem:[%s14283_s0 + $0x120] sm:$0xff] }
 0x10f   :  { %v1146_v3 = vadd.f32 %v9504_v38, %v1145_v58 }
 0x111   :  { %v1879_v6 = vmax.f32 %v1146_v3, 0.0  ;;  %8198 = vmatmul.msk.f32.gmra.mxu0 %vm304_vm1, %v73_v62  ;;  %8412 = vmatmul.msk.f32.gmra.mxu1 %vm304_vm1, %v287_v36  ;;  %v2128_v62 = vsel %vm2118_vm2, %v1865_v50, -inf }
 0x113   :  { %v2123_v11 = vsel %vm2118_vm2, %v1879_v6, -inf }
 0x114   :  { %v2124_v14 = vmax.f32 %v2122_v10, %v2123_v11  ;;  %v290_v10 = vld [vmem:[%s14283_s0 + $0x7d0] sm:$0xff] }
 0x116   :  { %v2504_v18 = vsel %vm2118_vm2, %v2124_v14, -inf  ;;  %v1148_v19 = vpop.f32.mrf.mxu0  ;;  %v9538_v22 = vpop.f32.mrf.mxu1 }
 0x117   :  { %v2505_v27 = vmax.f32 %v2503_v15, %v2504_v18  ;;  %v1149_v30 = vadd.f32 %v9504_v38, %v1148_v19  ;;  %v1107_v15 = vadd.f32 %v9504_v38, %v9357_v52  ;;  %v1110_v18 = vadd.f32 %v9504_v38, %v9369_v56  ;;  %v291_v52 = vld [vmem:[%s14283_s0 + $0x7d8] sm:$0xff] }
 0x119   :  { %2735 = vst.msk [vmem:[#allocation2 + $0x58] sm:$0xff] %vm2118_vm2, %v2505_v27  ;;  %8199 = vmatmul.msk.f32.gmra.mxu0 %vm304_vm1, %v74_v23  ;;  %8413 = vmatmul.msk.f32.gmra.mxu1 %vm304_vm1, %v288_v26  ;;  %v1880_v35 = vmax.f32 %v1149_v30, 0.0  ;;  %v1866_v23 = vmax.f32 %v1107_v15, 0.0  ;;  %v77_v30 = vld [vmem:[%s14283_s0 + $0x128] sm:$0xff]  ;;  %v1867_v31 = vmax.f32 %v1110_v18, 0.0  ;;  %v79_v18 = vld [vmem:[%s14283_s0 + $0x138] sm:$0xff] }
 0x11b   :  { %v2126_v51 = vsel %vm2118_vm2, %v1880_v35, -inf  ;;  %v2131_v56 = vsel %vm2118_vm2, %v1866_v23, -inf }
 0x11c   :  { %v2127_v58 = vmax.f32 %v2125_v48, %v2126_v51 }
 0x11e   :  { %v1151_v43 = vpop.f32.mrf.mxu0  ;;  %v9554_v46 = vpop.f32.mrf.mxu1  ;;  %v2506_v2 = vsel %vm2118_vm2, %v2127_v58, -inf }
 0x11f   :  { %v1152_v54 = vadd.f32 %v9504_v38, %v1151_v43  ;;  %v9108_v43 = vmov 0.0  }
 0x120   :  { %2717 = vst.msk [vmem:[#allocation2 + $0x50] sm:$0xff] %vm2118_vm2, %v9108_v43 }
 0x121   :  { %v1881_v55 = vmax.f32 %v1152_v54, 0.0  ;;  %8200 = vmatmul.msk.f32.gmra.mxu0 %vm304_vm1, %v75_v47  ;;  %8414 = vmatmul.msk.f32.gmra.mxu1 %vm304_vm1, %v289_v44  ;;  %2695 = vst.msk [vmem:[#allocation2] sm:$0xff] %vm2118_vm2, %v9108_v43  ;;  %v2134_v44 = vsel %vm2118_vm2, %v1867_v31, -inf  ;;  %v8426_v54 = vld [vmem:[%s14285_s3 + $0x38] sm:$0xff] }
 0x122   :  { %2696 = vst.msk [vmem:[#allocation2 + $0x8] sm:$0xff] %vm2118_vm2, %v9108_v43  ;;  %3274 = vmatpush.msrb.mxu1 %v8426_v54  ;;  %9093 = vmatpush.msra.mxu2 %v8426_v54 }
 0x123   :  { %v2129_v36 = vsel %vm2118_vm2, %v1881_v55, -inf  ;;  %2697 = vst.msk [vmem:[#allocation2 + $0x10] sm:$0xff] %vm2118_vm2, %v9108_v43  ;;  %9094 = vmatpush.msra.mxu3 %v8426_v54  ;;  %v294_v54 = vld [vmem:[%s14283_s0 + $0x7f0] sm:$0xff] }
 0x124   :  { %v2130_v63 = vmax.f32 %v2128_v62, %v2129_v36  ;;  %2698 = vst.msk [vmem:[#allocation2 + $0x18] sm:$0xff] %vm2118_vm2, %v9108_v43  ;;  %v78_v36 = vld [vmem:[%s14283_s0 + $0x130] sm:$0xff] }
 0x125   :  { %2699 = vst.msk [vmem:[#allocation2 + $0x20] sm:$0xff] %vm2118_vm2, %v9108_v43 }
 0x126   :  { %v2507_v3 = vsel %vm2118_vm2, %v2130_v63, -inf  ;;  %v1154_v40 = vpop.f32.mrf.mxu0  ;;  %v9571_v6 = vpop.f32.mrf.mxu1  ;;  %v292_v63 = vld [vmem:[%s14283_s0 + $0x7e0] sm:$0xff]  ;;  %2700 = vst.msk [vmem:[#allocation2 + $0x28] sm:$0xff] %vm2118_vm2, %v9108_v43 }
 0x127   :  { %v2508_v11 = vmax.f32 %v2506_v2, %v2507_v3  ;;  %v1155_v14 = vadd.f32 %v9504_v38, %v1154_v40  ;;  %v8425_v40 = vld [vmem:[%s14285_s3 + $0x30] sm:$0xff]  ;;  %2701 = vst.msk [vmem:[#allocation2 + $0x30] sm:$0xff] %vm2118_vm2, %v9108_v43 }
 0x128   :  { %3275 = vmatpush.msrb.mxu1 %v8425_v40  ;;  %9095 = vmatpush.msra.mxu2 %v8425_v40  ;;  %2702 = vst.msk [vmem:[#allocation2 + $0x38] sm:$0xff] %vm2118_vm2, %v9108_v43 }
 0x129   :  { %2736 = vst.msk [vmem:[#allocation2 + $0x60] sm:$0xff] %vm2118_vm2, %v2508_v11  ;;  %8201 = vmatmul.msk.f32.gmra.mxu0 %vm304_vm1, %v76_v7  ;;  %8415 = vmatmul.msk.f32.gmra.mxu1 %vm304_vm1, %v290_v10  ;;  %v1882_v19 = vmax.f32 %v1155_v14, 0.0  ;;  %v1113_v7 = vadd.f32 %v9504_v38, %v9381_v60  ;;  %v1116_v10 = vadd.f32 %v9504_v38, %v9393_v0  ;;  %v293_v0 = vld [vmem:[%s14283_s0 + $0x7e8] sm:$0xff] }
 0x12a   :  { %9096 = vmatpush.msra.mxu3 %v8425_v40  ;;  %2703 = vst.msk [vmem:[#allocation2 + $0x40] sm:$0xff] %vm2118_vm2, %v9108_v43  ;;  %v81_v40 = vld [vmem:[%s14283_s0 + $0x148] sm:$0xff] }
 0x12b   :  { %v2132_v34 = vsel %vm2118_vm2, %v1882_v19, -inf  ;;  %2704 = vst.msk [vmem:[#allocation2 + $0x48] sm:$0xff] %vm2118_vm2, %v9108_v43  ;;  %v1868_v60 = vmax.f32 %v1113_v7, 0.0  ;;  %v1869_v19 = vmax.f32 %v1116_v10, 0.0 }
 0x12c   :  { %v2133_v47 = vmax.f32 %v2131_v56, %v2132_v34  ;;  %2706 = vst.msk [vmem:[#allocation2 + $0x2d0] sm:$0xff] %vm2118_vm2, %v9108_v43 }
 0x12d   :  { %2707 = vst.msk [vmem:[#allocation2 + $0x2d8] sm:$0xff] %vm2118_vm2, %v9108_v43  ;;  %v2140_v34 = vsel %vm2118_vm2, %v1869_v19, -inf }
 0x12e   :  { %v1157_v26 = vpop.f32.mrf.mxu0  ;;  %v9587_v27 = vpop.f32.mrf.mxu1  ;;  %v2509_v48 = vsel %vm2118_vm2, %v2133_v47, -inf  ;;  %2708 = vst.msk [vmem:[#allocation2 + $0x2e0] sm:$0xff] %vm2118_vm2, %v9108_v43 }
 0x12f   :  { %v1158_v35 = vadd.f32 %v9504_v38, %v1157_v26  ;;  %2709 = vst.msk [vmem:[#allocation2 + $0x2e8] sm:$0xff] %vm2118_vm2, %v9108_v43 }
 0x130   :  { %2710 = vst.msk [vmem:[#allocation2 + $0x2f0] sm:$0xff] %vm2118_vm2, %v9108_v43 }
 0x131   :  { %v1883_v39 = vmax.f32 %v1158_v35, 0.0  ;;  %8202 = vmatmul.msk.f32.gmra.mxu0 %vm304_vm1, %v77_v30  ;;  %8416 = vmatmul.msk.f32.gmra.mxu1 %vm304_vm1, %v291_v52  ;;  %v2137_v30 = vsel %vm2118_vm2, %v1868_v60, -inf  ;;  %2711 = vst.msk [vmem:[#allocation2 + $0x2f8] sm:$0xff] %vm2118_vm2, %v9108_v43 }
 0x132   :  { %2712 = vst.msk [vmem:[#allocation2 + $0x300] sm:$0xff] %vm2118_vm2, %v9108_v43 }
 0x133   :  { %v2135_v50 = vsel %vm2118_vm2, %v1883_v39, -inf  ;;  %2713 = vst.msk [vmem:[#allocation2 + $0x308] sm:$0xff] %vm2118_vm2, %v9108_v43 }
 0x134   :  { %v2136_v51 = vmax.f32 %v2134_v44, %v2135_v50  ;;  %2714 = vst.msk [vmem:[#allocation2 + $0x310] sm:$0xff] %vm2118_vm2, %v9108_v43 }
 0x135   :  { %2715 = vst.msk [vmem:[#allocation2 + $0x318] sm:$0xff] %vm2118_vm2, %v9108_v43 }
 0x136   :  { %v2510_v55 = vsel %vm2118_vm2, %v2136_v51, -inf  ;;  %v1160_v58 = vpop.f32.mrf.mxu0  ;;  %v9617_v62 = vpop.f32.mrf.mxu1  ;;  %v80_v51 = vld [vmem:[%s14283_s0 + $0x140] sm:$0xff]  ;;  %2718 = vst.msk [vmem:[#allocation2 + $0xa0] sm:$0xff] %vm2118_vm2, %v9108_v43 }
 0x137   :  { %v2511_v2 = vmax.f32 %v2509_v48, %v2510_v55  ;;  %v1161_v3 = vadd.f32 %v9504_v38, %v1160_v58  ;;  %2719 = vst.msk [vmem:[#allocation2 + $0xf0] sm:$0xff] %vm2118_vm2, %v9108_v43  ;;  %v1119_v58 = vadd.f32 %v9504_v38, %v9405_v4 }
 0x138   :  { %2720 = vst.msk [vmem:[#allocation2 + $0x140] sm:$0xff] %vm2118_vm2, %v9108_v43 }
 0x139   :  { %2737 = vst.msk [vmem:[#allocation2 + $0x68] sm:$0xff] %vm2118_vm2, %v2511_v2  ;;  %8203 = vmatmul.msk.f32.gmra.mxu0 %vm304_vm1, %v78_v36  ;;  %8417 = vmatmul.msk.f32.gmra.mxu1 %vm304_vm1, %v292_v63  ;;  %v1884_v11 = vmax.f32 %v1161_v3, 0.0  ;;  %v1122_v36 = vadd.f32 %v9504_v38, %v9417_v8  ;;  %v1870_v4 = vmax.f32 %v1119_v58, 0.0  ;;  %v295_v8 = vld [vmem:[%s14283_s0 + $0x7f8] sm:$0xff] }
 0x13a   :  { %2721 = vst.msk [vmem:[#allocation2 + $0x190] sm:$0xff] %vm2118_vm2, %v9108_v43 }
 0x13b   :  { %v2138_v23 = vsel %vm2118_vm2, %v1884_v11, -inf  ;;  %2722 = vst.msk [vmem:[#allocation2 + $0x1e0] sm:$0xff] %vm2118_vm2, %v9108_v43  ;;  %v1871_v7 = vmax.f32 %v1122_v36, 0.0  ;;  %v2143_v60 = vsel %vm2118_vm2, %v1870_v4, -inf }
 0x13c   :  { %v2139_v31 = vmax.f32 %v2137_v30, %v2138_v23  ;;  %2723 = vst.msk [vmem:[#allocation2 + $0x230] sm:$0xff] %vm2118_vm2, %v9108_v43 }
 0x13d   :  { %2724 = vst.msk [vmem:[#allocation2 + $0x280] sm:$0xff] %vm2118_vm2, %v9108_v43 }
 0x13e   :  { %v1163_v14 = vpop.f32.mrf.mxu0  ;;  %v9650_v15 = vpop.f32.mrf.mxu1  ;;  %v2512_v39 = vsel %vm2118_vm2, %v2139_v31, -inf  ;;  %2726 = vst.msk [vmem:[#allocation2 + $0x98] sm:$0xff] %vm2118_vm2, %v9108_v43 }
 0x13f   :  { %v1164_v26 = vadd.f32 %v9504_v38, %v1163_v14  ;;  %2727 = vst.msk [vmem:[#allocation2 + $0xe8] sm:$0xff] %vm2118_vm2, %v9108_v43 }
 0x140   :  { %2728 = vst.msk [vmem:[#allocation2 + $0x138] sm:$0xff] %vm2118_vm2, %v9108_v43 }
 0x141   :  { %v1885_v52 = vmax.f32 %v1164_v26, 0.0  ;;  %8204 = vmatmul.msk.f32.gmra.mxu0 %vm304_vm1, %v79_v18  ;;  %8418 = vmatmul.msk.f32.gmra.mxu1 %vm304_vm1, %v293_v0  ;;  %2729 = vst.msk [vmem:[#allocation2 + $0x188] sm:$0xff] %vm2118_vm2, %v9108_v43  ;;  %v2146_v0 = vsel %vm2118_vm2, %v1871_v7, -inf  ;;  %v1767_v26 = vadd.f32 %v9504_v38, %v9431_v13 }
 0x142   :  { %2730 = vst.msk [vmem:[#allocation2 + $0x1d8] sm:$0xff] %vm2118_vm2, %v9108_v43 }
 0x143   :  { %v2141_v35 = vsel %vm2118_vm2, %v1885_v52, -inf  ;;  %2731 = vst.msk [vmem:[#allocation2 + $0x228] sm:$0xff] %vm2118_vm2, %v9108_v43 }
 0x144   :  { %v2142_v56 = vmax.f32 %v2140_v34, %v2141_v35  ;;  %2732 = vst.msk [vmem:[#allocation2 + $0x278] sm:$0xff] %vm2118_vm2, %v9108_v43  ;;  %v82_v35 = vld [vmem:[%s14283_s0 + $0x150] sm:$0xff] }
 0x145   :  { %2733 = vst.msk [vmem:[#allocation2 + $0x2c8] sm:$0xff] %vm2118_vm2, %v9108_v43  ;;  %v1128_v43 = vadd.f32 %v9504_v38, %v9441_v16 }
 0x146   :  { %v2513_v47 = vsel %vm2118_vm2, %v2142_v56, -inf  ;;  %v1166_v44 = vpop.f32.mrf.mxu0  ;;  %v9683_v50 = vpop.f32.mrf.mxu1  ;;  %v3001_v56 = vld [vmem:[#allocation2 + $0x50] sm:$0xff] }
 0x147   :  { %v2514_v48 = vmax.f32 %v2512_v39, %v2513_v47  ;;  %v1167_v55 = vadd.f32 %v9504_v38, %v1166_v44  ;;  %v1125_v44 = vadd.f32 %v9504_v38, %v9429_v12 }
 0x149   :  { %2738 = vst.msk [vmem:[#allocation2 + $0x70] sm:$0xff] %vm2118_vm2, %v2514_v48  ;;  %8205 = vmatmul.msk.f32.gmra.mxu0 %vm304_vm1, %v80_v51  ;;  %8419 = vmatmul.msk.f32.gmra.mxu1 %vm304_vm1, %v294_v54  ;;  %v1886_v63 = vmax.f32 %v1167_v55, 0.0  ;;  %v2086_v51 = vmax.f32 %v1767_v26, 0.0  ;;  %v1770_v54 = vadd.f32 %v9504_v38, %v9443_v17  ;;  %v1872_v58 = vmax.f32 %v1125_v44, 0.0  ;;  %v83_v17 = vld [vmem:[%s14283_s0 + $0x158] sm:$0xff] }
 0x14b   :  { %v2144_v10 = vsel %vm2118_vm2, %v1886_v63, -inf  ;;  %v2455_v36 = vsel %vm2118_vm2, %v2086_v51, -inf  ;;  %v2087_v63 = vmax.f32 %v1770_v54, 0.0  ;;  %v84_v51 = vld [vmem:[%s14283_s0 + $0x160] sm:$0xff] }
 0x14c   :  { %v2145_v18 = vmax.f32 %v2143_v60, %v2144_v10  ;;  %v2149_v60 = vsel %vm2118_vm2, %v1872_v58, -inf  ;;  %v3003_v58 = vld [vmem:[#allocation2 + $0x60] sm:$0xff] }
 0x14e   :  { %v1169_v2 = vpop.f32.mrf.mxu0  ;;  %v9713_v3 = vpop.f32.mrf.mxu1  ;;  %v2515_v30 = vsel %vm2118_vm2, %v2145_v18, -inf }
 0x14f   :  { %v1170_v11 = vadd.f32 %v9504_v38, %v1169_v2 }
 0x151   :  { %v1887_v14 = vmax.f32 %v1170_v11, 0.0  ;;  %8206 = vmatmul.msk.f32.gmra.mxu0 %vm304_vm1, %v81_v40  ;;  %8420 = vmatmul.msk.f32.gmra.mxu1 %vm304_vm1, %v295_v8  ;;  %v1873_v40 = vmax.f32 %v1128_v43, 0.0  ;;  %v3002_v11 = vld [vmem:[#allocation2 + $0x58] sm:$0xff] }
 0x153   :  { %v2147_v19 = vsel %vm2118_vm2, %v1887_v14, -inf  ;;  %v2458_v14 = vsel %vm2118_vm2, %v2087_v63, -inf  ;;  %v1776_v63 = vadd.f32 %v9504_v38, %v9467_v25 }
 0x154   :  { %v2148_v23 = vmax.f32 %v2146_v0, %v2147_v19 }
 0x156   :  { %v2516_v52 = vsel %vm2118_vm2, %v2148_v23, -inf  ;;  %v1172_v31 = vpop.f32.mrf.mxu0  ;;  %v1814_v34 = vpop.f32.mrf.mxu1  ;;  %v2152_v23 = vsel %vm2118_vm2, %v1873_v40, -inf  ;;  %v2089_v40 = vmax.f32 %v1776_v63, 0.0  ;;  %v3005_v63 = vld [vmem:[#allocation2 + $0x70] sm:$0xff] }
 0x157   :  { %v2517_v39 = vmax.f32 %v2515_v30, %v2516_v52  ;;  %v1173_v13 = vadd.f32 %v9504_v38, %v1172_v31  ;;  %v1815_v47 = vadd.f32 %v9504_v38, %v1814_v34 }
 0x159   :  { %2739 = vst.msk [vmem:[#allocation2 + $0x78] sm:$0xff] %vm2118_vm2, %v2517_v39  ;;  %v2102_v48 = vmax.f32 %v1815_v47, 0.0  ;;  %8207 = vmatmul.msk.f32.gmra.mxu0 %vm304_vm1, %v82_v35  ;;  %8427 = vmatmul.msk.f32.vlgmr.msrb.gmra.mxu1 %vm2118_vm2, %v3001_v56  ;;  %v1888_v55 = vmax.f32 %v1173_v13, 0.0  ;;  %v1773_v35 = vadd.f32 %v9504_v38, %v9455_v21  ;;  %v1131_v21 = vadd.f32 %v9504_v38, %v9453_v20 }
 0x15b   :  { %v2456_v12 = vsel %vm2118_vm2, %v2102_v48, -inf  ;;  %v2150_v8 = vsel %vm2118_vm2, %v1888_v55, -inf }
 0x15c   :  { %v2457_v10 = vmax.f32 %v2455_v36, %v2456_v12  ;;  %v2151_v19 = vmax.f32 %v2149_v60, %v2150_v8  ;;  %v2088_v36 = vmax.f32 %v1773_v35, 0.0 }
 0x15e   :  { %v1175_v4 = vpop.f32.mrf.mxu0  ;;  %v1817_v2 = vpop.f32.mrf.mxu1  ;;  %v2671_v52 = vsel %vm2118_vm2, %v2457_v10, -inf  ;;  %v2518_v56 = vsel %vm2118_vm2, %v2151_v19, -inf  ;;  %v2461_v20 = vsel %vm2118_vm2, %v2088_v36, -inf  ;;  %v2464_v19 = vsel %vm2118_vm2, %v2089_v40, -inf }
 0x15f   :  { %v1176_v7 = vadd.f32 %v9504_v38, %v1175_v4  ;;  %v1818_v16 = vadd.f32 %v9504_v38, %v1817_v2  ;;  %v1134_v4 = vadd.f32 %v9504_v38, %v9465_v24 }
 0x161   :  { %v1889_v18 = vmax.f32 %v1176_v7, 0.0  ;;  %v2103_v0 = vmax.f32 %v1818_v16, 0.0  ;;  %8208 = vmatmul.msk.f32.gmra.mxu0 %vm304_vm1, %v83_v17  ;;  %8428 = vmatmul.msk.f32.gmra.mxu1 %vm2118_vm2, %v3002_v11  ;;  %v1874_v17 = vmax.f32 %v1131_v21, 0.0  ;;  %v85_v16 = vld [vmem:[%s14283_s0 + $0x168] sm:$0xff]  ;;  %v1875_v10 = vmax.f32 %v1134_v4, 0.0 }
 0x162   :  { %v1782_v4 = vadd.f32 %v9504_v38, %v9491_v33 }
 0x163   :  { %v2153_v26 = vsel %vm2118_vm2, %v1889_v18, -inf  ;;  %v2459_v30 = vsel %vm2118_vm2, %v2103_v0, -inf  ;;  %v3004_v18 = vld [vmem:[#allocation2 + $0x68] sm:$0xff]  ;;  %v2155_v0 = vsel %vm2118_vm2, %v1874_v17, -inf  ;;  %v1140_v17 = vadd.f32 %v9504_v38, %v9489_v32 }
 0x164   :  { %v2154_v31 = vmax.f32 %v2152_v23, %v2153_v26  ;;  %v2460_v34 = vmax.f32 %v2458_v14, %v2459_v30 }
 0x166   :  { %v2519_v39 = vsel %vm2118_vm2, %v2154_v31, -inf  ;;  %v2672_v13 = vsel %vm2118_vm2, %v2460_v34, -inf  ;;  %v1178_v47 = vpop.f32.mrf.mxu0  ;;  %v1820_v44 = vpop.f32.mrf.mxu1 }
 0x167   :  { %v2520_v54 = vmax.f32 %v2518_v56, %v2519_v39  ;;  %v2673_v48 = vmax.f32 %v2671_v52, %v2672_v13  ;;  %v1179_v43 = vadd.f32 %v9504_v38, %v1178_v47  ;;  %v1821_v55 = vadd.f32 %v9504_v38, %v1820_v44 }
 0x168   :  { %v2158_v52 = vsel %vm2118_vm2, %v1875_v10, -inf  ;;  %v1779_v13 = vadd.f32 %v9504_v38, %v9479_v29  ;;  %v1137_v29 = vadd.f32 %v9504_v38, %v9477_v28  ;;  %v1877_v10 = vmax.f32 %v1140_v17, 0.0 }
 0x169   :  { %2740 = vst.msk [vmem:[#allocation2 + $0x80] sm:$0xff] %vm2118_vm2, %v2520_v54  ;;  %v2104_v12 = vmax.f32 %v1821_v55, 0.0  ;;  %8209 = vmatmul.msk.f32.gmra.mxu0 %vm304_vm1, %v84_v51  ;;  %8429 = vmatmul.msk.f32.gmra.mxu1 %vm2118_vm2, %v3003_v58  ;;  %v1890_v2 = vmax.f32 %v1179_v43, 0.0  ;;  %v86_v43 = vld [vmem:[%s14283_s0 + $0x170] sm:$0xff] }
 0x16a   :  { %2791 = vst.msk [vmem:[#allocation2 + $0x288] sm:$0xff] %vm2118_vm2, %v2673_v48  ;;  %v1876_v40 = vmax.f32 %v1137_v29, 0.0 }
 0x16b   :  { %v2462_v8 = vsel %vm2118_vm2, %v2104_v12, -inf  ;;  %v2156_v11 = vsel %vm2118_vm2, %v1890_v2, -inf  ;;  %v2090_v12 = vmax.f32 %v1779_v13, 0.0 }
 0x16c   :  { %v2463_v14 = vmax.f32 %v2461_v20, %v2462_v8  ;;  %v2157_v30 = vmax.f32 %v2155_v0, %v2156_v11  ;;  %v2091_v8 = vmax.f32 %v1782_v4, 0.0 }
 0x16d   :  { %v2467_v28 = vsel %vm2118_vm2, %v2090_v12, -inf }
 0x16e   :  { %v1181_v25 = vpop.f32.mrf.mxu0  ;;  %v1823_v7 = vpop.f32.mrf.mxu1  ;;  %v2674_v35 = vsel %vm2118_vm2, %v2463_v14, -inf  ;;  %v2521_v47 = vsel %vm2118_vm2, %v2157_v30, -inf  ;;  %v3006_v14 = vld [vmem:[#allocation2 + $0x78] sm:$0xff]  ;;  %v2470_v0 = vsel %vm2118_vm2, %v2091_v8, -inf  ;;  %v2164_v30 = vsel %vm2118_vm2, %v1877_v10, -inf }
 0x16f   :  { %v1182_v60 = vadd.f32 %v9504_v38, %v1181_v25  ;;  %v1824_v24 = vadd.f32 %v9504_v38, %v1823_v7  ;;  %v1791_v10 = vadd.f32 %v9504_v38, %v9538_v22 }
 0x171   :  { %v1891_v23 = vmax.f32 %v1182_v60, 0.0  ;;  %v2105_v26 = vmax.f32 %v1824_v24, 0.0  ;;  %8210 = vmatmul.msk.f32.gmra.mxu0 %vm304_vm1, %v85_v16  ;;  %8430 = vmatmul.msk.f32.gmra.mxu1 %vm2118_vm2, %v3004_v18  ;;  %v87_v16 = vld [vmem:[%s14283_s0 + $0x178] sm:$0xff]  ;;  %v2161_v18 = vsel %vm2118_vm2, %v1876_v40, -inf }
 0x173   :  { %v2159_v31 = vsel %vm2118_vm2, %v1891_v23, -inf  ;;  %v2465_v34 = vsel %vm2118_vm2, %v2105_v26, -inf }
 0x174   :  { %v2160_v56 = vmax.f32 %v2158_v52, %v2159_v31  ;;  %v2466_v39 = vmax.f32 %v2464_v19, %v2465_v34 }
 0x176   :  { %v2522_v44 = vsel %vm2118_vm2, %v2160_v56, -inf  ;;  %v2675_v51 = vsel %vm2118_vm2, %v2466_v39, -inf  ;;  %v1184_v54 = vpop.f32.mrf.mxu0  ;;  %v1826_v48 = vpop.f32.mrf.mxu1  ;;  %v1785_v39 = vadd.f32 %v9504_v38, %v9506_v42  ;;  %v1788_v42 = vadd.f32 %v9504_v38, %v9521_v59  ;;  %v89_v59 = vld [vmem:[%s14283_s0 + $0x188] sm:$0xff] }
 0x177   :  { %v2523_v55 = vmax.f32 %v2521_v47, %v2522_v44  ;;  %v2676_v58 = vmax.f32 %v2674_v35, %v2675_v51  ;;  %v1185_v21 = vadd.f32 %v9504_v38, %v1184_v54  ;;  %v1827_v36 = vadd.f32 %v9504_v38, %v1826_v48  ;;  %v88_v48 = vld [vmem:[%s14283_s0 + $0x180] sm:$0xff] }
 0x178   :  { %v2093_v12 = vmax.f32 %v1788_v42, 0.0 }
 0x179   :  { %2741 = vst.msk [vmem:[#allocation2 + $0x88] sm:$0xff] %vm2118_vm2, %v2523_v55  ;;  %v2106_v2 = vmax.f32 %v1827_v36, 0.0  ;;  %8211 = vmatmul.msk.f32.gmra.mxu0 %vm304_vm1, %v86_v43  ;;  %8431 = vmatmul.msk.f32.gmra.mxu1 %vm2118_vm2, %v3005_v63  ;;  %v1892_v20 = vmax.f32 %v1185_v21, 0.0  ;;  %v3007_v21 = vld [vmem:[#allocation2 + $0x80] sm:$0xff]  ;;  %v2092_v36 = vmax.f32 %v1785_v39, 0.0 }
 0x17a   :  { %2792 = vst.msk [vmem:[#allocation2 + $0x290] sm:$0xff] %vm2118_vm2, %v2676_v58  ;;  %v2476_v8 = vsel %vm2118_vm2, %v2093_v12, -inf }
 0x17b   :  { %v2468_v25 = vsel %vm2118_vm2, %v2106_v2, -inf  ;;  %v2162_v11 = vsel %vm2118_vm2, %v1892_v20, -inf  ;;  %v2473_v29 = vsel %vm2118_vm2, %v2092_v36, -inf }
 0x17c   :  { %v2469_v24 = vmax.f32 %v2467_v28, %v2468_v25  ;;  %v2163_v26 = vmax.f32 %v2161_v18, %v2162_v11 }
 0x17e   :  { %v1187_v33 = vpop.f32.mrf.mxu0  ;;  %v1829_v7 = vpop.f32.mrf.mxu1  ;;  %v2677_v34 = vsel %vm2118_vm2, %v2469_v24, -inf  ;;  %v2524_v13 = vsel %vm2118_vm2, %v2163_v26, -inf  ;;  %v90_v24 = vld [vmem:[%s14283_s0 + $0x190] sm:$0xff] }
 0x17f   :  { %v1188_v60 = vadd.f32 %v9504_v38, %v1187_v33  ;;  %v1830_v32 = vadd.f32 %v9504_v38, %v1829_v7 }
 0x180   :  { %v3008_v28 = vld [vmem:[#allocation2 + $0x88] sm:$0xff] }
 0x181   :  { %v1893_v19 = vmax.f32 %v1188_v60, 0.0  ;;  %v2107_v23 = vmax.f32 %v1830_v32, 0.0  ;;  %8212 = vmatmul.msk.f32.gmra.mxu0 %vm304_vm1, %v87_v16  ;;  %8432 = vmatmul.msk.f32.gmra.mxu1 %vm2118_vm2, %v3006_v14 }
 0x183   :  { %v2165_v52 = vsel %vm2118_vm2, %v1893_v19, -inf  ;;  %v2471_v31 = vsel %vm2118_vm2, %v2107_v23, -inf  ;;  %v1794_v19 = vadd.f32 %v9504_v38, %v9554_v46 }
 0x184   :  { %v2166_v35 = vmax.f32 %v2164_v30, %v2165_v52  ;;  %v2472_v56 = vmax.f32 %v2470_v0, %v2471_v31  ;;  %v2094_v0 = vmax.f32 %v1791_v10, 0.0 }
 0x185   :  { %v2095_v26 = vmax.f32 %v1794_v19, 0.0  ;;  %v1806_v19 = vadd.f32 %v9504_v38, %v9650_v15 }
 0x186   :  { %v2525_v47 = vsel %vm2118_vm2, %v2166_v35, -inf  ;;  %v2678_v44 = vsel %vm2118_vm2, %v2472_v56, -inf  ;;  %v9857_v51 = vpop.f32.mrf.mxu0  ;;  %v1832_v54 = vpop.f32.mrf.mxu1  ;;  %v2479_v22 = vsel %vm2118_vm2, %v2094_v0, -inf }
 0x187   :  { %v2526_v43 = vmax.f32 %v2524_v13, %v2525_v47  ;;  %v2679_v55 = vmax.f32 %v2677_v34, %v2678_v44  ;;  %v1833_v58 = vadd.f32 %v9504_v38, %v1832_v54  ;;  %v91_v34 = vld [vmem:[%s14283_s0 + $0x198] sm:$0xff]  ;;  %v2482_v56 = vsel %vm2118_vm2, %v2095_v26, -inf }
 0x188   :  { %v1797_v54 = vadd.f32 %v9504_v38, %v9571_v6 }
 0x189   :  { %2742 = vst.msk [vmem:[#allocation2 + $0x90] sm:$0xff] %vm2118_vm2, %v2526_v43  ;;  %v2108_v63 = vmax.f32 %v1833_v58, 0.0  ;;  %8213 = vmatmul.msk.f32.gmra.mxu0 %vm304_vm1, %v88_v48  ;;  %8433 = vmatmul.msk.f32.gmra.mxu1 %vm2118_vm2, %v3007_v21  ;;  %v92_v58 = vld [vmem:[%s14283_s0 + $0x1a0] sm:$0xff] }
 0x18a   :  { %2793 = vst.msk [vmem:[#allocation2 + $0x298] sm:$0xff] %vm2118_vm2, %v2679_v55  ;;  %v2096_v42 = vmax.f32 %v1797_v54, 0.0 }
 0x18b   :  { %v2474_v4 = vsel %vm2118_vm2, %v2108_v63, -inf  ;;  %v1800_v63 = vadd.f32 %v9504_v38, %v9587_v27 }
 0x18c   :  { %v2475_v40 = vmax.f32 %v2473_v29, %v2474_v4  ;;  %v2485_v6 = vsel %vm2118_vm2, %v2096_v42, -inf }
 0x18d   :  { %v2097_v12 = vmax.f32 %v1800_v63, 0.0  ;;  %v1812_v63 = vadd.f32 %v9504_v38, %v9713_v3 }
 0x18e   :  { %v9871_v2 = vpop.f32.mrf.mxu0  ;;  %v1835_v17 = vpop.f32.mrf.mxu1  ;;  %v2680_v7 = vsel %vm2118_vm2, %v2475_v40, -inf }
 0x18f   :  { %v1836_v20 = vadd.f32 %v9504_v38, %v1835_v17 }
 0x191   :  { %v2109_v25 = vmax.f32 %v1836_v20, 0.0  ;;  %8214 = vmatmul.msk.f32.gmra.mxu0 %vm304_vm1, %v89_v59  ;;  %8434 = vmatmul.msk.f32.gmra.mxu1 %vm2118_vm2, %v3008_v28  ;;  %v93_v20 = vld [vmem:[%s14283_s0 + $0x1a8] sm:$0xff]  ;;  %v2488_v28 = vsel %vm2118_vm2, %v2097_v12, -inf }
 0x193   :  { %v2477_v33 = vsel %vm2118_vm2, %v2109_v25, -inf }
 0x194   :  { %v2478_v16 = vmax.f32 %v2476_v8, %v2477_v33 }
 0x196   :  { %v2681_v11 = vsel %vm2118_vm2, %v2478_v16, -inf  ;;  %v9885_v60 = vpop.f32.mrf.mxu0  ;;  %v1838_v32 = vpop.f32.mrf.mxu1  ;;  %v1803_v16 = vadd.f32 %v9504_v38, %v9617_v62 }
 0x197   :  { %v2682_v14 = vmax.f32 %v2680_v7, %v2681_v11  ;;  %v1839_v18 = vadd.f32 %v9504_v38, %v1838_v32 }
 0x198   :  { %v2098_v0 = vmax.f32 %v1803_v16, 0.0 }
 0x199   :  { %2794 = vst.msk [vmem:[#allocation2 + $0x2a0] sm:$0xff] %vm2118_vm2, %v2682_v14  ;;  %v2110_v23 = vmax.f32 %v1839_v18, 0.0  ;;  %8215 = vmatmul.msk.f32.gmra.mxu0 %vm304_vm1, %v90_v24  ;;  %v94_v24 = vld [vmem:[%s14283_s0 + $0x1b0] sm:$0xff] }
 0x19a   :  { %v2491_v62 = vsel %vm2118_vm2, %v2098_v0, -inf  ;;  %v100_v0 = vld [vmem:[%s14283_s0 + $0x1e0] sm:$0xff] }
 0x19b   :  { %v2480_v30 = vsel %vm2118_vm2, %v2110_v23, -inf }
 0x19c   :  { %v2481_v46 = vmax.f32 %v2479_v22, %v2480_v30  ;;  %v2099_v22 = vmax.f32 %v1806_v19, 0.0 }
 0x19e   :  { %v9897_v52 = vpop.f32.mrf.mxu0  ;;  %v1841_v31 = vpop.f32.mrf.mxu1  ;;  %v2683_v47 = vsel %vm2118_vm2, %v2481_v46, -inf  ;;  %v2494_v46 = vsel %vm2118_vm2, %v2099_v22, -inf  ;;  %v102_v22 = vld [vmem:[%s14283_s0 + $0x1f0] sm:$0xff] }
 0x19f   :  { %v1842_v35 = vadd.f32 %v9504_v38, %v1841_v31 }
 0x1a1   :  { %v2111_v39 = vmax.f32 %v1842_v35, 0.0  ;;  %8216 = vmatmul.msk.f32.gmra.mxu0 %vm304_vm1, %v91_v34  ;;  %v95_v34 = vld [vmem:[%s14283_s0 + $0x1b8] sm:$0xff] }
 0x1a3   :  { %v2483_v13 = vsel %vm2118_vm2, %v2111_v39, -inf }
 0x1a4   :  { %v2484_v44 = vmax.f32 %v2482_v56, %v2483_v13 }
 0x1a6   :  { %v2684_v48 = vsel %vm2118_vm2, %v2484_v44, -inf  ;;  %v9910_v43 = vpop.f32.mrf.mxu0  ;;  %v1844_v55 = vpop.f32.mrf.mxu1  ;;  %v1809_v44 = vadd.f32 %v9504_v38, %v9683_v50 }
 0x1a7   :  { %v2685_v21 = vmax.f32 %v2683_v47, %v2684_v48  ;;  %v1845_v36 = vadd.f32 %v9504_v38, %v1844_v55 }
 0x1a8   :  { %v2100_v42 = vmax.f32 %v1809_v44, 0.0 }
 0x1a9   :  { %2795 = vst.msk [vmem:[#allocation2 + $0x2a8] sm:$0xff] %vm2118_vm2, %v2685_v21  ;;  %v2112_v29 = vmax.f32 %v1845_v36, 0.0  ;;  %8217 = vmatmul.msk.f32.gmra.mxu0 %vm304_vm1, %v92_v58  ;;  %v96_v58 = vld [vmem:[%s14283_s0 + $0x1c0] sm:$0xff] }
 0x1aa   :  { %v2497_v50 = vsel %vm2118_vm2, %v2100_v42, -inf }
 0x1ab   :  { %v2486_v4 = vsel %vm2118_vm2, %v2112_v29, -inf }
 0x1ac   :  { %v2487_v27 = vmax.f32 %v2485_v6, %v2486_v4  ;;  %v2101_v6 = vmax.f32 %v1812_v63, 0.0 }
 0x1ae   :  { %v9922_v17 = vpop.f32.mrf.mxu0  ;;  %v1847_v59 = vpop.f32.mrf.mxu1  ;;  %v2686_v33 = vsel %vm2118_vm2, %v2487_v27, -inf  ;;  %v2500_v27 = vsel %vm2118_vm2, %v2101_v6, -inf }
 0x1af   :  { %v1848_v40 = vadd.f32 %v9504_v38, %v1847_v59 }
 0x1b1   :  { %v2113_v8 = vmax.f32 %v1848_v40, 0.0  ;;  %8218 = vmatmul.msk.f32.gmra.mxu0 %vm304_vm1, %v93_v20  ;;  %v97_v20 = vld [vmem:[%s14283_s0 + $0x1c8] sm:$0xff] }
 0x1b3   :  { %v2489_v25 = vsel %vm2118_vm2, %v2113_v8, -inf }
 0x1b4   :  { %v2490_v7 = vmax.f32 %v2488_v28, %v2489_v25 }
 0x1b6   :  { %v2687_v10 = vsel %vm2118_vm2, %v2490_v7, -inf  ;;  %v9935_v11 = vpop.f32.mrf.mxu0  ;;  %v1850_v32 = vpop.f32.mrf.mxu1 }
 0x1b7   :  { %v2688_v14 = vmax.f32 %v2686_v33, %v2687_v10  ;;  %v1851_v18 = vadd.f32 %v9504_v38, %v1850_v32  ;;  %v98_v10 = vld [vmem:[%s14283_s0 + $0x1d0] sm:$0xff] }
 0x1b9   :  { %2796 = vst.msk [vmem:[#allocation2 + $0x2b0] sm:$0xff] %vm2118_vm2, %v2688_v14  ;;  %v2114_v23 = vmax.f32 %v1851_v18, 0.0  ;;  %8219 = vmatmul.msk.f32.gmra.mxu0 %vm304_vm1, %v94_v24  ;;  %v99_v14 = vld [vmem:[%s14283_s0 + $0x1d8] sm:$0xff] }
 0x1bb   :  { %v2492_v26 = vsel %vm2118_vm2, %v2114_v23, -inf  ;;  %v101_v23 = vld [vmem:[%s14283_s0 + $0x1e8] sm:$0xff] }
 0x1bc   :  { %v2493_v15 = vmax.f32 %v2491_v62, %v2492_v26  ;;  %v3009_v26 = vld [vmem:[#allocation2 + $0xa0] sm:$0xff] }
 0x1bd   :  { %8435 = vmatmul.msk.f32.gmra.mxu1 %vm2118_vm2, %v3009_v26 }
 0x1be   :  { %v9947_v30 = vpop.f32.mrf.mxu0  ;;  %v1853_v31 = vpop.f32.mrf.mxu1  ;;  %v2689_v13 = vsel %vm2118_vm2, %v2493_v15, -inf  ;;  %v104_v15 = vld [vmem:[%s14283_s0 + $0x200] sm:$0xff] }
 0x1bf   :  { %v1854_v35 = vadd.f32 %v9504_v38, %v1853_v31 }
 0x1c1   :  { %v2115_v56 = vmax.f32 %v1854_v35, 0.0  ;;  %8220 = vmatmul.msk.f32.gmra.mxu0 %vm304_vm1, %v95_v34  ;;  %v103_v34 = vld [vmem:[%s14283_s0 + $0x1f8] sm:$0xff] }
 0x1c3   :  { %v2495_v39 = vsel %vm2118_vm2, %v2115_v56, -inf  ;;  %v1191_v56 = vadd.f32 %v9504_v38, %v9857_v51 }
 0x1c4   :  { %v2496_v47 = vmax.f32 %v2494_v46, %v2495_v39  ;;  %v1194_v39 = vadd.f32 %v9504_v38, %v9871_v2 }
 0x1c6   :  { %v2690_v54 = vsel %vm2118_vm2, %v2496_v47, -inf  ;;  %v9960_v48 = vpop.f32.mrf.mxu0  ;;  %v1856_v55 = vpop.f32.mrf.mxu1  ;;  %v1894_v47 = vmax.f32 %v1191_v56, 0.0 }
 0x1c7   :  { %v2691_v21 = vmax.f32 %v2689_v13, %v2690_v54  ;;  %v1857_v36 = vadd.f32 %v9504_v38, %v1856_v55  ;;  %v105_v54 = vld [vmem:[%s14283_s0 + $0x208] sm:$0xff]  ;;  %v1895_v55 = vmax.f32 %v1194_v39, 0.0 }
 0x1c9   :  { %2797 = vst.msk [vmem:[#allocation2 + $0x2b8] sm:$0xff] %vm2118_vm2, %v2691_v21  ;;  %v2116_v29 = vmax.f32 %v1857_v36, 0.0  ;;  %8221 = vmatmul.msk.f32.gmra.mxu0 %vm304_vm1, %v96_v58  ;;  %v2167_v36 = vsel %vm2118_vm2, %v1894_v47, -inf  ;;  %v2170_v2 = vsel %vm2118_vm2, %v1895_v55, -inf }
 0x1cb   :  { %v2498_v12 = vsel %vm2118_vm2, %v2116_v29, -inf }
 0x1cc   :  { %v2499_v3 = vmax.f32 %v2497_v50, %v2498_v12 }
 0x1ce   :  { %v9972_v4 = vpop.f32.mrf.mxu0  ;;  %v1859_v59 = vpop.f32.mrf.mxu1  ;;  %v2692_v25 = vsel %vm2118_vm2, %v2499_v3, -inf }
 0x1cf   :  { %v1860_v40 = vadd.f32 %v9504_v38, %v1859_v59 }
 0x1d1   :  { %v2117_v28 = vmax.f32 %v1860_v40, 0.0  ;;  %8222 = vmatmul.msk.f32.gmra.mxu0 %vm304_vm1, %v97_v20  ;;  %v10047_v20 = vld [vmem:[%s14284_s2] ss:$0 sm:$0xff] }
 0x1d2   :  { %v1197_v3 = vadd.f32 %v10047_v20, %v9885_v60  ;;  %v1206_v47 = vadd.f32 %v10047_v20, %v9922_v17 }
 0x1d3   :  { %v2501_v8 = vsel %vm2118_vm2, %v2117_v28, -inf }
 0x1d4   :  { %v2502_v33 = vmax.f32 %v2500_v27, %v2501_v8  ;;  %v1200_v27 = vadd.f32 %v10047_v20, %v9897_v52  ;;  %v1896_v8 = vmax.f32 %v1197_v3, 0.0 }
 0x1d6   :  { %v2693_v7 = vsel %vm2118_vm2, %v2502_v33, -inf  ;;  %v9983_v16 = vpop.f32.mrf.mxu0  ;;  %v107_v33 = vld [vmem:[%s14283_s0 + $0x218] sm:$0xff] }
 0x1d7   :  { %v2694_v32 = vmax.f32 %v2692_v25, %v2693_v7  ;;  %v1897_v7 = vmax.f32 %v1200_v27, 0.0  ;;  %v1209_v27 = vadd.f32 %v10047_v20, %v9935_v11 }
 0x1d9   :  { %2798 = vst.msk [vmem:[#allocation2 + $0x2c0] sm:$0xff] %vm2118_vm2, %v2694_v32  ;;  %8223 = vmatmul.msk.f32.gmra.mxu0 %vm304_vm1, %v98_v10 }
 0x1de   :  { %v9990_v24 = vpop.f32.mrf.mxu0 }
 0x1e1   :  { %8224 = vmatmul.msk.f32.gmra.mxu0 %vm304_vm1, %v99_v14  ;;  %v2173_v14 = vsel %vm2118_vm2, %v1896_v8, -inf }
 0x1e6   :  { %v9996_v18 = vpop.f32.mrf.mxu0 }
 0x1e9   :  { %8225 = vmatmul.msk.f32.gmra.mxu0 %vm304_vm1, %v100_v0 }
 0x1ee   :  { %v10002_v19 = vpop.f32.mrf.mxu0 }
 0x1f1   :  { %8226 = vmatmul.msk.f32.gmra.mxu0 %vm304_vm1, %v101_v23  ;;  %v2176_v23 = vsel %vm2118_vm2, %v1897_v7, -inf  ;;  %v111_v7 = vld [vmem:[%s14283_s0 + $0x238] sm:$0xff] }
 0x1f6   :  { %v10008_v62 = vpop.f32.mrf.mxu0 }
 0x1f9   :  { %8227 = vmatmul.msk.f32.gmra.mxu0 %vm304_vm1, %v102_v22 }
 0x1fe   :  { %v10015_v31 = vpop.f32.mrf.mxu0 }
 0x201   :  { %8228 = vmatmul.msk.f32.gmra.mxu0 %vm304_vm1, %v103_v34 }
 0x206   :  { %v1238_v35 = vpop.f32.mrf.mxu0 }
 0x207   :  { %v1239_v46 = vadd.f32 %v9504_v38, %v1238_v35 }
 0x209   :  { %8229 = vmatmul.msk.f32.gmra.mxu0 %vm304_vm1, %v104_v15  ;;  %v1910_v13 = vmax.f32 %v1239_v46, 0.0  ;;  %v108_v46 = vld [vmem:[%s14283_s0 + $0x220] sm:$0xff] }
 0x20b   :  { %v2168_v58 = vsel %vm2118_vm2, %v1910_v13, -inf  ;;  %v1203_v13 = vadd.f32 %v10047_v20, %v9910_v43 }
 0x20c   :  { %v2169_v42 = vmax.f32 %v2167_v36, %v2168_v58  ;;  %v109_v58 = vld [vmem:[%s14283_s0 + $0x228] sm:$0xff] }
 0x20e   :  { %v1241_v44 = vpop.f32.mrf.mxu0  ;;  %v2527_v50 = vsel %vm2118_vm2, %v2169_v42, -inf }
 0x20f   :  { %v1242_v21 = vadd.f32 %v9504_v38, %v1241_v44  ;;  %v106_v38 = vld [vmem:[%s14283_s0 + $0x210] sm:$0xff] }
 0x211   :  { %v1911_v51 = vmax.f32 %v1242_v21, 0.0  ;;  %8230 = vmatmul.msk.f32.gmra.mxu0 %vm304_vm1, %v105_v54  ;;  %v1898_v54 = vmax.f32 %v1203_v13, 0.0  ;;  %v1899_v21 = vmax.f32 %v1206_v47, 0.0  ;;  %v1218_v13 = vadd.f32 %v10047_v20, %v9972_v4 }
 0x213   :  { %v2171_v63 = vsel %vm2118_vm2, %v1911_v51, -inf  ;;  %v2179_v42 = vsel %vm2118_vm2, %v1898_v54, -inf }
 0x214   :  { %v2172_v29 = vmax.f32 %v2170_v2, %v2171_v63  ;;  %v2182_v63 = vsel %vm2118_vm2, %v1899_v21, -inf }
 0x216   :  { %v2528_v6 = vsel %vm2118_vm2, %v2172_v29, -inf  ;;  %v1244_v12 = vpop.f32.mrf.mxu0 }
 0x217   :  { %v2529_v59 = vmax.f32 %v2527_v50, %v2528_v6  ;;  %v1245_v40 = vadd.f32 %v10047_v20, %v1244_v12 }
 0x219   :  { %2743 = vst.msk [vmem:[#allocation2 + $0xa8] sm:$0xff] %vm2118_vm2, %v2529_v59  ;;  %8231 = vmatmul.msk.f32.gmra.mxu0 %vm304_vm1, %v106_v38  ;;  %v1912_v28 = vmax.f32 %v1245_v40, 0.0  ;;  %v110_v59 = vld [vmem:[%s14283_s0 + $0x230] sm:$0xff] }
 0x21b   :  { %v2174_v10 = vsel %vm2118_vm2, %v1912_v28, -inf  ;;  %v1212_v28 = vadd.f32 %v10047_v20, %v9947_v30 }
 0x21c   :  { %v2175_v52 = vmax.f32 %v2173_v14, %v2174_v10 }
 0x21d   :  { %v1901_v10 = vmax.f32 %v1212_v28, 0.0 }
 0x21e   :  { %v1247_v25 = vpop.f32.mrf.mxu0  ;;  %v2530_v34 = vsel %vm2118_vm2, %v2175_v52, -inf }
 0x21f   :  { %v1248_v32 = vadd.f32 %v10047_v20, %v1247_v25  ;;  %v1900_v25 = vmax.f32 %v1209_v27, 0.0  ;;  %v2188_v52 = vsel %vm2118_vm2, %v1901_v10, -inf }
 0x220   :  { %v3010_v60 = vld [vmem:[#allocation2 + $0xa8] sm:$0xff] }
 0x221   :  { %v1913_v0 = vmax.f32 %v1248_v32, 0.0  ;;  %8232 = vmatmul.msk.f32.gmra.mxu0 %vm304_vm1, %v107_v33  ;;  %8436 = vmatmul.msk.f32.gmra.mxu1 %vm2118_vm2, %v3010_v60  ;;  %v2185_v14 = vsel %vm2118_vm2, %v1900_v25, -inf }
 0x223   :  { %v2177_v22 = vsel %vm2118_vm2, %v1913_v0, -inf }
 0x224   :  { %v2178_v26 = vmax.f32 %v2176_v23, %v2177_v22 }
 0x226   :  { %v2531_v35 = vsel %vm2118_vm2, %v2178_v26, -inf  ;;  %v1250_v15 = vpop.f32.mrf.mxu0 }
 0x227   :  { %v2532_v56 = vmax.f32 %v2530_v34, %v2531_v35  ;;  %v1251_v39 = vadd.f32 %v10047_v20, %v1250_v15  ;;  %v112_v15 = vld [vmem:[%s14283_s0 + $0x240] sm:$0xff] }
 0x229   :  { %2744 = vst.msk [vmem:[#allocation2 + $0xb0] sm:$0xff] %vm2118_vm2, %v2532_v56  ;;  %8233 = vmatmul.msk.f32.gmra.mxu0 %vm304_vm1, %v108_v46  ;;  %v1914_v44 = vmax.f32 %v1251_v39, 0.0  ;;  %v1215_v39 = vadd.f32 %v10047_v20, %v9960_v48 }
 0x22b   :  { %v2180_v36 = vsel %vm2118_vm2, %v1914_v44, -inf  ;;  %v1902_v44 = vmax.f32 %v1215_v39, 0.0  ;;  %v117_v39 = vld [vmem:[%s14283_s0 + $0x268] sm:$0xff] }
 0x22c   :  { %v2181_v17 = vmax.f32 %v2179_v42, %v2180_v36 }
 0x22e   :  { %v1253_v55 = vpop.f32.mrf.mxu0  ;;  %v2533_v6 = vsel %vm2118_vm2, %v2181_v17, -inf }
 0x22f   :  { %v1254_v51 = vadd.f32 %v10047_v20, %v1253_v55  ;;  %v113_v55 = vld [vmem:[%s14283_s0 + $0x248] sm:$0xff] }
 0x230   :  { %v3011_v43 = vld [vmem:[#allocation2 + $0xb0] sm:$0xff] }
 0x231   :  { %v1915_v2 = vmax.f32 %v1254_v51, 0.0  ;;  %8234 = vmatmul.msk.f32.gmra.mxu0 %vm304_vm1, %v109_v58  ;;  %8437 = vmatmul.msk.f32.gmra.mxu1 %vm2118_vm2, %v3011_v43  ;;  %v1903_v58 = vmax.f32 %v1218_v13, 0.0  ;;  %v2191_v51 = vsel %vm2118_vm2, %v1902_v44, -inf }
 0x233   :  { %v2183_v29 = vsel %vm2118_vm2, %v1915_v2, -inf  ;;  %v2194_v42 = vsel %vm2118_vm2, %v1903_v58, -inf }
 0x234   :  { %v2184_v50 = vmax.f32 %v2182_v63, %v2183_v29 }
 0x236   :  { %v2534_v12 = vsel %vm2118_vm2, %v2184_v50, -inf  ;;  %v1256_v38 = vpop.f32.mrf.mxu0 }
 0x237   :  { %v2535_v40 = vmax.f32 %v2533_v6, %v2534_v12  ;;  %v1257_v3 = vadd.f32 %v10047_v20, %v1256_v38  ;;  %v114_v6 = vld [vmem:[%s14283_s0 + $0x250] sm:$0xff] }
 0x239   :  { %2745 = vst.msk [vmem:[#allocation2 + $0xb8] sm:$0xff] %vm2118_vm2, %v2535_v40  ;;  %8235 = vmatmul.msk.f32.gmra.mxu0 %vm304_vm1, %v110_v59  ;;  %v1916_v8 = vmax.f32 %v1257_v3, 0.0  ;;  %v1221_v59 = vadd.f32 %v10047_v20, %v9983_v16  ;;  %v1224_v40 = vadd.f32 %v10047_v20, %v9990_v24 }
 0x23b   :  { %v2186_v32 = vsel %vm2118_vm2, %v1916_v8, -inf  ;;  %v1904_v27 = vmax.f32 %v1221_v59, 0.0  ;;  %v115_v8 = vld [vmem:[%s14283_s0 + $0x258] sm:$0xff]  ;;  %v1905_v25 = vmax.f32 %v1224_v40, 0.0 }
 0x23c   :  { %v2187_v30 = vmax.f32 %v2185_v14, %v2186_v32 }
 0x23d   :  { %v2197_v10 = vsel %vm2118_vm2, %v1904_v27, -inf }
 0x23e   :  { %v1259_v33 = vpop.f32.mrf.mxu0  ;;  %v2536_v26 = vsel %vm2118_vm2, %v2187_v30, -inf }
 0x23f   :  { %v1260_v60 = vadd.f32 %v10047_v20, %v1259_v33 }
 0x240   :  { %v3012_v11 = vld [vmem:[#allocation2 + $0xb8] sm:$0xff] }
 0x241   :  { %v1917_v0 = vmax.f32 %v1260_v60, 0.0  ;;  %8236 = vmatmul.msk.f32.gmra.mxu0 %vm304_vm1, %v111_v7  ;;  %8438 = vmatmul.msk.f32.gmra.mxu1 %vm2118_vm2, %v3012_v11  ;;  %v2200_v60 = vsel %vm2118_vm2, %v1905_v25, -inf }
 0x243   :  { %v2189_v23 = vsel %vm2118_vm2, %v1917_v0, -inf }
 0x244   :  { %v2190_v22 = vmax.f32 %v2188_v52, %v2189_v23  ;;  %v116_v23 = vld [vmem:[%s14283_s0 + $0x260] sm:$0xff] }
 0x246   :  { %v2537_v34 = vsel %vm2118_vm2, %v2190_v22, -inf  ;;  %v1262_v35 = vpop.f32.mrf.mxu0 }
 0x247   :  { %v2538_v46 = vmax.f32 %v2536_v26, %v2537_v34  ;;  %v1263_v56 = vadd.f32 %v10047_v20, %v1262_v35  ;;  %v1227_v34 = vadd.f32 %v10047_v20, %v9996_v18  ;;  %v1230_v35 = vadd.f32 %v10047_v20, %v10002_v19 }
 0x249   :  { %2746 = vst.msk [vmem:[#allocation2 + $0xc0] sm:$0xff] %vm2118_vm2, %v2538_v46  ;;  %8237 = vmatmul.msk.f32.gmra.mxu0 %vm304_vm1, %v112_v15  ;;  %v1918_v47 = vmax.f32 %v1263_v56, 0.0  ;;  %v1906_v46 = vmax.f32 %v1227_v34, 0.0  ;;  %v1907_v13 = vmax.f32 %v1230_v35, 0.0  ;;  %v126_v35 = vld [vmem:[%s14283_s0 + $0x2b0] sm:$0xff] }
 0x24b   :  { %v2192_v21 = vsel %vm2118_vm2, %v1918_v47, -inf  ;;  %v2206_v58 = vsel %vm2118_vm2, %v1907_v13, -inf }
 0x24c   :  { %v2193_v4 = vmax.f32 %v2191_v51, %v2192_v21 }
 0x24e   :  { %v1265_v54 = vpop.f32.mrf.mxu0  ;;  %v2539_v63 = vsel %vm2118_vm2, %v2193_v4, -inf  ;;  %v118_v4 = vld [vmem:[%s14283_s0 + $0x270] sm:$0xff] }
 0x24f   :  { %v1266_v36 = vadd.f32 %v10047_v20, %v1265_v54  ;;  %v2203_v54 = vsel %vm2118_vm2, %v1906_v46, -inf  ;;  %v127_v46 = vld [vmem:[%s14283_s0 + $0x2b8] sm:$0xff] }
 0x250   :  { %v3013_v48 = vld [vmem:[#allocation2 + $0xc0] sm:$0xff] }
 0x251   :  { %v1919_v43 = vmax.f32 %v1266_v36, 0.0  ;;  %8238 = vmatmul.msk.f32.gmra.mxu0 %vm304_vm1, %v113_v55  ;;  %8439 = vmatmul.msk.f32.gmra.mxu1 %vm2118_vm2, %v3013_v48 }
 0x253   :  { %v2195_v2 = vsel %vm2118_vm2, %v1919_v43, -inf }
 0x254   :  { %v2196_v17 = vmax.f32 %v2194_v42, %v2195_v2 }
 0x256   :  { %v2540_v29 = vsel %vm2118_vm2, %v2196_v17, -inf  ;;  %v1268_v50 = vpop.f32.mrf.mxu0  ;;  %v1233_v17 = vadd.f32 %v10047_v20, %v10008_v62 }
 0x257   :  { %v2541_v12 = vmax.f32 %v2539_v63, %v2540_v29  ;;  %v1269_v38 = vadd.f32 %v10047_v20, %v1268_v50  ;;  %v1236_v63 = vadd.f32 %v10047_v20, %v10015_v31 }
 0x258   :  { %v1908_v50 = vmax.f32 %v1233_v17, 0.0  ;;  %v136_v17 = vld [vmem:[%s14283_s0 + $0x300] sm:$0xff] }
 0x259   :  { %2747 = vst.msk [vmem:[#allocation2 + $0xc8] sm:$0xff] %vm2118_vm2, %v2541_v12  ;;  %8239 = vmatmul.msk.f32.gmra.mxu0 %vm304_vm1, %v114_v6  ;;  %v1920_v3 = vmax.f32 %v1269_v38, 0.0  ;;  %v119_v12 = vld [vmem:[%s14283_s0 + $0x278] sm:$0xff]  ;;  %v1909_v38 = vmax.f32 %v1236_v63, 0.0 }
 0x25b   :  { %v2198_v33 = vsel %vm2118_vm2, %v1920_v3, -inf  ;;  %v2209_v3 = vsel %vm2118_vm2, %v1908_v50, -inf }
 0x25c   :  { %v2199_v24 = vmax.f32 %v2197_v10, %v2198_v33  ;;  %v120_v10 = vld [vmem:[%s14283_s0 + $0x280] sm:$0xff] }
 0x25e   :  { %v1271_v28 = vpop.f32.mrf.mxu0  ;;  %v2542_v0 = vsel %vm2118_vm2, %v2199_v24, -inf }
 0x25f   :  { %v1272_v7 = vadd.f32 %v10047_v20, %v1271_v28  ;;  %v2212_v28 = vsel %vm2118_vm2, %v1909_v38, -inf }
 0x260   :  { %v3014_v16 = vld [vmem:[#allocation2 + $0xc8] sm:$0xff] }
 0x261   :  { %v1921_v32 = vmax.f32 %v1272_v7, 0.0  ;;  %8240 = vmatmul.msk.f32.gmra.mxu0 %vm304_vm1, %v115_v8  ;;  %8440 = vmatmul.msk.f32.gmra.mxu1 %vm2118_vm2, %v3014_v16 }
 0x263   :  { %v2201_v11 = vsel %vm2118_vm2, %v1921_v32, -inf }
 0x264   :  { %v2202_v14 = vmax.f32 %v2200_v60, %v2201_v11  ;;  %v121_v60 = vld [vmem:[%s14283_s0 + $0x288] sm:$0xff] }
 0x266   :  { %v2543_v30 = vsel %vm2118_vm2, %v2202_v14, -inf  ;;  %v1274_v52 = vpop.f32.mrf.mxu0  ;;  %v122_v14 = vld [vmem:[%s14283_s0 + $0x290] sm:$0xff] }
 0x267   :  { %v2544_v22 = vmax.f32 %v2542_v0, %v2543_v30  ;;  %v1275_v26 = vadd.f32 %v10047_v20, %v1274_v52  ;;  %v123_v30 = vld [vmem:[%s14283_s0 + $0x298] sm:$0xff] }
 0x269   :  { %2748 = vst.msk [vmem:[#allocation2 + $0xd0] sm:$0xff] %vm2118_vm2, %v2544_v22  ;;  %8241 = vmatmul.msk.f32.gmra.mxu0 %vm304_vm1, %v116_v23  ;;  %v1922_v15 = vmax.f32 %v1275_v26, 0.0  ;;  %v124_v23 = vld [vmem:[%s14283_s0 + $0x2a0] sm:$0xff]  ;;  %v125_v26 = vld [vmem:[%s14283_s0 + $0x2a8] sm:$0xff] }
 0x26b   :  { %v2204_v47 = vsel %vm2118_vm2, %v1922_v15, -inf }
 0x26c   :  { %v2205_v19 = vmax.f32 %v2203_v54, %v2204_v47  ;;  %v129_v47 = vld [vmem:[%s14283_s0 + $0x2c8] sm:$0xff] }
 0x26e   :  { %v1277_v56 = vpop.f32.mrf.mxu0  ;;  %v2545_v48 = vsel %vm2118_vm2, %v2205_v19, -inf }
 0x26f   :  { %v1278_v44 = vadd.f32 %v10047_v20, %v1277_v56 }
 0x270   :  { %v3015_v18 = vld [vmem:[#allocation2 + $0xd0] sm:$0xff] }
 0x271   :  { %v1923_v55 = vmax.f32 %v1278_v44, 0.0  ;;  %8242 = vmatmul.msk.f32.gmra.mxu0 %vm304_vm1, %v117_v39  ;;  %8441 = vmatmul.msk.f32.gmra.mxu1 %vm2118_vm2, %v3015_v18  ;;  %v128_v39 = vld [vmem:[%s14283_s0 + $0x2c0] sm:$0xff]  ;;  %v130_v18 = vld [vmem:[%s14283_s0 + $0x2d0] sm:$0xff] }
 0x273   :  { %v2207_v21 = vsel %vm2118_vm2, %v1923_v55, -inf  ;;  %v131_v55 = vld [vmem:[%s14283_s0 + $0x2d8] sm:$0xff] }
 0x274   :  { %v2208_v36 = vmax.f32 %v2206_v58, %v2207_v21  ;;  %v132_v58 = vld [vmem:[%s14283_s0 + $0x2e0] sm:$0xff] }
 0x276   :  { %v2546_v51 = vsel %vm2118_vm2, %v2208_v36, -inf  ;;  %v1280_v43 = vpop.f32.mrf.mxu0  ;;  %v133_v36 = vld [vmem:[%s14283_s0 + $0x2e8] sm:$0xff] }
 0x277   :  { %v2547_v42 = vmax.f32 %v2545_v48, %v2546_v51  ;;  %v1281_v2 = vadd.f32 %v10047_v20, %v1280_v43  ;;  %v134_v51 = vld [vmem:[%s14283_s0 + $0x2f0] sm:$0xff] }
 0x278   :  { %v3017_v43 = vld [vmem:[#allocation2 + $0xf0] sm:$0xff] }
 0x279   :  { %2749 = vst.msk [vmem:[#allocation2 + $0xd8] sm:$0xff] %vm2118_vm2, %v2547_v42  ;;  %8243 = vmatmul.msk.f32.gmra.mxu0 %vm304_vm1, %v118_v4  ;;  %v1924_v29 = vmax.f32 %v1281_v2, 0.0  ;;  %v135_v42 = vld [vmem:[%s14283_s0 + $0x2f8] sm:$0xff] }
 0x27b   :  { %v2210_v59 = vsel %vm2118_vm2, %v1924_v29, -inf }
 0x27c   :  { %v2211_v31 = vmax.f32 %v2209_v3, %v2210_v59  ;;  %v137_v59 = vld [vmem:[%s14283_s0 + $0x308] sm:$0xff] }
 0x27e   :  { %v1283_v6 = vpop.f32.mrf.mxu0  ;;  %v2548_v33 = vsel %vm2118_vm2, %v2211_v31, -inf }
 0x27f   :  { %v1284_v40 = vadd.f32 %v10047_v20, %v1283_v6 }
 0x280   :  { %v3016_v62 = vld [vmem:[#allocation2 + $0xd8] sm:$0xff] }
 0x281   :  { %v1925_v27 = vmax.f32 %v1284_v40, 0.0  ;;  %8244 = vmatmul.msk.f32.gmra.mxu0 %vm304_vm1, %v119_v12  ;;  %8442 = vmatmul.msk.f32.gmra.mxu1 %vm2118_vm2, %v3016_v62 }
 0x283   :  { %v2213_v8 = vsel %vm2118_vm2, %v1925_v27, -inf }
 0x284   :  { %v2214_v25 = vmax.f32 %v2212_v28, %v2213_v8 }
 0x286   :  { %v2549_v7 = vsel %vm2118_vm2, %v2214_v25, -inf  ;;  %v1286_v16 = vpop.f32.mrf.mxu0 }
 0x287   :  { %v2550_v32 = vmax.f32 %v2548_v33, %v2549_v7  ;;  %v1287_v29 = vadd.f32 %v10047_v20, %v1286_v16 }
 0x289   :  { %2750 = vst.msk [vmem:[#allocation2 + $0xe0] sm:$0xff] %vm2118_vm2, %v2550_v32  ;;  %8245 = vmatmul.msk.f32.gmra.mxu0 %vm304_vm1, %v120_v10  ;;  %8443 = vmatmul.msk.f32.gmra.mxu1 %vm2118_vm2, %v3017_v43  ;;  %v1926_v12 = vmax.f32 %v1287_v29, 0.0  ;;  %v138_v32 = vld [vmem:[%s14283_s0 + $0x310] sm:$0xff] }
 0x28b   :  { %v2215_v27 = vsel %vm2118_vm2, %v1926_v12, -inf }
 0x28e   :  { %v1289_v24 = vpop.f32.mrf.mxu0 }
 0x28f   :  { %v1290_v50 = vadd.f32 %v10047_v20, %v1289_v24 }
 0x291   :  { %8246 = vmatmul.msk.f32.gmra.mxu0 %vm304_vm1, %v121_v60  ;;  %v1927_v40 = vmax.f32 %v1290_v50, 0.0 }
 0x293   :  { %v2218_v8 = vsel %vm2118_vm2, %v1927_v40, -inf }
 0x296   :  { %v10209_v11 = vpop.f32.mrf.mxu0 }
 0x299   :  { %8247 = vmatmul.msk.f32.gmra.mxu0 %vm304_vm1, %v122_v14  ;;  %v1293_v14 = vadd.f32 %v10047_v20, %v10209_v11 }
 0x29e   :  { %v10215_v0 = vpop.f32.mrf.mxu0 }
 0x2a1   :  { %8248 = vmatmul.msk.f32.gmra.mxu0 %vm304_vm1, %v123_v30  ;;  %v1296_v30 = vadd.f32 %v10047_v20, %v10215_v0 }
 0x2a6   :  { %v10221_v52 = vpop.f32.mrf.mxu0 }
 0x2a9   :  { %8249 = vmatmul.msk.f32.gmra.mxu0 %vm304_vm1, %v124_v23 }
 0x2ae   :  { %v10227_v22 = vpop.f32.mrf.mxu0 }
 0x2af   :  { %v1302_v12 = vadd.f32 %v10047_v20, %v10227_v22 }
 0x2b1   :  { %8250 = vmatmul.msk.f32.gmra.mxu0 %vm304_vm1, %v125_v26  ;;  %v1928_v26 = vmax.f32 %v1293_v14, 0.0 }
 0x2b6   :  { %v10233_v34 = vpop.f32.mrf.mxu0 }
 0x2b9   :  { %8251 = vmatmul.msk.f32.gmra.mxu0 %vm304_vm1, %v126_v35 }
 0x2be   :  { %v10239_v15 = vpop.f32.mrf.mxu0 }
 0x2c1   :  { %8252 = vmatmul.msk.f32.gmra.mxu0 %vm304_vm1, %v127_v46  ;;  %v139_v46 = vld [vmem:[%s14283_s0 + $0x318] sm:$0xff] }
 0x2c6   :  { %v10245_v56 = vpop.f32.mrf.mxu0 }
 0x2c9   :  { %8253 = vmatmul.msk.f32.gmra.mxu0 %vm304_vm1, %v128_v39  ;;  %v1929_v39 = vmax.f32 %v1296_v30, 0.0  ;;  %v1305_v30 = vadd.f32 %v10047_v20, %v10233_v34 }
 0x2ce   :  { %v10251_v13 = vpop.f32.mrf.mxu0 }
 0x2d1   :  { %8254 = vmatmul.msk.f32.gmra.mxu0 %vm304_vm1, %v129_v47 }
 0x2d6   :  { %v10257_v44 = vpop.f32.mrf.mxu0 }
 0x2d9   :  { %8255 = vmatmul.msk.f32.gmra.mxu0 %vm304_vm1, %v130_v18 }
 0x2de   :  { %v10263_v54 = vpop.f32.mrf.mxu0 }
 0x2e1   :  { %8256 = vmatmul.msk.f32.gmra.mxu0 %vm304_vm1, %v131_v55  ;;  %v2221_v55 = vsel %vm2118_vm2, %v1928_v26, -inf }
 0x2e6   :  { %v10269_v19 = vpop.f32.mrf.mxu0 }
 0x2e9   :  { %8257 = vmatmul.msk.f32.gmra.mxu0 %vm304_vm1, %v132_v58 }
 0x2ee   :  { %v10275_v21 = vpop.f32.mrf.mxu0 }
 0x2f1   :  { %8258 = vmatmul.msk.f32.gmra.mxu0 %vm304_vm1, %v133_v36  ;;  %v2224_v36 = vsel %vm2118_vm2, %v1929_v39, -inf  ;;  %v143_v39 = vld [vmem:[%s14283_s0 + $0x338] sm:$0xff] }
 0x2f6   :  { %v10281_v48 = vpop.f32.mrf.mxu0 }
 0x2f9   :  { %8259 = vmatmul.msk.f32.gmra.mxu0 %vm304_vm1, %v134_v51 }
 0x2fe   :  { %v10288_v4 = vpop.f32.mrf.mxu0 }
 0x301   :  { %8260 = vmatmul.msk.f32.gmra.mxu0 %vm304_vm1, %v135_v42 }
 0x306   :  { %v1334_v2 = vpop.f32.mrf.mxu0 }
 0x307   :  { %v1335_v63 = vadd.f32 %v10047_v20, %v1334_v2 }
 0x309   :  { %8261 = vmatmul.msk.f32.gmra.mxu0 %vm304_vm1, %v136_v17  ;;  %v1942_v6 = vmax.f32 %v1335_v63, 0.0  ;;  %v140_v63 = vld [vmem:[%s14283_s0 + $0x320] sm:$0xff] }
 0x30b   :  { %v2216_v62 = vsel %vm2118_vm2, %v1942_v6, -inf  ;;  %v1299_v6 = vadd.f32 %v10047_v20, %v10221_v52 }
 0x30c   :  { %v2217_v28 = vmax.f32 %v2215_v27, %v2216_v62  ;;  %v141_v62 = vld [vmem:[%s14283_s0 + $0x328] sm:$0xff] }
 0x30e   :  { %v1337_v38 = vpop.f32.mrf.mxu0  ;;  %v2551_v7 = vsel %vm2118_vm2, %v2217_v28, -inf }
 0x30f   :  { %v1338_v3 = vadd.f32 %v10047_v20, %v1337_v38 }
 0x311   :  { %v1943_v31 = vmax.f32 %v1338_v3, 0.0  ;;  %8262 = vmatmul.msk.f32.gmra.mxu0 %vm304_vm1, %v137_v59  ;;  %v1930_v59 = vmax.f32 %v1299_v6, 0.0  ;;  %v1931_v3 = vmax.f32 %v1302_v12, 0.0  ;;  %v1314_v6 = vadd.f32 %v10047_v20, %v10251_v13 }
 0x313   :  { %v2219_v25 = vsel %vm2118_vm2, %v1943_v31, -inf  ;;  %v2227_v28 = vsel %vm2118_vm2, %v1930_v59, -inf }
 0x314   :  { %v2220_v33 = vmax.f32 %v2218_v8, %v2219_v25  ;;  %v2230_v25 = vsel %vm2118_vm2, %v1931_v3, -inf }
 0x316   :  { %v2552_v16 = vsel %vm2118_vm2, %v2220_v33, -inf  ;;  %v1340_v10 = vpop.f32.mrf.mxu0 }
 0x317   :  { %v2553_v24 = vmax.f32 %v2551_v7, %v2552_v16  ;;  %v1341_v60 = vadd.f32 %v10047_v20, %v1340_v10 }
 0x319   :  { %2751 = vst.msk [vmem:[#allocation2 + $0xf8] sm:$0xff] %vm2118_vm2, %v2553_v24  ;;  %8263 = vmatmul.msk.f32.gmra.mxu0 %vm304_vm1, %v138_v32  ;;  %v1944_v23 = vmax.f32 %v1341_v60, 0.0  ;;  %v142_v24 = vld [vmem:[%s14283_s0 + $0x330] sm:$0xff] }
 0x31b   :  { %v2222_v47 = vsel %vm2118_vm2, %v1944_v23, -inf  ;;  %v1308_v23 = vadd.f32 %v10047_v20, %v10239_v15 }
 0x31c   :  { %v2223_v0 = vmax.f32 %v2221_v55, %v2222_v47 }
 0x31d   :  { %v1933_v47 = vmax.f32 %v1308_v23, 0.0 }
 0x31e   :  { %v1343_v35 = vpop.f32.mrf.mxu0  ;;  %v2554_v42 = vsel %vm2118_vm2, %v2223_v0, -inf }
 0x31f   :  { %v1344_v18 = vadd.f32 %v10047_v20, %v1343_v35  ;;  %v1932_v35 = vmax.f32 %v1305_v30, 0.0  ;;  %v2236_v0 = vsel %vm2118_vm2, %v1933_v47, -inf }
 0x320   :  { %v3018_v11 = vld [vmem:[#allocation2 + $0xf8] sm:$0xff] }
 0x321   :  { %v1945_v58 = vmax.f32 %v1344_v18, 0.0  ;;  %8264 = vmatmul.msk.f32.gmra.mxu0 %vm304_vm1, %v139_v46  ;;  %8444 = vmatmul.msk.f32.gmra.mxu1 %vm2118_vm2, %v3018_v11  ;;  %v2233_v55 = vsel %vm2118_vm2, %v1932_v35, -inf }
 0x323   :  { %v2225_v51 = vsel %vm2118_vm2, %v1945_v58, -inf }
 0x324   :  { %v2226_v43 = vmax.f32 %v2224_v36, %v2225_v51 }
 0x326   :  { %v2555_v2 = vsel %vm2118_vm2, %v2226_v43, -inf  ;;  %v1346_v17 = vpop.f32.mrf.mxu0 }
 0x327   :  { %v2556_v29 = vmax.f32 %v2554_v42, %v2555_v2  ;;  %v1347_v50 = vadd.f32 %v10047_v20, %v1346_v17  ;;  %v144_v17 = vld [vmem:[%s14283_s0 + $0x340] sm:$0xff] }
 0x329   :  { %2752 = vst.msk [vmem:[#allocation2 + $0x100] sm:$0xff] %vm2118_vm2, %v2556_v29  ;;  %8265 = vmatmul.msk.f32.gmra.mxu0 %vm304_vm1, %v140_v63  ;;  %v1946_v38 = vmax.f32 %v1347_v50, 0.0  ;;  %v1311_v50 = vadd.f32 %v10047_v20, %v10245_v56 }
 0x32b   :  { %v2228_v27 = vsel %vm2118_vm2, %v1946_v38, -inf  ;;  %v1934_v38 = vmax.f32 %v1311_v50, 0.0  ;;  %v149_v50 = vld [vmem:[%s14283_s0 + $0x368] sm:$0xff] }
 0x32c   :  { %v2229_v22 = vmax.f32 %v2227_v28, %v2228_v27 }
 0x32e   :  { %v1349_v40 = vpop.f32.mrf.mxu0  ;;  %v2557_v16 = vsel %vm2118_vm2, %v2229_v22, -inf }
 0x32f   :  { %v1350_v31 = vadd.f32 %v10047_v20, %v1349_v40  ;;  %v145_v40 = vld [vmem:[%s14283_s0 + $0x348] sm:$0xff] }
 0x330   :  { %v3019_v52 = vld [vmem:[#allocation2 + $0x100] sm:$0xff] }
 0x331   :  { %v1947_v8 = vmax.f32 %v1350_v31, 0.0  ;;  %8266 = vmatmul.msk.f32.gmra.mxu0 %vm304_vm1, %v141_v62  ;;  %8445 = vmatmul.msk.f32.gmra.mxu1 %vm2118_vm2, %v3019_v52  ;;  %v1935_v62 = vmax.f32 %v1314_v6, 0.0  ;;  %v2239_v31 = vsel %vm2118_vm2, %v1934_v38, -inf }
 0x333   :  { %v2231_v33 = vsel %vm2118_vm2, %v1947_v8, -inf  ;;  %v2242_v28 = vsel %vm2118_vm2, %v1935_v62, -inf }
 0x334   :  { %v2232_v7 = vmax.f32 %v2230_v25, %v2231_v33 }
 0x336   :  { %v2558_v10 = vsel %vm2118_vm2, %v2232_v7, -inf  ;;  %v1352_v32 = vpop.f32.mrf.mxu0 }
 0x337   :  { %v2559_v60 = vmax.f32 %v2557_v16, %v2558_v10  ;;  %v1353_v14 = vadd.f32 %v10047_v20, %v1352_v32  ;;  %v146_v16 = vld [vmem:[%s14283_s0 + $0x350] sm:$0xff] }
 0x339   :  { %2753 = vst.msk [vmem:[#allocation2 + $0x108] sm:$0xff] %vm2118_vm2, %v2559_v60  ;;  %8267 = vmatmul.msk.f32.gmra.mxu0 %vm304_vm1, %v142_v24  ;;  %v1948_v26 = vmax.f32 %v1353_v14, 0.0  ;;  %v1317_v24 = vadd.f32 %v10047_v20, %v10257_v44  ;;  %v1320_v60 = vadd.f32 %v10047_v20, %v10263_v54 }
 0x33b   :  { %v2234_v18 = vsel %vm2118_vm2, %v1948_v26, -inf  ;;  %v1936_v30 = vmax.f32 %v1317_v24, 0.0  ;;  %v147_v26 = vld [vmem:[%s14283_s0 + $0x358] sm:$0xff]  ;;  %v1937_v35 = vmax.f32 %v1320_v60, 0.0 }
 0x33c   :  { %v2235_v15 = vmax.f32 %v2233_v55, %v2234_v18 }
 0x33d   :  { %v2245_v47 = vsel %vm2118_vm2, %v1936_v30, -inf }
 0x33e   :  { %v1355_v46 = vpop.f32.mrf.mxu0  ;;  %v2560_v43 = vsel %vm2118_vm2, %v2235_v15, -inf }
 0x33f   :  { %v1356_v11 = vadd.f32 %v10047_v20, %v1355_v46 }
 0x340   :  { %v3020_v34 = vld [vmem:[#allocation2 + $0x108] sm:$0xff] }
 0x341   :  { %v1949_v58 = vmax.f32 %v1356_v11, 0.0  ;;  %8268 = vmatmul.msk.f32.gmra.mxu0 %vm304_vm1, %v143_v39  ;;  %8446 = vmatmul.msk.f32.gmra.mxu1 %vm2118_vm2, %v3020_v34  ;;  %v2248_v11 = vsel %vm2118_vm2, %v1937_v35, -inf }
 0x343   :  { %v2237_v36 = vsel %vm2118_vm2, %v1949_v58, -inf }
 0x344   :  { %v2238_v51 = vmax.f32 %v2236_v0, %v2237_v36  ;;  %v148_v36 = vld [vmem:[%s14283_s0 + $0x360] sm:$0xff] }
 0x346   :  { %v2561_v42 = vsel %vm2118_vm2, %v2238_v51, -inf  ;;  %v1358_v2 = vpop.f32.mrf.mxu0 }
 0x347   :  { %v2562_v63 = vmax.f32 %v2560_v43, %v2561_v42  ;;  %v1359_v29 = vadd.f32 %v10047_v20, %v1358_v2  ;;  %v1323_v42 = vadd.f32 %v10047_v20, %v10269_v19  ;;  %v1326_v2 = vadd.f32 %v10047_v20, %v10275_v21 }
 0x349   :  { %2754 = vst.msk [vmem:[#allocation2 + $0x110] sm:$0xff] %vm2118_vm2, %v2562_v63  ;;  %8269 = vmatmul.msk.f32.gmra.mxu0 %vm304_vm1, %v144_v17  ;;  %v1950_v12 = vmax.f32 %v1359_v29, 0.0  ;;  %v1938_v63 = vmax.f32 %v1323_v42, 0.0  ;;  %v1939_v6 = vmax.f32 %v1326_v2, 0.0  ;;  %v158_v2 = vld [vmem:[%s14283_s0 + $0x3b0] sm:$0xff] }
 0x34b   :  { %v2240_v3 = vsel %vm2118_vm2, %v1950_v12, -inf  ;;  %v2254_v62 = vsel %vm2118_vm2, %v1939_v6, -inf }
 0x34c   :  { %v2241_v13 = vmax.f32 %v2239_v31, %v2240_v3 }
 0x34e   :  { %v1361_v59 = vpop.f32.mrf.mxu0  ;;  %v2563_v25 = vsel %vm2118_vm2, %v2241_v13, -inf  ;;  %v150_v13 = vld [vmem:[%s14283_s0 + $0x370] sm:$0xff] }
 0x34f   :  { %v1362_v27 = vadd.f32 %v10047_v20, %v1361_v59  ;;  %v2251_v59 = vsel %vm2118_vm2, %v1938_v63, -inf  ;;  %v159_v63 = vld [vmem:[%s14283_s0 + $0x3b8] sm:$0xff] }
 0x350   :  { %v3021_v56 = vld [vmem:[#allocation2 + $0x110] sm:$0xff] }
 0x351   :  { %v1951_v52 = vmax.f32 %v1362_v27, 0.0  ;;  %8270 = vmatmul.msk.f32.gmra.mxu0 %vm304_vm1, %v145_v40  ;;  %8447 = vmatmul.msk.f32.gmra.mxu1 %vm2118_vm2, %v3021_v56 }
 0x353   :  { %v2243_v8 = vsel %vm2118_vm2, %v1951_v52, -inf }
 0x354   :  { %v2244_v22 = vmax.f32 %v2242_v28, %v2243_v8 }
 0x356   :  { %v2564_v33 = vsel %vm2118_vm2, %v2244_v22, -inf  ;;  %v1364_v7 = vpop.f32.mrf.mxu0  ;;  %v1329_v22 = vadd.f32 %v10047_v20, %v10281_v48 }
 0x357   :  { %v2565_v10 = vmax.f32 %v2563_v25, %v2564_v33  ;;  %v1365_v32 = vadd.f32 %v10047_v20, %v1364_v7  ;;  %v1332_v25 = vadd.f32 %v10047_v20, %v10288_v4 }
 0x358   :  { %v1940_v7 = vmax.f32 %v1329_v22, 0.0 }
 0x359   :  { %2755 = vst.msk [vmem:[#allocation2 + $0x118] sm:$0xff] %vm2118_vm2, %v2565_v10  ;;  %8271 = vmatmul.msk.f32.gmra.mxu0 %vm304_vm1, %v146_v16  ;;  %v1952_v14 = vmax.f32 %v1365_v32, 0.0  ;;  %v151_v10 = vld [vmem:[%s14283_s0 + $0x378] sm:$0xff]  ;;  %v1941_v32 = vmax.f32 %v1332_v25, 0.0  ;;  %v168_v25 = vld [vmem:[%s14283_s0 + $0x400] sm:$0xff] }
 0x35b   :  { %v2246_v46 = vsel %vm2118_vm2, %v1952_v14, -inf  ;;  %v2257_v14 = vsel %vm2118_vm2, %v1940_v7, -inf }
 0x35c   :  { %v2247_v54 = vmax.f32 %v2245_v47, %v2246_v46  ;;  %v152_v47 = vld [vmem:[%s14283_s0 + $0x380] sm:$0xff] }
 0x35e   :  { %v1367_v23 = vpop.f32.mrf.mxu0  ;;  %v2566_v58 = vsel %vm2118_vm2, %v2247_v54, -inf }
 0x35f   :  { %v1368_v39 = vadd.f32 %v10047_v20, %v1367_v23  ;;  %v2260_v23 = vsel %vm2118_vm2, %v1941_v32, -inf }
 0x360   :  { %v3022_v44 = vld [vmem:[#allocation2 + $0x118] sm:$0xff] }
 0x361   :  { %v1953_v18 = vmax.f32 %v1368_v39, 0.0  ;;  %8272 = vmatmul.msk.f32.gmra.mxu0 %vm304_vm1, %v147_v26  ;;  %8448 = vmatmul.msk.f32.gmra.mxu1 %vm2118_vm2, %v3022_v44 }
 0x363   :  { %v2249_v34 = vsel %vm2118_vm2, %v1953_v18, -inf }
 0x364   :  { %v2250_v55 = vmax.f32 %v2248_v11, %v2249_v34  ;;  %v153_v11 = vld [vmem:[%s14283_s0 + $0x388] sm:$0xff] }
 0x366   :  { %v2567_v15 = vsel %vm2118_vm2, %v2250_v55, -inf  ;;  %v1370_v0 = vpop.f32.mrf.mxu0  ;;  %v154_v55 = vld [vmem:[%s14283_s0 + $0x390] sm:$0xff] }
 0x367   :  { %v2568_v51 = vmax.f32 %v2566_v58, %v2567_v15  ;;  %v1371_v43 = vadd.f32 %v10047_v20, %v1370_v0  ;;  %v155_v15 = vld [vmem:[%s14283_s0 + $0x398] sm:$0xff] }
 0x369   :  { %2756 = vst.msk [vmem:[#allocation2 + $0x120] sm:$0xff] %vm2118_vm2, %v2568_v51  ;;  %8273 = vmatmul.msk.f32.gmra.mxu0 %vm304_vm1, %v148_v36  ;;  %v1954_v17 = vmax.f32 %v1371_v43, 0.0  ;;  %v156_v36 = vld [vmem:[%s14283_s0 + $0x3a0] sm:$0xff]  ;;  %v157_v43 = vld [vmem:[%s14283_s0 + $0x3a8] sm:$0xff] }
 0x36b   :  { %v2252_v12 = vsel %vm2118_vm2, %v1954_v17, -inf }
 0x36c   :  { %v2253_v21 = vmax.f32 %v2251_v59, %v2252_v12  ;;  %v161_v12 = vld [vmem:[%s14283_s0 + $0x3c8] sm:$0xff] }
 0x36e   :  { %v1373_v29 = vpop.f32.mrf.mxu0  ;;  %v2569_v56 = vsel %vm2118_vm2, %v2253_v21, -inf }
 0x36f   :  { %v1374_v38 = vadd.f32 %v10047_v20, %v1373_v29 }
 0x370   :  { %v3023_v19 = vld [vmem:[#allocation2 + $0x120] sm:$0xff] }
 0x371   :  { %v1955_v40 = vmax.f32 %v1374_v38, 0.0  ;;  %8274 = vmatmul.msk.f32.gmra.mxu0 %vm304_vm1, %v149_v50  ;;  %8449 = vmatmul.msk.f32.gmra.mxu1 %vm2118_vm2, %v3023_v19  ;;  %v160_v50 = vld [vmem:[%s14283_s0 + $0x3c0] sm:$0xff]  ;;  %v162_v19 = vld [vmem:[%s14283_s0 + $0x3d0] sm:$0xff] }
 0x373   :  { %v2255_v3 = vsel %vm2118_vm2, %v1955_v40, -inf  ;;  %v163_v40 = vld [vmem:[%s14283_s0 + $0x3d8] sm:$0xff] }
 0x374   :  { %v2256_v27 = vmax.f32 %v2254_v62, %v2255_v3  ;;  %v164_v62 = vld [vmem:[%s14283_s0 + $0x3e0] sm:$0xff] }
 0x376   :  { %v2570_v31 = vsel %vm2118_vm2, %v2256_v27, -inf  ;;  %v1376_v52 = vpop.f32.mrf.mxu0  ;;  %v165_v27 = vld [vmem:[%s14283_s0 + $0x3e8] sm:$0xff] }
 0x377   :  { %v2571_v28 = vmax.f32 %v2569_v56, %v2570_v31  ;;  %v1377_v8 = vadd.f32 %v10047_v20, %v1376_v52  ;;  %v166_v31 = vld [vmem:[%s14283_s0 + $0x3f0] sm:$0xff]  ;;  %v3025_v52 = vld [vmem:[#allocation2 + $0x140] sm:$0xff] }
 0x379   :  { %2757 = vst.msk [vmem:[#allocation2 + $0x128] sm:$0xff] %vm2118_vm2, %v2571_v28  ;;  %8275 = vmatmul.msk.f32.gmra.mxu0 %vm304_vm1, %v150_v13  ;;  %v1956_v33 = vmax.f32 %v1377_v8, 0.0  ;;  %v10552_v13 = vpop.f32.mrf.mxu1  ;;  %v167_v8 = vld [vmem:[%s14283_s0 + $0x3f8] sm:$0xff] }
 0x37b   :  { %v2258_v24 = vsel %vm2118_vm2, %v1956_v33, -inf }
 0x37c   :  { %v2259_v4 = vmax.f32 %v2257_v14, %v2258_v24 }
 0x37e   :  { %v1379_v16 = vpop.f32.mrf.mxu0  ;;  %v2572_v46 = vsel %vm2118_vm2, %v2259_v4, -inf }
 0x37f   :  { %v1380_v60 = vadd.f32 %v10047_v20, %v1379_v16 }
 0x380   :  { %v3024_v48 = vld [vmem:[#allocation2 + $0x128] sm:$0xff] }
 0x381   :  { %v1957_v30 = vmax.f32 %v1380_v60, 0.0  ;;  %8276 = vmatmul.msk.f32.gmra.mxu0 %vm304_vm1, %v151_v10  ;;  %8450 = vmatmul.msk.f32.gmra.mxu1 %vm2118_vm2, %v3024_v48  ;;  %v169_v60 = vld [vmem:[%s14283_s0 + $0x408] sm:$0xff] }
 0x383   :  { %v2261_v26 = vsel %vm2118_vm2, %v1957_v30, -inf }
 0x384   :  { %v2262_v35 = vmax.f32 %v2260_v23, %v2261_v26 }
 0x386   :  { %v2573_v39 = vsel %vm2118_vm2, %v2262_v35, -inf  ;;  %v1382_v44 = vpop.f32.mrf.mxu0 }
 0x387   :  { %v2574_v18 = vmax.f32 %v2572_v46, %v2573_v39  ;;  %v1383_v7 = vadd.f32 %v10047_v20, %v1382_v44 }
 0x389   :  { %2758 = vst.msk [vmem:[#allocation2 + $0x130] sm:$0xff] %vm2118_vm2, %v2574_v18  ;;  %8277 = vmatmul.msk.f32.gmra.mxu0 %vm304_vm1, %v152_v47  ;;  %8451 = vmatmul.msk.f32.gmra.mxu1 %vm2118_vm2, %v3025_v52  ;;  %v1958_v32 = vmax.f32 %v1383_v7, 0.0 }
 0x38b   :  { %v2263_v4 = vsel %vm2118_vm2, %v1958_v32, -inf }
 0x38e   :  { %v1385_v54 = vpop.f32.mrf.mxu0 }
 0x38f   :  { %v1386_v16 = vadd.f32 %v10047_v20, %v1385_v54 }
 0x391   :  { %8278 = vmatmul.msk.f32.gmra.mxu0 %vm304_vm1, %v153_v11  ;;  %v1959_v48 = vmax.f32 %v1386_v16, 0.0  ;;  %v10586_v11 = vld [vmem:[%s14284_s2] ss:$0 sm:$0xff] }
 0x392   :  { %v172_v16 = vld [vmem:[%s14283_s0 + $0x420] sm:$0xff] }
 0x393   :  { %v2266_v35 = vsel %vm2118_vm2, %v1959_v48, -inf }
 0x396   :  { %v10475_v34 = vpop.f32.mrf.mxu0 }
 0x399   :  { %8279 = vmatmul.msk.f32.gmra.mxu0 %vm304_vm1, %v154_v55 }
 0x39e   :  { %v10481_v58 = vpop.f32.mrf.mxu0 }
 0x3a1   :  { %8280 = vmatmul.msk.f32.gmra.mxu0 %vm304_vm1, %v155_v15  ;;  %v1389_v15 = vadd.f32 %v10586_v11, %v10475_v34 }
 0x3a6   :  { %v10487_v0 = vpop.f32.mrf.mxu0 }
 0x3a9   :  { %8281 = vmatmul.msk.f32.gmra.mxu0 %vm304_vm1, %v156_v36  ;;  %v1392_v36 = vadd.f32 %v10586_v11, %v10481_v58 }
 0x3ae   :  { %v10493_v51 = vpop.f32.mrf.mxu0 }
 0x3b1   :  { %8282 = vmatmul.msk.f32.gmra.mxu0 %vm304_vm1, %v157_v43 }
 0x3b6   :  { %v10499_v42 = vpop.f32.mrf.mxu0 }
 0x3b9   :  { %8283 = vmatmul.msk.f32.gmra.mxu0 %vm304_vm1, %v158_v2  ;;  %v1960_v2 = vmax.f32 %v1389_v15, 0.0 }
 0x3be   :  { %v10505_v17 = vpop.f32.mrf.mxu0 }
 0x3c1   :  { %8284 = vmatmul.msk.f32.gmra.mxu0 %vm304_vm1, %v159_v63 }
 0x3c6   :  { %v10511_v29 = vpop.f32.mrf.mxu0 }
 0x3c9   :  { %8285 = vmatmul.msk.f32.gmra.mxu0 %vm304_vm1, %v160_v50  ;;  %v171_v50 = vld [vmem:[%s14283_s0 + $0x418] sm:$0xff] }
 0x3ce   :  { %v10517_v6 = vpop.f32.mrf.mxu0 }
 0x3d1   :  { %8286 = vmatmul.msk.f32.gmra.mxu0 %vm304_vm1, %v161_v12  ;;  %v1961_v12 = vmax.f32 %v1392_v36, 0.0  ;;  %v174_v36 = vld [vmem:[%s14283_s0 + $0x430] sm:$0xff] }
 0x3d3   :  { %v2272_v52 = vsel %vm2118_vm2, %v1961_v12, -inf }
 0x3d6   :  { %v10523_v38 = vpop.f32.mrf.mxu0 }
 0x3d9   :  { %8287 = vmatmul.msk.f32.gmra.mxu0 %vm304_vm1, %v162_v19 }
 0x3de   :  { %v10529_v59 = vpop.f32.mrf.mxu0 }
 0x3e1   :  { %8288 = vmatmul.msk.f32.gmra.mxu0 %vm304_vm1, %v163_v40 }
 0x3e6   :  { %v10535_v21 = vpop.f32.mrf.mxu0 }
 0x3e9   :  { %8289 = vmatmul.msk.f32.gmra.mxu0 %vm304_vm1, %v164_v62  ;;  %v10600_v62 = vpop.f32.mrf.mxu1 }
 0x3ee   :  { %v10541_v3 = vpop.f32.mrf.mxu0 }
 0x3f1   :  { %8290 = vmatmul.msk.f32.gmra.mxu0 %vm304_vm1, %v165_v27  ;;  %v2269_v27 = vsel %vm2118_vm2, %v1960_v2, -inf }
 0x3f6   :  { %v10547_v56 = vpop.f32.mrf.mxu0 }
 0x3f9   :  { %8291 = vmatmul.msk.f32.gmra.mxu0 %vm304_vm1, %v166_v31 }
 0x3fe   :  { %v10556_v28 = vpop.f32.mrf.mxu0 }
 0x401   :  { %8292 = vmatmul.msk.f32.gmra.mxu0 %vm304_vm1, %v167_v8 }
 0x406   :  { %v1430_v22 = vpop.f32.mrf.mxu0 }
 0x407   :  { %v1431_v33 = vadd.f32 %v10047_v20, %v1430_v22 }
 0x409   :  { %8293 = vmatmul.msk.f32.gmra.mxu0 %vm304_vm1, %v168_v25  ;;  %v1974_v10 = vmax.f32 %v1431_v33, 0.0 }
 0x40b   :  { %v2264_v14 = vsel %vm2118_vm2, %v1974_v10, -inf }
 0x40c   :  { %v2265_v26 = vmax.f32 %v2263_v4, %v2264_v14  ;;  %v173_v4 = vld [vmem:[%s14283_s0 + $0x428] sm:$0xff] }
 0x40e   :  { %v1433_v24 = vpop.f32.mrf.mxu0  ;;  %v2575_v44 = vsel %vm2118_vm2, %v2265_v26, -inf }
 0x40f   :  { %v1434_v30 = vadd.f32 %v10047_v20, %v1433_v24  ;;  %v170_v20 = vld [vmem:[%s14283_s0 + $0x410] sm:$0xff]  ;;  %v1395_v24 = vadd.f32 %v10586_v11, %v10487_v0 }
 0x411   :  { %v1975_v23 = vmax.f32 %v1434_v30, 0.0  ;;  %8294 = vmatmul.msk.f32.gmra.mxu0 %vm304_vm1, %v169_v60  ;;  %v1398_v60 = vadd.f32 %v10586_v11, %v10493_v51  ;;  %v1962_v14 = vmax.f32 %v1395_v24, 0.0  ;;  %v176_v24 = vld [vmem:[%s14283_s0 + $0x440] sm:$0xff] }
 0x413   :  { %v2267_v46 = vsel %vm2118_vm2, %v1975_v23, -inf  ;;  %v1963_v23 = vmax.f32 %v1398_v60, 0.0 }
 0x414   :  { %v2268_v39 = vmax.f32 %v2266_v35, %v2267_v46  ;;  %v10624_v46 = vpop.f32.mrf.mxu1 }
 0x416   :  { %v2576_v47 = vsel %vm2118_vm2, %v2268_v39, -inf  ;;  %v1436_v18 = vpop.f32.mrf.mxu0  ;;  %v2275_v39 = vsel %vm2118_vm2, %v1962_v14, -inf  ;;  %v1407_v14 = vadd.f32 %v10586_v11, %v10511_v29 }
 0x417   :  { %v2577_v54 = vmax.f32 %v2575_v44, %v2576_v47  ;;  %v1437_v55 = vadd.f32 %v10586_v11, %v1436_v18  ;;  %v2278_v47 = vsel %vm2118_vm2, %v1963_v23, -inf }
 0x418   :  { %v1966_v23 = vmax.f32 %v1407_v14, 0.0 }
 0x419   :  { %2759 = vst.msk [vmem:[#allocation2 + $0x148] sm:$0xff] %vm2118_vm2, %v2577_v54  ;;  %8295 = vmatmul.msk.f32.gmra.mxu0 %vm304_vm1, %v170_v20  ;;  %v1976_v43 = vmax.f32 %v1437_v55, 0.0 }
 0x41b   :  { %v2270_v19 = vsel %vm2118_vm2, %v1976_v43, -inf }
 0x41c   :  { %v2271_v58 = vmax.f32 %v2269_v27, %v2270_v19 }
 0x41e   :  { %v1439_v63 = vpop.f32.mrf.mxu0  ;;  %v2578_v25 = vsel %vm2118_vm2, %v2271_v58, -inf }
 0x41f   :  { %v1440_v40 = vadd.f32 %v10586_v11, %v1439_v63  ;;  %v1401_v63 = vadd.f32 %v10586_v11, %v10499_v42 }
 0x420   :  { %v3026_v34 = vld [vmem:[#allocation2 + $0x148] sm:$0xff] }
 0x421   :  { %v1977_v31 = vmax.f32 %v1440_v40, 0.0  ;;  %8296 = vmatmul.msk.f32.gmra.mxu0 %vm304_vm1, %v171_v50  ;;  %8452 = vmatmul.msk.f32.gmra.mxu1 %vm2118_vm2, %v3026_v34  ;;  %v1404_v50 = vadd.f32 %v10586_v11, %v10505_v17  ;;  %v1964_v19 = vmax.f32 %v1401_v63, 0.0  ;;  %v175_v34 = vld [vmem:[%s14283_s0 + $0x438] sm:$0xff] }
 0x423   :  { %v2273_v8 = vsel %vm2118_vm2, %v1977_v31, -inf  ;;  %v1965_v27 = vmax.f32 %v1404_v50, 0.0 }
 0x424   :  { %v2274_v22 = vmax.f32 %v2272_v52, %v2273_v8  ;;  %v10648_v52 = vpop.f32.mrf.mxu1  ;;  %v2281_v8 = vsel %vm2118_vm2, %v1964_v19, -inf  ;;  %v1416_v19 = vadd.f32 %v10586_v11, %v10529_v59 }
 0x426   :  { %v2579_v33 = vsel %vm2118_vm2, %v2274_v22, -inf  ;;  %v1442_v7 = vpop.f32.mrf.mxu0 }
 0x427   :  { %v2580_v10 = vmax.f32 %v2578_v25, %v2579_v33  ;;  %v1443_v32 = vadd.f32 %v10586_v11, %v1442_v7  ;;  %v2284_v25 = vsel %vm2118_vm2, %v1965_v27, -inf }
 0x429   :  { %2760 = vst.msk [vmem:[#allocation2 + $0x150] sm:$0xff] %vm2118_vm2, %v2580_v10  ;;  %8297 = vmatmul.msk.f32.gmra.mxu0 %vm304_vm1, %v172_v16  ;;  %v1978_v48 = vmax.f32 %v1443_v32, 0.0 }
 0x42b   :  { %v2276_v26 = vsel %vm2118_vm2, %v1978_v48, -inf }
 0x42c   :  { %v2277_v51 = vmax.f32 %v2275_v39, %v2276_v26 }
 0x42e   :  { %v1445_v30 = vpop.f32.mrf.mxu0  ;;  %v2581_v54 = vsel %vm2118_vm2, %v2277_v51, -inf  ;;  %v10672_v51 = vpop.f32.mrf.mxu1 }
 0x42f   :  { %v1446_v35 = vadd.f32 %v10586_v11, %v1445_v30  ;;  %v1410_v30 = vadd.f32 %v10586_v11, %v10517_v6  ;;  %14311 = vst [vmem:[#allocation4_spill] sm:$0xff] %v10672_v51 }
 0x430   :  { %v3027_v0 = vld [vmem:[#allocation2 + $0x150] sm:$0xff] }
 0x431   :  { %v1979_v44 = vmax.f32 %v1446_v35, 0.0  ;;  %8298 = vmatmul.msk.f32.gmra.mxu0 %vm304_vm1, %v173_v4  ;;  %8453 = vmatmul.msk.f32.gmra.mxu1 %vm2118_vm2, %v3027_v0  ;;  %v177_v35 = vld [vmem:[%s14283_s0 + $0x448] sm:$0xff]  ;;  %v1967_v0 = vmax.f32 %v1410_v30, 0.0  ;;  %v1419_v30 = vadd.f32 %v10586_v11, %v10535_v21 }
 0x433   :  { %v2279_v18 = vsel %vm2118_vm2, %v1979_v44, -inf }
 0x434   :  { %v2280_v20 = vmax.f32 %v2278_v47, %v2279_v18  ;;  %v2287_v47 = vsel %vm2118_vm2, %v1966_v23, -inf }
 0x436   :  { %v2582_v55 = vsel %vm2118_vm2, %v2280_v20, -inf  ;;  %v1448_v15 = vpop.f32.mrf.mxu0  ;;  %v2290_v20 = vsel %vm2118_vm2, %v1967_v0, -inf  ;;  %v181_v0 = vld [vmem:[%s14283_s0 + $0x468] sm:$0xff] }
 0x437   :  { %v2583_v43 = vmax.f32 %v2581_v54, %v2582_v55  ;;  %v1449_v2 = vadd.f32 %v10586_v11, %v1448_v15 }
 0x439   :  { %2761 = vst.msk [vmem:[#allocation2 + $0x158] sm:$0xff] %vm2118_vm2, %v2583_v43  ;;  %8299 = vmatmul.msk.f32.gmra.mxu0 %vm304_vm1, %v174_v36  ;;  %v1980_v12 = vmax.f32 %v1449_v2, 0.0  ;;  %v178_v2 = vld [vmem:[%s14283_s0 + $0x450] sm:$0xff] }
 0x43b   :  { %v2282_v31 = vsel %vm2118_vm2, %v1980_v12, -inf  ;;  %v1413_v12 = vadd.f32 %v10586_v11, %v10523_v38 }
 0x43c   :  { %v2283_v17 = vmax.f32 %v2281_v8, %v2282_v31  ;;  %v179_v31 = vld [vmem:[%s14283_s0 + $0x458] sm:$0xff] }
 0x43e   :  { %v1451_v40 = vpop.f32.mrf.mxu0  ;;  %v2584_v16 = vsel %vm2118_vm2, %v2283_v17, -inf }
 0x43f   :  { %v1452_v58 = vadd.f32 %v10586_v11, %v1451_v40 }
 0x440   :  { %v3028_v42 = vld [vmem:[#allocation2 + $0x158] sm:$0xff] }
 0x441   :  { %v1981_v22 = vmax.f32 %v1452_v58, 0.0  ;;  %8300 = vmatmul.msk.f32.gmra.mxu0 %vm304_vm1, %v175_v34  ;;  %8454 = vmatmul.msk.f32.gmra.mxu1 %vm2118_vm2, %v3028_v42  ;;  %v1968_v34 = vmax.f32 %v1413_v12, 0.0  ;;  %v1969_v58 = vmax.f32 %v1416_v19, 0.0  ;;  %v1425_v12 = vadd.f32 %v10586_v11, %v10547_v56 }
 0x442   :  { %v1428_v19 = vadd.f32 %v10586_v11, %v10556_v28 }
 0x443   :  { %v2285_v33 = vsel %vm2118_vm2, %v1981_v22, -inf  ;;  %v10696_v22 = vpop.f32.mrf.mxu1  ;;  %v2293_v17 = vsel %vm2118_vm2, %v1968_v34, -inf  ;;  %v1972_v34 = vmax.f32 %v1425_v12, 0.0 }
 0x444   :  { %v2286_v7 = vmax.f32 %v2284_v25, %v2285_v33  ;;  %14312 = vst [vmem:[#allocation5_spill] sm:$0xff] %v10696_v22  ;;  %v2296_v33 = vsel %vm2118_vm2, %v1969_v58, -inf  ;;  %v1973_v58 = vmax.f32 %v1428_v19, 0.0 }
 0x446   :  { %v2585_v10 = vsel %vm2118_vm2, %v2286_v7, -inf  ;;  %v1454_v32 = vpop.f32.mrf.mxu0 }
 0x447   :  { %v2586_v60 = vmax.f32 %v2584_v16, %v2585_v10  ;;  %v1455_v48 = vadd.f32 %v10586_v11, %v1454_v32 }
 0x449   :  { %2762 = vst.msk [vmem:[#allocation2 + $0x160] sm:$0xff] %vm2118_vm2, %v2586_v60  ;;  %8301 = vmatmul.msk.f32.gmra.mxu0 %vm304_vm1, %v176_v24  ;;  %v1982_v4 = vmax.f32 %v1455_v48, 0.0  ;;  %v180_v60 = vld [vmem:[%s14283_s0 + $0x460] sm:$0xff] }
 0x44b   :  { %v2288_v39 = vsel %vm2118_vm2, %v1982_v4, -inf  ;;  %v1422_v4 = vadd.f32 %v10586_v11, %v10541_v3 }
 0x44c   :  { %v2289_v6 = vmax.f32 %v2287_v47, %v2288_v39  ;;  %v10720_v47 = vpop.f32.mrf.mxu1 }
 0x44d   :  { %v1971_v39 = vmax.f32 %v1422_v4, 0.0  ;;  %14313 = vst [vmem:[#allocation6_spill] sm:$0xff] %v10720_v47  ;;  %v186_v4 = vld [vmem:[%s14283_s0 + $0x490] sm:$0xff] }
 0x44e   :  { %v1457_v26 = vpop.f32.mrf.mxu0  ;;  %v2587_v15 = vsel %vm2118_vm2, %v2289_v6, -inf }
 0x44f   :  { %v1458_v44 = vadd.f32 %v10586_v11, %v1457_v26  ;;  %v1970_v26 = vmax.f32 %v1419_v30, 0.0 }
 0x450   :  { %v3029_v29 = vld [vmem:[#allocation2 + $0x160] sm:$0xff] }
 0x451   :  { %v1983_v18 = vmax.f32 %v1458_v44, 0.0  ;;  %8302 = vmatmul.msk.f32.gmra.mxu0 %vm304_vm1, %v177_v35  ;;  %8455 = vmatmul.msk.f32.gmra.mxu1 %vm2118_vm2, %v3029_v29 }
 0x453   :  { %v2291_v54 = vsel %vm2118_vm2, %v1983_v18, -inf  ;;  %v2299_v18 = vsel %vm2118_vm2, %v1970_v26, -inf  ;;  %v187_v26 = vld [vmem:[%s14283_s0 + $0x498] sm:$0xff] }
 0x454   :  { %v2292_v55 = vmax.f32 %v2290_v20, %v2291_v54  ;;  %v2302_v20 = vsel %vm2118_vm2, %v1971_v39, -inf }
 0x456   :  { %v2588_v36 = vsel %vm2118_vm2, %v2292_v55, -inf  ;;  %v1460_v43 = vpop.f32.mrf.mxu0 }
 0x457   :  { %v2589_v63 = vmax.f32 %v2587_v15, %v2588_v36  ;;  %v1461_v50 = vadd.f32 %v10586_v11, %v1460_v43 }
 0x459   :  { %2763 = vst.msk [vmem:[#allocation2 + $0x168] sm:$0xff] %vm2118_vm2, %v2589_v63  ;;  %8303 = vmatmul.msk.f32.gmra.mxu0 %vm304_vm1, %v178_v2  ;;  %v1984_v40 = vmax.f32 %v1461_v50, 0.0  ;;  %v182_v2 = vld [vmem:[%s14283_s0 + $0x470] sm:$0xff] }
 0x45b   :  { %v2294_v42 = vsel %vm2118_vm2, %v1984_v40, -inf }
 0x45c   :  { %v2295_v59 = vmax.f32 %v2293_v17, %v2294_v42  ;;  %v2305_v17 = vsel %vm2118_vm2, %v1972_v34, -inf }
 0x45e   :  { %v1463_v27 = vpop.f32.mrf.mxu0  ;;  %v2590_v10 = vsel %vm2118_vm2, %v2295_v59, -inf  ;;  %v2308_v59 = vsel %vm2118_vm2, %v1973_v58, -inf  ;;  %v3033_v58 = vld [vmem:[#allocation2 + $0x190] sm:$0xff] }
 0x45f   :  { %v1464_v8 = vadd.f32 %v10586_v11, %v1463_v27 }
 0x460   :  { %v3030_v38 = vld [vmem:[#allocation2 + $0x168] sm:$0xff] }
 0x461   :  { %v1985_v25 = vmax.f32 %v1464_v8, 0.0  ;;  %8304 = vmatmul.msk.f32.gmra.mxu0 %vm304_vm1, %v179_v31  ;;  %8456 = vmatmul.msk.f32.gmra.mxu1 %vm2118_vm2, %v3030_v38  ;;  %v183_v31 = vld [vmem:[%s14283_s0 + $0x478] sm:$0xff]  ;;  %v10744_v38 = vpop.f32.mrf.mxu1 }
 0x462   :  { %14314 = vst [vmem:[#allocation7_spill] sm:$0xff] %v10744_v38 }
 0x463   :  { %v2297_v7 = vsel %vm2118_vm2, %v1985_v25, -inf }
 0x464   :  { %v2298_v16 = vmax.f32 %v2296_v33, %v2297_v7 }
 0x466   :  { %v2591_v32 = vsel %vm2118_vm2, %v2298_v16, -inf  ;;  %v1466_v24 = vpop.f32.mrf.mxu0 }
 0x467   :  { %v2592_v48 = vmax.f32 %v2590_v10, %v2591_v32  ;;  %v1467_v14 = vadd.f32 %v10586_v11, %v1466_v24  ;;  %v184_v24 = vld [vmem:[%s14283_s0 + $0x480] sm:$0xff] }
 0x469   :  { %2764 = vst.msk [vmem:[#allocation2 + $0x170] sm:$0xff] %vm2118_vm2, %v2592_v48  ;;  %8305 = vmatmul.msk.f32.gmra.mxu0 %vm304_vm1, %v180_v60  ;;  %v1986_v23 = vmax.f32 %v1467_v14, 0.0  ;;  %v185_v14 = vld [vmem:[%s14283_s0 + $0x488] sm:$0xff]  ;;  %v10828_v12 = vpop.f32.mrf.mxu1 }
 0x46a   :  { %14315 = vst [vmem:[#allocation8_spill] sm:$0xff] %v10828_v12 }
 0x46b   :  { %v2300_v44 = vsel %vm2118_vm2, %v1986_v23, -inf }
 0x46c   :  { %v2301_v3 = vmax.f32 %v2299_v18, %v2300_v44  ;;  %v189_v44 = vld [vmem:[%s14283_s0 + $0x4a8] sm:$0xff] }
 0x46e   :  { %v1469_v35 = vpop.f32.mrf.mxu0  ;;  %v2593_v15 = vsel %vm2118_vm2, %v2301_v3, -inf }
 0x46f   :  { %v1470_v29 = vadd.f32 %v10586_v11, %v1469_v35 }
 0x470   :  { %v3031_v21 = vld [vmem:[#allocation2 + $0x170] sm:$0xff] }
 0x471   :  { %v1987_v6 = vmax.f32 %v1470_v29, 0.0  ;;  %8306 = vmatmul.msk.f32.gmra.mxu0 %vm304_vm1, %v181_v0  ;;  %8457 = vmatmul.msk.f32.gmra.mxu1 %vm2118_vm2, %v3031_v21  ;;  %v188_v0 = vld [vmem:[%s14283_s0 + $0x4a0] sm:$0xff]  ;;  %v190_v21 = vld [vmem:[%s14283_s0 + $0x4b0] sm:$0xff] }
 0x473   :  { %v2303_v54 = vsel %vm2118_vm2, %v1987_v6, -inf  ;;  %v191_v6 = vld [vmem:[%s14283_s0 + $0x4b8] sm:$0xff] }
 0x474   :  { %v2304_v55 = vmax.f32 %v2302_v20, %v2303_v54  ;;  %v192_v20 = vld [vmem:[%s14283_s0 + $0x4c0] sm:$0xff] }
 0x476   :  { %v2594_v36 = vsel %vm2118_vm2, %v2304_v55, -inf  ;;  %v1472_v43 = vpop.f32.mrf.mxu0  ;;  %v193_v55 = vld [vmem:[%s14283_s0 + $0x4c8] sm:$0xff] }
 0x477   :  { %v2595_v63 = vmax.f32 %v2593_v15, %v2594_v36  ;;  %v1473_v50 = vadd.f32 %v10586_v11, %v1472_v43  ;;  %v194_v36 = vld [vmem:[%s14283_s0 + $0x4d0] sm:$0xff] }
 0x479   :  { %2765 = vst.msk [vmem:[#allocation2 + $0x178] sm:$0xff] %vm2118_vm2, %v2595_v63  ;;  %8307 = vmatmul.msk.f32.gmra.mxu0 %vm304_vm1, %v182_v2  ;;  %v1988_v40 = vmax.f32 %v1473_v50, 0.0  ;;  %v195_v2 = vld [vmem:[%s14283_s0 + $0x4d8] sm:$0xff]  ;;  %v196_v50 = vld [vmem:[%s14283_s0 + $0x4e0] sm:$0xff] }
 0x47b   :  { %v2306_v42 = vsel %vm2118_vm2, %v1988_v40, -inf  ;;  %v197_v40 = vld [vmem:[%s14283_s0 + $0x4e8] sm:$0xff] }
 0x47c   :  { %v2307_v28 = vmax.f32 %v2305_v17, %v2306_v42 }
 0x47e   :  { %v1475_v27 = vpop.f32.mrf.mxu0  ;;  %v2596_v16 = vsel %vm2118_vm2, %v2307_v28, -inf }
 0x47f   :  { %v1476_v8 = vadd.f32 %v10586_v11, %v1475_v27  ;;  %v198_v27 = vld [vmem:[%s14283_s0 + $0x4f0] sm:$0xff] }
 0x480   :  { %v3032_v56 = vld [vmem:[#allocation2 + $0x178] sm:$0xff] }
 0x481   :  { %v1989_v25 = vmax.f32 %v1476_v8, 0.0  ;;  %8308 = vmatmul.msk.f32.gmra.mxu0 %vm304_vm1, %v183_v31  ;;  %8458 = vmatmul.msk.f32.gmra.mxu1 %vm2118_vm2, %v3032_v56  ;;  %v10841_v31 = vpop.f32.mrf.mxu1  ;;  %v199_v8 = vld [vmem:[%s14283_s0 + $0x4f8] sm:$0xff] }
 0x482   :  { %14316 = vst [vmem:[#allocation9_spill] sm:$0xff] %v10841_v31 }
 0x483   :  { %v2309_v33 = vsel %vm2118_vm2, %v1989_v25, -inf  ;;  %v200_v25 = vld [vmem:[%s14283_s0 + $0x500] sm:$0xff] }
 0x484   :  { %v2310_v7 = vmax.f32 %v2308_v59, %v2309_v33 }
 0x486   :  { %v2597_v10 = vsel %vm2118_vm2, %v2310_v7, -inf  ;;  %v1478_v32 = vpop.f32.mrf.mxu0 }
 0x487   :  { %v2598_v60 = vmax.f32 %v2596_v16, %v2597_v10  ;;  %v1479_v33 = vadd.f32 %v10586_v11, %v1478_v32 }
 0x489   :  { %2766 = vst.msk [vmem:[#allocation2 + $0x180] sm:$0xff] %vm2118_vm2, %v2598_v60  ;;  %8309 = vmatmul.msk.f32.gmra.mxu0 %vm304_vm1, %v184_v24  ;;  %8459 = vmatmul.msk.f32.gmra.mxu1 %vm2118_vm2, %v3033_v58  ;;  %v10850_v56 = vpop.f32.mrf.mxu1  ;;  %v1990_v10 = vmax.f32 %v1479_v33, 0.0  ;;  %v201_v60 = vld [vmem:[%s14283_s0 + $0x508] sm:$0xff] }
 0x48a   :  { %14317 = vst [vmem:[#allocation10_spill] sm:$0xff] %v10850_v56 }
 0x48b   :  { %v2311_v32 = vsel %vm2118_vm2, %v1990_v10, -inf }
 0x48e   :  { %v1481_v48 = vpop.f32.mrf.mxu0 }
 0x48f   :  { %v1482_v7 = vadd.f32 %v10586_v11, %v1481_v48 }
 0x491   :  { %8310 = vmatmul.msk.f32.gmra.mxu0 %vm304_vm1, %v185_v14  ;;  %v10857_v59 = vpop.f32.mrf.mxu1  ;;  %v1991_v14 = vmax.f32 %v1482_v7, 0.0  ;;  %v203_v7 = vld [vmem:[%s14283_s0 + $0x518] sm:$0xff] }
 0x492   :  { %14318 = vst [vmem:[#allocation11_spill] sm:$0xff] %v10857_v59 }
 0x496   :  { %v10762_v30 = vpop.f32.mrf.mxu0 }
 0x499   :  { %8311 = vmatmul.msk.f32.gmra.mxu0 %vm304_vm1, %v186_v4 }
 0x49e   :  { %v10768_v23 = vpop.f32.mrf.mxu0 }
 0x4a1   :  { %8312 = vmatmul.msk.f32.gmra.mxu0 %vm304_vm1, %v187_v26 }
 0x4a6   :  { %v10774_v35 = vpop.f32.mrf.mxu0 }
 0x4a9   :  { %8313 = vmatmul.msk.f32.gmra.mxu0 %vm304_vm1, %v188_v0  ;;  %v10867_v0 = vpop.f32.mrf.mxu1 }
 0x4aa   :  { %14319 = vst [vmem:[#allocation12_spill] sm:$0xff] %v10867_v0 }
 0x4ae   :  { %v10780_v39 = vpop.f32.mrf.mxu0 }
 0x4b1   :  { %8314 = vmatmul.msk.f32.gmra.mxu0 %vm304_vm1, %v189_v44  ;;  %v10879_v58 = vpop.f32.mrf.mxu1 }
 0x4b2   :  { %14320 = vst [vmem:[#allocation13_spill] sm:$0xff] %v10879_v58 }
 0x4b6   :  { %v10786_v29 = vpop.f32.mrf.mxu0 }
 0x4b9   :  { %8315 = vmatmul.msk.f32.gmra.mxu0 %vm304_vm1, %v190_v21  ;;  %v2314_v21 = vsel %vm2118_vm2, %v1991_v14, -inf }
 0x4be   :  { %v10792_v18 = vpop.f32.mrf.mxu0 }
 0x4c1   :  { %8316 = vmatmul.msk.f32.gmra.mxu0 %vm304_vm1, %v191_v6 }
 0x4c6   :  { %v10798_v3 = vpop.f32.mrf.mxu0 }
 0x4c9   :  { %8317 = vmatmul.msk.f32.gmra.mxu0 %vm304_vm1, %v192_v20 }
 0x4ce   :  { %v10804_v54 = vpop.f32.mrf.mxu0 }
 0x4d1   :  { %8318 = vmatmul.msk.f32.gmra.mxu0 %vm304_vm1, %v193_v55 }
 0x4d6   :  { %v10810_v15 = vpop.f32.mrf.mxu0 }
 0x4d9   :  { %8319 = vmatmul.msk.f32.gmra.mxu0 %vm304_vm1, %v194_v36 }
 0x4de   :  { %v10816_v43 = vpop.f32.mrf.mxu0 }
 0x4e1   :  { %8320 = vmatmul.msk.f32.gmra.mxu0 %vm304_vm1, %v195_v2 }
 0x4e6   :  { %v10822_v63 = vpop.f32.mrf.mxu0 }
 0x4e9   :  { %8321 = vmatmul.msk.f32.gmra.mxu0 %vm304_vm1, %v196_v50  ;;  %v202_v50 = vld [vmem:[%s14283_s0 + $0x510] sm:$0xff] }
 0x4ee   :  { %v10830_v19 = vpop.f32.mrf.mxu0 }
 0x4f1   :  { %8322 = vmatmul.msk.f32.gmra.mxu0 %vm304_vm1, %v197_v40 }
 0x4f6   :  { %v10836_v34 = vpop.f32.mrf.mxu0 }
 0x4f9   :  { %8323 = vmatmul.msk.f32.gmra.mxu0 %vm304_vm1, %v198_v27 }
 0x4fe   :  { %v10845_v42 = vpop.f32.mrf.mxu0 }
 0x501   :  { %8324 = vmatmul.msk.f32.gmra.mxu0 %vm304_vm1, %v199_v8  ;;  %v1485_v8 = vadd.f32 %v10586_v11, %v10762_v30  ;;  %v10892_v30 = vpop.f32.mrf.mxu1 }
 0x502   :  { %14321 = vst [vmem:[#allocation14_spill] sm:$0xff] %v10892_v30 }
 0x506   :  { %v1526_v17 = vpop.f32.mrf.mxu0 }
 0x507   :  { %v1527_v28 = vadd.f32 %v10586_v11, %v1526_v17  ;;  %v1488_v17 = vadd.f32 %v10586_v11, %v10768_v23 }
 0x509   :  { %8325 = vmatmul.msk.f32.gmra.mxu0 %vm304_vm1, %v200_v25  ;;  %v2006_v16 = vmax.f32 %v1527_v28, 0.0  ;;  %v1992_v28 = vmax.f32 %v1485_v8, 0.0 }
 0x50b   :  { %v2312_v4 = vsel %vm2118_vm2, %v2006_v16, -inf  ;;  %v1993_v16 = vmax.f32 %v1488_v17, 0.0  ;;  %v2317_v14 = vsel %vm2118_vm2, %v1992_v28, -inf }
 0x50c   :  { %v2313_v48 = vmax.f32 %v2311_v32, %v2312_v4 }
 0x50e   :  { %v1529_v24 = vpop.f32.mrf.mxu0  ;;  %v2599_v55 = vsel %vm2118_vm2, %v2313_v48, -inf }
 0x50f   :  { %v1530_v26 = vadd.f32 %v10586_v11, %v1529_v24 }
 0x511   :  { %v2007_v44 = vmax.f32 %v1530_v26, 0.0  ;;  %8326 = vmatmul.msk.f32.gmra.mxu0 %vm304_vm1, %v201_v60  ;;  %v2320_v26 = vsel %vm2118_vm2, %v1993_v16, -inf }
 0x513   :  { %v2315_v6 = vsel %vm2118_vm2, %v2007_v44, -inf }
 0x514   :  { %v2316_v20 = vmax.f32 %v2314_v21, %v2315_v6 }
 0x516   :  { %v2600_v36 = vsel %vm2118_vm2, %v2316_v20, -inf  ;;  %v1532_v2 = vpop.f32.mrf.mxu0  ;;  %v204_v20 = vld [vmem:[%s14283_s0 + $0x520] sm:$0xff] }
 0x517   :  { %v2601_v40 = vmax.f32 %v2599_v55, %v2600_v36  ;;  %v1533_v27 = vadd.f32 %v10586_v11, %v1532_v2  ;;  %v10905_v2 = vpop.f32.mrf.mxu1 }
 0x518   :  { %14322 = vst [vmem:[#allocation15_spill] sm:$0xff] %v10905_v2 }
 0x519   :  { %2767 = vst.msk [vmem:[#allocation2 + $0x198] sm:$0xff] %vm2118_vm2, %v2601_v40  ;;  %8327 = vmatmul.msk.f32.gmra.mxu0 %vm304_vm1, %v202_v50  ;;  %v2008_v25 = vmax.f32 %v1533_v27, 0.0  ;;  %v1491_v50 = vadd.f32 %v10586_v11, %v10774_v35  ;;  %v1494_v40 = vadd.f32 %v10586_v11, %v10780_v39 }
 0x51b   :  { %v2318_v10 = vsel %vm2118_vm2, %v2008_v25, -inf  ;;  %v1994_v8 = vmax.f32 %v1491_v50, 0.0  ;;  %v205_v25 = vld [vmem:[%s14283_s0 + $0x528] sm:$0xff]  ;;  %v1995_v28 = vmax.f32 %v1494_v40, 0.0 }
 0x51c   :  { %v2319_v23 = vmax.f32 %v2317_v14, %v2318_v10 }
 0x51d   :  { %v2323_v10 = vsel %vm2118_vm2, %v1994_v8, -inf }
 0x51e   :  { %v1535_v33 = vpop.f32.mrf.mxu0  ;;  %v2602_v48 = vsel %vm2118_vm2, %v2319_v23, -inf }
 0x51f   :  { %v1536_v24 = vadd.f32 %v10586_v11, %v1535_v33  ;;  %v10918_v35 = vpop.f32.mrf.mxu1 }
 0x520   :  { %v3034_v60 = vld [vmem:[#allocation2 + $0x198] sm:$0xff]  ;;  %14323 = vst [vmem:[#allocation16_spill] sm:$0xff] %v10918_v35 }
 0x521   :  { %v2009_v4 = vmax.f32 %v1536_v24, 0.0  ;;  %8328 = vmatmul.msk.f32.gmra.mxu0 %vm304_vm1, %v203_v7  ;;  %8460 = vmatmul.msk.f32.gmra.mxu1 %vm2118_vm2, %v3034_v60  ;;  %v2326_v60 = vsel %vm2118_vm2, %v1995_v28, -inf }
 0x523   :  { %v2321_v32 = vsel %vm2118_vm2, %v2009_v4, -inf }
 0x524   :  { %v2322_v44 = vmax.f32 %v2320_v26, %v2321_v32 }
 0x526   :  { %v2603_v21 = vsel %vm2118_vm2, %v2322_v44, -inf  ;;  %v1538_v6 = vpop.f32.mrf.mxu0  ;;  %v206_v44 = vld [vmem:[%s14283_s0 + $0x530] sm:$0xff] }
 0x527   :  { %v2604_v55 = vmax.f32 %v2602_v48, %v2603_v21  ;;  %v1539_v36 = vadd.f32 %v10586_v11, %v1538_v6  ;;  %v1497_v6 = vadd.f32 %v10586_v11, %v10786_v29 }
 0x529   :  { %2768 = vst.msk [vmem:[#allocation2 + $0x1a0] sm:$0xff] %vm2118_vm2, %v2604_v55  ;;  %8329 = vmatmul.msk.f32.gmra.mxu0 %vm304_vm1, %v204_v20  ;;  %v2010_v27 = vmax.f32 %v1539_v36, 0.0  ;;  %v10935_v20 = vpop.f32.mrf.mxu1  ;;  %v1500_v55 = vadd.f32 %v10586_v11, %v10792_v18  ;;  %v1996_v50 = vmax.f32 %v1497_v6, 0.0  ;;  %v1506_v6 = vadd.f32 %v10586_v11, %v10804_v54 }
 0x52a   :  { %14324 = vst [vmem:[#allocation17_spill] sm:$0xff] %v10935_v20 }
 0x52b   :  { %v2324_v33 = vsel %vm2118_vm2, %v2010_v27, -inf  ;;  %v207_v27 = vld [vmem:[%s14283_s0 + $0x538] sm:$0xff]  ;;  %v1997_v8 = vmax.f32 %v1500_v55, 0.0  ;;  %v2329_v28 = vsel %vm2118_vm2, %v1996_v50, -inf }
 0x52c   :  { %v2325_v39 = vmax.f32 %v2323_v10, %v2324_v33 }
 0x52e   :  { %v1541_v17 = vpop.f32.mrf.mxu0  ;;  %v2605_v23 = vsel %vm2118_vm2, %v2325_v39, -inf  ;;  %v8422_v39 = vld [vmem:[%s14285_s3 + $0x18] sm:$0xff] }
 0x52f   :  { %v1542_v7 = vadd.f32 %v10586_v11, %v1541_v17  ;;  %4544 = vmatpush.msra.mxu1 %v8422_v39 }
 0x530   :  { %v3035_v16 = vld [vmem:[#allocation2 + $0x1a0] sm:$0xff] }
 0x531   :  { %v2011_v24 = vmax.f32 %v1542_v7, 0.0  ;;  %8330 = vmatmul.msk.f32.gmra.mxu0 %vm304_vm1, %v205_v25  ;;  %8461 = vmatmul.msk.f32.gmra.mxu1 %vm2118_vm2, %v3035_v16  ;;  %v10947_v18 = vpop.f32.mrf.mxu1  ;;  %v2332_v16 = vsel %vm2118_vm2, %v1997_v8, -inf }
 0x532   :  { %14325 = vst [vmem:[#allocation18_spill] sm:$0xff] %v10947_v18 }
 0x533   :  { %v2327_v14 = vsel %vm2118_vm2, %v2011_v24, -inf }
 0x534   :  { %v2328_v4 = vmax.f32 %v2326_v60, %v2327_v14 }
 0x536   :  { %v2606_v26 = vsel %vm2118_vm2, %v2328_v4, -inf  ;;  %v1544_v32 = vpop.f32.mrf.mxu0 }
 0x537   :  { %v2607_v48 = vmax.f32 %v2605_v23, %v2606_v26  ;;  %v1545_v21 = vadd.f32 %v10586_v11, %v1544_v32  ;;  %v208_v23 = vld [vmem:[%s14283_s0 + $0x540] sm:$0xff] }
 0x539   :  { %2769 = vst.msk [vmem:[#allocation2 + $0x1a8] sm:$0xff] %vm2118_vm2, %v2607_v48  ;;  %8331 = vmatmul.msk.f32.gmra.mxu0 %vm304_vm1, %v206_v44  ;;  %v2012_v36 = vmax.f32 %v1545_v21, 0.0  ;;  %v8421_v44 = vld [vmem:[%s14285_s3 + $0x10] sm:$0xff]  ;;  %v1503_v48 = vadd.f32 %v10586_v11, %v10798_v3  ;;  %v10967_v21 = vpop.f32.mrf.mxu1 }
 0x53a   :  { %4545 = vmatpush.msra.mxu1 %v8421_v44  ;;  %14326 = vst [vmem:[#allocation19_spill] sm:$0xff] %v10967_v21 }
 0x53b   :  { %v2330_v17 = vsel %vm2118_vm2, %v2012_v36, -inf  ;;  %v1998_v36 = vmax.f32 %v1503_v48, 0.0 }
 0x53c   :  { %v2331_v7 = vmax.f32 %v2329_v28, %v2330_v17 }
 0x53e   :  { %v1547_v40 = vpop.f32.mrf.mxu0  ;;  %v2608_v60 = vsel %vm2118_vm2, %v2331_v7, -inf }
 0x53f   :  { %v1548_v29 = vadd.f32 %v10586_v11, %v1547_v40  ;;  %v209_v40 = vld [vmem:[%s14283_s0 + $0x548] sm:$0xff] }
 0x540   :  { %v3036_v25 = vld [vmem:[#allocation2 + $0x1a8] sm:$0xff] }
 0x541   :  { %v2013_v33 = vmax.f32 %v1548_v29, 0.0  ;;  %8332 = vmatmul.msk.f32.gmra.mxu0 %vm304_vm1, %v207_v27  ;;  %8462 = vmatmul.msk.f32.gmra.mxu1 %vm2118_vm2, %v3036_v25  ;;  %v1999_v27 = vmax.f32 %v1506_v6, 0.0  ;;  %v2335_v29 = vsel %vm2118_vm2, %v1998_v36, -inf  ;;  %v10982_v54 = vpop.f32.mrf.mxu1 }
 0x542   :  { %14327 = vst [vmem:[#allocation20_spill] sm:$0xff] %v10982_v54 }
 0x543   :  { %v2333_v10 = vsel %vm2118_vm2, %v2013_v33, -inf  ;;  %v2338_v33 = vsel %vm2118_vm2, %v1999_v27, -inf }
 0x544   :  { %v2334_v24 = vmax.f32 %v2332_v16, %v2333_v10 }
 0x546   :  { %v2609_v14 = vsel %vm2118_vm2, %v2334_v24, -inf  ;;  %v1550_v4 = vpop.f32.mrf.mxu0 }
 0x547   :  { %v2610_v26 = vmax.f32 %v2608_v60, %v2609_v14  ;;  %v1551_v32 = vadd.f32 %v10586_v11, %v1550_v4  ;;  %v210_v60 = vld [vmem:[%s14283_s0 + $0x550] sm:$0xff] }
 0x549   :  { %2770 = vst.msk [vmem:[#allocation2 + $0x1b0] sm:$0xff] %vm2118_vm2, %v2610_v26  ;;  %8333 = vmatmul.msk.f32.gmra.mxu0 %vm304_vm1, %v208_v23  ;;  %v2014_v55 = vmax.f32 %v1551_v32, 0.0  ;;  %v1509_v23 = vadd.f32 %v10586_v11, %v10810_v15  ;;  %v10996_v26 = vpop.f32.mrf.mxu1  ;;  %v1512_v32 = vadd.f32 %v10586_v11, %v10816_v43 }
 0x54a   :  { %14328 = vst [vmem:[#allocation21_spill] sm:$0xff] %v10996_v26 }
 0x54b   :  { %v2336_v8 = vsel %vm2118_vm2, %v2014_v55, -inf  ;;  %v2000_v48 = vmax.f32 %v1509_v23, 0.0  ;;  %v211_v55 = vld [vmem:[%s14283_s0 + $0x558] sm:$0xff]  ;;  %v2001_v36 = vmax.f32 %v1512_v32, 0.0  ;;  %v1518_v23 = vadd.f32 %v10586_v11, %v10830_v19 }
 0x54c   :  { %v2337_v28 = vmax.f32 %v2335_v29, %v2336_v8 }
 0x54d   :  { %v2341_v27 = vsel %vm2118_vm2, %v2000_v48, -inf  ;;  %v2344_v29 = vsel %vm2118_vm2, %v2001_v36, -inf }
 0x54e   :  { %v1553_v50 = vpop.f32.mrf.mxu0  ;;  %v2611_v10 = vsel %vm2118_vm2, %v2337_v28, -inf }
 0x54f   :  { %v1554_v3 = vadd.f32 %v10586_v11, %v1553_v50 }
 0x550   :  { %v10976_v17 = vld [vmem:[#allocation2 + $0x1b0] sm:$0xff] }
 0x551   :  { %v2015_v25 = vmax.f32 %v1554_v3, 0.0  ;;  %8334 = vmatmul.msk.f32.gmra.mxu0 %vm304_vm1, %v209_v40  ;;  %8463 = vmatmul.msk.f32.gmra.mxu1 %vm2118_vm2, %v10976_v17  ;;  %v11011_v43 = vpop.f32.mrf.mxu1 }
 0x552   :  { %14329 = vst [vmem:[#allocation22_spill] sm:$0xff] %v11011_v43 }
 0x553   :  { %v2339_v7 = vsel %vm2118_vm2, %v2015_v25, -inf }
 0x554   :  { %v2340_v16 = vmax.f32 %v2338_v33, %v2339_v7 }
 0x556   :  { %v2612_v24 = vsel %vm2118_vm2, %v2340_v16, -inf  ;;  %v1556_v39 = vpop.f32.mrf.mxu0 }
 0x557   :  { %v2613_v14 = vmax.f32 %v2611_v10, %v2612_v24  ;;  %v1557_v4 = vadd.f32 %v10586_v11, %v1556_v39  ;;  %v212_v10 = vld [vmem:[%s14283_s0 + $0x560] sm:$0xff]  ;;  %v2866_v24 = vld [vmem:[#allocation2 + $0x8] sm:$0xff] }
 0x559   :  { %2771 = vst.msk [vmem:[#allocation2 + $0x1b8] sm:$0xff] %vm2118_vm2, %v2613_v14  ;;  %8335 = vmatmul.msk.f32.gmra.mxu0 %vm304_vm1, %v210_v60  ;;  %v2016_v44 = vmax.f32 %v1557_v4, 0.0  ;;  %v1515_v14 = vadd.f32 %v10586_v11, %v10822_v63  ;;  %v11026_v4 = vpop.f32.mrf.mxu1 }
 0x55a   :  { %14330 = vst [vmem:[#allocation23_spill] sm:$0xff] %v11026_v4 }
 0x55b   :  { %v2342_v50 = vsel %vm2118_vm2, %v2016_v44, -inf  ;;  %v2002_v44 = vmax.f32 %v1515_v14, 0.0  ;;  %v1521_v14 = vadd.f32 %v10586_v11, %v10836_v34 }
 0x55c   :  { %v2343_v3 = vmax.f32 %v2341_v27, %v2342_v50  ;;  %v2867_v50 = vld [vmem:[#allocation2 + $0x10] sm:$0xff] }
 0x55d   :  { %v2347_v27 = vsel %vm2118_vm2, %v2002_v44, -inf }
 0x55e   :  { %v1559_v6 = vpop.f32.mrf.mxu0  ;;  %v2614_v33 = vsel %vm2118_vm2, %v2343_v3, -inf }
 0x55f   :  { %v1560_v15 = vadd.f32 %v10586_v11, %v1559_v6  ;;  %v213_v6 = vld [vmem:[%s14283_s0 + $0x568] sm:$0xff] }
 0x560   :  { %v11005_v40 = vld [vmem:[#allocation2 + $0x1b8] sm:$0xff] }
 0x561   :  { %v2017_v8 = vmax.f32 %v1560_v15, 0.0  ;;  %8336 = vmatmul.msk.f32.gmra.mxu0 %vm304_vm1, %v211_v55  ;;  %8464 = vmatmul.msk.f32.gmra.mxu1 %vm2118_vm2, %v11005_v40  ;;  %v2003_v55 = vmax.f32 %v1518_v23, 0.0  ;;  %v11041_v19 = vpop.f32.mrf.mxu1  ;;  %v1524_v23 = vadd.f32 %v10586_v11, %v10845_v42  ;;  %v12911_v22 = vld [vmem:[#allocation2 + $0x1b8] sm:$0xff] }
 0x562   :  { %14331 = vst [vmem:[#allocation24_spill] sm:$0xff] %v11041_v19 }
 0x563   :  { %v2345_v25 = vsel %vm2118_vm2, %v2017_v8, -inf  ;;  %14608 = vst [vmem:[#allocation301_spill] sm:$0xff] %v12911_v22 }
 0x564   :  { %v2346_v28 = vmax.f32 %v2344_v29, %v2345_v25  ;;  %v2350_v29 = vsel %vm2118_vm2, %v2003_v55, -inf  ;;  %v215_v55 = vld [vmem:[%s14283_s0 + $0x578] sm:$0xff] }
 0x566   :  { %v2615_v7 = vsel %vm2118_vm2, %v2346_v28, -inf  ;;  %v1562_v16 = vpop.f32.mrf.mxu0 }
 0x567   :  { %v2616_v39 = vmax.f32 %v2614_v33, %v2615_v7  ;;  %v1563_v60 = vadd.f32 %v10586_v11, %v1562_v16 }
 0x569   :  { %2772 = vst.msk [vmem:[#allocation2 + $0x1c0] sm:$0xff] %vm2118_vm2, %v2616_v39  ;;  %8337 = vmatmul.msk.f32.gmra.mxu0 %vm304_vm1, %v212_v10  ;;  %8621 = vmatmul.msk.f32.vlgmr.msra.gmra.mxu1 %vm2118_vm2, %v2866_v24  ;;  %v2018_v32 = vmax.f32 %v1563_v60, 0.0  ;;  %v214_v10 = vld [vmem:[%s14283_s0 + $0x570] sm:$0xff]  ;;  %v2868_v60 = vld [vmem:[#allocation2 + $0x18] sm:$0xff]  ;;  %v11059_v44 = vpop.f32.mrf.mxu1 }
 0x56a   :  { %14332 = vst [vmem:[#allocation25_spill] sm:$0xff] %v11059_v44  ;;  %v2885_v44 = vld [vmem:[#allocation2 + $0xc0] sm:$0xff] }
 0x56b   :  { %v2348_v63 = vsel %vm2118_vm2, %v2018_v32, -inf }
 0x56c   :  { %v2349_v3 = vmax.f32 %v2347_v27, %v2348_v63  ;;  %v2005_v63 = vmax.f32 %v1524_v23, 0.0  ;;  %v217_v23 = vld [vmem:[%s14283_s0 + $0x588] sm:$0xff] }
 0x56e   :  { %v1565_v48 = vpop.f32.mrf.mxu0  ;;  %v2617_v33 = vsel %vm2118_vm2, %v2349_v3, -inf }
 0x56f   :  { %v1566_v36 = vadd.f32 %v10586_v11, %v1565_v48  ;;  %v2004_v48 = vmax.f32 %v1521_v14, 0.0 }
 0x570   :  { %v11035_v15 = vld [vmem:[#allocation2 + $0x1c0] sm:$0xff] }
 0x571   :  { %v2019_v8 = vmax.f32 %v1566_v36, 0.0  ;;  %8338 = vmatmul.msk.f32.gmra.mxu0 %vm304_vm1, %v213_v6  ;;  %8465 = vmatmul.msk.f32.vlgmr.msra.gmra.mxu2 %vm2118_vm2, %v11035_v15 }
 0x572   :  { %8622 = vmatmul.msk.f32.gmra.mxu1 %vm2118_vm2, %v2867_v50  ;;  %v2869_v50 = vld [vmem:[#allocation2 + $0x20] sm:$0xff] }
 0x573   :  { %v2351_v25 = vsel %vm2118_vm2, %v2019_v8, -inf  ;;  %v2353_v8 = vsel %vm2118_vm2, %v2004_v48, -inf }
 0x574   :  { %v2352_v28 = vmax.f32 %v2350_v29, %v2351_v25  ;;  %v2356_v29 = vsel %vm2118_vm2, %v2005_v63, -inf  ;;  %v2872_v63 = vld [vmem:[#allocation2 + $0x38] sm:$0xff] }
 0x576   :  { %v2618_v7 = vsel %vm2118_vm2, %v2352_v28, -inf  ;;  %v1568_v16 = vpop.f32.mrf.mxu0  ;;  %v11075_v28 = vpop.f32.mrf.mxu1 }
 0x577   :  { %v2619_v24 = vmax.f32 %v2617_v33, %v2618_v7  ;;  %v1569_v39 = vadd.f32 %v10586_v11, %v1568_v16  ;;  %14333 = vst [vmem:[#allocation26_spill] sm:$0xff] %v11075_v28 }
 0x579   :  { %2773 = vst.msk [vmem:[#allocation2 + $0x1c8] sm:$0xff] %vm2118_vm2, %v2619_v24  ;;  %8339 = vmatmul.msk.f32.gmra.mxu0 %vm304_vm1, %v214_v10  ;;  %v2020_v32 = vmax.f32 %v1569_v39, 0.0  ;;  %v216_v10 = vld [vmem:[%s14283_s0 + $0x580] sm:$0xff]  ;;  %v2870_v39 = vld [vmem:[#allocation2 + $0x28] sm:$0xff] }
 0x57a   :  { %8623 = vmatmul.msk.f32.gmra.mxu1 %vm2118_vm2, %v2868_v60 }
 0x57b   :  { %v2354_v34 = vsel %vm2118_vm2, %v2020_v32, -inf  ;;  %v2871_v32 = vld [vmem:[#allocation2 + $0x30] sm:$0xff] }
 0x57c   :  { %v2355_v3 = vmax.f32 %v2353_v8, %v2354_v34  ;;  %v2873_v8 = vld [vmem:[#allocation2 + $0x40] sm:$0xff] }
 0x57e   :  { %v1571_v6 = vpop.f32.mrf.mxu0  ;;  %v2620_v33 = vsel %vm2118_vm2, %v2355_v3, -inf  ;;  %v11087_v60 = vpop.f32.mrf.mxu1 }
 0x57f   :  { %v1572_v36 = vadd.f32 %v10586_v11, %v1571_v6  ;;  %14334 = vst [vmem:[#allocation27_spill] sm:$0xff] %v11087_v60  ;;  %v3041_v60 = vld [vmem:[#allocation2 + $0x1e0] sm:$0xff] }
 0x580   :  { %v11066_v27 = vld [vmem:[#allocation2 + $0x1c8] sm:$0xff] }
 0x581   :  { %v2021_v42 = vmax.f32 %v1572_v36, 0.0  ;;  %8340 = vmatmul.msk.f32.gmra.mxu0 %vm304_vm1, %v215_v55  ;;  %8466 = vmatmul.msk.f32.gmra.mxu2 %vm2118_vm2, %v11066_v27  ;;  %v218_v55 = vld [vmem:[%s14283_s0 + $0x590] sm:$0xff] }
 0x582   :  { %8624 = vmatmul.msk.f32.gmra.mxu1 %vm2118_vm2, %v2869_v50  ;;  %v219_v50 = vld [vmem:[%s14283_s0 + $0x598] sm:$0xff] }
 0x583   :  { %v2357_v25 = vsel %vm2118_vm2, %v2021_v42, -inf }
 0x584   :  { %v2358_v11 = vmax.f32 %v2356_v29, %v2357_v25  ;;  %v220_v29 = vld [vmem:[%s14283_s0 + $0x5a0] sm:$0xff]  ;;  %v2874_v25 = vld [vmem:[#allocation2 + $0x58] sm:$0xff] }
 0x586   :  { %v2621_v7 = vsel %vm2118_vm2, %v2358_v11, -inf  ;;  %v11079_v16 = vpop.f32.mrf.mxu0  ;;  %v11096_v48 = vpop.f32.mrf.mxu1 }
 0x587   :  { %v2622_v24 = vmax.f32 %v2620_v33, %v2621_v7  ;;  %14335 = vst [vmem:[#allocation28_spill] sm:$0xff] %v11096_v48  ;;  %v221_v7 = vld [vmem:[%s14283_s0 + $0x5a8] sm:$0xff]  ;;  %v2884_v48 = vld [vmem:[#allocation2 + $0xb8] sm:$0xff] }
 0x589   :  { %2774 = vst.msk [vmem:[#allocation2 + $0x1d0] sm:$0xff] %vm2118_vm2, %v2622_v24  ;;  %8341 = vmatmul.msk.f32.gmra.mxu0 %vm304_vm1, %v216_v10  ;;  %v2875_v10 = vld [vmem:[#allocation2 + $0x60] sm:$0xff]  ;;  %8467 = vmatmul.msk.f32.gmra.mxu2 %vm2118_vm2, %v3041_v60 }
 0x58a   :  { %8625 = vmatmul.msk.f32.gmra.mxu1 %vm2118_vm2, %v2870_v39  ;;  %v11229_v60 = vld [vmem:[%s14284_s2] ss:$0 sm:$0xff] }
 0x58e   :  { %v11089_v14 = vpop.f32.mrf.mxu0  ;;  %v11105_v34 = vpop.f32.mrf.mxu1 }
 0x58f   :  { %14336 = vst [vmem:[#allocation29_spill] sm:$0xff] %v11105_v34  ;;  %v1578_v43 = vadd.f32 %v11229_v60, %v11089_v14  ;;  %v2887_v14 = vld [vmem:[#allocation2 + $0xd0] sm:$0xff] }
 0x591   :  { %8342 = vmatmul.msk.f32.gmra.mxu0 %vm304_vm1, %v217_v23  ;;  %v222_v23 = vld [vmem:[%s14283_s0 + $0x5b0] sm:$0xff]  ;;  %v2023_v18 = vmax.f32 %v1578_v43, 0.0 }
 0x592   :  { %8626 = vmatmul.msk.f32.gmra.mxu1 %vm2118_vm2, %v2871_v32  ;;  %v2876_v32 = vld [vmem:[#allocation2 + $0x68] sm:$0xff] }
 0x596   :  { %v11098_v6 = vpop.f32.mrf.mxu0  ;;  %v11114_v42 = vpop.f32.mrf.mxu1 }
 0x597   :  { %14337 = vst [vmem:[#allocation30_spill] sm:$0xff] %v11114_v42  ;;  %v2883_v42 = vld [vmem:[#allocation2 + $0xb0] sm:$0xff] }
 0x599   :  { %8343 = vmatmul.msk.f32.gmra.mxu0 %vm304_vm1, %v218_v55 }
 0x59a   :  { %8627 = vmatmul.msk.f32.gmra.mxu1 %vm2118_vm2, %v2872_v63 }
 0x59e   :  { %v11107_v36 = vpop.f32.mrf.mxu0  ;;  %v11123_v11 = vpop.f32.mrf.mxu1 }
 0x59f   :  { %14338 = vst [vmem:[#allocation31_spill] sm:$0xff] %v11123_v11 }
 0x5a1   :  { %8344 = vmatmul.msk.f32.gmra.mxu0 %vm304_vm1, %v219_v50  ;;  %v223_v50 = vld [vmem:[%s14283_s0 + $0x5b8] sm:$0xff] }
 0x5a2   :  { %8628 = vmatmul.msk.f32.gmra.mxu1 %vm2118_vm2, %v2873_v8  ;;  %v2877_v8 = vld [vmem:[#allocation2 + $0x70] sm:$0xff] }
 0x5a6   :  { %v11116_v3 = vpop.f32.mrf.mxu0  ;;  %v11132_v24 = vpop.f32.mrf.mxu1 }
 0x5a7   :  { %14339 = vst [vmem:[#allocation32_spill] sm:$0xff] %v11132_v24 }
 0x5a9   :  { %8345 = vmatmul.msk.f32.gmra.mxu0 %vm304_vm1, %v220_v29 }
 0x5aa   :  { %8629 = vmatmul.msk.f32.gmra.mxu1 %vm2118_vm2, %v2874_v25 }
 0x5ae   :  { %v11125_v33 = vpop.f32.mrf.mxu0  ;;  %v11141_v55 = vpop.f32.mrf.mxu1 }
 0x5af   :  { %14340 = vst [vmem:[#allocation33_spill] sm:$0xff] %v11141_v55 }
 0x5b1   :  { %8346 = vmatmul.msk.f32.gmra.mxu0 %vm304_vm1, %v221_v7  ;;  %v224_v7 = vld [vmem:[%s14283_s0 + $0x5c0] sm:$0xff] }
 0x5b2   :  { %8630 = vmatmul.msk.f32.gmra.mxu1 %vm2118_vm2, %v2875_v10  ;;  %v2878_v10 = vld [vmem:[#allocation2 + $0x78] sm:$0xff] }
 0x5b6   :  { %v11134_v39 = vpop.f32.mrf.mxu0  ;;  %v11150_v29 = vpop.f32.mrf.mxu1 }
 0x5b7   :  { %14341 = vst [vmem:[#allocation34_spill] sm:$0xff] %v11150_v29 }
 0x5b9   :  { %8347 = vmatmul.msk.f32.gmra.mxu0 %vm304_vm1, %v222_v23 }
 0x5ba   :  { %8631 = vmatmul.msk.f32.gmra.mxu1 %vm2118_vm2, %v2876_v32 }
 0x5be   :  { %v11143_v63 = vpop.f32.mrf.mxu0  ;;  %v11159_v23 = vpop.f32.mrf.mxu1 }
 0x5bf   :  { %14342 = vst [vmem:[#allocation35_spill] sm:$0xff] %v11159_v23 }
 0x5c1   :  { %8348 = vmatmul.msk.f32.gmra.mxu0 %vm304_vm1, %v223_v50  ;;  %v225_v50 = vld [vmem:[%s14283_s0 + $0x5c8] sm:$0xff] }
 0x5c2   :  { %8632 = vmatmul.msk.f32.gmra.mxu1 %vm2118_vm2, %v2877_v8  ;;  %v2879_v8 = vld [vmem:[#allocation2 + $0x80] sm:$0xff] }
 0x5c6   :  { %v11152_v25 = vpop.f32.mrf.mxu0 }
 0x5c9   :  { %8349 = vmatmul.msk.f32.gmra.mxu0 %vm304_vm1, %v224_v7  ;;  %v226_v7 = vld [vmem:[%s14283_s0 + $0x5d0] sm:$0xff] }
 0x5ca   :  { %8633 = vmatmul.msk.f32.gmra.mxu1 %vm2118_vm2, %v2878_v10  ;;  %v2880_v10 = vld [vmem:[#allocation2 + $0x88] sm:$0xff] }
 0x5ce   :  { %v11161_v32 = vpop.f32.mrf.mxu0  ;;  %v11168_v29 = vpop.f32.mrf.mxu1 }
 0x5cf   :  { %14343 = vst [vmem:[#allocation36_spill] sm:$0xff] %v11168_v29 }
 0x5d1   :  { %8350 = vmatmul.msk.f32.gmra.mxu0 %vm304_vm1, %v225_v50  ;;  %v227_v50 = vld [vmem:[%s14283_s0 + $0x5d8] sm:$0xff] }
 0x5d2   :  { %8634 = vmatmul.msk.f32.gmra.mxu1 %vm2118_vm2, %v2879_v8  ;;  %v2881_v8 = vld [vmem:[#allocation2 + $0x90] sm:$0xff] }
 0x5d6   :  { %v11170_v55 = vpop.f32.mrf.mxu0 }
 0x5d9   :  { %8351 = vmatmul.msk.f32.gmra.mxu0 %vm304_vm1, %v226_v7  ;;  %v228_v7 = vld [vmem:[%s14283_s0 + $0x5e0] sm:$0xff] }
 0x5da   :  { %8635 = vmatmul.msk.f32.gmra.mxu1 %vm2118_vm2, %v2880_v10  ;;  %v2882_v10 = vld [vmem:[#allocation2 + $0xa8] sm:$0xff] }
 0x5de   :  { %v11177_v23 = vpop.f32.mrf.mxu0  ;;  %v11179_v24 = vpop.f32.mrf.mxu1 }
 0x5df   :  { %14344 = vst [vmem:[#allocation37_spill] sm:$0xff] %v11179_v24 }
 0x5e1   :  { %8352 = vmatmul.msk.f32.gmra.mxu0 %vm304_vm1, %v227_v50  ;;  %v229_v50 = vld [vmem:[%s14283_s0 + $0x5e8] sm:$0xff] }
 0x5e2   :  { %8636 = vmatmul.msk.f32.gmra.mxu1 %vm2118_vm2, %v2881_v8 }
 0x5e6   :  { %v11186_v29 = vpop.f32.mrf.mxu0  ;;  %v11188_v11 = vpop.f32.mrf.mxu1 }
 0x5e9   :  { %8353 = vmatmul.msk.f32.gmra.mxu0 %vm304_vm1, %v228_v7  ;;  %v230_v7 = vld [vmem:[%s14283_s0 + $0x5f0] sm:$0xff] }
 0x5ea   :  { %8637 = vmatmul.msk.f32.gmra.mxu1 %vm2118_vm2, %v2882_v10 }
 0x5ee   :  { %v11195_v24 = vpop.f32.mrf.mxu0 }
 0x5ef   :  { %v11200_v8 = vpop.f32.mrf.mxu1 }
 0x5f1   :  { %8354 = vmatmul.msk.f32.gmra.mxu0 %vm304_vm1, %v229_v50 }
 0x5f2   :  { %8638 = vmatmul.msk.f32.gmra.mxu1 %vm2118_vm2, %v2883_v42  ;;  %v231_v42 = vld [vmem:[%s14283_s0 + $0x5f8] sm:$0xff] }
 0x5f6   :  { %v11204_v34 = vpop.f32.mrf.mxu0 }
 0x5f7   :  { %v11209_v10 = vpop.f32.mrf.mxu1 }
 0x5f9   :  { %8355 = vmatmul.msk.f32.gmra.mxu0 %vm304_vm1, %v230_v7 }
 0x5fa   :  { %8639 = vmatmul.msk.f32.gmra.mxu1 %vm2118_vm2, %v2884_v48  ;;  %v232_v48 = vld [vmem:[%s14283_s0 + $0x600] sm:$0xff] }
 0x5fe   :  { %v11214_v50 = vpop.f32.mrf.mxu0 }
 0x5ff   :  { %v11219_v28 = vpop.f32.mrf.mxu1 }
 0x601   :  { %8356 = vmatmul.msk.f32.gmra.mxu0 %vm304_vm1, %v231_v42  ;;  %v1575_v42 = vadd.f32 %v11229_v60, %v11079_v16 }
 0x602   :  { %8640 = vmatmul.msk.f32.gmra.mxu1 %vm2118_vm2, %v2885_v44  ;;  %v2886_v44 = vld [vmem:[#allocation2 + $0xc8] sm:$0xff] }
 0x603   :  { %v2022_v54 = vmax.f32 %v1575_v42, 0.0  ;;  %v2362_v42 = vsel %vm2118_vm2, %v2023_v18, -inf  ;;  %v1581_v18 = vadd.f32 %v11229_v60, %v11098_v6 }
 0x606   :  { %v1622_v7 = vpop.f32.mrf.mxu0 }
 0x607   :  { %v1623_v19 = vadd.f32 %v11229_v60, %v1622_v7  ;;  %v11232_v4 = vpop.f32.mrf.mxu1  ;;  %v233_v7 = vld [vmem:[%s14283_s0 + $0x608] sm:$0xff] }
 0x608   :  { %14345 = vst [vmem:[#allocation38_spill] sm:$0xff] %v11232_v4  ;;  %v12935_v4 = vld [vmem:[#allocation2 + $0x1d0] sm:$0xff] }
 0x609   :  { %8357 = vmatmul.msk.f32.gmra.mxu0 %vm304_vm1, %v232_v48  ;;  %v2038_v26 = vmax.f32 %v1623_v19, 0.0  ;;  %v2359_v48 = vsel %vm2118_vm2, %v2022_v54, -inf  ;;  %v234_v54 = vld [vmem:[%s14283_s0 + $0x610] sm:$0xff]  ;;  %14614 = vst [vmem:[#allocation307_spill] sm:$0xff] %v12935_v4 }
 0x60a   :  { %8641 = vmatmul.msk.f32.gmra.mxu1 %vm2118_vm2, %v2886_v44 }
 0x60b   :  { %v2360_v20 = vsel %vm2118_vm2, %v2038_v26, -inf }
 0x60c   :  { %v2361_v19 = vmax.f32 %v2359_v48, %v2360_v20  ;;  %v1584_v48 = vadd.f32 %v11229_v60, %v11107_v36  ;;  %v2889_v36 = vld [vmem:[#allocation2 + $0xe0] sm:$0xff] }
 0x60e   :  { %v1625_v21 = vpop.f32.mrf.mxu0  ;;  %v2623_v26 = vsel %vm2118_vm2, %v2361_v19, -inf }
 0x60f   :  { %v1626_v16 = vadd.f32 %v11229_v60, %v1625_v21  ;;  %v11245_v35 = vpop.f32.mrf.mxu1 }
 0x610   :  { %14346 = vst [vmem:[#allocation39_spill] sm:$0xff] %v11245_v35  ;;  %v12871_v35 = vld [vmem:[#allocation2 + $0x180] sm:$0xff] }
 0x611   :  { %v2039_v44 = vmax.f32 %v1626_v16, 0.0  ;;  %8358 = vmatmul.msk.f32.gmra.mxu0 %vm304_vm1, %v233_v7  ;;  %14598 = vst [vmem:[#allocation291_spill] sm:$0xff] %v12871_v35 }
 0x612   :  { %8642 = vmatmul.msk.f32.gmra.mxu1 %vm2118_vm2, %v2887_v14  ;;  %v2024_v14 = vmax.f32 %v1581_v18, 0.0 }
 0x613   :  { %v2363_v2 = vsel %vm2118_vm2, %v2039_v44, -inf }
 0x614   :  { %v2364_v43 = vmax.f32 %v2362_v42, %v2363_v2  ;;  %v2888_v2 = vld [vmem:[#allocation2 + $0xd8] sm:$0xff]  ;;  %v2025_v42 = vmax.f32 %v1584_v48, 0.0 }
 0x616   :  { %v2624_v21 = vsel %vm2118_vm2, %v2364_v43, -inf  ;;  %v1628_v30 = vpop.f32.mrf.mxu0  ;;  %v2368_v18 = vsel %vm2118_vm2, %v2025_v42, -inf  ;;  %v1587_v42 = vadd.f32 %v11229_v60, %v11116_v3 }
 0x617   :  { %v2625_v16 = vmax.f32 %v2623_v26, %v2624_v21  ;;  %v1629_v7 = vadd.f32 %v11229_v60, %v1628_v30  ;;  %v11258_v20 = vpop.f32.mrf.mxu1  ;;  %v235_v30 = vld [vmem:[%s14283_s0 + $0x618] sm:$0xff] }
 0x618   :  { %14347 = vst [vmem:[#allocation40_spill] sm:$0xff] %v11258_v20  ;;  %v12833_v20 = vld [vmem:[#allocation2 + $0x160] sm:$0xff] }
 0x619   :  { %2775 = vst.msk [vmem:[#allocation2 + $0x1e8] sm:$0xff] %vm2118_vm2, %v2625_v16  ;;  %8359 = vmatmul.msk.f32.gmra.mxu0 %vm304_vm1, %v234_v54  ;;  %v2040_v44 = vmax.f32 %v1629_v7, 0.0  ;;  %v2365_v54 = vsel %vm2118_vm2, %v2024_v14, -inf }
 0x61a   :  { %8643 = vmatmul.msk.f32.gmra.mxu1 %vm2118_vm2, %v2888_v2 }
 0x61b   :  { %v2366_v6 = vsel %vm2118_vm2, %v2040_v44, -inf }
 0x61c   :  { %v2367_v7 = vmax.f32 %v2365_v54, %v2366_v6  ;;  %v2890_v54 = vld [vmem:[#allocation2 + $0xf8] sm:$0xff] }
 0x61e   :  { %v1631_v19 = vpop.f32.mrf.mxu0  ;;  %v2626_v44 = vsel %vm2118_vm2, %v2367_v7, -inf  ;;  %v2026_v7 = vmax.f32 %v1587_v42, 0.0 }
 0x61f   :  { %v1632_v43 = vadd.f32 %v11229_v60, %v1631_v19  ;;  %v11272_v26 = vpop.f32.mrf.mxu1 }
 0x620   :  { %14348 = vst [vmem:[#allocation41_spill] sm:$0xff] %v11272_v26  ;;  %v11274_v21 = vld [vmem:[#allocation2 + $0x1e8] sm:$0xff] }
 0x621   :  { %v2041_v16 = vmax.f32 %v1632_v43, 0.0  ;;  %8360 = vmatmul.msk.f32.gmra.mxu0 %vm304_vm1, %v235_v30  ;;  %8468 = vmatmul.msk.f32.gmra.mxu2 %vm2118_vm2, %v11274_v21  ;;  %v236_v30 = vld [vmem:[%s14283_s0 + $0x620] sm:$0xff] }
 0x622   :  { %8644 = vmatmul.msk.f32.gmra.mxu1 %vm2118_vm2, %v2889_v36 }
 0x623   :  { %v2369_v2 = vsel %vm2118_vm2, %v2041_v16, -inf  ;;  %v1590_v16 = vadd.f32 %v11229_v60, %v11125_v33 }
 0x624   :  { %v2370_v48 = vmax.f32 %v2368_v18, %v2369_v2  ;;  %v237_v2 = vld [vmem:[%s14283_s0 + $0x628] sm:$0xff] }
 0x626   :  { %v2627_v19 = vsel %vm2118_vm2, %v2370_v48, -inf  ;;  %v1634_v14 = vpop.f32.mrf.mxu0  ;;  %v2027_v48 = vmax.f32 %v1590_v16, 0.0 }
 0x627   :  { %v2628_v43 = vmax.f32 %v2626_v44, %v2627_v19  ;;  %v1635_v58 = vadd.f32 %v11229_v60, %v1634_v14  ;;  %v11289_v6 = vpop.f32.mrf.mxu1 }
 0x628   :  { %14349 = vst [vmem:[#allocation42_spill] sm:$0xff] %v11289_v6  ;;  %v2374_v42 = vsel %vm2118_vm2, %v2027_v48, -inf  ;;  %v1593_v48 = vadd.f32 %v11229_v60, %v11134_v39 }
 0x629   :  { %2776 = vst.msk [vmem:[#allocation2 + $0x1f0] sm:$0xff] %vm2118_vm2, %v2628_v43  ;;  %8361 = vmatmul.msk.f32.gmra.mxu0 %vm304_vm1, %v236_v30  ;;  %v2042_v36 = vmax.f32 %v1635_v58, 0.0  ;;  %v2371_v30 = vsel %vm2118_vm2, %v2026_v7, -inf  ;;  %v2891_v58 = vld [vmem:[#allocation2 + $0x100] sm:$0xff] }
 0x62a   :  { %8645 = vmatmul.msk.f32.gmra.mxu1 %vm2118_vm2, %v2890_v54 }
 0x62b   :  { %v2372_v3 = vsel %vm2118_vm2, %v2042_v36, -inf }
 0x62c   :  { %v2373_v33 = vmax.f32 %v2371_v30, %v2372_v3  ;;  %v2892_v30 = vld [vmem:[#allocation2 + $0x108] sm:$0xff] }
 0x62e   :  { %v1637_v18 = vpop.f32.mrf.mxu0  ;;  %v2629_v36 = vsel %vm2118_vm2, %v2373_v33, -inf  ;;  %v2028_v33 = vmax.f32 %v1593_v48, 0.0 }
 0x62f   :  { %v1638_v44 = vadd.f32 %v11229_v60, %v1637_v18  ;;  %v11303_v19 = vpop.f32.mrf.mxu1 }
 0x630   :  { %14350 = vst [vmem:[#allocation43_spill] sm:$0xff] %v11303_v19  ;;  %v11305_v14 = vld [vmem:[#allocation2 + $0x1f0] sm:$0xff] }
 0x631   :  { %v2043_v43 = vmax.f32 %v1638_v44, 0.0  ;;  %8362 = vmatmul.msk.f32.gmra.mxu0 %vm304_vm1, %v237_v2  ;;  %8469 = vmatmul.msk.f32.gmra.mxu2 %vm2118_vm2, %v11305_v14  ;;  %v238_v2 = vld [vmem:[%s14283_s0 + $0x630] sm:$0xff] }
 0x632   :  { %8646 = vmatmul.msk.f32.gmra.mxu1 %vm2118_vm2, %v2891_v58 }
 0x633   :  { %v2375_v54 = vsel %vm2118_vm2, %v2043_v43, -inf  ;;  %v1596_v43 = vadd.f32 %v11229_v60, %v11143_v63 }
 0x634   :  { %v2376_v16 = vmax.f32 %v2374_v42, %v2375_v54  ;;  %v239_v54 = vld [vmem:[%s14283_s0 + $0x638] sm:$0xff] }
 0x636   :  { %v2630_v18 = vsel %vm2118_vm2, %v2376_v16, -inf  ;;  %v1640_v7 = vpop.f32.mrf.mxu0  ;;  %v2029_v16 = vmax.f32 %v1596_v43, 0.0 }
 0x637   :  { %v2631_v44 = vmax.f32 %v2629_v36, %v2630_v18  ;;  %v1641_v0 = vadd.f32 %v11229_v60, %v1640_v7  ;;  %v11320_v3 = vpop.f32.mrf.mxu1 }
 0x638   :  { %14351 = vst [vmem:[#allocation44_spill] sm:$0xff] %v11320_v3  ;;  %v2380_v48 = vsel %vm2118_vm2, %v2029_v16, -inf  ;;  %v1599_v16 = vadd.f32 %v11229_v60, %v11152_v25 }
 0x639   :  { %2777 = vst.msk [vmem:[#allocation2 + $0x1f8] sm:$0xff] %vm2118_vm2, %v2631_v44  ;;  %8363 = vmatmul.msk.f32.gmra.mxu0 %vm304_vm1, %v238_v2  ;;  %v2044_v58 = vmax.f32 %v1641_v0, 0.0  ;;  %v2377_v2 = vsel %vm2118_vm2, %v2028_v33, -inf  ;;  %v2893_v0 = vld [vmem:[#allocation2 + $0x110] sm:$0xff] }
 0x63a   :  { %8647 = vmatmul.msk.f32.gmra.mxu1 %vm2118_vm2, %v2892_v30 }
 0x63b   :  { %v2378_v39 = vsel %vm2118_vm2, %v2044_v58, -inf }
 0x63c   :  { %v2379_v63 = vmax.f32 %v2377_v2, %v2378_v39  ;;  %v2894_v2 = vld [vmem:[#allocation2 + $0x118] sm:$0xff] }
 0x63e   :  { %v1643_v42 = vpop.f32.mrf.mxu0  ;;  %v2632_v58 = vsel %vm2118_vm2, %v2379_v63, -inf  ;;  %v2030_v63 = vmax.f32 %v1599_v16, 0.0 }
 0x63f   :  { %v1644_v36 = vadd.f32 %v11229_v60, %v1643_v42  ;;  %v11334_v18 = vpop.f32.mrf.mxu1 }
 0x640   :  { %14352 = vst [vmem:[#allocation45_spill] sm:$0xff] %v11334_v18  ;;  %v11336_v7 = vld [vmem:[#allocation2 + $0x1f8] sm:$0xff] }
 0x641   :  { %v2045_v44 = vmax.f32 %v1644_v36, 0.0  ;;  %8364 = vmatmul.msk.f32.gmra.mxu0 %vm304_vm1, %v239_v54  ;;  %8470 = vmatmul.msk.f32.gmra.mxu2 %vm2118_vm2, %v11336_v7  ;;  %v240_v54 = vld [vmem:[%s14283_s0 + $0x640] sm:$0xff] }
 0x642   :  { %8648 = vmatmul.msk.f32.gmra.mxu1 %vm2118_vm2, %v2893_v0 }
 0x643   :  { %v2381_v30 = vsel %vm2118_vm2, %v2045_v44, -inf  ;;  %v1602_v44 = vadd.f32 %v11229_v60, %v11161_v32  ;;  %v2895_v32 = vld [vmem:[#allocation2 + $0x120] sm:$0xff] }
 0x644   :  { %v2382_v43 = vmax.f32 %v2380_v48, %v2381_v30  ;;  %v241_v30 = vld [vmem:[%s14283_s0 + $0x648] sm:$0xff] }
 0x646   :  { %v2633_v42 = vsel %vm2118_vm2, %v2382_v43, -inf  ;;  %v1646_v33 = vpop.f32.mrf.mxu0  ;;  %v2031_v43 = vmax.f32 %v1602_v44, 0.0 }
 0x647   :  { %v2634_v36 = vmax.f32 %v2632_v58, %v2633_v42  ;;  %v1647_v18 = vadd.f32 %v11229_v60, %v1646_v33  ;;  %v11351_v39 = vpop.f32.mrf.mxu1 }
 0x648   :  { %14353 = vst [vmem:[#allocation46_spill] sm:$0xff] %v11351_v39  ;;  %v2386_v16 = vsel %vm2118_vm2, %v2031_v43, -inf  ;;  %v1605_v43 = vadd.f32 %v11229_v60, %v11170_v55 }
 0x649   :  { %2778 = vst.msk [vmem:[#allocation2 + $0x200] sm:$0xff] %vm2118_vm2, %v2634_v36  ;;  %8365 = vmatmul.msk.f32.gmra.mxu0 %vm304_vm1, %v240_v54  ;;  %v2046_v0 = vmax.f32 %v1647_v18, 0.0  ;;  %v2383_v54 = vsel %vm2118_vm2, %v2030_v63, -inf }
 0x64a   :  { %8649 = vmatmul.msk.f32.gmra.mxu1 %vm2118_vm2, %v2894_v2 }
 0x64b   :  { %v2384_v25 = vsel %vm2118_vm2, %v2046_v0, -inf }
 0x64c   :  { %v2385_v18 = vmax.f32 %v2383_v54, %v2384_v25  ;;  %v2896_v54 = vld [vmem:[#allocation2 + $0x128] sm:$0xff] }
 0x64e   :  { %v1649_v48 = vpop.f32.mrf.mxu0  ;;  %v2635_v0 = vsel %vm2118_vm2, %v2385_v18, -inf  ;;  %v2032_v18 = vmax.f32 %v1605_v43, 0.0 }
 0x64f   :  { %v1650_v58 = vadd.f32 %v11229_v60, %v1649_v48  ;;  %v11365_v42 = vpop.f32.mrf.mxu1 }
 0x650   :  { %14354 = vst [vmem:[#allocation47_spill] sm:$0xff] %v11365_v42  ;;  %v11367_v33 = vld [vmem:[#allocation2 + $0x200] sm:$0xff] }
 0x651   :  { %v2047_v36 = vmax.f32 %v1650_v58, 0.0  ;;  %8366 = vmatmul.msk.f32.gmra.mxu0 %vm304_vm1, %v241_v30  ;;  %8471 = vmatmul.msk.f32.gmra.mxu2 %vm2118_vm2, %v11367_v33  ;;  %v242_v30 = vld [vmem:[%s14283_s0 + $0x650] sm:$0xff] }
 0x652   :  { %8650 = vmatmul.msk.f32.gmra.mxu1 %vm2118_vm2, %v2895_v32 }
 0x653   :  { %v2387_v2 = vsel %vm2118_vm2, %v2047_v36, -inf  ;;  %v1608_v36 = vadd.f32 %v11229_v60, %v11177_v23  ;;  %v2897_v23 = vld [vmem:[#allocation2 + $0x130] sm:$0xff] }
 0x654   :  { %v2388_v44 = vmax.f32 %v2386_v16, %v2387_v2  ;;  %v243_v2 = vld [vmem:[%s14283_s0 + $0x658] sm:$0xff] }
 0x656   :  { %v2636_v48 = vsel %vm2118_vm2, %v2388_v44, -inf  ;;  %v1652_v63 = vpop.f32.mrf.mxu0  ;;  %v2033_v44 = vmax.f32 %v1608_v36, 0.0 }
 0x657   :  { %v2637_v58 = vmax.f32 %v2635_v0, %v2636_v48  ;;  %v1653_v42 = vadd.f32 %v11229_v60, %v1652_v63  ;;  %v11382_v25 = vpop.f32.mrf.mxu1 }
 0x658   :  { %14355 = vst [vmem:[#allocation48_spill] sm:$0xff] %v11382_v25  ;;  %v2392_v43 = vsel %vm2118_vm2, %v2033_v44, -inf  ;;  %v1611_v44 = vadd.f32 %v11229_v60, %v11186_v29 }
 0x659   :  { %2779 = vst.msk [vmem:[#allocation2 + $0x208] sm:$0xff] %vm2118_vm2, %v2637_v58  ;;  %8367 = vmatmul.msk.f32.gmra.mxu0 %vm304_vm1, %v242_v30  ;;  %v2048_v32 = vmax.f32 %v1653_v42, 0.0  ;;  %v2389_v30 = vsel %vm2118_vm2, %v2032_v18, -inf }
 0x65a   :  { %8651 = vmatmul.msk.f32.gmra.mxu1 %vm2118_vm2, %v2896_v54 }
 0x65b   :  { %v2390_v55 = vsel %vm2118_vm2, %v2048_v32, -inf }
 0x65c   :  { %v2391_v42 = vmax.f32 %v2389_v30, %v2390_v55  ;;  %v2898_v30 = vld [vmem:[#allocation2 + $0x148] sm:$0xff] }
 0x65e   :  { %v1655_v16 = vpop.f32.mrf.mxu0  ;;  %v2638_v32 = vsel %vm2118_vm2, %v2391_v42, -inf  ;;  %v2034_v42 = vmax.f32 %v1611_v44, 0.0 }
 0x65f   :  { %v1656_v0 = vadd.f32 %v11229_v60, %v1655_v16  ;;  %v11396_v48 = vpop.f32.mrf.mxu1 }
 0x660   :  { %14356 = vst [vmem:[#allocation49_spill] sm:$0xff] %v11396_v48  ;;  %v11398_v63 = vld [vmem:[#allocation2 + $0x208] sm:$0xff] }
 0x661   :  { %v2049_v58 = vmax.f32 %v1656_v0, 0.0  ;;  %8368 = vmatmul.msk.f32.gmra.mxu0 %vm304_vm1, %v243_v2  ;;  %8472 = vmatmul.msk.f32.gmra.mxu2 %vm2118_vm2, %v11398_v63  ;;  %v244_v2 = vld [vmem:[%s14283_s0 + $0x660] sm:$0xff] }
 0x662   :  { %8652 = vmatmul.msk.f32.gmra.mxu1 %vm2118_vm2, %v2897_v23 }
 0x663   :  { %v2393_v54 = vsel %vm2118_vm2, %v2049_v58, -inf  ;;  %v1614_v58 = vadd.f32 %v11229_v60, %v11195_v24  ;;  %v2899_v24 = vld [vmem:[#allocation2 + $0x150] sm:$0xff] }
 0x664   :  { %v2394_v36 = vmax.f32 %v2392_v43, %v2393_v54  ;;  %v245_v54 = vld [vmem:[%s14283_s0 + $0x668] sm:$0xff] }
 0x666   :  { %v2639_v16 = vsel %vm2118_vm2, %v2394_v36, -inf  ;;  %v1658_v18 = vpop.f32.mrf.mxu0  ;;  %v2035_v36 = vmax.f32 %v1614_v58, 0.0 }
 0x667   :  { %v2640_v0 = vmax.f32 %v2638_v32, %v2639_v16  ;;  %v1659_v48 = vadd.f32 %v11229_v60, %v1658_v18  ;;  %v11413_v55 = vpop.f32.mrf.mxu1 }
 0x668   :  { %14357 = vst [vmem:[#allocation50_spill] sm:$0xff] %v11413_v55  ;;  %v2398_v44 = vsel %vm2118_vm2, %v2035_v36, -inf  ;;  %v1617_v36 = vadd.f32 %v11229_v60, %v11204_v34 }
 0x669   :  { %2780 = vst.msk [vmem:[#allocation2 + $0x210] sm:$0xff] %vm2118_vm2, %v2640_v0  ;;  %8369 = vmatmul.msk.f32.gmra.mxu0 %vm304_vm1, %v244_v2  ;;  %v2050_v23 = vmax.f32 %v1659_v48, 0.0  ;;  %v2395_v2 = vsel %vm2118_vm2, %v2034_v42, -inf }
 0x66a   :  { %8653 = vmatmul.msk.f32.gmra.mxu1 %vm2118_vm2, %v2898_v30 }
 0x66b   :  { %v2396_v29 = vsel %vm2118_vm2, %v2050_v23, -inf }
 0x66c   :  { %v2397_v48 = vmax.f32 %v2395_v2, %v2396_v29  ;;  %v2900_v2 = vld [vmem:[#allocation2 + $0x158] sm:$0xff] }
 0x66e   :  { %v1661_v43 = vpop.f32.mrf.mxu0  ;;  %v2641_v23 = vsel %vm2118_vm2, %v2397_v48, -inf  ;;  %v2036_v48 = vmax.f32 %v1617_v36, 0.0 }
 0x66f   :  { %v1662_v32 = vadd.f32 %v11229_v60, %v1661_v43  ;;  %v11427_v16 = vpop.f32.mrf.mxu1 }
 0x670   :  { %14358 = vst [vmem:[#allocation51_spill] sm:$0xff] %v11427_v16  ;;  %v11429_v18 = vld [vmem:[#allocation2 + $0x210] sm:$0xff] }
 0x671   :  { %v2051_v0 = vmax.f32 %v1662_v32, 0.0  ;;  %8370 = vmatmul.msk.f32.gmra.mxu0 %vm304_vm1, %v245_v54  ;;  %8473 = vmatmul.msk.f32.gmra.mxu2 %vm2118_vm2, %v11429_v18  ;;  %v246_v54 = vld [vmem:[%s14283_s0 + $0x670] sm:$0xff] }
 0x672   :  { %8654 = vmatmul.msk.f32.gmra.mxu1 %vm2118_vm2, %v2899_v24 }
 0x673   :  { %v2399_v30 = vsel %vm2118_vm2, %v2051_v0, -inf  ;;  %v1620_v0 = vadd.f32 %v11229_v60, %v11214_v50  ;;  %v2901_v50 = vld [vmem:[#allocation2 + $0x160] sm:$0xff] }
 0x674   :  { %v2400_v58 = vmax.f32 %v2398_v44, %v2399_v30  ;;  %v247_v30 = vld [vmem:[%s14283_s0 + $0x678] sm:$0xff] }
 0x676   :  { %v2642_v43 = vsel %vm2118_vm2, %v2400_v58, -inf  ;;  %v1664_v42 = vpop.f32.mrf.mxu0  ;;  %v2037_v58 = vmax.f32 %v1620_v0, 0.0 }
 0x677   :  { %v2643_v32 = vmax.f32 %v2641_v23, %v2642_v43  ;;  %v1665_v16 = vadd.f32 %v11229_v60, %v1664_v42  ;;  %v11444_v29 = vpop.f32.mrf.mxu1 }
 0x678   :  { %14359 = vst [vmem:[#allocation52_spill] sm:$0xff] %v11444_v29  ;;  %v2404_v36 = vsel %vm2118_vm2, %v2037_v58, -inf  ;;  %v2902_v58 = vld [vmem:[#allocation2 + $0x168] sm:$0xff] }
 0x679   :  { %2781 = vst.msk [vmem:[#allocation2 + $0x218] sm:$0xff] %vm2118_vm2, %v2643_v32  ;;  %8371 = vmatmul.msk.f32.gmra.mxu0 %vm304_vm1, %v246_v54  ;;  %v2052_v24 = vmax.f32 %v1665_v16, 0.0  ;;  %v2401_v54 = vsel %vm2118_vm2, %v2036_v48, -inf }
 0x67a   :  { %8655 = vmatmul.msk.f32.gmra.mxu1 %vm2118_vm2, %v2900_v2 }
 0x67b   :  { %v2402_v34 = vsel %vm2118_vm2, %v2052_v24, -inf }
 0x67c   :  { %v2403_v16 = vmax.f32 %v2401_v54, %v2402_v34  ;;  %v249_v54 = vld [vmem:[%s14283_s0 + $0x688] sm:$0xff] }
 0x67e   :  { %v1667_v44 = vpop.f32.mrf.mxu0  ;;  %v2644_v24 = vsel %vm2118_vm2, %v2403_v16, -inf }
 0x67f   :  { %v1668_v23 = vadd.f32 %v11229_v60, %v1667_v44  ;;  %v11458_v43 = vpop.f32.mrf.mxu1 }
 0x680   :  { %14360 = vst [vmem:[#allocation53_spill] sm:$0xff] %v11458_v43  ;;  %v11460_v42 = vld [vmem:[#allocation2 + $0x218] sm:$0xff] }
 0x681   :  { %v2053_v32 = vmax.f32 %v1668_v23, 0.0  ;;  %8372 = vmatmul.msk.f32.gmra.mxu0 %vm304_vm1, %v247_v30  ;;  %8474 = vmatmul.msk.f32.gmra.mxu2 %vm2118_vm2, %v11460_v42  ;;  %v248_v30 = vld [vmem:[%s14283_s0 + $0x680] sm:$0xff] }
 0x682   :  { %8656 = vmatmul.msk.f32.gmra.mxu1 %vm2118_vm2, %v2901_v50  ;;  %v2903_v50 = vld [vmem:[#allocation2 + $0x170] sm:$0xff] }
 0x683   :  { %v2405_v2 = vsel %vm2118_vm2, %v2053_v32, -inf }
 0x684   :  { %v2406_v0 = vmax.f32 %v2404_v36, %v2405_v2  ;;  %v250_v36 = vld [vmem:[%s14283_s0 + $0x690] sm:$0xff] }
 0x686   :  { %v2645_v44 = vsel %vm2118_vm2, %v2406_v0, -inf  ;;  %v11471_v48 = vpop.f32.mrf.mxu0  ;;  %v2904_v0 = vld [vmem:[#allocation2 + $0x178] sm:$0xff] }
 0x687   :  { %v2646_v23 = vmax.f32 %v2644_v24, %v2645_v44  ;;  %v11476_v43 = vpop.f32.mrf.mxu1  ;;  %v251_v44 = vld [vmem:[%s14283_s0 + $0x698] sm:$0xff] }
 0x688   :  { %14361 = vst [vmem:[#allocation54_spill] sm:$0xff] %v11476_v43  ;;  %v1740_v43 = vadd.f32 %v11229_v60, %v9323_v41 }
 0x689   :  { %2782 = vst.msk [vmem:[#allocation2 + $0x220] sm:$0xff] %vm2118_vm2, %v2646_v23  ;;  %8373 = vmatmul.msk.f32.gmra.mxu0 %vm304_vm1, %v248_v30  ;;  %v2905_v23 = vld [vmem:[#allocation2 + $0x180] sm:$0xff] }
 0x68a   :  { %8657 = vmatmul.msk.f32.gmra.mxu1 %vm2118_vm2, %v2902_v58  ;;  %v2077_v55 = vmax.f32 %v1740_v43, 0.0 }
 0x68c   :  { %v2429_v41 = vsel %vm2118_vm2, %v2077_v55, -inf }
 0x68e   :  { %v11481_v34 = vpop.f32.mrf.mxu0 }
 0x68f   :  { %v11486_v32 = vpop.f32.mrf.mxu1 }
 0x690   :  { %14362 = vst [vmem:[#allocation55_spill] sm:$0xff] %v11486_v32  ;;  %v9106_v32 = vld [vmem:[#allocation2 + $0x1a8] sm:$0xff] }
 0x691   :  { %8374 = vmatmul.msk.f32.gmra.mxu0 %vm304_vm1, %v249_v54  ;;  %v252_v54 = vld [vmem:[%s14283_s0 + $0x6a0] sm:$0xff] }
 0x692   :  { %8658 = vmatmul.msk.f32.gmra.mxu1 %vm2118_vm2, %v2903_v50 }
 0x696   :  { %v11490_v16 = vpop.f32.mrf.mxu0 }
 0x697   :  { %v11495_v2 = vpop.f32.mrf.mxu1 }
 0x698   :  { %14363 = vst [vmem:[#allocation56_spill] sm:$0xff] %v11495_v2 }
 0x699   :  { %8375 = vmatmul.msk.f32.gmra.mxu0 %vm304_vm1, %v250_v36  ;;  %v2906_v36 = vld [vmem:[#allocation2 + $0x198] sm:$0xff] }
 0x69a   :  { %8659 = vmatmul.msk.f32.gmra.mxu1 %vm2118_vm2, %v2904_v0 }
 0x69e   :  { %v11499_v24 = vpop.f32.mrf.mxu0 }
 0x69f   :  { %v11504_v30 = vpop.f32.mrf.mxu1 }
 0x6a0   :  { %14364 = vst [vmem:[#allocation57_spill] sm:$0xff] %v11504_v30  ;;  %v2907_v30 = vld [vmem:[#allocation2 + $0x1a0] sm:$0xff] }
 0x6a1   :  { %8376 = vmatmul.msk.f32.gmra.mxu0 %vm304_vm1, %v251_v44  ;;  %v253_v44 = vld [vmem:[%s14283_s0 + $0x6a8] sm:$0xff] }
 0x6a2   :  { %8660 = vmatmul.msk.f32.gmra.mxu1 %vm2118_vm2, %v2905_v23 }
 0x6a6   :  { %v11508_v58 = vpop.f32.mrf.mxu0 }
 0x6a7   :  { %v11513_v50 = vpop.f32.mrf.mxu1 }
 0x6a8   :  { %14365 = vst [vmem:[#allocation58_spill] sm:$0xff] %v11513_v50 }
 0x6a9   :  { %8377 = vmatmul.msk.f32.gmra.mxu0 %vm304_vm1, %v252_v54 }
 0x6aa   :  { %8661 = vmatmul.msk.f32.gmra.mxu1 %vm2118_vm2, %v2906_v36  ;;  %v1737_v36 = vadd.f32 %v11229_v60, %v9311_v37 }
 0x6ac   :  { %v2076_v29 = vmax.f32 %v1737_v36, 0.0 }
 0x6ae   :  { %v11517_v0 = vpop.f32.mrf.mxu0  ;;  %v2426_v37 = vsel %vm2118_vm2, %v2076_v29, -inf  ;;  %v1743_v29 = vadd.f32 %v11229_v60, %v9335_v45 }
 0x6af   :  { %v11522_v23 = vpop.f32.mrf.mxu1 }
 0x6b0   :  { %14366 = vst [vmem:[#allocation59_spill] sm:$0xff] %v11522_v23  ;;  %v2078_v55 = vmax.f32 %v1743_v29, 0.0 }
 0x6b1   :  { %8378 = vmatmul.msk.f32.gmra.mxu0 %vm304_vm1, %v253_v44 }
 0x6b2   :  { %8662 = vmatmul.msk.f32.gmra.mxu1 %vm2118_vm2, %v2907_v30  ;;  %v2864_v30 = vld [vmem:[%s14285_s3 + $0x8] sm:$0xff] }
 0x6b3   :  { %3675 = vmatpush.msrb.mxu2 %v2864_v30 }
 0x6b6   :  { %v1688_v2 = vpop.f32.mrf.mxu0 }
 0x6b7   :  { %v1689_v50 = vadd.f32 %v11229_v60, %v1688_v2  ;;  %v11527_v54 = vpop.f32.mrf.mxu1 }
 0x6b8   :  { %14367 = vst [vmem:[#allocation60_spill] sm:$0xff] %v11527_v54 }
 0x6b9   :  { %v2060_v23 = vmax.f32 %v1689_v50, 0.0 }
 0x6ba   :  { %8663 = vmatmul.msk.f32.gmra.mxu1 %vm2118_vm2, %v9106_v32 }
 0x6bb   :  { %v2425_v2 = vsel %vm2118_vm2, %v2060_v23, -inf }
 0x6bc   :  { %v2427_v39 = vmax.f32 %v2425_v2, %v2426_v37  ;;  %v8556_v2 = vld [vmem:[%s14285_s3 + $0x48] sm:$0xff] }
 0x6bd   :  { %4143 = vmatpush.msrb.mxu3 %v8556_v2 }
 0x6be   :  { %v1691_v44 = vpop.f32.mrf.mxu0  ;;  %v2656_v43 = vsel %vm2118_vm2, %v2427_v39, -inf }
 0x6bf   :  { %v1692_v54 = vadd.f32 %v11229_v60, %v1691_v44  ;;  %v11539_v25 = vpop.f32.mrf.mxu1 }
 0x6c0   :  { %14368 = vst [vmem:[#allocation61_spill] sm:$0xff] %v11539_v25 }
 0x6c1   :  { %v2061_v32 = vmax.f32 %v1692_v54, 0.0 }
 0x6c2   :  { %8664 = vmatmul.msk.f32.gmra.mxu1 %vm2118_vm2, %v10976_v17  ;;  %v1746_v17 = vadd.f32 %v11229_v60, %v9347_v49 }
 0x6c3   :  { %v2428_v50 = vsel %vm2118_vm2, %v2061_v32, -inf }
 0x6c4   :  { %v2430_v36 = vmax.f32 %v2428_v50, %v2429_v41  ;;  %v2079_v37 = vmax.f32 %v1746_v17, 0.0 }
 0x6c6   :  { %v2657_v23 = vsel %vm2118_vm2, %v2430_v36, -inf  ;;  %v1694_v44 = vpop.f32.mrf.mxu0  ;;  %v2435_v36 = vsel %vm2118_vm2, %v2079_v37, -inf }
 0x6c7   :  { %v2658_v59 = vmax.f32 %v2656_v43, %v2657_v23  ;;  %v1695_v30 = vadd.f32 %v11229_v60, %v1694_v44  ;;  %v11549_v25 = vpop.f32.mrf.mxu1 }
 0x6c8   :  { %14369 = vst [vmem:[#allocation62_spill] sm:$0xff] %v11549_v25 }
 0x6c9   :  { %2786 = vst.msk [vmem:[#allocation2 + $0x250] sm:$0xff] %vm2118_vm2, %v2658_v59  ;;  %v2062_v39 = vmax.f32 %v1695_v30, 0.0 }
 0x6ca   :  { %8665 = vmatmul.msk.f32.gmra.mxu1 %vm2118_vm2, %v11005_v40  ;;  %v2432_v40 = vsel %vm2118_vm2, %v2078_v55, -inf }
 0x6cb   :  { %v2431_v32 = vsel %vm2118_vm2, %v2062_v39, -inf }
 0x6cc   :  { %v2433_v50 = vmax.f32 %v2431_v32, %v2432_v40 }
 0x6ce   :  { %v1697_v54 = vpop.f32.mrf.mxu0  ;;  %v2659_v44 = vsel %vm2118_vm2, %v2433_v50, -inf }
 0x6cf   :  { %v1698_v45 = vadd.f32 %v11229_v60, %v1697_v54  ;;  %v11563_v41 = vpop.f32.mrf.mxu1  ;;  %v1749_v54 = vadd.f32 %v11229_v60, %v9359_v53 }
 0x6d0   :  { %14370 = vst [vmem:[#allocation63_spill] sm:$0xff] %v11563_v41  ;;  %v11565_v59 = vld [vmem:[#allocation2 + $0x250] sm:$0xff] }
 0x6d1   :  { %v2063_v49 = vmax.f32 %v1698_v45, 0.0  ;;  %8479 = vmatmul.msk.f32.vlgmr.msra.gmra.mxu3 %vm2118_vm2, %v11565_v59  ;;  %v2080_v37 = vmax.f32 %v1749_v54, 0.0 }
 0x6d2   :  { %8666 = vmatmul.msk.f32.gmra.mxu1 %vm2118_vm2, %v11035_v15  ;;  %v1752_v15 = vadd.f32 %v11229_v60, %v9371_v57 }
 0x6d3   :  { %v2434_v43 = vsel %vm2118_vm2, %v2063_v49, -inf  ;;  %v2438_v53 = vsel %vm2118_vm2, %v2080_v37, -inf  ;;  %v1755_v37 = vadd.f32 %v11229_v60, %v9383_v61 }
 0x6d4   :  { %v2436_v23 = vmax.f32 %v2434_v43, %v2435_v36  ;;  %v2081_v45 = vmax.f32 %v1752_v15, 0.0 }
 0x6d6   :  { %v2660_v30 = vsel %vm2118_vm2, %v2436_v23, -inf  ;;  %v1700_v29 = vpop.f32.mrf.mxu0  ;;  %v2441_v23 = vsel %vm2118_vm2, %v2081_v45, -inf }
 0x6d7   :  { %v2661_v17 = vmax.f32 %v2659_v44, %v2660_v30  ;;  %v1701_v39 = vadd.f32 %v11229_v60, %v1700_v29  ;;  %v11577_v55 = vpop.f32.mrf.mxu1 }
 0x6d8   :  { %14371 = vst [vmem:[#allocation64_spill] sm:$0xff] %v11577_v55 }
 0x6d9   :  { %2787 = vst.msk [vmem:[#allocation2 + $0x258] sm:$0xff] %vm2118_vm2, %v2661_v17  ;;  %v2064_v2 = vmax.f32 %v1701_v39, 0.0 }
 0x6da   :  { %8667 = vmatmul.msk.f32.gmra.mxu1 %vm2118_vm2, %v11066_v27  ;;  %v2913_v27 = vld [vmem:[#allocation2 + $0x1d0] sm:$0xff] }
 0x6db   :  { %v2437_v40 = vsel %vm2118_vm2, %v2064_v2, -inf }
 0x6dc   :  { %v2439_v57 = vmax.f32 %v2437_v40, %v2438_v53  ;;  %v2082_v40 = vmax.f32 %v1755_v37, 0.0 }
 0x6de   :  { %v1703_v32 = vpop.f32.mrf.mxu0  ;;  %v2662_v29 = vsel %vm2118_vm2, %v2439_v57, -inf  ;;  %v2444_v61 = vsel %vm2118_vm2, %v2082_v40, -inf  ;;  %v3049_v40 = vld [vmem:[#allocation2 + $0x230] sm:$0xff] }
 0x6df   :  { %v1704_v49 = vadd.f32 %v11229_v60, %v1703_v32  ;;  %v11588_v50 = vpop.f32.mrf.mxu1  ;;  %v1758_v32 = vadd.f32 %v11229_v60, %v9395_v1  ;;  %8475 = vmatmul.msk.f32.gmra.mxu2 %vm2118_vm2, %v3049_v40 }
 0x6e0   :  { %14372 = vst [vmem:[#allocation65_spill] sm:$0xff] %v11588_v50  ;;  %v11590_v36 = vld [vmem:[#allocation2 + $0x258] sm:$0xff] }
 0x6e1   :  { %v2065_v43 = vmax.f32 %v1704_v49, 0.0  ;;  %8480 = vmatmul.msk.f32.gmra.mxu3 %vm2118_vm2, %v11590_v36  ;;  %v2083_v53 = vmax.f32 %v1758_v32, 0.0 }
 0x6e2   :  { %8668 = vmatmul.msk.f32.gmra.mxu1 %vm2118_vm2, %v2913_v27 }
 0x6e3   :  { %v2440_v44 = vsel %vm2118_vm2, %v2065_v43, -inf  ;;  %v2447_v1 = vsel %vm2118_vm2, %v2083_v53, -inf }
 0x6e4   :  { %v2442_v30 = vmax.f32 %v2440_v44, %v2441_v23 }
 0x6e6   :  { %v2663_v17 = vsel %vm2118_vm2, %v2442_v30, -inf  ;;  %v1706_v39 = vpop.f32.mrf.mxu0 }
 0x6e7   :  { %v2664_v54 = vmax.f32 %v2662_v29, %v2663_v17  ;;  %v1707_v15 = vadd.f32 %v11229_v60, %v1706_v39  ;;  %v11601_v2 = vpop.f32.mrf.mxu1 }
 0x6e8   :  { %14373 = vst [vmem:[#allocation66_spill] sm:$0xff] %v11601_v2  ;;  %v3893_v2 = vld [vmem:[#allocation2 + $0x130] sm:$0xff] }
 0x6e9   :  { %2788 = vst.msk [vmem:[#allocation2 + $0x260] sm:$0xff] %vm2118_vm2, %v2664_v54  ;;  %v2066_v45 = vmax.f32 %v1707_v15, 0.0 }
 0x6ea   :  { %8669 = vmatmul.msk.f32.gmra.mxu1 %vm2118_vm2, %v11274_v21 }
 0x6eb   :  { %v2443_v43 = vsel %vm2118_vm2, %v2066_v45, -inf  ;;  %v1761_v45 = vadd.f32 %v11229_v60, %v9407_v5  ;;  %v8555_v5 = vld [vmem:[%s14285_s3 + $0x40] sm:$0xff] }
 0x6ec   :  { %v2445_v21 = vmax.f32 %v2443_v43, %v2444_v61  ;;  %4144 = vmatpush.msrb.mxu3 %v8555_v5 }
 0x6ed   :  { %v2084_v43 = vmax.f32 %v1761_v45, 0.0 }
 0x6ee   :  { %v1709_v49 = vpop.f32.mrf.mxu0  ;;  %v2665_v17 = vsel %vm2118_vm2, %v2445_v21, -inf }
 0x6ef   :  { %v1710_v27 = vadd.f32 %v11229_v60, %v1709_v49  ;;  %v11612_v57 = vpop.f32.mrf.mxu1  ;;  %v1764_v49 = vadd.f32 %v11229_v60, %v9419_v9  ;;  %v2450_v9 = vsel %vm2118_vm2, %v2084_v43, -inf  ;;  %v1671_v43 = vadd.f32 %v11229_v60, %v11471_v48  ;;  %v3058_v48 = vld [vmem:[#allocation2 + $0x288] sm:$0xff] }
 0x6f0   :  { %14374 = vst [vmem:[#allocation67_spill] sm:$0xff] %v11612_v57  ;;  %v11614_v23 = vld [vmem:[#allocation2 + $0x260] sm:$0xff] }
 0x6f1   :  { %v2067_v44 = vmax.f32 %v1710_v27, 0.0  ;;  %8481 = vmatmul.msk.f32.gmra.mxu3 %vm2118_vm2, %v11614_v23  ;;  %v2085_v61 = vmax.f32 %v1764_v49, 0.0  ;;  %v2054_v5 = vmax.f32 %v1671_v43, 0.0  ;;  %v3059_v43 = vld [vmem:[#allocation2 + $0x290] sm:$0xff] }
 0x6f2   :  { %8670 = vmatmul.msk.f32.gmra.mxu1 %vm2118_vm2, %v11305_v14  ;;  %v2863_v14 = vld [vmem:[%s14285_s3] sm:$0xff] }
 0x6f3   :  { %v2446_v30 = vsel %vm2118_vm2, %v2067_v44, -inf  ;;  %3676 = vmatpush.msrb.mxu2 %v2863_v14  ;;  %v3057_v14 = vld [vmem:[#allocation2 + $0x280] sm:$0xff] }
 0x6f4   :  { %v2448_v29 = vmax.f32 %v2446_v30, %v2447_v1 }
 0x6f6   :  { %v2666_v39 = vsel %vm2118_vm2, %v2448_v29, -inf  ;;  %v1712_v54 = vpop.f32.mrf.mxu0 }
 0x6f7   :  { %v2667_v15 = vmax.f32 %v2665_v17, %v2666_v39  ;;  %v1713_v37 = vadd.f32 %v11229_v60, %v1712_v54  ;;  %v11626_v32 = vpop.f32.mrf.mxu1  ;;  %v2453_v17 = vsel %vm2118_vm2, %v2085_v61, -inf }
 0x6f8   :  { %14375 = vst [vmem:[#allocation68_spill] sm:$0xff] %v11626_v32 }
 0x6f9   :  { %2789 = vst.msk [vmem:[#allocation2 + $0x268] sm:$0xff] %vm2118_vm2, %v2667_v15  ;;  %v2068_v53 = vmax.f32 %v1713_v37, 0.0 }
 0x6fa   :  { %8671 = vmatmul.msk.f32.gmra.mxu1 %vm2118_vm2, %v11336_v7 }
 0x6fb   :  { %v2449_v44 = vsel %vm2118_vm2, %v2068_v53, -inf }
 0x6fc   :  { %v2451_v29 = vmax.f32 %v2449_v44, %v2450_v9 }
 0x6fe   :  { %v1715_v27 = vpop.f32.mrf.mxu0  ;;  %v2668_v15 = vsel %vm2118_vm2, %v2451_v29, -inf  ;;  %v2407_v29 = vsel %vm2118_vm2, %v2054_v5, -inf }
 0x6ff   :  { %v1716_v21 = vadd.f32 %v11229_v60, %v1715_v27  ;;  %v11644_v1 = vpop.f32.mrf.mxu1 }
 0x700   :  { %14376 = vst [vmem:[#allocation69_spill] sm:$0xff] %v11644_v1  ;;  %v11646_v7 = vld [vmem:[#allocation2 + $0x268] sm:$0xff] }
 0x701   :  { %v2069_v30 = vmax.f32 %v1716_v21, 0.0  ;;  %8482 = vmatmul.msk.f32.gmra.mxu3 %vm2118_vm2, %v11646_v7  ;;  %v12038_v1 = vld [vmem:[#allocation2 + $0x148] sm:$0xff] }
 0x702   :  { %8672 = vmatmul.msk.f32.gmra.mxu1 %vm2118_vm2, %v11367_v33  ;;  %v1674_v33 = vadd.f32 %v11229_v60, %v11481_v34 }
 0x703   :  { %v2452_v39 = vsel %vm2118_vm2, %v2069_v30, -inf }
 0x704   :  { %v2454_v54 = vmax.f32 %v2452_v39, %v2453_v17  ;;  %v2055_v44 = vmax.f32 %v1674_v33, 0.0  ;;  %v1677_v33 = vadd.f32 %v11229_v60, %v11490_v16 }
 0x706   :  { %v2669_v37 = vsel %vm2118_vm2, %v2454_v54, -inf  ;;  %v1718_v45 = vpop.f32.mrf.mxu0  ;;  %v2410_v34 = vsel %vm2118_vm2, %v2055_v44, -inf  ;;  %v2056_v5 = vmax.f32 %v1677_v33, 0.0  ;;  %v3061_v33 = vld [vmem:[#allocation2 + $0x2a0] sm:$0xff] }
 0x707   :  { %v2670_v40 = vmax.f32 %v2668_v15, %v2669_v37  ;;  %v1719_v49 = vadd.f32 %v11229_v60, %v1718_v45  ;;  %v11658_v53 = vpop.f32.mrf.mxu1 }
 0x708   :  { %14377 = vst [vmem:[#allocation70_spill] sm:$0xff] %v11658_v53 }
 0x709   :  { %2790 = vst.msk [vmem:[#allocation2 + $0x270] sm:$0xff] %vm2118_vm2, %v2670_v40  ;;  %8483 = vmatmul.msk.f32.gmra.mxu3 %vm2118_vm2, %v3057_v14  ;;  %v2070_v27 = vmax.f32 %v1719_v49, 0.0 }
 0x70a   :  { %8673 = vmatmul.msk.f32.gmra.mxu1 %vm2118_vm2, %v11398_v63 }
 0x70b   :  { %v2408_v21 = vsel %vm2118_vm2, %v2070_v27, -inf }
 0x70c   :  { %v2409_v63 = vmax.f32 %v2407_v29, %v2408_v21  ;;  %v3060_v29 = vld [vmem:[#allocation2 + $0x298] sm:$0xff] }
 0x70e   :  { %v1721_v61 = vpop.f32.mrf.mxu0  ;;  %v2647_v15 = vsel %vm2118_vm2, %v2409_v63, -inf }
 0x70f   :  { %v1722_v9 = vadd.f32 %v11229_v60, %v1721_v61  ;;  %v11670_v30 = vpop.f32.mrf.mxu1 }
 0x710   :  { %14378 = vst [vmem:[#allocation71_spill] sm:$0xff] %v11670_v30  ;;  %v12020_v30 = vld [vmem:[#allocation2 + $0x140] sm:$0xff] }
 0x711   :  { %v2071_v17 = vmax.f32 %v1722_v9, 0.0  ;;  %8484 = vmatmul.msk.f32.gmra.mxu3 %vm2118_vm2, %v3058_v48 }
 0x712   :  { %8674 = vmatmul.msk.f32.gmra.mxu1 %vm2118_vm2, %v11429_v18  ;;  %v1680_v18 = vadd.f32 %v11229_v60, %v11499_v24 }
 0x713   :  { %v2411_v39 = vsel %vm2118_vm2, %v2071_v17, -inf  ;;  %v2413_v17 = vsel %vm2118_vm2, %v2056_v5, -inf  ;;  %v8424_v5 = vld [vmem:[%s14285_s3 + $0x28] sm:$0xff] }
 0x714   :  { %v2412_v54 = vmax.f32 %v2410_v34, %v2411_v39  ;;  %v2057_v44 = vmax.f32 %v1680_v18, 0.0  ;;  %v1683_v18 = vadd.f32 %v11229_v60, %v11508_v58  ;;  %5414 = vmatpush.msra.mxu3 %v8424_v5  ;;  %v2799_v5 = vld [vmem:[#allocation2] sm:$0xff] }
 0x716   :  { %v2648_v37 = vsel %vm2118_vm2, %v2412_v54, -inf  ;;  %v1724_v45 = vpop.f32.mrf.mxu0  ;;  %v2416_v34 = vsel %vm2118_vm2, %v2057_v44, -inf  ;;  %v2058_v58 = vmax.f32 %v1683_v18, 0.0 }
 0x717   :  { %v2649_v14 = vmax.f32 %v2647_v15, %v2648_v37  ;;  %v1725_v40 = vadd.f32 %v11229_v60, %v1724_v45  ;;  %v11681_v49 = vpop.f32.mrf.mxu1 }
 0x718   :  { %14379 = vst [vmem:[#allocation72_spill] sm:$0xff] %v11681_v49 }
 0x719   :  { %2783 = vst.msk [vmem:[#allocation2 + $0x238] sm:$0xff] %vm2118_vm2, %v2649_v14  ;;  %8485 = vmatmul.msk.f32.gmra.mxu3 %vm2118_vm2, %v3059_v43  ;;  %v2072_v27 = vmax.f32 %v1725_v40, 0.0 }
 0x71a   :  { %8675 = vmatmul.msk.f32.gmra.mxu1 %vm2118_vm2, %v11460_v42  ;;  %v2921_v42 = vld [vmem:[#allocation2 + $0x220] sm:$0xff] }
 0x71b   :  { %v2414_v21 = vsel %vm2118_vm2, %v2072_v27, -inf  ;;  %v8686_v27 = vld [vmem:[%s14285_s3 + $0x58] sm:$0xff] }
 0x71c   :  { %v2415_v24 = vmax.f32 %v2413_v17, %v2414_v21  ;;  %5013 = vmatpush.msra.mxu2 %v8686_v27  ;;  %v3064_v27 = vld [vmem:[#allocation2 + $0x2b8] sm:$0xff] }
 0x71e   :  { %v1727_v61 = vpop.f32.mrf.mxu0  ;;  %v2650_v15 = vsel %vm2118_vm2, %v2415_v24, -inf  ;;  %v2419_v24 = vsel %vm2118_vm2, %v2058_v58, -inf  ;;  %v2800_v58 = vld [vmem:[#allocation2 + $0x8] sm:$0xff] }
 0x71f   :  { %v1728_v9 = vadd.f32 %v11229_v60, %v1727_v61  ;;  %v11693_v48 = vpop.f32.mrf.mxu1  ;;  %v1686_v61 = vadd.f32 %v11229_v60, %v11517_v0 }
 0x720   :  { %14380 = vst [vmem:[#allocation73_spill] sm:$0xff] %v11693_v48  ;;  %v3050_v16 = vld [vmem:[#allocation2 + $0x238] sm:$0xff] }
 0x721   :  { %v2073_v63 = vmax.f32 %v1728_v9, 0.0  ;;  %8476 = vmatmul.msk.f32.gmra.mxu2 %vm2118_vm2, %v3050_v16  ;;  %8486 = vmatmul.msk.f32.gmra.mxu3 %vm2118_vm2, %v3060_v29  ;;  %v2059_v9 = vmax.f32 %v1686_v61, 0.0 }
 0x722   :  { %8676 = vmatmul.msk.f32.gmra.mxu1 %vm2118_vm2, %v2921_v42  ;;  %v3062_v42 = vld [vmem:[#allocation2 + $0x2a8] sm:$0xff] }
 0x723   :  { %v2417_v39 = vsel %vm2118_vm2, %v2073_v63, -inf }
 0x724   :  { %v2418_v54 = vmax.f32 %v2416_v34, %v2417_v39  ;;  %v2422_v39 = vsel %vm2118_vm2, %v2059_v9, -inf }
 0x726   :  { %v2651_v37 = vsel %vm2118_vm2, %v2418_v54, -inf  ;;  %v1730_v45 = vpop.f32.mrf.mxu0 }
 0x727   :  { %v2652_v14 = vmax.f32 %v2650_v15, %v2651_v37  ;;  %v1731_v40 = vadd.f32 %v11229_v60, %v1730_v45  ;;  %v11704_v43 = vpop.f32.mrf.mxu1 }
 0x728   :  { %14381 = vst [vmem:[#allocation74_spill] sm:$0xff] %v11704_v43 }
 0x729   :  { %2784 = vst.msk [vmem:[#allocation2 + $0x240] sm:$0xff] %vm2118_vm2, %v2652_v14  ;;  %8487 = vmatmul.msk.f32.gmra.mxu3 %vm2118_vm2, %v3061_v33  ;;  %v2074_v44 = vmax.f32 %v1731_v40, 0.0  ;;  %v3063_v40 = vld [vmem:[#allocation2 + $0x2b0] sm:$0xff] }
 0x72a   :  { %8677 = vmatmul.msk.f32.gmra.mxu1 %vm2118_vm2, %v3050_v16 }
 0x72b   :  { %v2420_v29 = vsel %vm2118_vm2, %v2074_v44, -inf  ;;  %v11742_v44 = vld [vmem:[#allocation2 + $0x58] sm:$0xff] }
 0x72c   :  { %v2421_v0 = vmax.f32 %v2419_v24, %v2420_v29  ;;  %v11754_v29 = vld [vmem:[#allocation2 + $0x60] sm:$0xff]  ;;  %v11768_v24 = vld [vmem:[#allocation2 + $0x68] sm:$0xff] }
 0x72e   :  { %v1733_v21 = vpop.f32.mrf.mxu0 }
 0x72f   :  { %v1734_v16 = vadd.f32 %v11229_v60, %v1733_v21  ;;  %v11721_v17 = vpop.f32.mrf.mxu1  ;;  %v2653_v60 = vsel %vm2118_vm2, %v2421_v0, -inf  ;;  %v8816_v21 = vld [vmem:[%s14285_s3 + $0x68] sm:$0xff] }
 0x730   :  { %14382 = vst [vmem:[#allocation75_spill] sm:$0xff] %v11721_v17  ;;  %v3051_v63 = vld [vmem:[#allocation2 + $0x240] sm:$0xff]  ;;  %5883 = vmatpush.msrb.mxu1 %v8816_v21  ;;  %v2805_v21 = vld [vmem:[#allocation2 + $0x30] sm:$0xff] }
 0x731   :  { %v2075_v34 = vmax.f32 %v1734_v16, 0.0  ;;  %8477 = vmatmul.msk.f32.gmra.mxu2 %vm2118_vm2, %v3051_v63  ;;  %8488 = vmatmul.msk.f32.gmra.mxu3 %vm2118_vm2, %v3062_v42  ;;  %v8815_v16 = vld [vmem:[%s14285_s3 + $0x60] sm:$0xff]  ;;  %v11766_v42 = vpop.f32.mrf.mxu2 }
 0x732   :  { %8678 = vmatmul.msk.f32.gmra.mxu1 %vm2118_vm2, %v3051_v63  ;;  %14388 = vst [vmem:[#allocation81_spill] sm:$0xff] %v11766_v42 }
 0x733   :  { %v2423_v54 = vsel %vm2118_vm2, %v2075_v34, -inf  ;;  %5884 = vmatpush.msrb.mxu1 %v8815_v16  ;;  %v2802_v34 = vld [vmem:[#allocation2 + $0x18] sm:$0xff] }
 0x734   :  { %v2424_v15 = vmax.f32 %v2422_v39, %v2423_v54  ;;  %v11779_v39 = vld [vmem:[#allocation2 + $0x70] sm:$0xff]  ;;  %v2803_v54 = vld [vmem:[#allocation2 + $0x20] sm:$0xff] }
 0x736   :  { %v2654_v37 = vsel %vm2118_vm2, %v2424_v15, -inf }
 0x737   :  { %v2655_v45 = vmax.f32 %v2653_v60, %v2654_v37  ;;  %v11731_v14 = vpop.f32.mrf.mxu1  ;;  %v2929_v37 = vld [vmem:[#allocation2 + $0x270] sm:$0xff] }
 0x738   :  { %14383 = vst [vmem:[#allocation76_spill] sm:$0xff] %v11731_v14 }
 0x739   :  { %2785 = vst.msk [vmem:[#allocation2 + $0x248] sm:$0xff] %vm2118_vm2, %v2655_v45  ;;  %8489 = vmatmul.msk.f32.gmra.mxu3 %vm2118_vm2, %v3063_v40  ;;  %v2804_v40 = vld [vmem:[#allocation2 + $0x28] sm:$0xff] }
 0x73f   :  { %v11735_v33 = vpop.f32.mrf.mxu1 }
 0x740   :  { %14384 = vst [vmem:[#allocation77_spill] sm:$0xff] %v11735_v33  ;;  %v3052_v18 = vld [vmem:[#allocation2 + $0x248] sm:$0xff] }
 0x741   :  { %8478 = vmatmul.msk.f32.gmra.mxu2 %vm2118_vm2, %v3052_v18  ;;  %8490 = vmatmul.msk.f32.gmra.mxu3 %vm2118_vm2, %v3064_v27  ;;  %v11802_v27 = vld [vmem:[#allocation2 + $0x80] sm:$0xff] }
 0x742   :  { %8679 = vmatmul.msk.f32.gmra.mxu1 %vm2118_vm2, %v3052_v18 }
 0x747   :  { %v11740_v61 = vpop.f32.mrf.mxu1 }
 0x748   :  { %14385 = vst [vmem:[#allocation78_spill] sm:$0xff] %v11740_v61 }
 0x749   :  { %8491 = vmatmul.msk.f32.vlgmr.msrb.gmra.mxu2 %vm2118_vm2, %v2799_v5  ;;  %8557 = vmatmul.msk.f32.vlgmr.msrb.gmra.mxu3 %vm2118_vm2, %v11742_v44 }
 0x74a   :  { %8680 = vmatmul.msk.f32.gmra.mxu1 %vm2118_vm2, %v11565_v59  ;;  %v2801_v59 = vld [vmem:[#allocation2 + $0x10] sm:$0xff] }
 0x74f   :  { %v11752_v9 = vpop.f32.mrf.mxu1 }
 0x750   :  { %14386 = vst [vmem:[#allocation79_spill] sm:$0xff] %v11752_v9 }
 0x751   :  { %8492 = vmatmul.msk.f32.gmra.mxu2 %vm2118_vm2, %v2800_v58  ;;  %8558 = vmatmul.msk.f32.gmra.mxu3 %vm2118_vm2, %v11754_v29 }
 0x752   :  { %8681 = vmatmul.msk.f32.gmra.mxu1 %vm2118_vm2, %v11590_v36  ;;  %v11777_v36 = vpop.f32.mrf.mxu2 }
 0x753   :  { %14390 = vst [vmem:[#allocation83_spill] sm:$0xff] %v11777_v36 }
 0x754   :  { %v11796_v45 = vpop.f32.mrf.mxu3 }
 0x757   :  { %v11764_v63 = vpop.f32.mrf.mxu1 }
 0x758   :  { %14387 = vst [vmem:[#allocation80_spill] sm:$0xff] %v11764_v63  ;;  %v2807_v63 = vld [vmem:[#allocation2 + $0x50] sm:$0xff] }
 0x759   :  { %8493 = vmatmul.msk.f32.gmra.mxu2 %vm2118_vm2, %v2801_v59  ;;  %8559 = vmatmul.msk.f32.gmra.mxu3 %vm2118_vm2, %v11768_v24  ;;  %v11815_v59 = vld [vmem:[#allocation2 + $0x88] sm:$0xff] }
 0x75a   :  { %8682 = vmatmul.msk.f32.gmra.mxu1 %vm2118_vm2, %v11614_v23  ;;  %v11788_v60 = vpop.f32.mrf.mxu2  ;;  %v11790_v23 = vld [vmem:[#allocation2 + $0x78] sm:$0xff] }
 0x75b   :  { %14392 = vst [vmem:[#allocation85_spill] sm:$0xff] %v11788_v60 }
 0x75f   :  { %v11775_v0 = vpop.f32.mrf.mxu1 }
 0x760   :  { %14389 = vst [vmem:[#allocation82_spill] sm:$0xff] %v11775_v0 }
 0x761   :  { %8494 = vmatmul.msk.f32.gmra.mxu2 %vm2118_vm2, %v2802_v34  ;;  %8560 = vmatmul.msk.f32.gmra.mxu3 %vm2118_vm2, %v11779_v39  ;;  %v11820_v34 = vld [vmem:[#allocation2 + $0xa8] sm:$0xff] }
 0x762   :  { %8683 = vmatmul.msk.f32.gmra.mxu1 %vm2118_vm2, %v11646_v7  ;;  %v11800_v7 = vld [vmem:[#allocation2 + $0xa0] sm:$0xff]  ;;  %v11807_v5 = vpop.f32.mrf.mxu2 }
 0x763   :  { %14394 = vst [vmem:[#allocation87_spill] sm:$0xff] %v11807_v5 }
 0x764   :  { %v11811_v58 = vpop.f32.mrf.mxu3 }
 0x767   :  { %v11786_v15 = vpop.f32.mrf.mxu1 }
 0x768   :  { %14391 = vst [vmem:[#allocation84_spill] sm:$0xff] %v11786_v15 }
 0x769   :  { %8495 = vmatmul.msk.f32.gmra.mxu2 %vm2118_vm2, %v2803_v54  ;;  %8561 = vmatmul.msk.f32.gmra.mxu3 %vm2118_vm2, %v11790_v23 }
 0x76a   :  { %8684 = vmatmul.msk.f32.gmra.mxu1 %vm2118_vm2, %v2929_v37  ;;  %v11822_v54 = vpop.f32.mrf.mxu2 }
 0x76b   :  { %14396 = vst [vmem:[#allocation89_spill] sm:$0xff] %v11822_v54 }
 0x76f   :  { %v11798_v18 = vpop.f32.mrf.mxu1 }
 0x770   :  { %14393 = vst [vmem:[#allocation86_spill] sm:$0xff] %v11798_v18 }
 0x771   :  { %8496 = vmatmul.msk.f32.gmra.mxu2 %vm2118_vm2, %v2804_v40  ;;  %8562 = vmatmul.msk.f32.gmra.mxu3 %vm2118_vm2, %v11802_v27  ;;  %v2806_v40 = vld [vmem:[#allocation2 + $0x38] sm:$0xff] }
 0x772   :  { %8817 = vmatmul.msk.f32.vlgmr.msrb.gmra.mxu1 %vm2118_vm2, %v11800_v7  ;;  %v11834_v15 = vpop.f32.mrf.mxu2 }
 0x773   :  { %14398 = vst [vmem:[#allocation91_spill] sm:$0xff] %v11834_v15 }
 0x774   :  { %v11826_v37 = vpop.f32.mrf.mxu3 }
 0x777   :  { %v11813_v16 = vpop.f32.mrf.mxu1 }
 0x778   :  { %14395 = vst [vmem:[#allocation88_spill] sm:$0xff] %v11813_v16  ;;  %v3877_v16 = vld [vmem:[#allocation2 + $0x90] sm:$0xff] }
 0x779   :  { %8497 = vmatmul.msk.f32.gmra.mxu2 %vm2118_vm2, %v2805_v21  ;;  %8563 = vmatmul.msk.f32.gmra.mxu3 %vm2118_vm2, %v11815_v59  ;;  %v11832_v21 = vld [vmem:[#allocation2 + $0xb0] sm:$0xff] }
 0x77a   :  { %8818 = vmatmul.msk.f32.gmra.mxu1 %vm2118_vm2, %v11820_v34 }
 0x77f   :  { %v11828_v18 = vpop.f32.mrf.mxu1 }
 0x780   :  { %14397 = vst [vmem:[#allocation90_spill] sm:$0xff] %v11828_v18 }
 0x781   :  { %8498 = vmatmul.msk.f32.gmra.mxu2 %vm2118_vm2, %v2806_v40  ;;  %8564 = vmatmul.msk.f32.gmra.mxu3 %vm2118_vm2, %v3877_v16  ;;  %v11845_v40 = vld [vmem:[#allocation2 + $0xb8] sm:$0xff]  ;;  %v11847_v16 = vpop.f32.mrf.mxu2 }
 0x782   :  { %8819 = vmatmul.msk.f32.gmra.mxu1 %vm2118_vm2, %v11832_v21  ;;  %14400 = vst [vmem:[#allocation93_spill] sm:$0xff] %v11847_v16 }
 0x784   :  { %v11838_v0 = vpop.f32.mrf.mxu3 }
 0x787   :  { %v11840_v9 = vpop.f32.mrf.mxu1 }
 0x788   :  { %14399 = vst [vmem:[#allocation92_spill] sm:$0xff] %v11840_v9 }
 0x789   :  { %8499 = vmatmul.msk.f32.gmra.mxu2 %vm2118_vm2, %v2807_v63  ;;  %8565 = vmatmul.msk.f32.gmra.mxu3 %vm2118_vm2, %v11820_v34  ;;  %v11859_v63 = vld [vmem:[#allocation2 + $0xc0] sm:$0xff]  ;;  %v11861_v9 = vpop.f32.mrf.mxu2 }
 0x78a   :  { %8820 = vmatmul.msk.f32.gmra.mxu1 %vm2118_vm2, %v11845_v40  ;;  %14403 = vst [vmem:[#allocation96_spill] sm:$0xff] %v11861_v9 }
 0x78c   :  { %v11851_v18 = vpop.f32.mrf.mxu3 }
 0x78d   :  { %14401 = vst [vmem:[#allocation94_spill] sm:$0xff] %v11851_v18 }
 0x78f   :  { %v11853_v61 = vpop.f32.mrf.mxu1 }
 0x790   :  { %14402 = vst [vmem:[#allocation95_spill] sm:$0xff] %v11853_v61 }
 0x791   :  { %8500 = vmatmul.msk.f32.gmra.mxu2 %vm2118_vm2, %v11742_v44  ;;  %8566 = vmatmul.msk.f32.gmra.mxu3 %vm2118_vm2, %v11832_v21  ;;  %v11873_v44 = vld [vmem:[#allocation2 + $0xc8] sm:$0xff]  ;;  %v11875_v18 = vpop.f32.mrf.mxu2 }
 0x792   :  { %8821 = vmatmul.msk.f32.gmra.mxu1 %vm2118_vm2, %v11859_v63  ;;  %14406 = vst [vmem:[#allocation99_spill] sm:$0xff] %v11875_v18 }
 0x794   :  { %v11865_v16 = vpop.f32.mrf.mxu3 }
 0x795   :  { %14404 = vst [vmem:[#allocation97_spill] sm:$0xff] %v11865_v16  ;;  %v11885_v16 = vld [vmem:[#allocation2 + $0xd0] sm:$0xff] }
 0x797   :  { %v11867_v33 = vpop.f32.mrf.mxu1 }
 0x798   :  { %14405 = vst [vmem:[#allocation98_spill] sm:$0xff] %v11867_v33 }
 0x799   :  { %8501 = vmatmul.msk.f32.gmra.mxu2 %vm2118_vm2, %v11754_v29  ;;  %8567 = vmatmul.msk.f32.gmra.mxu3 %vm2118_vm2, %v11845_v40  ;;  %v11887_v29 = vpop.f32.mrf.mxu2 }
 0x79a   :  { %8822 = vmatmul.msk.f32.gmra.mxu1 %vm2118_vm2, %v11873_v44  ;;  %14408 = vst [vmem:[#allocation101_spill] sm:$0xff] %v11887_v29 }
 0x79c   :  { %v11879_v61 = vpop.f32.mrf.mxu3 }
 0x79d   :  { %14407 = vst [vmem:[#allocation100_spill] sm:$0xff] %v11879_v61 }
 0x79f   :  { %v11891_v33 = vpop.f32.mrf.mxu1 }
 0x7a0   :  { %14409 = vst [vmem:[#allocation102_spill] sm:$0xff] %v11891_v33  ;;  %v11909_v33 = vld [vmem:[#allocation2 + $0xf0] sm:$0xff] }
 0x7a1   :  { %8502 = vmatmul.msk.f32.gmra.mxu2 %vm2118_vm2, %v11768_v24  ;;  %8568 = vmatmul.msk.f32.gmra.mxu3 %vm2118_vm2, %v11859_v63  ;;  %v11899_v24 = vld [vmem:[#allocation2 + $0xd8] sm:$0xff]  ;;  %v11901_v61 = vpop.f32.mrf.mxu2 }
 0x7a2   :  { %8823 = vmatmul.msk.f32.gmra.mxu1 %vm2118_vm2, %v11885_v16 }
 0x7a4   :  { %v11893_v18 = vpop.f32.mrf.mxu3 }
 0x7a5   :  { %14410 = vst [vmem:[#allocation103_spill] sm:$0xff] %v11893_v18 }
 0x7a7   :  { %v11907_v9 = vpop.f32.mrf.mxu1 }
 0x7a8   :  { %14412 = vst [vmem:[#allocation105_spill] sm:$0xff] %v11907_v9 }
 0x7a9   :  { %8503 = vmatmul.msk.f32.gmra.mxu2 %vm2118_vm2, %v11779_v39  ;;  %8569 = vmatmul.msk.f32.gmra.mxu3 %vm2118_vm2, %v11873_v44  ;;  %v11917_v39 = vpop.f32.mrf.mxu2 }
 0x7aa   :  { %8824 = vmatmul.msk.f32.gmra.mxu1 %vm2118_vm2, %v11899_v24 }
 0x7ac   :  { %v11905_v29 = vpop.f32.mrf.mxu3 }
 0x7ad   :  { %14411 = vst [vmem:[#allocation104_spill] sm:$0xff] %v11905_v29  ;;  %v11927_v29 = vld [vmem:[#allocation2 + $0xf8] sm:$0xff] }
 0x7af   :  { %v11921_v15 = vpop.f32.mrf.mxu1 }
 0x7b0   :  { %14414 = vst [vmem:[#allocation107_spill] sm:$0xff] %v11921_v15 }
 0x7b1   :  { %8504 = vmatmul.msk.f32.gmra.mxu2 %vm2118_vm2, %v11790_v23  ;;  %8570 = vmatmul.msk.f32.gmra.mxu3 %vm2118_vm2, %v11885_v16 }
 0x7b2   :  { %8825 = vmatmul.msk.f32.gmra.mxu1 %vm2118_vm2, %v11909_v33 }
 0x7b4   :  { %v11919_v18 = vpop.f32.mrf.mxu3  ;;  %v11931_v23 = vpop.f32.mrf.mxu2 }
 0x7b5   :  { %14413 = vst [vmem:[#allocation106_spill] sm:$0xff] %v11919_v18  ;;  %v3885_v18 = vld [vmem:[#allocation2 + $0xe0] sm:$0xff] }
 0x7b9   :  { %8505 = vmatmul.msk.f32.gmra.mxu2 %vm2118_vm2, %v11802_v27  ;;  %8571 = vmatmul.msk.f32.gmra.mxu3 %vm2118_vm2, %v11899_v24  ;;  %v11940_v27 = vld [vmem:[#allocation2 + $0x100] sm:$0xff] }
 0x7ba   :  { %8826 = vmatmul.msk.f32.gmra.mxu1 %vm2118_vm2, %v11927_v29 }
 0x7bc   :  { %v11933_v9 = vpop.f32.mrf.mxu3 }
 0x7bd   :  { %14415 = vst [vmem:[#allocation108_spill] sm:$0xff] %v11933_v9 }
 0x7bf   :  { %v11935_v14 = vpop.f32.mrf.mxu1 }
 0x7c0   :  { %14416 = vst [vmem:[#allocation109_spill] sm:$0xff] %v11935_v14 }
 0x7c1   :  { %8506 = vmatmul.msk.f32.gmra.mxu2 %vm2118_vm2, %v11815_v59  ;;  %8572 = vmatmul.msk.f32.gmra.mxu3 %vm2118_vm2, %v3885_v18  ;;  %v11954_v59 = vld [vmem:[#allocation2 + $0x108] sm:$0xff] }
 0x7c2   :  { %8827 = vmatmul.msk.f32.gmra.mxu1 %vm2118_vm2, %v11940_v27 }
 0x7c4   :  { %v11944_v15 = vpop.f32.mrf.mxu2  ;;  %v11946_v54 = vpop.f32.mrf.mxu3 }
 0x7c5   :  { %14417 = vst [vmem:[#allocation110_spill] sm:$0xff] %v11946_v54 }
 0x7c7   :  { %v11948_v17 = vpop.f32.mrf.mxu1 }
 0x7c8   :  { %14418 = vst [vmem:[#allocation111_spill] sm:$0xff] %v11948_v17 }
 0x7c9   :  { %8507 = vmatmul.msk.f32.gmra.mxu2 %vm2118_vm2, %v11800_v7  ;;  %8573 = vmatmul.msk.f32.gmra.mxu3 %vm2118_vm2, %v11927_v29  ;;  %v11968_v7 = vld [vmem:[#allocation2 + $0x110] sm:$0xff] }
 0x7ca   :  { %8828 = vmatmul.msk.f32.gmra.mxu1 %vm2118_vm2, %v11954_v59 }
 0x7cc   :  { %v11958_v18 = vpop.f32.mrf.mxu2  ;;  %v11960_v9 = vpop.f32.mrf.mxu3 }
 0x7cf   :  { %v11962_v14 = vpop.f32.mrf.mxu1 }
 0x7d0   :  { %14419 = vst [vmem:[#allocation112_spill] sm:$0xff] %v11962_v14 }
 0x7d1   :  { %8508 = vmatmul.msk.f32.gmra.mxu2 %vm2118_vm2, %v11820_v34  ;;  %8574 = vmatmul.msk.f32.gmra.mxu3 %vm2118_vm2, %v11940_v27  ;;  %v11982_v34 = vld [vmem:[#allocation2 + $0x118] sm:$0xff] }
 0x7d2   :  { %8829 = vmatmul.msk.f32.gmra.mxu1 %vm2118_vm2, %v11968_v7 }
 0x7d4   :  { %v11972_v54 = vpop.f32.mrf.mxu2  ;;  %v11974_v17 = vpop.f32.mrf.mxu3 }
 0x7d7   :  { %v11976_v5 = vpop.f32.mrf.mxu1 }
 0x7d8   :  { %14420 = vst [vmem:[#allocation113_spill] sm:$0xff] %v11976_v5 }
 0x7d9   :  { %8509 = vmatmul.msk.f32.gmra.mxu2 %vm2118_vm2, %v11832_v21  ;;  %8575 = vmatmul.msk.f32.gmra.mxu3 %vm2118_vm2, %v11954_v59  ;;  %v11996_v21 = vld [vmem:[#allocation2 + $0x120] sm:$0xff] }
 0x7da   :  { %8830 = vmatmul.msk.f32.gmra.mxu1 %vm2118_vm2, %v11982_v34 }
 0x7dc   :  { %v11986_v14 = vpop.f32.mrf.mxu2  ;;  %v11988_v43 = vpop.f32.mrf.mxu3 }
 0x7df   :  { %v11990_v60 = vpop.f32.mrf.mxu1 }
 0x7e0   :  { %14421 = vst [vmem:[#allocation114_spill] sm:$0xff] %v11990_v60 }
 0x7e1   :  { %8510 = vmatmul.msk.f32.gmra.mxu2 %vm2118_vm2, %v11845_v40  ;;  %8576 = vmatmul.msk.f32.gmra.mxu3 %vm2118_vm2, %v11968_v7  ;;  %v12010_v40 = vld [vmem:[#allocation2 + $0x128] sm:$0xff] }
 0x7e2   :  { %8831 = vmatmul.msk.f32.gmra.mxu1 %vm2118_vm2, %v11996_v21 }
 0x7e4   :  { %v12000_v5 = vpop.f32.mrf.mxu2  ;;  %v12002_v48 = vpop.f32.mrf.mxu3 }
 0x7e7   :  { %v12004_v36 = vpop.f32.mrf.mxu1 }
 0x7e8   :  { %14422 = vst [vmem:[#allocation115_spill] sm:$0xff] %v12004_v36 }
 0x7e9   :  { %8511 = vmatmul.msk.f32.gmra.mxu2 %vm2118_vm2, %v11859_v63  ;;  %8577 = vmatmul.msk.f32.gmra.mxu3 %vm2118_vm2, %v11982_v34 }
 0x7ea   :  { %8832 = vmatmul.msk.f32.gmra.mxu1 %vm2118_vm2, %v12010_v40 }
 0x7ec   :  { %v12014_v60 = vpop.f32.mrf.mxu2  ;;  %v12016_v49 = vpop.f32.mrf.mxu3 }
 0x7ed   :  { %14423 = vst [vmem:[#allocation116_spill] sm:$0xff] %v12014_v60 }
 0x7ee   :  { %14424 = vst [vmem:[#allocation117_spill] sm:$0xff] %v12016_v49  ;;  %v4779_v49 = vld [vmem:[#allocation2 + $0x1d8] sm:$0xff] }
 0x7ef   :  { %v12018_v42 = vpop.f32.mrf.mxu1 }
 0x7f1   :  { %8512 = vmatmul.msk.f32.gmra.mxu2 %vm2118_vm2, %v11873_v44  ;;  %8578 = vmatmul.msk.f32.gmra.mxu3 %vm2118_vm2, %v11996_v21 }
 0x7f2   :  { %8833 = vmatmul.msk.f32.gmra.mxu1 %vm2118_vm2, %v12020_v30 }
 0x7f4   :  { %v12028_v63 = vpop.f32.mrf.mxu2  ;;  %v12030_v36 = vpop.f32.mrf.mxu3 }
 0x7f5   :  { %14425 = vst [vmem:[#allocation118_spill] sm:$0xff] %v12028_v63  ;;  %v12903_v63 = vld [vmem:[#allocation2 + $0x1b0] sm:$0xff] }
 0x7f6   :  { %14426 = vst [vmem:[#allocation119_spill] sm:$0xff] %v12030_v36  ;;  %v12895_v36 = vld [vmem:[#allocation2 + $0x1a8] sm:$0xff] }
 0x7f7   :  { %v12032_v53 = vpop.f32.mrf.mxu1  ;;  %14604 = vst [vmem:[#allocation297_spill] sm:$0xff] %v12895_v36 }
 0x7f8   :  { %14606 = vst [vmem:[#allocation299_spill] sm:$0xff] %v12903_v63 }
 0x7f9   :  { %8513 = vmatmul.msk.f32.gmra.mxu2 %vm2118_vm2, %v11885_v16  ;;  %8579 = vmatmul.msk.f32.gmra.mxu3 %vm2118_vm2, %v12010_v40  ;;  %v12051_v16 = vld [vmem:[#allocation2 + $0x150] sm:$0xff] }
 0x7fa   :  { %8834 = vmatmul.msk.f32.gmra.mxu1 %vm2118_vm2, %v12038_v1 }
 0x7fc   :  { %v12042_v44 = vpop.f32.mrf.mxu2  ;;  %v12044_v32 = vpop.f32.mrf.mxu3 }
 0x7fd   :  { %14427 = vst [vmem:[#allocation120_spill] sm:$0xff] %v12042_v44  ;;  %v12849_v44 = vld [vmem:[#allocation2 + $0x170] sm:$0xff] }
 0x7fe   :  { %14428 = vst [vmem:[#allocation121_spill] sm:$0xff] %v12044_v32  ;;  %v12841_v32 = vld [vmem:[#allocation2 + $0x168] sm:$0xff] }
 0x7ff   :  { %v12046_v57 = vpop.f32.mrf.mxu1 }
 0x801   :  { %8514 = vmatmul.msk.f32.gmra.mxu2 %vm2118_vm2, %v11899_v24  ;;  %8580 = vmatmul.msk.f32.gmra.mxu3 %vm2118_vm2, %v3893_v2  ;;  %v12065_v24 = vld [vmem:[#allocation2 + $0x158] sm:$0xff] }
 0x802   :  { %8835 = vmatmul.msk.f32.gmra.mxu1 %vm2118_vm2, %v12051_v16 }
 0x804   :  { %v12055_v50 = vpop.f32.mrf.mxu2  ;;  %v12057_v55 = vpop.f32.mrf.mxu3 }
 0x805   :  { %14429 = vst [vmem:[#allocation122_spill] sm:$0xff] %v12055_v50  ;;  %v2940_v50 = vld [vmem:[#allocation2 + $0x40] sm:$0xff] }
 0x806   :  { %14430 = vst [vmem:[#allocation123_spill] sm:$0xff] %v12057_v55 }
 0x807   :  { %v12059_v41 = vpop.f32.mrf.mxu1 }
 0x809   :  { %8515 = vmatmul.msk.f32.gmra.mxu2 %vm2118_vm2, %v11909_v33  ;;  %8581 = vmatmul.msk.f32.gmra.mxu3 %vm2118_vm2, %v12038_v1  ;;  %v12079_v33 = vld [vmem:[#allocation2 + $0x160] sm:$0xff] }
 0x80a   :  { %8836 = vmatmul.msk.f32.gmra.mxu1 %vm2118_vm2, %v12065_v24 }
 0x80c   :  { %v12069_v2 = vpop.f32.mrf.mxu2  ;;  %v12071_v25 = vpop.f32.mrf.mxu3 }
 0x80d   :  { %14431 = vst [vmem:[#allocation124_spill] sm:$0xff] %v12069_v2 }
 0x80e   :  { %14432 = vst [vmem:[#allocation125_spill] sm:$0xff] %v12071_v25 }
 0x80f   :  { %v12073_v3 = vpop.f32.mrf.mxu1 }
 0x810   :  { %14433 = vst [vmem:[#allocation126_spill] sm:$0xff] %v12073_v3  ;;  %v12927_v3 = vld [vmem:[#allocation2 + $0x1c8] sm:$0xff] }
 0x811   :  { %8516 = vmatmul.msk.f32.gmra.mxu2 %vm2118_vm2, %v11927_v29  ;;  %8582 = vmatmul.msk.f32.gmra.mxu3 %vm2118_vm2, %v12051_v16  ;;  %v12093_v29 = vld [vmem:[#allocation2 + $0x168] sm:$0xff]  ;;  %14612 = vst [vmem:[#allocation305_spill] sm:$0xff] %v12927_v3 }
 0x812   :  { %8837 = vmatmul.msk.f32.gmra.mxu1 %vm2118_vm2, %v12079_v33 }
 0x814   :  { %v12083_v56 = vpop.f32.mrf.mxu2  ;;  %v12085_v19 = vpop.f32.mrf.mxu3 }
 0x815   :  { %14434 = vst [vmem:[#allocation127_spill] sm:$0xff] %v12083_v56 }
 0x816   :  { %14435 = vst [vmem:[#allocation128_spill] sm:$0xff] %v12085_v19 }
 0x817   :  { %v12087_v31 = vpop.f32.mrf.mxu1 }
 0x818   :  { %14436 = vst [vmem:[#allocation129_spill] sm:$0xff] %v12087_v31 }
 0x819   :  { %8517 = vmatmul.msk.f32.gmra.mxu2 %vm2118_vm2, %v11940_v27  ;;  %8583 = vmatmul.msk.f32.gmra.mxu3 %vm2118_vm2, %v12065_v24  ;;  %v12107_v27 = vld [vmem:[#allocation2 + $0x170] sm:$0xff] }
 0x81a   :  { %8838 = vmatmul.msk.f32.gmra.mxu1 %vm2118_vm2, %v12093_v29 }
 0x81c   :  { %v12097_v6 = vpop.f32.mrf.mxu2  ;;  %v12099_v25 = vpop.f32.mrf.mxu3 }
 0x81d   :  { %14437 = vst [vmem:[#allocation130_spill] sm:$0xff] %v12097_v6 }
 0x81e   :  { %14438 = vst [vmem:[#allocation131_spill] sm:$0xff] %v12099_v25  ;;  %v8685_v25 = vld [vmem:[%s14285_s3 + $0x50] sm:$0xff] }
 0x81f   :  { %v12101_v56 = vpop.f32.mrf.mxu1  ;;  %5014 = vmatpush.msra.mxu2 %v8685_v25 }
 0x820   :  { %14439 = vst [vmem:[#allocation132_spill] sm:$0xff] %v12101_v56 }
 0x821   :  { %8518 = vmatmul.msk.f32.gmra.mxu2 %vm2118_vm2, %v11954_v59  ;;  %8584 = vmatmul.msk.f32.gmra.mxu3 %vm2118_vm2, %v12079_v33  ;;  %v12121_v59 = vld [vmem:[#allocation2 + $0x178] sm:$0xff] }
 0x822   :  { %8839 = vmatmul.msk.f32.gmra.mxu1 %vm2118_vm2, %v12107_v27 }
 0x824   :  { %v12111_v19 = vpop.f32.mrf.mxu2  ;;  %v12113_v2 = vpop.f32.mrf.mxu3 }
 0x825   :  { %14440 = vst [vmem:[#allocation133_spill] sm:$0xff] %v12111_v19 }
 0x826   :  { %14441 = vst [vmem:[#allocation134_spill] sm:$0xff] %v12113_v2  ;;  %v8423_v2 = vld [vmem:[%s14285_s3 + $0x20] sm:$0xff] }
 0x827   :  { %v12115_v6 = vpop.f32.mrf.mxu1  ;;  %5415 = vmatpush.msra.mxu3 %v8423_v2 }
 0x828   :  { %14442 = vst [vmem:[#allocation135_spill] sm:$0xff] %v12115_v6  ;;  %v12137_v6 = vld [vmem:[#allocation2 + $0x190] sm:$0xff] }
 0x829   :  { %8519 = vmatmul.msk.f32.gmra.mxu2 %vm2118_vm2, %v11968_v7  ;;  %8585 = vmatmul.msk.f32.gmra.mxu3 %vm2118_vm2, %v12093_v29 }
 0x82a   :  { %8840 = vmatmul.msk.f32.gmra.mxu1 %vm2118_vm2, %v12121_v59 }
 0x82c   :  { %v12131_v19 = vpop.f32.mrf.mxu2  ;;  %v12133_v7 = vpop.f32.mrf.mxu3 }
 0x82d   :  { %14443 = vst [vmem:[#allocation136_spill] sm:$0xff] %v12131_v19 }
 0x82e   :  { %14444 = vst [vmem:[#allocation137_spill] sm:$0xff] %v12133_v7  ;;  %v12155_v7 = vld [vmem:[#allocation2 + $0x198] sm:$0xff] }
 0x82f   :  { %v12135_v12 = vpop.f32.mrf.mxu1 }
 0x830   :  { %14445 = vst [vmem:[#allocation138_spill] sm:$0xff] %v12135_v12 }
 0x831   :  { %8520 = vmatmul.msk.f32.gmra.mxu2 %vm2118_vm2, %v11982_v34  ;;  %8586 = vmatmul.msk.f32.gmra.mxu3 %vm2118_vm2, %v12107_v27 }
 0x832   :  { %8841 = vmatmul.msk.f32.gmra.mxu1 %vm2118_vm2, %v12137_v6 }
 0x834   :  { %v12145_v25 = vpop.f32.mrf.mxu2  ;;  %v12147_v2 = vpop.f32.mrf.mxu3 }
 0x835   :  { %14446 = vst [vmem:[#allocation139_spill] sm:$0xff] %v12145_v25 }
 0x836   :  { %14447 = vst [vmem:[#allocation140_spill] sm:$0xff] %v12147_v2  ;;  %v3901_v2 = vld [vmem:[#allocation2 + $0x180] sm:$0xff] }
 0x837   :  { %v12149_v19 = vpop.f32.mrf.mxu1 }
 0x838   :  { %14448 = vst [vmem:[#allocation141_spill] sm:$0xff] %v12149_v19 }
 0x839   :  { %8521 = vmatmul.msk.f32.gmra.mxu2 %vm2118_vm2, %v11996_v21  ;;  %8587 = vmatmul.msk.f32.gmra.mxu3 %vm2118_vm2, %v12121_v59  ;;  %v12168_v21 = vld [vmem:[#allocation2 + $0x1a0] sm:$0xff] }
 0x83a   :  { %8842 = vmatmul.msk.f32.gmra.mxu1 %vm2118_vm2, %v12155_v7 }
 0x83c   :  { %v12159_v34 = vpop.f32.mrf.mxu2  ;;  %v12161_v12 = vpop.f32.mrf.mxu3 }
 0x83d   :  { %14449 = vst [vmem:[#allocation142_spill] sm:$0xff] %v12159_v34 }
 0x83e   :  { %14450 = vst [vmem:[#allocation143_spill] sm:$0xff] %v12161_v12 }
 0x83f   :  { %v12163_v25 = vpop.f32.mrf.mxu1 }
 0x840   :  { %14451 = vst [vmem:[#allocation144_spill] sm:$0xff] %v12163_v25 }
 0x841   :  { %8522 = vmatmul.msk.f32.gmra.mxu2 %vm2118_vm2, %v12010_v40  ;;  %8588 = vmatmul.msk.f32.gmra.mxu3 %vm2118_vm2, %v3901_v2  ;;  %v12182_v40 = vld [vmem:[#allocation2 + $0x1a8] sm:$0xff] }
 0x842   :  { %8843 = vmatmul.msk.f32.gmra.mxu1 %vm2118_vm2, %v12168_v21 }
 0x844   :  { %v12172_v19 = vpop.f32.mrf.mxu2  ;;  %v12174_v26 = vpop.f32.mrf.mxu3 }
 0x845   :  { %14452 = vst [vmem:[#allocation145_spill] sm:$0xff] %v12172_v19 }
 0x846   :  { %14453 = vst [vmem:[#allocation146_spill] sm:$0xff] %v12174_v26 }
 0x847   :  { %v12176_v34 = vpop.f32.mrf.mxu1 }
 0x848   :  { %14454 = vst [vmem:[#allocation147_spill] sm:$0xff] %v12176_v34 }
 0x849   :  { %8523 = vmatmul.msk.f32.gmra.mxu2 %vm2118_vm2, %v12020_v30  ;;  %8589 = vmatmul.msk.f32.gmra.mxu3 %vm2118_vm2, %v12155_v7  ;;  %v12196_v30 = vld [vmem:[#allocation2 + $0x1b0] sm:$0xff] }
 0x84a   :  { %8844 = vmatmul.msk.f32.gmra.mxu1 %vm2118_vm2, %v12182_v40 }
 0x84c   :  { %v12186_v2 = vpop.f32.mrf.mxu2  ;;  %v12188_v12 = vpop.f32.mrf.mxu3 }
 0x84d   :  { %14455 = vst [vmem:[#allocation148_spill] sm:$0xff] %v12186_v2 }
 0x84e   :  { %14456 = vst [vmem:[#allocation149_spill] sm:$0xff] %v12188_v12 }
 0x84f   :  { %v12190_v19 = vpop.f32.mrf.mxu1 }
 0x850   :  { %14457 = vst [vmem:[#allocation150_spill] sm:$0xff] %v12190_v19 }
 0x851   :  { %8524 = vmatmul.msk.f32.gmra.mxu2 %vm2118_vm2, %v12038_v1  ;;  %8590 = vmatmul.msk.f32.gmra.mxu3 %vm2118_vm2, %v12168_v21  ;;  %v12210_v1 = vld [vmem:[#allocation2 + $0x1b8] sm:$0xff] }
 0x852   :  { %8845 = vmatmul.msk.f32.gmra.mxu1 %vm2118_vm2, %v12196_v30 }
 0x854   :  { %v12200_v26 = vpop.f32.mrf.mxu2  ;;  %v12202_v34 = vpop.f32.mrf.mxu3 }
 0x855   :  { %14458 = vst [vmem:[#allocation151_spill] sm:$0xff] %v12200_v26 }
 0x856   :  { %14459 = vst [vmem:[#allocation152_spill] sm:$0xff] %v12202_v34 }
 0x857   :  { %v12204_v2 = vpop.f32.mrf.mxu1 }
 0x858   :  { %14460 = vst [vmem:[#allocation153_spill] sm:$0xff] %v12204_v2 }
 0x859   :  { %8525 = vmatmul.msk.f32.gmra.mxu2 %vm2118_vm2, %v12051_v16  ;;  %8591 = vmatmul.msk.f32.gmra.mxu3 %vm2118_vm2, %v12182_v40  ;;  %v12224_v16 = vld [vmem:[#allocation2 + $0x1c0] sm:$0xff] }
 0x85a   :  { %8846 = vmatmul.msk.f32.gmra.mxu1 %vm2118_vm2, %v12210_v1 }
 0x85c   :  { %v12214_v12 = vpop.f32.mrf.mxu2  ;;  %v12216_v19 = vpop.f32.mrf.mxu3 }
 0x85d   :  { %14461 = vst [vmem:[#allocation154_spill] sm:$0xff] %v12214_v12 }
 0x85e   :  { %14462 = vst [vmem:[#allocation155_spill] sm:$0xff] %v12216_v19 }
 0x85f   :  { %v12218_v26 = vpop.f32.mrf.mxu1 }
 0x860   :  { %14463 = vst [vmem:[#allocation156_spill] sm:$0xff] %v12218_v26 }
 0x861   :  { %8526 = vmatmul.msk.f32.gmra.mxu2 %vm2118_vm2, %v12065_v24  ;;  %8592 = vmatmul.msk.f32.gmra.mxu3 %vm2118_vm2, %v12196_v30  ;;  %v12238_v24 = vld [vmem:[#allocation2 + $0x1c8] sm:$0xff] }
 0x862   :  { %8847 = vmatmul.msk.f32.gmra.mxu1 %vm2118_vm2, %v12224_v16 }
 0x864   :  { %v12228_v34 = vpop.f32.mrf.mxu2  ;;  %v12230_v2 = vpop.f32.mrf.mxu3 }
 0x865   :  { %14464 = vst [vmem:[#allocation157_spill] sm:$0xff] %v12228_v34 }
 0x866   :  { %14465 = vst [vmem:[#allocation158_spill] sm:$0xff] %v12230_v2  ;;  %v12248_v2 = vld [vmem:[#allocation2 + $0x1e0] sm:$0xff] }
 0x867   :  { %v12232_v12 = vpop.f32.mrf.mxu1 }
 0x868   :  { %14466 = vst [vmem:[#allocation159_spill] sm:$0xff] %v12232_v12 }
 0x869   :  { %8527 = vmatmul.msk.f32.gmra.mxu2 %vm2118_vm2, %v12079_v33  ;;  %8593 = vmatmul.msk.f32.gmra.mxu3 %vm2118_vm2, %v12210_v1 }
 0x86a   :  { %8848 = vmatmul.msk.f32.gmra.mxu1 %vm2118_vm2, %v12238_v24 }
 0x86c   :  { %v12242_v19 = vpop.f32.mrf.mxu2  ;;  %v12244_v26 = vpop.f32.mrf.mxu3 }
 0x86d   :  { %14467 = vst [vmem:[#allocation160_spill] sm:$0xff] %v12242_v19 }
 0x86e   :  { %14468 = vst [vmem:[#allocation161_spill] sm:$0xff] %v12244_v26  ;;  %v12266_v26 = vld [vmem:[#allocation2 + $0x1e8] sm:$0xff] }
 0x86f   :  { %v12246_v34 = vpop.f32.mrf.mxu1 }
 0x870   :  { %14469 = vst [vmem:[#allocation162_spill] sm:$0xff] %v12246_v34 }
 0x871   :  { %8528 = vmatmul.msk.f32.gmra.mxu2 %vm2118_vm2, %v12093_v29  ;;  %8594 = vmatmul.msk.f32.gmra.mxu3 %vm2118_vm2, %v12224_v16 }
 0x872   :  { %8849 = vmatmul.msk.f32.gmra.mxu1 %vm2118_vm2, %v12248_v2 }
 0x874   :  { %v12256_v33 = vpop.f32.mrf.mxu2  ;;  %v12258_v12 = vpop.f32.mrf.mxu3 }
 0x875   :  { %14470 = vst [vmem:[#allocation163_spill] sm:$0xff] %v12256_v33 }
 0x876   :  { %14471 = vst [vmem:[#allocation164_spill] sm:$0xff] %v12258_v12  ;;  %v3909_v12 = vld [vmem:[#allocation2 + $0x1d0] sm:$0xff] }
 0x877   :  { %v12260_v19 = vpop.f32.mrf.mxu1 }
 0x878   :  { %14472 = vst [vmem:[#allocation165_spill] sm:$0xff] %v12260_v19 }
 0x879   :  { %8529 = vmatmul.msk.f32.gmra.mxu2 %vm2118_vm2, %v12107_v27  ;;  %8595 = vmatmul.msk.f32.gmra.mxu3 %vm2118_vm2, %v12238_v24  ;;  %v12279_v27 = vld [vmem:[#allocation2 + $0x1f0] sm:$0xff] }
 0x87a   :  { %8850 = vmatmul.msk.f32.gmra.mxu1 %vm2118_vm2, %v12266_v26 }
 0x87c   :  { %v12270_v29 = vpop.f32.mrf.mxu2  ;;  %v12272_v34 = vpop.f32.mrf.mxu3 }
 0x87d   :  { %14473 = vst [vmem:[#allocation166_spill] sm:$0xff] %v12270_v29 }
 0x87e   :  { %14474 = vst [vmem:[#allocation167_spill] sm:$0xff] %v12272_v34 }
 0x87f   :  { %v12274_v33 = vpop.f32.mrf.mxu1 }
 0x880   :  { %14475 = vst [vmem:[#allocation168_spill] sm:$0xff] %v12274_v33 }
 0x881   :  { %8530 = vmatmul.msk.f32.gmra.mxu2 %vm2118_vm2, %v12121_v59  ;;  %8596 = vmatmul.msk.f32.gmra.mxu3 %vm2118_vm2, %v3909_v12  ;;  %v12293_v59 = vld [vmem:[#allocation2 + $0x1f8] sm:$0xff] }
 0x882   :  { %8851 = vmatmul.msk.f32.gmra.mxu1 %vm2118_vm2, %v12279_v27 }
 0x884   :  { %v12283_v19 = vpop.f32.mrf.mxu2  ;;  %v12285_v25 = vpop.f32.mrf.mxu3 }
 0x885   :  { %14476 = vst [vmem:[#allocation169_spill] sm:$0xff] %v12283_v19 }
 0x886   :  { %14477 = vst [vmem:[#allocation170_spill] sm:$0xff] %v12285_v25 }
 0x887   :  { %v12287_v29 = vpop.f32.mrf.mxu1 }
 0x888   :  { %14478 = vst [vmem:[#allocation171_spill] sm:$0xff] %v12287_v29 }
 0x889   :  { %8531 = vmatmul.msk.f32.gmra.mxu2 %vm2118_vm2, %v12137_v6  ;;  %8597 = vmatmul.msk.f32.gmra.mxu3 %vm2118_vm2, %v12266_v26  ;;  %v12307_v6 = vld [vmem:[#allocation2 + $0x200] sm:$0xff] }
 0x88a   :  { %8852 = vmatmul.msk.f32.gmra.mxu1 %vm2118_vm2, %v12293_v59 }
 0x88c   :  { %v12297_v12 = vpop.f32.mrf.mxu2  ;;  %v12299_v34 = vpop.f32.mrf.mxu3 }
 0x88d   :  { %14479 = vst [vmem:[#allocation172_spill] sm:$0xff] %v12297_v12 }
 0x88e   :  { %14480 = vst [vmem:[#allocation173_spill] sm:$0xff] %v12299_v34 }
 0x88f   :  { %v12301_v19 = vpop.f32.mrf.mxu1 }
 0x890   :  { %14481 = vst [vmem:[#allocation174_spill] sm:$0xff] %v12301_v19 }
 0x891   :  { %8532 = vmatmul.msk.f32.gmra.mxu2 %vm2118_vm2, %v12155_v7  ;;  %8598 = vmatmul.msk.f32.gmra.mxu3 %vm2118_vm2, %v12279_v27  ;;  %v12321_v7 = vld [vmem:[#allocation2 + $0x208] sm:$0xff] }
 0x892   :  { %8853 = vmatmul.msk.f32.gmra.mxu1 %vm2118_vm2, %v12307_v6 }
 0x894   :  { %v12311_v25 = vpop.f32.mrf.mxu2  ;;  %v12313_v29 = vpop.f32.mrf.mxu3 }
 0x895   :  { %14482 = vst [vmem:[#allocation175_spill] sm:$0xff] %v12311_v25 }
 0x896   :  { %14483 = vst [vmem:[#allocation176_spill] sm:$0xff] %v12313_v29 }
 0x897   :  { %v12315_v12 = vpop.f32.mrf.mxu1 }
 0x898   :  { %14484 = vst [vmem:[#allocation177_spill] sm:$0xff] %v12315_v12 }
 0x899   :  { %8533 = vmatmul.msk.f32.gmra.mxu2 %vm2118_vm2, %v12168_v21  ;;  %8599 = vmatmul.msk.f32.gmra.mxu3 %vm2118_vm2, %v12293_v59  ;;  %v12335_v21 = vld [vmem:[#allocation2 + $0x210] sm:$0xff] }
 0x89a   :  { %8854 = vmatmul.msk.f32.gmra.mxu1 %vm2118_vm2, %v12321_v7 }
 0x89c   :  { %v12325_v34 = vpop.f32.mrf.mxu2  ;;  %v12327_v19 = vpop.f32.mrf.mxu3 }
 0x89d   :  { %14485 = vst [vmem:[#allocation178_spill] sm:$0xff] %v12325_v34 }
 0x89e   :  { %14486 = vst [vmem:[#allocation179_spill] sm:$0xff] %v12327_v19 }
 0x89f   :  { %v12329_v25 = vpop.f32.mrf.mxu1 }
 0x8a0   :  { %14487 = vst [vmem:[#allocation180_spill] sm:$0xff] %v12329_v25 }
 0x8a1   :  { %8534 = vmatmul.msk.f32.gmra.mxu2 %vm2118_vm2, %v12182_v40  ;;  %8600 = vmatmul.msk.f32.gmra.mxu3 %vm2118_vm2, %v12307_v6  ;;  %v12349_v40 = vld [vmem:[#allocation2 + $0x218] sm:$0xff] }
 0x8a2   :  { %8855 = vmatmul.msk.f32.gmra.mxu1 %vm2118_vm2, %v12335_v21 }
 0x8a4   :  { %v12339_v29 = vpop.f32.mrf.mxu2  ;;  %v12341_v12 = vpop.f32.mrf.mxu3 }
 0x8a5   :  { %14488 = vst [vmem:[#allocation181_spill] sm:$0xff] %v12339_v29 }
 0x8a6   :  { %14489 = vst [vmem:[#allocation182_spill] sm:$0xff] %v12341_v12  ;;  %v12359_v12 = vld [vmem:[#allocation2 + $0x230] sm:$0xff] }
 0x8a7   :  { %v12343_v34 = vpop.f32.mrf.mxu1 }
 0x8a8   :  { %14490 = vst [vmem:[#allocation183_spill] sm:$0xff] %v12343_v34 }
 0x8a9   :  { %8535 = vmatmul.msk.f32.gmra.mxu2 %vm2118_vm2, %v12196_v30  ;;  %8601 = vmatmul.msk.f32.gmra.mxu3 %vm2118_vm2, %v12321_v7 }
 0x8aa   :  { %8856 = vmatmul.msk.f32.gmra.mxu1 %vm2118_vm2, %v12349_v40 }
 0x8ac   :  { %v12353_v19 = vpop.f32.mrf.mxu2  ;;  %v12355_v25 = vpop.f32.mrf.mxu3 }
 0x8ad   :  { %14491 = vst [vmem:[#allocation184_spill] sm:$0xff] %v12353_v19 }
 0x8ae   :  { %14492 = vst [vmem:[#allocation185_spill] sm:$0xff] %v12355_v25  ;;  %v12377_v25 = vld [vmem:[#allocation2 + $0x238] sm:$0xff] }
 0x8af   :  { %v12357_v29 = vpop.f32.mrf.mxu1 }
 0x8b0   :  { %14493 = vst [vmem:[#allocation186_spill] sm:$0xff] %v12357_v29 }
 0x8b1   :  { %8536 = vmatmul.msk.f32.gmra.mxu2 %vm2118_vm2, %v12210_v1  ;;  %8602 = vmatmul.msk.f32.gmra.mxu3 %vm2118_vm2, %v12335_v21 }
 0x8b2   :  { %8857 = vmatmul.msk.f32.gmra.mxu1 %vm2118_vm2, %v12359_v12 }
 0x8b4   :  { %v12367_v30 = vpop.f32.mrf.mxu2  ;;  %v12369_v34 = vpop.f32.mrf.mxu3 }
 0x8b5   :  { %14494 = vst [vmem:[#allocation187_spill] sm:$0xff] %v12367_v30 }
 0x8b6   :  { %14495 = vst [vmem:[#allocation188_spill] sm:$0xff] %v12369_v34  ;;  %v3917_v34 = vld [vmem:[#allocation2 + $0x220] sm:$0xff] }
 0x8b7   :  { %v12371_v19 = vpop.f32.mrf.mxu1 }
 0x8b8   :  { %14496 = vst [vmem:[#allocation189_spill] sm:$0xff] %v12371_v19 }
 0x8b9   :  { %8537 = vmatmul.msk.f32.gmra.mxu2 %vm2118_vm2, %v12224_v16  ;;  %8603 = vmatmul.msk.f32.gmra.mxu3 %vm2118_vm2, %v12349_v40  ;;  %v12390_v16 = vld [vmem:[#allocation2 + $0x240] sm:$0xff] }
 0x8ba   :  { %8858 = vmatmul.msk.f32.gmra.mxu1 %vm2118_vm2, %v12377_v25 }
 0x8bc   :  { %v12381_v1 = vpop.f32.mrf.mxu2  ;;  %v12383_v29 = vpop.f32.mrf.mxu3 }
 0x8bd   :  { %14497 = vst [vmem:[#allocation190_spill] sm:$0xff] %v12381_v1 }
 0x8be   :  { %14498 = vst [vmem:[#allocation191_spill] sm:$0xff] %v12383_v29 }
 0x8bf   :  { %v12385_v30 = vpop.f32.mrf.mxu1 }
 0x8c0   :  { %14499 = vst [vmem:[#allocation192_spill] sm:$0xff] %v12385_v30 }
 0x8c1   :  { %8538 = vmatmul.msk.f32.gmra.mxu2 %vm2118_vm2, %v12238_v24  ;;  %8604 = vmatmul.msk.f32.gmra.mxu3 %vm2118_vm2, %v3917_v34  ;;  %v12404_v24 = vld [vmem:[#allocation2 + $0x248] sm:$0xff] }
 0x8c2   :  { %8859 = vmatmul.msk.f32.gmra.mxu1 %vm2118_vm2, %v12390_v16 }
 0x8c4   :  { %v12394_v19 = vpop.f32.mrf.mxu2  ;;  %v12396_v33 = vpop.f32.mrf.mxu3 }
 0x8c5   :  { %14500 = vst [vmem:[#allocation193_spill] sm:$0xff] %v12394_v19 }
 0x8c6   :  { %14501 = vst [vmem:[#allocation194_spill] sm:$0xff] %v12396_v33 }
 0x8c7   :  { %v12398_v1 = vpop.f32.mrf.mxu1 }
 0x8c8   :  { %14502 = vst [vmem:[#allocation195_spill] sm:$0xff] %v12398_v1 }
 0x8c9   :  { %8539 = vmatmul.msk.f32.gmra.mxu2 %vm2118_vm2, %v12248_v2  ;;  %8605 = vmatmul.msk.f32.gmra.mxu3 %vm2118_vm2, %v12377_v25  ;;  %v12418_v2 = vld [vmem:[#allocation2 + $0x250] sm:$0xff] }
 0x8ca   :  { %8860 = vmatmul.msk.f32.gmra.mxu1 %vm2118_vm2, %v12404_v24 }
 0x8cc   :  { %v12408_v34 = vpop.f32.mrf.mxu2  ;;  %v12410_v29 = vpop.f32.mrf.mxu3 }
 0x8cd   :  { %14503 = vst [vmem:[#allocation196_spill] sm:$0xff] %v12408_v34 }
 0x8ce   :  { %14504 = vst [vmem:[#allocation197_spill] sm:$0xff] %v12410_v29 }
 0x8cf   :  { %v12412_v19 = vpop.f32.mrf.mxu1 }
 0x8d0   :  { %14505 = vst [vmem:[#allocation198_spill] sm:$0xff] %v12412_v19 }
 0x8d1   :  { %8540 = vmatmul.msk.f32.gmra.mxu2 %vm2118_vm2, %v12266_v26  ;;  %8606 = vmatmul.msk.f32.gmra.mxu3 %vm2118_vm2, %v12390_v16  ;;  %v12432_v26 = vld [vmem:[#allocation2 + $0x258] sm:$0xff] }
 0x8d2   :  { %8861 = vmatmul.msk.f32.gmra.mxu1 %vm2118_vm2, %v12418_v2 }
 0x8d4   :  { %v12422_v33 = vpop.f32.mrf.mxu2  ;;  %v12424_v1 = vpop.f32.mrf.mxu3 }
 0x8d5   :  { %14506 = vst [vmem:[#allocation199_spill] sm:$0xff] %v12422_v33 }
 0x8d6   :  { %14507 = vst [vmem:[#allocation200_spill] sm:$0xff] %v12424_v1 }
 0x8d7   :  { %v12426_v34 = vpop.f32.mrf.mxu1 }
 0x8d8   :  { %14508 = vst [vmem:[#allocation201_spill] sm:$0xff] %v12426_v34 }
 0x8d9   :  { %8541 = vmatmul.msk.f32.gmra.mxu2 %vm2118_vm2, %v12279_v27  ;;  %8607 = vmatmul.msk.f32.gmra.mxu3 %vm2118_vm2, %v12404_v24  ;;  %v12446_v27 = vld [vmem:[#allocation2 + $0x260] sm:$0xff] }
 0x8da   :  { %8862 = vmatmul.msk.f32.gmra.mxu1 %vm2118_vm2, %v12432_v26 }
 0x8dc   :  { %v12436_v29 = vpop.f32.mrf.mxu2  ;;  %v12438_v19 = vpop.f32.mrf.mxu3 }
 0x8dd   :  { %14509 = vst [vmem:[#allocation202_spill] sm:$0xff] %v12436_v29 }
 0x8de   :  { %14510 = vst [vmem:[#allocation203_spill] sm:$0xff] %v12438_v19 }
 0x8df   :  { %v12440_v33 = vpop.f32.mrf.mxu1 }
 0x8e0   :  { %14511 = vst [vmem:[#allocation204_spill] sm:$0xff] %v12440_v33 }
 0x8e1   :  { %8542 = vmatmul.msk.f32.gmra.mxu2 %vm2118_vm2, %v12293_v59  ;;  %8608 = vmatmul.msk.f32.gmra.mxu3 %vm2118_vm2, %v12418_v2  ;;  %v12460_v59 = vld [vmem:[#allocation2 + $0x268] sm:$0xff] }
 0x8e2   :  { %8863 = vmatmul.msk.f32.gmra.mxu1 %vm2118_vm2, %v12446_v27 }
 0x8e4   :  { %v12450_v1 = vpop.f32.mrf.mxu2  ;;  %v12452_v34 = vpop.f32.mrf.mxu3 }
 0x8e5   :  { %14512 = vst [vmem:[#allocation205_spill] sm:$0xff] %v12450_v1 }
 0x8e6   :  { %14513 = vst [vmem:[#allocation206_spill] sm:$0xff] %v12452_v34  ;;  %v5658_v34 = vld [vmem:[#allocation2 + $0x280] sm:$0xff] }
 0x8e7   :  { %v12454_v29 = vpop.f32.mrf.mxu1 }
 0x8e8   :  { %14514 = vst [vmem:[#allocation207_spill] sm:$0xff] %v12454_v29 }
 0x8e9   :  { %8543 = vmatmul.msk.f32.gmra.mxu2 %vm2118_vm2, %v12307_v6  ;;  %8609 = vmatmul.msk.f32.gmra.mxu3 %vm2118_vm2, %v12432_v26 }
 0x8ea   :  { %8864 = vmatmul.msk.f32.gmra.mxu1 %vm2118_vm2, %v12460_v59 }
 0x8ec   :  { %v12464_v19 = vpop.f32.mrf.mxu2  ;;  %v12466_v33 = vpop.f32.mrf.mxu3 }
 0x8ed   :  { %14515 = vst [vmem:[#allocation208_spill] sm:$0xff] %v12464_v19 }
 0x8ee   :  { %14516 = vst [vmem:[#allocation209_spill] sm:$0xff] %v12466_v33  ;;  %v5659_v33 = vld [vmem:[#allocation2 + $0x288] sm:$0xff] }
 0x8ef   :  { %v12468_v1 = vpop.f32.mrf.mxu1 }
 0x8f0   :  { %14517 = vst [vmem:[#allocation210_spill] sm:$0xff] %v12468_v1 }
 0x8f1   :  { %8544 = vmatmul.msk.f32.gmra.mxu2 %vm2118_vm2, %v12321_v7  ;;  %8610 = vmatmul.msk.f32.gmra.mxu3 %vm2118_vm2, %v12446_v27 }
 0x8f2   :  { %8865 = vmatmul.msk.f32.gmra.mxu1 %vm2118_vm2, %v5658_v34 }
 0x8f4   :  { %v12475_v6 = vpop.f32.mrf.mxu2  ;;  %v12477_v29 = vpop.f32.mrf.mxu3 }
 0x8f5   :  { %14518 = vst [vmem:[#allocation211_spill] sm:$0xff] %v12475_v6  ;;  %v3925_v6 = vld [vmem:[#allocation2 + $0x270] sm:$0xff] }
 0x8f6   :  { %14519 = vst [vmem:[#allocation212_spill] sm:$0xff] %v12477_v29  ;;  %v5660_v29 = vld [vmem:[#allocation2 + $0x290] sm:$0xff] }
 0x8f7   :  { %v12479_v30 = vpop.f32.mrf.mxu1 }
 0x8f8   :  { %14520 = vst [vmem:[#allocation213_spill] sm:$0xff] %v12479_v30 }
 0x8f9   :  { %8545 = vmatmul.msk.f32.gmra.mxu2 %vm2118_vm2, %v12335_v21  ;;  %8611 = vmatmul.msk.f32.gmra.mxu3 %vm2118_vm2, %v12460_v59 }
 0x8fa   :  { %8866 = vmatmul.msk.f32.gmra.mxu1 %vm2118_vm2, %v5659_v33 }
 0x8fc   :  { %v12486_v7 = vpop.f32.mrf.mxu2  ;;  %v12488_v19 = vpop.f32.mrf.mxu3 }
 0x8fd   :  { %14521 = vst [vmem:[#allocation214_spill] sm:$0xff] %v12486_v7 }
 0x8fe   :  { %14522 = vst [vmem:[#allocation215_spill] sm:$0xff] %v12488_v19  ;;  %v5661_v19 = vld [vmem:[#allocation2 + $0x298] sm:$0xff] }
 0x8ff   :  { %v12490_v34 = vpop.f32.mrf.mxu1 }
 0x900   :  { %14523 = vst [vmem:[#allocation216_spill] sm:$0xff] %v12490_v34 }
 0x901   :  { %8546 = vmatmul.msk.f32.gmra.mxu2 %vm2118_vm2, %v12349_v40  ;;  %8612 = vmatmul.msk.f32.gmra.mxu3 %vm2118_vm2, %v3925_v6 }
 0x902   :  { %8867 = vmatmul.msk.f32.gmra.mxu1 %vm2118_vm2, %v5660_v29 }
 0x904   :  { %v12496_v21 = vpop.f32.mrf.mxu2  ;;  %v12498_v30 = vpop.f32.mrf.mxu3 }
 0x905   :  { %14524 = vst [vmem:[#allocation217_spill] sm:$0xff] %v12496_v21 }
 0x906   :  { %14525 = vst [vmem:[#allocation218_spill] sm:$0xff] %v12498_v30  ;;  %v5662_v30 = vld [vmem:[#allocation2 + $0x2a0] sm:$0xff] }
 0x907   :  { %v12500_v1 = vpop.f32.mrf.mxu1 }
 0x908   :  { %14526 = vst [vmem:[#allocation219_spill] sm:$0xff] %v12500_v1  ;;  %v2939_v1 = vld [vmem:[#allocation2 + $0x38] sm:$0xff] }
 0x909   :  { %8547 = vmatmul.msk.f32.gmra.mxu2 %vm2118_vm2, %v12359_v12  ;;  %8613 = vmatmul.msk.f32.gmra.mxu3 %vm2118_vm2, %v5659_v33 }
 0x90a   :  { %8868 = vmatmul.msk.f32.gmra.mxu1 %vm2118_vm2, %v5661_v19 }
 0x90c   :  { %v12506_v40 = vpop.f32.mrf.mxu2  ;;  %v12508_v6 = vpop.f32.mrf.mxu3 }
 0x90d   :  { %14527 = vst [vmem:[#allocation220_spill] sm:$0xff] %v12506_v40 }
 0x90e   :  { %14528 = vst [vmem:[#allocation221_spill] sm:$0xff] %v12508_v6  ;;  %v5663_v6 = vld [vmem:[#allocation2 + $0x2a8] sm:$0xff] }
 0x90f   :  { %v12510_v7 = vpop.f32.mrf.mxu1 }
 0x910   :  { %14529 = vst [vmem:[#allocation222_spill] sm:$0xff] %v12510_v7  ;;  %v12628_v7 = vld [vmem:[#allocation2 + $0x80] sm:$0xff] }
 0x911   :  { %8548 = vmatmul.msk.f32.gmra.mxu2 %vm2118_vm2, %v12377_v25  ;;  %8614 = vmatmul.msk.f32.gmra.mxu3 %vm2118_vm2, %v5660_v29 }
 0x912   :  { %8869 = vmatmul.msk.f32.gmra.mxu1 %vm2118_vm2, %v5662_v30 }
 0x914   :  { %v12516_v12 = vpop.f32.mrf.mxu2  ;;  %v12518_v33 = vpop.f32.mrf.mxu3 }
 0x915   :  { %14530 = vst [vmem:[#allocation223_spill] sm:$0xff] %v12516_v12 }
 0x916   :  { %14531 = vst [vmem:[#allocation224_spill] sm:$0xff] %v12518_v33  ;;  %v5664_v33 = vld [vmem:[#allocation2 + $0x2b0] sm:$0xff] }
 0x917   :  { %v12520_v21 = vpop.f32.mrf.mxu1 }
 0x918   :  { %14532 = vst [vmem:[#allocation225_spill] sm:$0xff] %v12520_v21 }
 0x919   :  { %8549 = vmatmul.msk.f32.gmra.mxu2 %vm2118_vm2, %v12390_v16  ;;  %8615 = vmatmul.msk.f32.gmra.mxu3 %vm2118_vm2, %v5661_v19 }
 0x91a   :  { %8870 = vmatmul.msk.f32.gmra.mxu1 %vm2118_vm2, %v5663_v6 }
 0x91c   :  { %v12526_v25 = vpop.f32.mrf.mxu2  ;;  %v12528_v29 = vpop.f32.mrf.mxu3 }
 0x91d   :  { %14533 = vst [vmem:[#allocation226_spill] sm:$0xff] %v12526_v25 }
 0x91e   :  { %14534 = vst [vmem:[#allocation227_spill] sm:$0xff] %v12528_v29  ;;  %v5665_v29 = vld [vmem:[#allocation2 + $0x2b8] sm:$0xff] }
 0x91f   :  { %v12530_v40 = vpop.f32.mrf.mxu1 }
 0x920   :  { %14535 = vst [vmem:[#allocation228_spill] sm:$0xff] %v12530_v40  ;;  %v12618_v40 = vld [vmem:[#allocation2 + $0x78] sm:$0xff] }
 0x921   :  { %8550 = vmatmul.msk.f32.gmra.mxu2 %vm2118_vm2, %v12404_v24  ;;  %8616 = vmatmul.msk.f32.gmra.mxu3 %vm2118_vm2, %v5662_v30  ;;  %v8882_v30 = vld [vmem:[%s14285_s3 + $0x78] sm:$0xff]  ;;  %v8948_v24 = vld [vmem:[%s14285_s3 + $0x88] sm:$0xff] }
 0x922   :  { %8871 = vmatmul.msk.f32.gmra.mxu1 %vm2118_vm2, %v5664_v33  ;;  %6416 = vmatpush.msrb.mxu2 %v8882_v30 }
 0x923   :  { %6949 = vmatpush.msrb.mxu3 %v8948_v24  ;;  %v5667_v24 = vld [vmem:[#allocation2 + $0x2d8] sm:$0xff] }
 0x924   :  { %v12536_v16 = vpop.f32.mrf.mxu2  ;;  %v12538_v19 = vpop.f32.mrf.mxu3 }
 0x925   :  { %14536 = vst [vmem:[#allocation229_spill] sm:$0xff] %v12536_v16 }
 0x926   :  { %14537 = vst [vmem:[#allocation230_spill] sm:$0xff] %v12538_v19 }
 0x927   :  { %v12540_v12 = vpop.f32.mrf.mxu1 }
 0x928   :  { %14538 = vst [vmem:[#allocation231_spill] sm:$0xff] %v12540_v12 }
 0x929   :  { %8551 = vmatmul.msk.f32.gmra.mxu2 %vm2118_vm2, %v12418_v2  ;;  %8617 = vmatmul.msk.f32.gmra.mxu3 %vm2118_vm2, %v5663_v6  ;;  %v5666_v6 = vld [vmem:[#allocation2 + $0x2d0] sm:$0xff] }
 0x92a   :  { %8872 = vmatmul.msk.f32.gmra.mxu1 %vm2118_vm2, %v5665_v29 }
 0x92c   :  { %v12552_v19 = vpop.f32.mrf.mxu2  ;;  %v12554_v16 = vpop.f32.mrf.mxu3 }
 0x92d   :  { %14539 = vst [vmem:[#allocation232_spill] sm:$0xff] %v12552_v19  ;;  %v12598_v19 = vld [vmem:[#allocation2 + $0x68] sm:$0xff] }
 0x92e   :  { %14540 = vst [vmem:[#allocation233_spill] sm:$0xff] %v12554_v16 }
 0x92f   :  { %v12556_v2 = vpop.f32.mrf.mxu1 }
 0x930   :  { %14541 = vst [vmem:[#allocation234_spill] sm:$0xff] %v12556_v2 }
 0x931   :  { %8552 = vmatmul.msk.f32.gmra.mxu2 %vm2118_vm2, %v12432_v26  ;;  %8618 = vmatmul.msk.f32.gmra.mxu3 %vm2118_vm2, %v5664_v33 }
 0x932   :  { %8873 = vmatmul.msk.f32.gmra.mxu1 %vm2118_vm2, %v5666_v6  ;;  %v5668_v6 = vld [vmem:[#allocation2 + $0x2e0] sm:$0xff] }
 0x934   :  { %v12562_v25 = vpop.f32.mrf.mxu2  ;;  %v12564_v12 = vpop.f32.mrf.mxu3 }
 0x935   :  { %14542 = vst [vmem:[#allocation235_spill] sm:$0xff] %v12562_v25  ;;  %v3933_v25 = vld [vmem:[#allocation2 + $0x2c0] sm:$0xff] }
 0x936   :  { %14543 = vst [vmem:[#allocation236_spill] sm:$0xff] %v12564_v12 }
 0x937   :  { %v12566_v30 = vpop.f32.mrf.mxu1 }
 0x938   :  { %14544 = vst [vmem:[#allocation237_spill] sm:$0xff] %v12566_v30  ;;  %v12608_v30 = vld [vmem:[#allocation2 + $0x70] sm:$0xff] }
 0x939   :  { %8553 = vmatmul.msk.f32.gmra.mxu2 %vm2118_vm2, %v12446_v27  ;;  %8619 = vmatmul.msk.f32.gmra.mxu3 %vm2118_vm2, %v5665_v29 }
 0x93a   :  { %8874 = vmatmul.msk.f32.gmra.mxu1 %vm2118_vm2, %v5667_v24  ;;  %v2934_v24 = vld [vmem:[#allocation2 + $0x10] sm:$0xff] }
 0x93c   :  { %v12572_v16 = vpop.f32.mrf.mxu2  ;;  %v12574_v26 = vpop.f32.mrf.mxu3 }
 0x93d   :  { %14545 = vst [vmem:[#allocation238_spill] sm:$0xff] %v12572_v16  ;;  %v5669_v16 = vld [vmem:[#allocation2 + $0x2e8] sm:$0xff] }
 0x93e   :  { %14546 = vst [vmem:[#allocation239_spill] sm:$0xff] %v12574_v26  ;;  %v12588_v26 = vld [vmem:[#allocation2 + $0x60] sm:$0xff] }
 0x93f   :  { %v12576_v33 = vpop.f32.mrf.mxu1 }
 0x940   :  { %14547 = vst [vmem:[#allocation240_spill] sm:$0xff] %v12576_v33 }
 0x941   :  { %8554 = vmatmul.msk.f32.gmra.mxu2 %vm2118_vm2, %v12460_v59  ;;  %8620 = vmatmul.msk.f32.gmra.mxu3 %vm2118_vm2, %v3933_v25 }
 0x942   :  { %8875 = vmatmul.msk.f32.gmra.mxu1 %vm2118_vm2, %v5668_v6  ;;  %v2935_v6 = vld [vmem:[#allocation2 + $0x18] sm:$0xff] }
 0x944   :  { %v12582_v27 = vpop.f32.mrf.mxu2  ;;  %v12584_v29 = vpop.f32.mrf.mxu3 }
 0x945   :  { %14548 = vst [vmem:[#allocation241_spill] sm:$0xff] %v12582_v27 }
 0x946   :  { %14549 = vst [vmem:[#allocation242_spill] sm:$0xff] %v12584_v29  ;;  %v5670_v29 = vld [vmem:[#allocation2 + $0x2f0] sm:$0xff] }
 0x947   :  { %v12586_v12 = vpop.f32.mrf.mxu1 }
 0x948   :  { %14550 = vst [vmem:[#allocation243_spill] sm:$0xff] %v12586_v12 }
 0x949   :  { %8687 = vmatmul.msk.f32.vlgmr.msra.gmra.mxu2 %vm2118_vm2, %v12588_v26  ;;  %8751 = vmatmul.msk.f32.vlgmr.msra.gmra.mxu3 %vm2118_vm2, %v2934_v24 }
 0x94a   :  { %8876 = vmatmul.msk.f32.gmra.mxu1 %vm2118_vm2, %v5669_v16  ;;  %v2936_v16 = vld [vmem:[#allocation2 + $0x20] sm:$0xff] }
 0x94c   :  { %v3822_v59 = vpop.f32.mrf.mxu2  ;;  %v12594_v25 = vpop.f32.mrf.mxu3 }
 0x94d   :  { %14551 = vst [vmem:[#allocation244_spill] sm:$0xff] %v12594_v25  ;;  %v5671_v25 = vld [vmem:[#allocation2 + $0x2f8] sm:$0xff] }
 0x94f   :  { %v12596_v27 = vpop.f32.mrf.mxu1 }
 0x950   :  { %14552 = vst [vmem:[#allocation245_spill] sm:$0xff] %v12596_v27 }
 0x951   :  { %8688 = vmatmul.msk.f32.gmra.mxu2 %vm2118_vm2, %v12598_v19  ;;  %8752 = vmatmul.msk.f32.gmra.mxu3 %vm2118_vm2, %v2935_v6 }
 0x952   :  { %8877 = vmatmul.msk.f32.gmra.mxu1 %vm2118_vm2, %v5670_v29  ;;  %v2937_v29 = vld [vmem:[#allocation2 + $0x28] sm:$0xff] }
 0x954   :  { %v3825_v12 = vpop.f32.mrf.mxu2  ;;  %v12604_v24 = vpop.f32.mrf.mxu3 }
 0x955   :  { %14553 = vst [vmem:[#allocation246_spill] sm:$0xff] %v12604_v24  ;;  %v5672_v24 = vld [vmem:[#allocation2 + $0x300] sm:$0xff] }
 0x957   :  { %v12606_v33 = vpop.f32.mrf.mxu1 }
 0x958   :  { %14554 = vst [vmem:[#allocation247_spill] sm:$0xff] %v12606_v33 }
 0x959   :  { %8689 = vmatmul.msk.f32.gmra.mxu2 %vm2118_vm2, %v12608_v30  ;;  %8753 = vmatmul.msk.f32.gmra.mxu3 %vm2118_vm2, %v2936_v16 }
 0x95a   :  { %8878 = vmatmul.msk.f32.gmra.mxu1 %vm2118_vm2, %v5671_v25  ;;  %v2938_v25 = vld [vmem:[#allocation2 + $0x30] sm:$0xff] }
 0x95c   :  { %v3828_v27 = vpop.f32.mrf.mxu2  ;;  %v12614_v6 = vpop.f32.mrf.mxu3 }
 0x95d   :  { %14555 = vst [vmem:[#allocation248_spill] sm:$0xff] %v12614_v6  ;;  %v5673_v6 = vld [vmem:[#allocation2 + $0x308] sm:$0xff] }
 0x95f   :  { %v12616_v2 = vpop.f32.mrf.mxu1 }
 0x960   :  { %14556 = vst [vmem:[#allocation249_spill] sm:$0xff] %v12616_v2 }
 0x961   :  { %8690 = vmatmul.msk.f32.gmra.mxu2 %vm2118_vm2, %v12618_v40  ;;  %8754 = vmatmul.msk.f32.gmra.mxu3 %vm2118_vm2, %v2937_v29 }
 0x962   :  { %8879 = vmatmul.msk.f32.gmra.mxu1 %vm2118_vm2, %v5672_v24  ;;  %v3823_v24 = vadd.f32 %v3822_v59, %v11901_v61  ;;  %v4746_v61 = vld [vmem:[#allocation2 + $0x90] sm:$0xff] }
 0x964   :  { %v3831_v33 = vpop.f32.mrf.mxu2  ;;  %v12624_v16 = vpop.f32.mrf.mxu3 }
 0x965   :  { %14557 = vst [vmem:[#allocation250_spill] sm:$0xff] %v12624_v16 }
 0x967   :  { %v12626_v21 = vpop.f32.mrf.mxu1 }
 0x968   :  { %14558 = vst [vmem:[#allocation251_spill] sm:$0xff] %v12626_v21  ;;  %v12639_v21 = vld [vmem:[#allocation2 + $0x88] sm:$0xff] }
 0x969   :  { %8691 = vmatmul.msk.f32.gmra.mxu2 %vm2118_vm2, %v12628_v7  ;;  %8755 = vmatmul.msk.f32.gmra.mxu3 %vm2118_vm2, %v2938_v25 }
 0x96a   :  { %8880 = vmatmul.msk.f32.gmra.mxu1 %vm2118_vm2, %v5673_v6  ;;  %v3826_v6 = vadd.f32 %v3825_v12, %v11917_v39 }
 0x96c   :  { %v3834_v2 = vpop.f32.mrf.mxu2  ;;  %v12634_v29 = vpop.f32.mrf.mxu3 }
 0x96d   :  { %14559 = vst [vmem:[#allocation252_spill] sm:$0xff] %v12634_v29 }
 0x96f   :  { %v6030_v16 = vpop.f32.mrf.mxu1 }
 0x970   :  { %v12637_v34 = vadd.f32 %v6030_v16, %v3823_v24  ;;  %v3829_v24 = vadd.f32 %v3828_v27, %v11931_v23 }
 0x971   :  { %8692 = vmatmul.msk.f32.gmra.mxu2 %vm2118_vm2, %v12639_v21  ;;  %8756 = vmatmul.msk.f32.gmra.mxu3 %vm2118_vm2, %v2939_v1  ;;  %v4747_v1 = vld [vmem:[#allocation2 + $0x98] sm:$0xff] }
 0x972   :  { %14560 = vst [vmem:[#allocation253_spill] sm:$0xff] %v12637_v34  ;;  %v2941_v34 = vld [vmem:[#allocation2 + $0x48] sm:$0xff] }
 0x974   :  { %v3837_v55 = vpop.f32.mrf.mxu2  ;;  %v12644_v25 = vpop.f32.mrf.mxu3 }
 0x975   :  { %14561 = vst [vmem:[#allocation254_spill] sm:$0xff] %v12644_v25 }
 0x977   :  { %v6033_v29 = vpop.f32.mrf.mxu1 }
 0x978   :  { %v12647_v38 = vadd.f32 %v6033_v29, %v3826_v6  ;;  %v3832_v29 = vadd.f32 %v3831_v33, %v11944_v15  ;;  %v12676_v15 = vld [vmem:[#allocation2 + $0xb8] sm:$0xff] }
 0x979   :  { %8693 = vmatmul.msk.f32.gmra.mxu2 %vm2118_vm2, %v4746_v61  ;;  %8757 = vmatmul.msk.f32.gmra.mxu3 %vm2118_vm2, %v2940_v50 }
 0x97a   :  { %14562 = vst [vmem:[#allocation255_spill] sm:$0xff] %v12647_v38 }
 0x97c   :  { %v3840_v59 = vpop.f32.mrf.mxu2  ;;  %v12651_v16 = vpop.f32.mrf.mxu3 }
 0x97d   :  { %14563 = vst [vmem:[#allocation256_spill] sm:$0xff] %v12651_v16  ;;  %v12663_v16 = vld [vmem:[#allocation2 + $0xb0] sm:$0xff] }
 0x97f   :  { %v6036_v56 = vpop.f32.mrf.mxu1 }
 0x980   :  { %v12654_v25 = vadd.f32 %v6036_v56, %v3829_v24 }
 0x981   :  { %8694 = vmatmul.msk.f32.gmra.mxu2 %vm2118_vm2, %v4747_v1  ;;  %8758 = vmatmul.msk.f32.gmra.mxu3 %vm2118_vm2, %v2941_v34  ;;  %v3835_v34 = vadd.f32 %v3834_v2, %v11796_v45  ;;  %v12689_v45 = vld [vmem:[#allocation2 + $0xc0] sm:$0xff] }
 0x982   :  { %14564 = vst [vmem:[#allocation257_spill] sm:$0xff] %v12654_v25  ;;  %v12817_v25 = vld [vmem:[#allocation2 + $0x150] sm:$0xff] }
 0x984   :  { %v3843_v39 = vpop.f32.mrf.mxu2  ;;  %v12658_v12 = vpop.f32.mrf.mxu3 }
 0x985   :  { %14565 = vst [vmem:[#allocation258_spill] sm:$0xff] %v12658_v12 }
 0x987   :  { %v6039_v50 = vpop.f32.mrf.mxu1 }
 0x988   :  { %v12661_v6 = vadd.f32 %v6039_v50, %v3832_v29  ;;  %v3838_v29 = vadd.f32 %v3837_v55, %v11811_v58  ;;  %v12702_v55 = vld [vmem:[#allocation2 + $0xc8] sm:$0xff] }
 0x989   :  { %8695 = vmatmul.msk.f32.gmra.mxu2 %vm2118_vm2, %v12663_v16  ;;  %8759 = vmatmul.msk.f32.gmra.mxu3 %vm2118_vm2, %v12588_v26 }
 0x98a   :  { %14566 = vst [vmem:[#allocation259_spill] sm:$0xff] %v12661_v6 }
 0x98c   :  { %v12669_v56 = vpop.f32.mrf.mxu2  ;;  %v12671_v23 = vpop.f32.mrf.mxu3 }
 0x98d   :  { %14567 = vst [vmem:[#allocation260_spill] sm:$0xff] %v12669_v56 }
 0x98e   :  { %14568 = vst [vmem:[#allocation261_spill] sm:$0xff] %v12671_v23 }
 0x98f   :  { %v6042_v27 = vpop.f32.mrf.mxu1 }
 0x990   :  { %v12674_v24 = vadd.f32 %v6042_v27, %v3835_v34  ;;  %v3841_v34 = vadd.f32 %v3840_v59, %v11826_v37  ;;  %v12715_v37 = vld [vmem:[#allocation2 + $0xd0] sm:$0xff] }
 0x991   :  { %8696 = vmatmul.msk.f32.gmra.mxu2 %vm2118_vm2, %v12676_v15  ;;  %8760 = vmatmul.msk.f32.gmra.mxu3 %vm2118_vm2, %v12598_v19 }
 0x992   :  { %14569 = vst [vmem:[#allocation262_spill] sm:$0xff] %v12674_v24  ;;  %v12809_v24 = vld [vmem:[#allocation2 + $0x138] sm:$0xff] }
 0x994   :  { %v12682_v33 = vpop.f32.mrf.mxu2  ;;  %v12684_v26 = vpop.f32.mrf.mxu3 }
 0x995   :  { %14570 = vst [vmem:[#allocation263_spill] sm:$0xff] %v12682_v33  ;;  %v12785_v33 = vld [vmem:[#allocation2 + $0x120] sm:$0xff] }
 0x996   :  { %14571 = vst [vmem:[#allocation264_spill] sm:$0xff] %v12684_v26 }
 0x997   :  { %v6045_v50 = vpop.f32.mrf.mxu1 }
 0x998   :  { %v12687_v23 = vadd.f32 %v6045_v50, %v3838_v29  ;;  %v3844_v29 = vadd.f32 %v3843_v39, %v11838_v0 }
 0x999   :  { %8697 = vmatmul.msk.f32.gmra.mxu2 %vm2118_vm2, %v12689_v45  ;;  %8761 = vmatmul.msk.f32.gmra.mxu3 %vm2118_vm2, %v12608_v30 }
 0x99a   :  { %14572 = vst [vmem:[#allocation265_spill] sm:$0xff] %v12687_v23 }
 0x99c   :  { %v12695_v2 = vpop.f32.mrf.mxu2  ;;  %v12697_v19 = vpop.f32.mrf.mxu3 }
 0x99d   :  { %14573 = vst [vmem:[#allocation266_spill] sm:$0xff] %v12695_v2 }
 0x99e   :  { %14574 = vst [vmem:[#allocation267_spill] sm:$0xff] %v12697_v19 }
 0x99f   :  { %v6048_v27 = vpop.f32.mrf.mxu1 }
 0x9a0   :  { %v12700_v26 = vadd.f32 %v6048_v27, %v3841_v34  ;;  %v12725_v34 = vld [vmem:[#allocation2 + $0xd8] sm:$0xff]  ;;  %v12735_v27 = vld [vmem:[#allocation2 + $0xe0] sm:$0xff] }
 0x9a1   :  { %8698 = vmatmul.msk.f32.gmra.mxu2 %vm2118_vm2, %v12702_v55  ;;  %8762 = vmatmul.msk.f32.gmra.mxu3 %vm2118_vm2, %v12618_v40 }
 0x9a2   :  { %14575 = vst [vmem:[#allocation268_spill] sm:$0xff] %v12700_v26  ;;  %v12801_v26 = vld [vmem:[#allocation2 + $0x130] sm:$0xff] }
 0x9a4   :  { %v12708_v58 = vpop.f32.mrf.mxu2  ;;  %v12710_v30 = vpop.f32.mrf.mxu3 }
 0x9a5   :  { %14576 = vst [vmem:[#allocation269_spill] sm:$0xff] %v12708_v58  ;;  %v12777_v58 = vld [vmem:[#allocation2 + $0x118] sm:$0xff] }
 0x9a6   :  { %14577 = vst [vmem:[#allocation270_spill] sm:$0xff] %v12710_v30 }
 0x9a7   :  { %v6051_v50 = vpop.f32.mrf.mxu1 }
 0x9a8   :  { %v12713_v19 = vadd.f32 %v6051_v50, %v3844_v29  ;;  %v12744_v50 = vld [vmem:[#allocation2 + $0xe8] sm:$0xff] }
 0x9a9   :  { %8699 = vmatmul.msk.f32.gmra.mxu2 %vm2118_vm2, %v12715_v37  ;;  %8763 = vmatmul.msk.f32.gmra.mxu3 %vm2118_vm2, %v12628_v7 }
 0x9aa   :  { %14578 = vst [vmem:[#allocation271_spill] sm:$0xff] %v12713_v19  ;;  %v12793_v19 = vld [vmem:[#allocation2 + $0x128] sm:$0xff] }
 0x9ac   :  { %v12721_v59 = vpop.f32.mrf.mxu2  ;;  %v12723_v40 = vpop.f32.mrf.mxu3 }
 0x9ad   :  { %14579 = vst [vmem:[#allocation272_spill] sm:$0xff] %v12721_v59  ;;  %v12769_v59 = vld [vmem:[#allocation2 + $0x110] sm:$0xff] }
 0x9ae   :  { %14580 = vst [vmem:[#allocation273_spill] sm:$0xff] %v12723_v40  ;;  %v12761_v40 = vld [vmem:[#allocation2 + $0x108] sm:$0xff] }
 0x9b1   :  { %8700 = vmatmul.msk.f32.gmra.mxu2 %vm2118_vm2, %v12725_v34  ;;  %8764 = vmatmul.msk.f32.gmra.mxu3 %vm2118_vm2, %v12639_v21 }
 0x9b4   :  { %v12731_v0 = vpop.f32.mrf.mxu2  ;;  %v12733_v39 = vpop.f32.mrf.mxu3 }
 0x9b5   :  { %14581 = vst [vmem:[#allocation274_spill] sm:$0xff] %v12731_v0  ;;  %v12753_v0 = vld [vmem:[#allocation2 + $0x100] sm:$0xff] }
 0x9b6   :  { %14582 = vst [vmem:[#allocation275_spill] sm:$0xff] %v12733_v39 }
 0x9b9   :  { %8701 = vmatmul.msk.f32.gmra.mxu2 %vm2118_vm2, %v12735_v27  ;;  %8765 = vmatmul.msk.f32.gmra.mxu3 %vm2118_vm2, %v4746_v61 }
 0x9bc   :  { %v12740_v7 = vpop.f32.mrf.mxu2  ;;  %v12742_v29 = vpop.f32.mrf.mxu3 }
 0x9bd   :  { %14583 = vst [vmem:[#allocation276_spill] sm:$0xff] %v12740_v7 }
 0x9be   :  { %14584 = vst [vmem:[#allocation277_spill] sm:$0xff] %v12742_v29 }
 0x9c1   :  { %8702 = vmatmul.msk.f32.gmra.mxu2 %vm2118_vm2, %v12744_v50  ;;  %8766 = vmatmul.msk.f32.gmra.mxu3 %vm2118_vm2, %v4747_v1 }
 0x9c4   :  { %v12749_v21 = vpop.f32.mrf.mxu2  ;;  %v12751_v39 = vpop.f32.mrf.mxu3 }
 0x9c5   :  { %14585 = vst [vmem:[#allocation278_spill] sm:$0xff] %v12749_v21 }
 0x9c6   :  { %14586 = vst [vmem:[#allocation279_spill] sm:$0xff] %v12751_v39 }
 0x9c9   :  { %8703 = vmatmul.msk.f32.gmra.mxu2 %vm2118_vm2, %v12753_v0  ;;  %8767 = vmatmul.msk.f32.gmra.mxu3 %vm2118_vm2, %v12663_v16 }
 0x9cc   :  { %v5016_v61 = vpop.f32.mrf.mxu2  ;;  %v5417_v29 = vpop.f32.mrf.mxu3 }
 0x9cd   :  { %v12759_v7 = vadd.f32 %v5417_v29, %v5016_v61 }
 0x9d1   :  { %8704 = vmatmul.msk.f32.gmra.mxu2 %vm2118_vm2, %v12761_v40  ;;  %8768 = vmatmul.msk.f32.gmra.mxu3 %vm2118_vm2, %v12676_v15 }
 0x9d4   :  { %v5019_v1 = vpop.f32.mrf.mxu2  ;;  %v5420_v39 = vpop.f32.mrf.mxu3 }
 0x9d5   :  { %v12767_v21 = vadd.f32 %v5420_v39, %v5019_v1 }
 0x9d9   :  { %8705 = vmatmul.msk.f32.gmra.mxu2 %vm2118_vm2, %v12769_v59  ;;  %8769 = vmatmul.msk.f32.gmra.mxu3 %vm2118_vm2, %v12689_v45 }
 0x9dc   :  { %v5022_v29 = vpop.f32.mrf.mxu2  ;;  %v5423_v61 = vpop.f32.mrf.mxu3 }
 0x9dd   :  { %v12775_v30 = vadd.f32 %v5423_v61, %v5022_v29 }
 0x9e1   :  { %8706 = vmatmul.msk.f32.gmra.mxu2 %vm2118_vm2, %v12777_v58  ;;  %8770 = vmatmul.msk.f32.gmra.mxu3 %vm2118_vm2, %v12702_v55 }
 0x9e4   :  { %v5025_v39 = vpop.f32.mrf.mxu2  ;;  %v5426_v1 = vpop.f32.mrf.mxu3 }
 0x9e5   :  { %v12783_v2 = vadd.f32 %v5426_v1, %v5025_v39 }
 0x9e9   :  { %8707 = vmatmul.msk.f32.gmra.mxu2 %vm2118_vm2, %v12785_v33  ;;  %8771 = vmatmul.msk.f32.gmra.mxu3 %vm2118_vm2, %v12715_v37 }
 0x9ec   :  { %v5028_v29 = vpop.f32.mrf.mxu2  ;;  %v5429_v61 = vpop.f32.mrf.mxu3 }
 0x9ed   :  { %v12791_v56 = vadd.f32 %v5429_v61, %v5028_v29 }
 0x9ef   :  { %14587 = vst [vmem:[#allocation280_spill] sm:$0xff] %v12791_v56  ;;  %v12919_v56 = vld [vmem:[#allocation2 + $0x1c0] sm:$0xff] }
 0x9f0   :  { %14610 = vst [vmem:[#allocation303_spill] sm:$0xff] %v12919_v56 }
 0x9f1   :  { %8708 = vmatmul.msk.f32.gmra.mxu2 %vm2118_vm2, %v12793_v19  ;;  %8772 = vmatmul.msk.f32.gmra.mxu3 %vm2118_vm2, %v12725_v34 }
 0x9f4   :  { %v5031_v39 = vpop.f32.mrf.mxu2  ;;  %v5432_v1 = vpop.f32.mrf.mxu3 }
 0x9f5   :  { %v12799_v12 = vadd.f32 %v5432_v1, %v5031_v39 }
 0x9f7   :  { %14588 = vst [vmem:[#allocation281_spill] sm:$0xff] %v12799_v12 }
 0x9f9   :  { %8709 = vmatmul.msk.f32.gmra.mxu2 %vm2118_vm2, %v12801_v26  ;;  %8773 = vmatmul.msk.f32.gmra.mxu3 %vm2118_vm2, %v12735_v27 }
 0x9fc   :  { %v5034_v29 = vpop.f32.mrf.mxu2  ;;  %v5435_v61 = vpop.f32.mrf.mxu3 }
 0x9fd   :  { %v12807_v23 = vadd.f32 %v5435_v61, %v5034_v29 }
 0x9ff   :  { %14589 = vst [vmem:[#allocation282_spill] sm:$0xff] %v12807_v23  ;;  %v12825_v23 = vld [vmem:[#allocation2 + $0x158] sm:$0xff] }
 0xa01   :  { %8710 = vmatmul.msk.f32.gmra.mxu2 %vm2118_vm2, %v12809_v24  ;;  %8774 = vmatmul.msk.f32.gmra.mxu3 %vm2118_vm2, %v12744_v50 }
 0xa04   :  { %v5037_v39 = vpop.f32.mrf.mxu2  ;;  %v5438_v1 = vpop.f32.mrf.mxu3 }
 0xa05   :  { %v12815_v6 = vadd.f32 %v5438_v1, %v5037_v39 }
 0xa07   :  { %14590 = vst [vmem:[#allocation283_spill] sm:$0xff] %v12815_v6 }
 0xa09   :  { %8711 = vmatmul.msk.f32.gmra.mxu2 %vm2118_vm2, %v12817_v25  ;;  %8775 = vmatmul.msk.f32.gmra.mxu3 %vm2118_vm2, %v12753_v0 }
 0xa0c   :  { %v5040_v29 = vpop.f32.mrf.mxu2  ;;  %v5441_v61 = vpop.f32.mrf.mxu3 }
 0xa0d   :  { %v12823_v38 = vadd.f32 %v5441_v61, %v5040_v29 }
 0xa0f   :  { %14591 = vst [vmem:[#allocation284_spill] sm:$0xff] %v12823_v38 }
 0xa11   :  { %8712 = vmatmul.msk.f32.gmra.mxu2 %vm2118_vm2, %v12825_v23  ;;  %8776 = vmatmul.msk.f32.gmra.mxu3 %vm2118_vm2, %v12761_v40 }
 0xa14   :  { %v5043_v39 = vpop.f32.mrf.mxu2  ;;  %v5444_v1 = vpop.f32.mrf.mxu3 }
 0xa15   :  { %v12831_v6 = vadd.f32 %v5444_v1, %v5043_v39 }
 0xa17   :  { %14592 = vst [vmem:[#allocation285_spill] sm:$0xff] %v12831_v6 }
 0xa19   :  { %8713 = vmatmul.msk.f32.gmra.mxu2 %vm2118_vm2, %v12833_v20  ;;  %8777 = vmatmul.msk.f32.gmra.mxu3 %vm2118_vm2, %v12769_v59 }
 0xa1c   :  { %v5046_v29 = vpop.f32.mrf.mxu2  ;;  %v5447_v61 = vpop.f32.mrf.mxu3 }
 0xa1d   :  { %v12839_v38 = vadd.f32 %v5447_v61, %v5046_v29  ;;  %v8881_v29 = vld [vmem:[%s14285_s3 + $0x70] sm:$0xff]  ;;  %v8947_v61 = vld [vmem:[%s14285_s3 + $0x80] sm:$0xff] }
 0xa1e   :  { %6417 = vmatpush.msrb.mxu2 %v8881_v29  ;;  %6950 = vmatpush.msrb.mxu3 %v8947_v61 }
 0xa1f   :  { %14593 = vst [vmem:[#allocation286_spill] sm:$0xff] %v12839_v38  ;;  %v12863_v38 = vld [vmem:[#allocation2 + $0x178] sm:$0xff] }
 0xa20   :  { %14596 = vst [vmem:[#allocation289_spill] sm:$0xff] %v12863_v38 }
 0xa21   :  { %8714 = vmatmul.msk.f32.gmra.mxu2 %vm2118_vm2, %v12841_v32  ;;  %8778 = vmatmul.msk.f32.gmra.mxu3 %vm2118_vm2, %v12777_v58 }
 0xa24   :  { %v5049_v39 = vpop.f32.mrf.mxu2  ;;  %v5450_v1 = vpop.f32.mrf.mxu3 }
 0xa25   :  { %v12847_v6 = vadd.f32 %v5450_v1, %v5049_v39 }
 0xa27   :  { %14594 = vst [vmem:[#allocation287_spill] sm:$0xff] %v12847_v6 }
 0xa29   :  { %8715 = vmatmul.msk.f32.gmra.mxu2 %vm2118_vm2, %v12849_v44  ;;  %8779 = vmatmul.msk.f32.gmra.mxu3 %vm2118_vm2, %v12785_v33 }
 0xa2c   :  { %v5052_v39 = vpop.f32.mrf.mxu2  ;;  %v5453_v1 = vpop.f32.mrf.mxu3 }
 0xa2d   :  { %v12861_v6 = vadd.f32 %v5453_v1, %v5052_v39  ;;  %v12879_v1 = vld [vmem:[#allocation2 + $0x188] sm:$0xff] }
 0xa2e   :  { %14600 = vst [vmem:[#allocation293_spill] sm:$0xff] %v12879_v1 }
 0xa2f   :  { %14595 = vst [vmem:[#allocation288_spill] sm:$0xff] %v12861_v6  ;;  %v12887_v6 = vld [vmem:[#allocation2 + $0x1a0] sm:$0xff] }
 0xa30   :  { %14602 = vst [vmem:[#allocation295_spill] sm:$0xff] %v12887_v6 }
 0xa31   :  { %8716 = vmatmul.msk.f32.gmra.mxu2 %vm2118_vm2, %v12863_v38  ;;  %8780 = vmatmul.msk.f32.gmra.mxu3 %vm2118_vm2, %v12793_v19 }
 0xa34   :  { %v5055_v47 = vpop.f32.mrf.mxu2  ;;  %v5456_v12 = vpop.f32.mrf.mxu3 }
 0xa35   :  { %v12869_v31 = vadd.f32 %v5456_v12, %v5055_v47 }
 0xa37   :  { %14597 = vst [vmem:[#allocation290_spill] sm:$0xff] %v12869_v31 }
 0xa39   :  { %8717 = vmatmul.msk.f32.gmra.mxu2 %vm2118_vm2, %v12871_v35  ;;  %8781 = vmatmul.msk.f32.gmra.mxu3 %vm2118_vm2, %v12801_v26 }
 0xa3c   :  { %v5058_v29 = vpop.f32.mrf.mxu2  ;;  %v5459_v61 = vpop.f32.mrf.mxu3 }
 0xa3d   :  { %v12877_v39 = vadd.f32 %v5459_v61, %v5058_v29 }
 0xa3f   :  { %14599 = vst [vmem:[#allocation292_spill] sm:$0xff] %v12877_v39 }
 0xa41   :  { %8718 = vmatmul.msk.f32.gmra.mxu2 %vm2118_vm2, %v12879_v1  ;;  %8782 = vmatmul.msk.f32.gmra.mxu3 %vm2118_vm2, %v12809_v24 }
 0xa44   :  { %v5061_v47 = vpop.f32.mrf.mxu2  ;;  %v5462_v12 = vpop.f32.mrf.mxu3 }
 0xa45   :  { %v12885_v31 = vadd.f32 %v5462_v12, %v5061_v47 }
 0xa47   :  { %14601 = vst [vmem:[#allocation294_spill] sm:$0xff] %v12885_v31 }
 0xa49   :  { %8719 = vmatmul.msk.f32.gmra.mxu2 %vm2118_vm2, %v12887_v6  ;;  %8783 = vmatmul.msk.f32.gmra.mxu3 %vm2118_vm2, %v12817_v25 }
 0xa4c   :  { %v5064_v29 = vpop.f32.mrf.mxu2  ;;  %v5465_v61 = vpop.f32.mrf.mxu3 }
 0xa4d   :  { %v12893_v39 = vadd.f32 %v5465_v61, %v5064_v29 }
 0xa4f   :  { %14603 = vst [vmem:[#allocation296_spill] sm:$0xff] %v12893_v39 }
 0xa51   :  { %8720 = vmatmul.msk.f32.gmra.mxu2 %vm2118_vm2, %v12895_v36  ;;  %8784 = vmatmul.msk.f32.gmra.mxu3 %vm2118_vm2, %v12825_v23 }
 0xa54   :  { %v5067_v47 = vpop.f32.mrf.mxu2  ;;  %v5468_v12 = vpop.f32.mrf.mxu3 }
 0xa55   :  { %v12901_v31 = vadd.f32 %v5468_v12, %v5067_v47 }
 0xa57   :  { %14605 = vst [vmem:[#allocation298_spill] sm:$0xff] %v12901_v31 }
 0xa59   :  { %8721 = vmatmul.msk.f32.gmra.mxu2 %vm2118_vm2, %v12903_v63  ;;  %8785 = vmatmul.msk.f32.gmra.mxu3 %vm2118_vm2, %v12833_v20 }
 0xa5c   :  { %v5070_v29 = vpop.f32.mrf.mxu2  ;;  %v5471_v61 = vpop.f32.mrf.mxu3 }
 0xa5d   :  { %v12909_v39 = vadd.f32 %v5471_v61, %v5070_v29 }
 0xa5f   :  { %14607 = vst [vmem:[#allocation300_spill] sm:$0xff] %v12909_v39 }
 0xa61   :  { %8722 = vmatmul.msk.f32.gmra.mxu2 %vm2118_vm2, %v12911_v22  ;;  %8786 = vmatmul.msk.f32.gmra.mxu3 %vm2118_vm2, %v12841_v32 }
 0xa64   :  { %v5073_v47 = vpop.f32.mrf.mxu2  ;;  %v5474_v12 = vpop.f32.mrf.mxu3 }
 0xa65   :  { %v12917_v31 = vadd.f32 %v5474_v12, %v5073_v47 }
 0xa67   :  { %14609 = vst [vmem:[#allocation302_spill] sm:$0xff] %v12917_v31 }
 0xa69   :  { %8723 = vmatmul.msk.f32.gmra.mxu2 %vm2118_vm2, %v12919_v56  ;;  %8787 = vmatmul.msk.f32.gmra.mxu3 %vm2118_vm2, %v12849_v44 }
 0xa6c   :  { %v5076_v29 = vpop.f32.mrf.mxu2  ;;  %v5477_v61 = vpop.f32.mrf.mxu3 }
 0xa6d   :  { %v12925_v39 = vadd.f32 %v5477_v61, %v5076_v29 }
 0xa6f   :  { %14611 = vst [vmem:[#allocation304_spill] sm:$0xff] %v12925_v39 }
 0xa71   :  { %8724 = vmatmul.msk.f32.gmra.mxu2 %vm2118_vm2, %v12927_v3  ;;  %8788 = vmatmul.msk.f32.gmra.mxu3 %vm2118_vm2, %v12863_v38  ;;  %v4780_v38 = vld [vmem:[#allocation2 + $0x1f0] sm:$0xff] }
 0xa74   :  { %v5079_v47 = vpop.f32.mrf.mxu2  ;;  %v5480_v12 = vpop.f32.mrf.mxu3 }
 0xa75   :  { %v12933_v31 = vadd.f32 %v5480_v12, %v5079_v47 }
 0xa77   :  { %14613 = vst [vmem:[#allocation306_spill] sm:$0xff] %v12933_v31 }
 0xa79   :  { %8725 = vmatmul.msk.f32.gmra.mxu2 %vm2118_vm2, %v12935_v4  ;;  %8789 = vmatmul.msk.f32.gmra.mxu3 %vm2118_vm2, %v12871_v35 }
 0xa7c   :  { %v5082_v29 = vpop.f32.mrf.mxu2  ;;  %v5483_v61 = vpop.f32.mrf.mxu3 }
 0xa7d   :  { %v12941_v39 = vadd.f32 %v5483_v61, %v5082_v29  ;;  %v4781_v61 = vld [vmem:[#allocation2 + $0x1f8] sm:$0xff] }
 0xa7f   :  { %14615 = vst [vmem:[#allocation308_spill] sm:$0xff] %v12941_v39 }
 0xa81   :  { %8726 = vmatmul.msk.f32.gmra.mxu2 %vm2118_vm2, %v4779_v49  ;;  %8790 = vmatmul.msk.f32.gmra.mxu3 %vm2118_vm2, %v12879_v1 }
 0xa84   :  { %v5085_v47 = vpop.f32.mrf.mxu2  ;;  %v5486_v12 = vpop.f32.mrf.mxu3 }
 0xa85   :  { %v12946_v31 = vadd.f32 %v5486_v12, %v5085_v47  ;;  %v4782_v12 = vld [vmem:[#allocation2 + $0x200] sm:$0xff] }
 0xa87   :  { %14616 = vst [vmem:[#allocation309_spill] sm:$0xff] %v12946_v31 }
 0xa89   :  { %8727 = vmatmul.msk.f32.gmra.mxu2 %vm2118_vm2, %v4780_v38  ;;  %8791 = vmatmul.msk.f32.gmra.mxu3 %vm2118_vm2, %v12887_v6 }
 0xa8c   :  { %v5088_v35 = vpop.f32.mrf.mxu2  ;;  %v5489_v60 = vpop.f32.mrf.mxu3 }
 0xa8d   :  { %v12951_v29 = vadd.f32 %v5489_v60, %v5088_v35  ;;  %v4783_v60 = vld [vmem:[#allocation2 + $0x208] sm:$0xff] }
 0xa8f   :  { %14617 = vst [vmem:[#allocation310_spill] sm:$0xff] %v12951_v29 }
 0xa91   :  { %8728 = vmatmul.msk.f32.gmra.mxu2 %vm2118_vm2, %v4781_v61  ;;  %8792 = vmatmul.msk.f32.gmra.mxu3 %vm2118_vm2, %v12895_v36 }
 0xa94   :  { %v5091_v39 = vpop.f32.mrf.mxu2  ;;  %v5492_v1 = vpop.f32.mrf.mxu3 }
 0xa95   :  { %v12956_v47 = vadd.f32 %v5492_v1, %v5091_v39  ;;  %v4784_v1 = vld [vmem:[#allocation2 + $0x210] sm:$0xff] }
 0xa97   :  { %14618 = vst [vmem:[#allocation311_spill] sm:$0xff] %v12956_v47 }
 0xa99   :  { %8729 = vmatmul.msk.f32.gmra.mxu2 %vm2118_vm2, %v4782_v12  ;;  %8793 = vmatmul.msk.f32.gmra.mxu3 %vm2118_vm2, %v12903_v63 }
 0xa9c   :  { %v5094_v31 = vpop.f32.mrf.mxu2  ;;  %v5495_v6 = vpop.f32.mrf.mxu3 }
 0xa9d   :  { %v12961_v35 = vadd.f32 %v5495_v6, %v5094_v31  ;;  %v4785_v6 = vld [vmem:[#allocation2 + $0x218] sm:$0xff] }
 0xa9f   :  { %14619 = vst [vmem:[#allocation312_spill] sm:$0xff] %v12961_v35 }
 0xaa1   :  { %8730 = vmatmul.msk.f32.gmra.mxu2 %vm2118_vm2, %v4783_v60  ;;  %8794 = vmatmul.msk.f32.gmra.mxu3 %vm2118_vm2, %v12911_v22 }
 0xaa4   :  { %v5097_v29 = vpop.f32.mrf.mxu2  ;;  %v5498_v36 = vpop.f32.mrf.mxu3 }
 0xaa5   :  { %v12966_v39 = vadd.f32 %v5498_v36, %v5097_v29  ;;  %v4786_v29 = vld [vmem:[#allocation2 + $0x220] sm:$0xff] }
 0xaa7   :  { %14620 = vst [vmem:[#allocation313_spill] sm:$0xff] %v12966_v39 }
 0xaa9   :  { %8731 = vmatmul.msk.f32.gmra.mxu2 %vm2118_vm2, %v4784_v1  ;;  %8795 = vmatmul.msk.f32.gmra.mxu3 %vm2118_vm2, %v12919_v56 }
 0xaac   :  { %v5100_v47 = vpop.f32.mrf.mxu2  ;;  %v5501_v63 = vpop.f32.mrf.mxu3 }
 0xaad   :  { %v12971_v31 = vadd.f32 %v5501_v63, %v5100_v47  ;;  %v4787_v47 = vld [vmem:[#allocation2 + $0x228] sm:$0xff] }
 0xaaf   :  { %14621 = vst [vmem:[#allocation314_spill] sm:$0xff] %v12971_v31 }
 0xab1   :  { %8732 = vmatmul.msk.f32.gmra.mxu2 %vm2118_vm2, %v4785_v6  ;;  %8796 = vmatmul.msk.f32.gmra.mxu3 %vm2118_vm2, %v12927_v3 }
 0xab4   :  { %v5103_v35 = vpop.f32.mrf.mxu2  ;;  %v5504_v22 = vpop.f32.mrf.mxu3 }
 0xab5   :  { %v12976_v36 = vadd.f32 %v5504_v22, %v5103_v35  ;;  %v4788_v22 = vld [vmem:[#allocation2 + $0x240] sm:$0xff] }
 0xab7   :  { %14622 = vst [vmem:[#allocation315_spill] sm:$0xff] %v12976_v36 }
 0xab9   :  { %8733 = vmatmul.msk.f32.gmra.mxu2 %vm2118_vm2, %v4786_v29  ;;  %8797 = vmatmul.msk.f32.gmra.mxu3 %vm2118_vm2, %v12935_v4 }
 0xabc   :  { %v5106_v39 = vpop.f32.mrf.mxu2  ;;  %v5507_v56 = vpop.f32.mrf.mxu3 }
 0xabd   :  { %v12981_v63 = vadd.f32 %v5507_v56, %v5106_v39  ;;  %v4789_v56 = vld [vmem:[#allocation2 + $0x248] sm:$0xff] }
 0xabf   :  { %14623 = vst [vmem:[#allocation316_spill] sm:$0xff] %v12981_v63 }
 0xac1   :  { %8734 = vmatmul.msk.f32.gmra.mxu2 %vm2118_vm2, %v4787_v47  ;;  %8798 = vmatmul.msk.f32.gmra.mxu3 %vm2118_vm2, %v4779_v49 }
 0xac4   :  { %v5109_v31 = vpop.f32.mrf.mxu2  ;;  %v5510_v3 = vpop.f32.mrf.mxu3 }
 0xac5   :  { %v12985_v51 = vadd.f32 %v5510_v3, %v5109_v31  ;;  %v4790_v3 = vld [vmem:[#allocation2 + $0x250] sm:$0xff] }
 0xac7   :  { %14624 = vst [vmem:[#allocation317_spill] sm:$0xff] %v12985_v51 }
 0xac9   :  { %8735 = vmatmul.msk.f32.gmra.mxu2 %vm2118_vm2, %v4788_v22  ;;  %8799 = vmatmul.msk.f32.gmra.mxu3 %vm2118_vm2, %v4780_v38 }
 0xacc   :  { %v5112_v35 = vpop.f32.mrf.mxu2  ;;  %v5513_v36 = vpop.f32.mrf.mxu3 }
 0xacd   :  { %v12989_v4 = vadd.f32 %v5513_v36, %v5112_v35  ;;  %v4791_v36 = vld [vmem:[#allocation2 + $0x258] sm:$0xff] }
 0xacf   :  { %14625 = vst [vmem:[#allocation318_spill] sm:$0xff] %v12989_v4 }
 0xad1   :  { %8736 = vmatmul.msk.f32.gmra.mxu2 %vm2118_vm2, %v4789_v56  ;;  %8800 = vmatmul.msk.f32.gmra.mxu3 %vm2118_vm2, %v4781_v61 }
 0xad4   :  { %v5115_v39 = vpop.f32.mrf.mxu2  ;;  %v5516_v49 = vpop.f32.mrf.mxu3 }
 0xad5   :  { %v12993_v63 = vadd.f32 %v5516_v49, %v5115_v39  ;;  %v4792_v39 = vld [vmem:[#allocation2 + $0x260] sm:$0xff] }
 0xad7   :  { %14626 = vst [vmem:[#allocation319_spill] sm:$0xff] %v12993_v63 }
 0xad9   :  { %8737 = vmatmul.msk.f32.gmra.mxu2 %vm2118_vm2, %v4790_v3  ;;  %8801 = vmatmul.msk.f32.gmra.mxu3 %vm2118_vm2, %v4782_v12 }
 0xadc   :  { %v5118_v31 = vpop.f32.mrf.mxu2  ;;  %v5519_v38 = vpop.f32.mrf.mxu3 }
 0xadd   :  { %v12997_v51 = vadd.f32 %v5519_v38, %v5118_v31  ;;  %v4793_v31 = vld [vmem:[#allocation2 + $0x268] sm:$0xff] }
 0xadf   :  { %14627 = vst [vmem:[#allocation320_spill] sm:$0xff] %v12997_v51 }
 0xae1   :  { %8738 = vmatmul.msk.f32.gmra.mxu2 %vm2118_vm2, %v4791_v36  ;;  %8802 = vmatmul.msk.f32.gmra.mxu3 %vm2118_vm2, %v4783_v60 }
 0xae4   :  { %v5121_v35 = vpop.f32.mrf.mxu2  ;;  %v5522_v61 = vpop.f32.mrf.mxu3 }
 0xae5   :  { %v13001_v4 = vadd.f32 %v5522_v61, %v5121_v35  ;;  %v4794_v35 = vld [vmem:[#allocation2 + $0x270] sm:$0xff] }
 0xae7   :  { %14628 = vst [vmem:[#allocation321_spill] sm:$0xff] %v13001_v4 }
 0xae9   :  { %8739 = vmatmul.msk.f32.gmra.mxu2 %vm2118_vm2, %v4792_v39  ;;  %8803 = vmatmul.msk.f32.gmra.mxu3 %vm2118_vm2, %v4784_v1 }
 0xaec   :  { %v5124_v49 = vpop.f32.mrf.mxu2  ;;  %v5525_v12 = vpop.f32.mrf.mxu3 }
 0xaed   :  { %v13005_v63 = vadd.f32 %v5525_v12, %v5124_v49  ;;  %v4795_v49 = vld [vmem:[#allocation2 + $0x278] sm:$0xff] }
 0xaef   :  { %14629 = vst [vmem:[#allocation322_spill] sm:$0xff] %v13005_v63 }
 0xaf1   :  { %8740 = vmatmul.msk.f32.gmra.mxu2 %vm2118_vm2, %v4793_v31  ;;  %8804 = vmatmul.msk.f32.gmra.mxu3 %vm2118_vm2, %v4785_v6 }
 0xaf4   :  { %v5127_v38 = vpop.f32.mrf.mxu2  ;;  %v5528_v60 = vpop.f32.mrf.mxu3 }
 0xaf5   :  { %v13009_v51 = vadd.f32 %v5528_v60, %v5127_v38  ;;  %v4796_v38 = vld [vmem:[#allocation2 + $0x290] sm:$0xff] }
 0xaf7   :  { %14630 = vst [vmem:[#allocation323_spill] sm:$0xff] %v13009_v51 }
 0xaf9   :  { %8741 = vmatmul.msk.f32.gmra.mxu2 %vm2118_vm2, %v4794_v35  ;;  %8805 = vmatmul.msk.f32.gmra.mxu3 %vm2118_vm2, %v4786_v29 }
 0xafc   :  { %v5130_v61 = vpop.f32.mrf.mxu2  ;;  %v5531_v1 = vpop.f32.mrf.mxu3 }
 0xafd   :  { %v13013_v4 = vadd.f32 %v5531_v1, %v5130_v61  ;;  %v4797_v61 = vld [vmem:[#allocation2 + $0x298] sm:$0xff] }
 0xaff   :  { %14631 = vst [vmem:[#allocation324_spill] sm:$0xff] %v13013_v4 }
 0xb01   :  { %8742 = vmatmul.msk.f32.gmra.mxu2 %vm2118_vm2, %v4795_v49  ;;  %8806 = vmatmul.msk.f32.gmra.mxu3 %vm2118_vm2, %v4787_v47 }
 0xb04   :  { %v5133_v12 = vpop.f32.mrf.mxu2  ;;  %v5534_v6 = vpop.f32.mrf.mxu3 }
 0xb05   :  { %v13017_v63 = vadd.f32 %v5534_v6, %v5133_v12  ;;  %v4798_v12 = vld [vmem:[#allocation2 + $0x2a0] sm:$0xff] }
 0xb09   :  { %8743 = vmatmul.msk.f32.gmra.mxu2 %vm2118_vm2, %v4796_v38  ;;  %8807 = vmatmul.msk.f32.gmra.mxu3 %vm2118_vm2, %v4788_v22 }
 0xb0c   :  { %v5136_v60 = vpop.f32.mrf.mxu2  ;;  %v5537_v29 = vpop.f32.mrf.mxu3 }
 0xb0d   :  { %v13021_v51 = vadd.f32 %v5537_v29, %v5136_v60  ;;  %v4799_v60 = vld [vmem:[#allocation2 + $0x2a8] sm:$0xff] }
 0xb11   :  { %8744 = vmatmul.msk.f32.gmra.mxu2 %vm2118_vm2, %v4797_v61  ;;  %8808 = vmatmul.msk.f32.gmra.mxu3 %vm2118_vm2, %v4789_v56 }
 0xb14   :  { %v5139_v1 = vpop.f32.mrf.mxu2  ;;  %v5540_v47 = vpop.f32.mrf.mxu3 }
 0xb15   :  { %v13025_v4 = vadd.f32 %v5540_v47, %v5139_v1  ;;  %v4800_v1 = vld [vmem:[#allocation2 + $0x2b0] sm:$0xff] }
 0xb19   :  { %8745 = vmatmul.msk.f32.gmra.mxu2 %vm2118_vm2, %v4798_v12  ;;  %8809 = vmatmul.msk.f32.gmra.mxu3 %vm2118_vm2, %v4790_v3 }
 0xb1c   :  { %v5142_v6 = vpop.f32.mrf.mxu2  ;;  %v5543_v22 = vpop.f32.mrf.mxu3 }
 0xb1d   :  { %v13029_v38 = vadd.f32 %v5543_v22, %v5142_v6  ;;  %v4801_v6 = vld [vmem:[#allocation2 + $0x2b8] sm:$0xff] }
 0xb21   :  { %8746 = vmatmul.msk.f32.gmra.mxu2 %vm2118_vm2, %v4799_v60  ;;  %8810 = vmatmul.msk.f32.gmra.mxu3 %vm2118_vm2, %v4791_v36 }
 0xb24   :  { %v5145_v29 = vpop.f32.mrf.mxu2  ;;  %v5546_v56 = vpop.f32.mrf.mxu3 }
 0xb25   :  { %v13033_v61 = vadd.f32 %v5546_v56, %v5145_v29  ;;  %v4802_v29 = vld [vmem:[#allocation2 + $0x2c0] sm:$0xff] }
 0xb29   :  { %8747 = vmatmul.msk.f32.gmra.mxu2 %vm2118_vm2, %v4800_v1  ;;  %8811 = vmatmul.msk.f32.gmra.mxu3 %vm2118_vm2, %v4792_v39 }
 0xb2c   :  { %v5148_v47 = vpop.f32.mrf.mxu2  ;;  %v5549_v3 = vpop.f32.mrf.mxu3 }
 0xb2d   :  { %v13037_v12 = vadd.f32 %v5549_v3, %v5148_v47  ;;  %v4803_v47 = vld [vmem:[#allocation2 + $0x2c8] sm:$0xff] }
 0xb31   :  { %8748 = vmatmul.msk.f32.gmra.mxu2 %vm2118_vm2, %v4801_v6  ;;  %8812 = vmatmul.msk.f32.gmra.mxu3 %vm2118_vm2, %v4793_v31 }
 0xb34   :  { %v5151_v22 = vpop.f32.mrf.mxu2  ;;  %v5552_v36 = vpop.f32.mrf.mxu3 }
 0xb35   :  { %v13041_v60 = vadd.f32 %v5552_v36, %v5151_v22  ;;  %v6143_v22 = vld [vmem:[#allocation2 + $0xa8] sm:$0xff] }
 0xb39   :  { %8749 = vmatmul.msk.f32.gmra.mxu2 %vm2118_vm2, %v4802_v29  ;;  %8813 = vmatmul.msk.f32.gmra.mxu3 %vm2118_vm2, %v4794_v35 }
 0xb3c   :  { %v5154_v56 = vpop.f32.mrf.mxu2  ;;  %v5555_v39 = vpop.f32.mrf.mxu3 }
 0xb3d   :  { %v13045_v1 = vadd.f32 %v5555_v39, %v5154_v56 }
 0xb41   :  { %8750 = vmatmul.msk.f32.gmra.mxu2 %vm2118_vm2, %v4803_v47  ;;  %8814 = vmatmul.msk.f32.gmra.mxu3 %vm2118_vm2, %v4795_v49 }
 0xb44   :  { %v5157_v3 = vpop.f32.mrf.mxu2  ;;  %v5558_v31 = vpop.f32.mrf.mxu3 }
 0xb45   :  { %v13049_v6 = vadd.f32 %v5558_v31, %v5157_v3 }
 0xb49   :  { %8883 = vmatmul.msk.f32.vlgmr.msrb.gmra.mxu2 %vm2118_vm2, %v6143_v22  ;;  %8949 = vmatmul.msk.f32.vlgmr.msrb.gmra.mxu3 %vm2118_vm2, %v12663_v16 }
 0xb4c   :  { %v5160_v35 = vpop.f32.mrf.mxu2  ;;  %v5561_v36 = vpop.f32.mrf.mxu3 }
 0xb4d   :  { %v13054_v29 = vadd.f32 %v5561_v36, %v5160_v35 }
 0xb51   :  { %8884 = vmatmul.msk.f32.gmra.mxu2 %vm2118_vm2, %v12663_v16  ;;  %8950 = vmatmul.msk.f32.gmra.mxu3 %vm2118_vm2, %v12676_v15 }
 0xb54   :  { %v5163_v49 = vpop.f32.mrf.mxu2  ;;  %v5564_v56 = vpop.f32.mrf.mxu3 }
 0xb55   :  { %v13060_v39 = vadd.f32 %v5564_v56, %v5163_v49 }
 0xb59   :  { %8885 = vmatmul.msk.f32.gmra.mxu2 %vm2118_vm2, %v12676_v15  ;;  %8951 = vmatmul.msk.f32.gmra.mxu3 %vm2118_vm2, %v12689_v45 }
 0xb5c   :  { %v5166_v47 = vpop.f32.mrf.mxu2  ;;  %v5567_v3 = vpop.f32.mrf.mxu3 }
 0xb5d   :  { %v13066_v31 = vadd.f32 %v5567_v3, %v5166_v47 }
 0xb61   :  { %8886 = vmatmul.msk.f32.gmra.mxu2 %vm2118_vm2, %v12689_v45  ;;  %8952 = vmatmul.msk.f32.gmra.mxu3 %vm2118_vm2, %v12702_v55 }
 0xb64   :  { %v5169_v16 = vpop.f32.mrf.mxu2  ;;  %v5570_v22 = vpop.f32.mrf.mxu3 }
 0xb65   :  { %v13072_v35 = vadd.f32 %v5570_v22, %v5169_v16 }
 0xb69   :  { %8887 = vmatmul.msk.f32.gmra.mxu2 %vm2118_vm2, %v12702_v55  ;;  %8953 = vmatmul.msk.f32.gmra.mxu3 %vm2118_vm2, %v12715_v37 }
 0xb6c   :  { %v5172_v15 = vpop.f32.mrf.mxu2  ;;  %v5573_v36 = vpop.f32.mrf.mxu3 }
 0xb6d   :  { %v13078_v49 = vadd.f32 %v5573_v36, %v5172_v15  ;;  %v6151_v36 = vld [vmem:[#allocation2 + $0xf8] sm:$0xff] }
 0xb71   :  { %8888 = vmatmul.msk.f32.gmra.mxu2 %vm2118_vm2, %v12715_v37  ;;  %8954 = vmatmul.msk.f32.gmra.mxu3 %vm2118_vm2, %v12725_v34 }
 0xb74   :  { %v5175_v45 = vpop.f32.mrf.mxu2  ;;  %v5576_v56 = vpop.f32.mrf.mxu3 }
 0xb75   :  { %v13084_v47 = vadd.f32 %v5576_v56, %v5175_v45 }
 0xb79   :  { %8889 = vmatmul.msk.f32.gmra.mxu2 %vm2118_vm2, %v12725_v34  ;;  %8955 = vmatmul.msk.f32.gmra.mxu3 %vm2118_vm2, %v12735_v27  ;;  %v7616_v34 = vld [vmem:[%s14287_s5 + $0x18] sm:$0xff] }
 0xb7a   :  { %7675 = vmatpush.msra.mxu3 %v7616_v34 }
 0xb7c   :  { %v5178_v55 = vpop.f32.mrf.mxu2  ;;  %v5579_v3 = vpop.f32.mrf.mxu3 }
 0xb7d   :  { %v13090_v16 = vadd.f32 %v5579_v3, %v5178_v55 }
 0xb81   :  { %8890 = vmatmul.msk.f32.gmra.mxu2 %vm2118_vm2, %v12735_v27  ;;  %8956 = vmatmul.msk.f32.gmra.mxu3 %vm2118_vm2, %v12744_v50  ;;  %v9028_v50 = vld [vmem:[%s14287_s5 + $0x98] sm:$0xff] }
 0xb82   :  { %7652 = vmatpush.msra.mxu1 %v9028_v50 }
 0xb84   :  { %v5181_v37 = vpop.f32.mrf.mxu2  ;;  %v5582_v22 = vpop.f32.mrf.mxu3 }
 0xb85   :  { %v13096_v15 = vadd.f32 %v5582_v22, %v5181_v37  ;;  %v9040_v22 = vld [vmem:[%s14287_s5 + $0xd8] sm:$0xff] }
 0xb86   :  { %7754 = vmatpush.msra.mxu2 %v9040_v22 }
 0xb89   :  { %8891 = vmatmul.msk.f32.gmra.mxu2 %vm2118_vm2, %v6151_v36  ;;  %8957 = vmatmul.msk.f32.gmra.mxu3 %vm2118_vm2, %v12753_v0 }
 0xb8c   :  { %v5184_v45 = vpop.f32.mrf.mxu2  ;;  %v5585_v27 = vpop.f32.mrf.mxu3 }
 0xb8d   :  { %v13104_v56 = vadd.f32 %v5585_v27, %v5184_v45 }
 0xb91   :  { %8892 = vmatmul.msk.f32.gmra.mxu2 %vm2118_vm2, %v12753_v0  ;;  %8958 = vmatmul.msk.f32.gmra.mxu3 %vm2118_vm2, %v12761_v40 }
 0xb94   :  { %v5187_v55 = vpop.f32.mrf.mxu2  ;;  %v5588_v3 = vpop.f32.mrf.mxu3 }
 0xb95   :  { %v13113_v37 = vadd.f32 %v5588_v3, %v5187_v55 }
 0xb99   :  { %8893 = vmatmul.msk.f32.gmra.mxu2 %vm2118_vm2, %v12761_v40  ;;  %8959 = vmatmul.msk.f32.gmra.mxu3 %vm2118_vm2, %v12769_v59 }
 0xb9c   :  { %v5190_v34 = vpop.f32.mrf.mxu2  ;;  %v5591_v0 = vpop.f32.mrf.mxu3 }
 0xb9d   :  { %v13122_v36 = vadd.f32 %v5591_v0, %v5190_v34 }
 0xba1   :  { %8894 = vmatmul.msk.f32.gmra.mxu2 %vm2118_vm2, %v12769_v59  ;;  %8960 = vmatmul.msk.f32.gmra.mxu3 %vm2118_vm2, %v12777_v58 }
 0xba4   :  { %v5193_v45 = vpop.f32.mrf.mxu2  ;;  %v5594_v27 = vpop.f32.mrf.mxu3 }
 0xba5   :  { %v13128_v50 = vadd.f32 %v5594_v27, %v5193_v45 }
 0xba9   :  { %8895 = vmatmul.msk.f32.gmra.mxu2 %vm2118_vm2, %v12777_v58  ;;  %8961 = vmatmul.msk.f32.gmra.mxu3 %vm2118_vm2, %v12785_v33 }
 0xbac   :  { %v5196_v40 = vpop.f32.mrf.mxu2  ;;  %v5597_v55 = vpop.f32.mrf.mxu3 }
 0xbad   :  { %v13134_v3 = vadd.f32 %v5597_v55, %v5196_v40  ;;  %v6159_v55 = vld [vmem:[#allocation2 + $0x148] sm:$0xff] }
 0xbb1   :  { %8896 = vmatmul.msk.f32.gmra.mxu2 %vm2118_vm2, %v12785_v33  ;;  %8962 = vmatmul.msk.f32.gmra.mxu3 %vm2118_vm2, %v12793_v19 }
 0xbb4   :  { %v5199_v59 = vpop.f32.mrf.mxu2  ;;  %v5600_v22 = vpop.f32.mrf.mxu3 }
 0xbb5   :  { %v13140_v34 = vadd.f32 %v5600_v22, %v5199_v59  ;;  %v4548_v59 = vadd.f32 %v11188_v11, %v11960_v9  ;;  %v4551_v11 = vadd.f32 %v11200_v8, %v11974_v17  ;;  %v4554_v8 = vadd.f32 %v11209_v10, %v11988_v43 }
 0xbb6   :  { %v4557_v10 = vadd.f32 %v11219_v28, %v12002_v48  ;;  %v14634_v28 = vld [vmem:[#allocation117_spill] sm:$0xff]  ;;  %v14635_v48 = vld [vmem:[#allocation38_spill] sm:$0xff] }
 0xbb9   :  { %8897 = vmatmul.msk.f32.gmra.mxu2 %vm2118_vm2, %v12793_v19  ;;  %8963 = vmatmul.msk.f32.gmra.mxu3 %vm2118_vm2, %v12801_v26  ;;  %v3679_v19 = vadd.f32 %v11958_v18, %v10552_v13  ;;  %v3682_v13 = vadd.f32 %v11972_v54, %v10600_v62  ;;  %v3685_v62 = vadd.f32 %v11986_v14, %v10624_v46 }
 0xbba   :  { %v3688_v46 = vadd.f32 %v12000_v5, %v10648_v52  ;;  %v14632_v52 = vld [vmem:[#allocation4_spill] sm:$0xff] }
 0xbbb   :  { %v6079_v18 = vadd.f32 %v12032_v53, %v3682_v13  ;;  %v6080_v54 = vadd.f32 %v12046_v57, %v3685_v62  ;;  %v14636_v13 = vld [vmem:[#allocation126_spill] sm:$0xff] }
 0xbbc   :  { %v5202_v58 = vpop.f32.mrf.mxu2  ;;  %v5603_v0 = vpop.f32.mrf.mxu3  ;;  %v6081_v14 = vadd.f32 %v12059_v41, %v3688_v46 }
 0xbbd   :  { %v13146_v45 = vadd.f32 %v5603_v0, %v5202_v58 }
 0xbc1   :  { %8898 = vmatmul.msk.f32.gmra.mxu2 %vm2118_vm2, %v12801_v26  ;;  %8964 = vmatmul.msk.f32.gmra.mxu3 %vm2118_vm2, %v12809_v24  ;;  %v6078_v24 = vadd.f32 %v12018_v42, %v3679_v19 }
 0xbc4   :  { %v5205_v33 = vpop.f32.mrf.mxu2  ;;  %v5606_v27 = vpop.f32.mrf.mxu3 }
 0xbc5   :  { %v13152_v40 = vadd.f32 %v5606_v27, %v5205_v33 }
 0xbc9   :  { %8899 = vmatmul.msk.f32.gmra.mxu2 %vm2118_vm2, %v6159_v55  ;;  %8965 = vmatmul.msk.f32.gmra.mxu3 %vm2118_vm2, %v12817_v25 }
 0xbcc   :  { %v6419_v26 = vpop.f32.mrf.mxu2  ;;  %v6952_v22 = vpop.f32.mrf.mxu3 }
 0xbcd   :  { %v6611_v58 = vadd.f32 %v6419_v26, %v4548_v59  ;;  %v7144_v0 = vadd.f32 %v6952_v22, %v12759_v7 }
 0xbcf   :  { %v7208_v33 = vadd.f32 %v6611_v58, %v6078_v24 }
 0xbd1   :  { %v13163_v27 = vadd.f32 %v7208_v33, %v7144_v0  ;;  %8900 = vmatmul.msk.f32.gmra.mxu2 %vm2118_vm2, %v12817_v25  ;;  %8966 = vmatmul.msk.f32.gmra.mxu3 %vm2118_vm2, %v12825_v23  ;;  %v4560_v0 = vadd.f32 %v14635_v48, %v14634_v28 }
 0xbd4   :  { %v6422_v9 = vpop.f32.mrf.mxu2  ;;  %v6955_v42 = vpop.f32.mrf.mxu3 }
 0xbd5   :  { %v6612_v7 = vadd.f32 %v6422_v9, %v4551_v11  ;;  %v7145_v55 = vadd.f32 %v6955_v42, %v12767_v21  ;;  %v14637_v9 = vld [vmem:[#allocation280_spill] sm:$0xff] }
 0xbd7   :  { %v7209_v19 = vadd.f32 %v6612_v7, %v6079_v18 }
 0xbd9   :  { %v13175_v59 = vadd.f32 %v7209_v19, %v7145_v55  ;;  %8901 = vmatmul.msk.f32.gmra.mxu2 %vm2118_vm2, %v12825_v23  ;;  %8967 = vmatmul.msk.f32.gmra.mxu3 %vm2118_vm2, %v12833_v20  ;;  %v14639_v55 = vld [vmem:[#allocation5_spill] sm:$0xff]  ;;  %v14640_v19 = vld [vmem:[#allocation118_spill] sm:$0xff] }
 0xbda   :  { %v3694_v62 = vadd.f32 %v14640_v19, %v14639_v55  ;;  %v14655_v19 = vld [vmem:[#allocation123_spill] sm:$0xff] }
 0xbdc   :  { %v6425_v17 = vpop.f32.mrf.mxu2  ;;  %v6958_v53 = vpop.f32.mrf.mxu3 }
 0xbdd   :  { %v6613_v25 = vadd.f32 %v6425_v17, %v4554_v8  ;;  %v7146_v21 = vadd.f32 %v6958_v53, %v12775_v30  ;;  %v14641_v8 = vld [vmem:[#allocation119_spill] sm:$0xff] }
 0xbde   :  { %v14642_v17 = vld [vmem:[#allocation39_spill] sm:$0xff] }
 0xbdf   :  { %v7210_v26 = vadd.f32 %v6613_v25, %v6080_v54  ;;  %v4563_v53 = vadd.f32 %v14642_v17, %v14641_v8 }
 0xbe1   :  { %v13187_v22 = vadd.f32 %v7210_v26, %v7146_v21  ;;  %8902 = vmatmul.msk.f32.gmra.mxu2 %vm2118_vm2, %v12833_v20  ;;  %8968 = vmatmul.msk.f32.gmra.mxu3 %vm2118_vm2, %v12841_v32  ;;  %v14633_v20 = vld [vmem:[#allocation116_spill] sm:$0xff]  ;;  %v14643_v21 = vld [vmem:[#allocation129_spill] sm:$0xff] }
 0xbe2   :  { %v3691_v5 = vadd.f32 %v14633_v20, %v14632_v52  ;;  %v6083_v26 = vadd.f32 %v14643_v21, %v3694_v62  ;;  %v14648_v52 = vld [vmem:[#allocation121_spill] sm:$0xff]  ;;  %v14649_v20 = vld [vmem:[#allocation40_spill] sm:$0xff] }
 0xbe3   :  { %v14656_v62 = vld [vmem:[#allocation41_spill] sm:$0xff] }
 0xbe4   :  { %v6428_v43 = vpop.f32.mrf.mxu2  ;;  %v6961_v57 = vpop.f32.mrf.mxu3  ;;  %v6082_v11 = vadd.f32 %v14636_v13, %v3691_v5  ;;  %v4566_v5 = vadd.f32 %v14649_v20, %v14648_v52  ;;  %v14651_v13 = vld [vmem:[#allocation282_spill] sm:$0xff]  ;;  %v4569_v8 = vadd.f32 %v14656_v62, %v14655_v19  ;;  %v14662_v52 = vld [vmem:[#allocation125_spill] sm:$0xff]  ;;  %v14668_v62 = vld [vmem:[#allocation127_spill] sm:$0xff] }
 0xbe5   :  { %v6614_v23 = vadd.f32 %v6428_v43, %v4557_v10  ;;  %v7147_v30 = vadd.f32 %v6961_v57, %v12783_v2  ;;  %v14644_v10 = vld [vmem:[#allocation281_spill] sm:$0xff]  ;;  %v14663_v20 = vld [vmem:[#allocation42_spill] sm:$0xff] }
 0xbe6   :  { %v14667_v19 = vld [vmem:[#allocation9_spill] sm:$0xff] }
 0xbe7   :  { %v7211_v24 = vadd.f32 %v6614_v23, %v6081_v14  ;;  %v14646_v23 = vld [vmem:[#allocation6_spill] sm:$0xff] }
 0xbe9   :  { %v13199_v58 = vadd.f32 %v7211_v24, %v7147_v30  ;;  %8903 = vmatmul.msk.f32.gmra.mxu2 %vm2118_vm2, %v12841_v32  ;;  %8969 = vmatmul.msk.f32.gmra.mxu3 %vm2118_vm2, %v12849_v44  ;;  %v14638_v32 = vld [vmem:[#allocation289_spill] sm:$0xff]  ;;  %v14647_v30 = vld [vmem:[#allocation120_spill] sm:$0xff] }
 0xbea   :  { %v3697_v24 = vadd.f32 %v14647_v30, %v14646_v23  ;;  %v14660_v23 = vld [vmem:[#allocation8_spill] sm:$0xff] }
 0xbeb   :  { %v14661_v30 = vld [vmem:[#allocation124_spill] sm:$0xff] }
 0xbec   :  { %v6431_v33 = vpop.f32.mrf.mxu2  ;;  %v6964_v41 = vpop.f32.mrf.mxu3 }
 0xbed   :  { %v6615_v2 = vadd.f32 %v6431_v33, %v4560_v0  ;;  %v7148_v42 = vadd.f32 %v6964_v41, %v14637_v9  ;;  %v14650_v0 = vld [vmem:[#allocation132_spill] sm:$0xff] }
 0xbee   :  { %v6084_v33 = vadd.f32 %v14650_v0, %v3697_v24  ;;  %v3703_v24 = vadd.f32 %v14661_v30, %v14660_v23  ;;  %v14672_v30 = vld [vmem:[#allocation285_spill] sm:$0xff] }
 0xbef   :  { %v7212_v18 = vadd.f32 %v6615_v2, %v6082_v11 }
 0xbf1   :  { %v13211_v7 = vadd.f32 %v7212_v18, %v7148_v42  ;;  %8904 = vmatmul.msk.f32.gmra.mxu2 %vm2118_vm2, %v12849_v44  ;;  %8970 = vmatmul.msk.f32.gmra.mxu3 %vm2118_vm2, %v14638_v32  ;;  %v14645_v44 = vld [vmem:[#allocation291_spill] sm:$0xff]  ;;  %v14652_v42 = vld [vmem:[#allocation293_spill] sm:$0xff] }
 0xbf2   :  { %v14653_v18 = vld [vmem:[#allocation7_spill] sm:$0xff] }
 0xbf4   :  { %v6434_v54 = vpop.f32.mrf.mxu2  ;;  %v6967_v25 = vpop.f32.mrf.mxu3 }
 0xbf5   :  { %v6616_v46 = vadd.f32 %v6434_v54, %v4563_v53  ;;  %v7149_v43 = vadd.f32 %v6967_v25, %v14644_v10  ;;  %v14657_v54 = vld [vmem:[#allocation135_spill] sm:$0xff] }
 0xbf7   :  { %v7213_v57 = vadd.f32 %v6616_v46, %v6083_v26  ;;  %v14658_v26 = vld [vmem:[#allocation283_spill] sm:$0xff] }
 0xbf9   :  { %v13223_v14 = vadd.f32 %v7213_v57, %v7149_v43  ;;  %8905 = vmatmul.msk.f32.gmra.mxu2 %vm2118_vm2, %v14638_v32  ;;  %8971 = vmatmul.msk.f32.gmra.mxu3 %vm2118_vm2, %v14645_v44  ;;  %v14654_v32 = vld [vmem:[#allocation122_spill] sm:$0xff] }
 0xbfa   :  { %v3700_v55 = vadd.f32 %v14654_v32, %v14653_v18  ;;  %v6167_v43 = vld [vmem:[#allocation2 + $0x198] sm:$0xff] }
 0xbfc   :  { %v6437_v28 = vpop.f32.mrf.mxu2  ;;  %v6970_v48 = vpop.f32.mrf.mxu3  ;;  %v6085_v25 = vadd.f32 %v14657_v54, %v3700_v55  ;;  %v14666_v55 = vld [vmem:[#allocation297_spill] sm:$0xff] }
 0xbfd   :  { %v6617_v41 = vadd.f32 %v6437_v28, %v4566_v5  ;;  %v7150_v11 = vadd.f32 %v6970_v48, %v14651_v13  ;;  %v4572_v5 = vadd.f32 %v14663_v20, %v14662_v52  ;;  %v13259_v28 = vld [vmem:[%s14286_s4] ss:$0 sm:$0xff] }
 0xbfe   :  { %v7341_v20 = vadd.f32 %v13259_v28, %v13175_v59  ;;  %v14677_v59 = vld [vmem:[#allocation44_spill] sm:$0xff] }
 0xbff   :  { %v7214_v2 = vadd.f32 %v6617_v41, %v6084_v33  ;;  %v14664_v33 = vld [vmem:[#allocation138_spill] sm:$0xff] }
 0xc00   :  { %v6086_v41 = vadd.f32 %v14664_v33, %v3703_v24 }
 0xc01   :  { %v13235_v9 = vadd.f32 %v7214_v2, %v7150_v11  ;;  %8906 = vmatmul.msk.f32.gmra.mxu2 %vm2118_vm2, %v14645_v44  ;;  %8972 = vmatmul.msk.f32.gmra.mxu3 %vm2118_vm2, %v14652_v42  ;;  %v14659_v44 = vld [vmem:[#allocation295_spill] sm:$0xff]  ;;  %v14665_v11 = vld [vmem:[#allocation284_spill] sm:$0xff]  ;;  %v7340_v42 = vadd.f32 %v13259_v28, %v13163_v27  ;;  %v7615_v27 = vld [vmem:[%s14287_s5 + $0x10] sm:$0xff] }
 0xc02   :  { %7676 = vmatpush.msra.mxu3 %v7615_v27 }
 0xc04   :  { %v6440_v17 = vpop.f32.mrf.mxu2  ;;  %v6973_v53 = vpop.f32.mrf.mxu3 }
 0xc05   :  { %v6618_v21 = vadd.f32 %v6440_v17, %v4569_v8  ;;  %v7151_v46 = vadd.f32 %v6973_v53, %v14658_v26  ;;  %v3706_v8 = vadd.f32 %v14668_v62, %v14667_v19  ;;  %v14669_v17 = vld [vmem:[#allocation128_spill] sm:$0xff]  ;;  %v14670_v53 = vld [vmem:[#allocation43_spill] sm:$0xff]  ;;  %v7405_v19 = vmax.f32 %v7341_v20, 0.0 }
 0xc06   :  { %v4575_v54 = vadd.f32 %v14670_v53, %v14669_v17 }
 0xc07   :  { %v7215_v10 = vadd.f32 %v6618_v21, %v6085_v25  ;;  %v7404_v25 = vmax.f32 %v7340_v42, 0.0 }
 0xc09   :  { %v13247_v57 = vadd.f32 %v7215_v10, %v7151_v46  ;;  %8907 = vmatmul.msk.f32.gmra.mxu2 %vm2118_vm2, %v6167_v43  ;;  %8973 = vmatmul.msk.f32.gmra.mxu3 %vm2118_vm2, %v14659_v44  ;;  %v14671_v10 = vld [vmem:[#allocation141_spill] sm:$0xff]  ;;  %v7469_v52 = vsel %vm7468_vm3, %v7404_v25, -inf }
 0xc0a   :  { %v6087_v43 = vadd.f32 %v14671_v10, %v3706_v8 }
 0xc0c   :  { %v6443_v48 = vpop.f32.mrf.mxu2  ;;  %v6976_v0 = vpop.f32.mrf.mxu3 }
 0xc0d   :  { %v6619_v13 = vadd.f32 %v6443_v48, %v4572_v5  ;;  %v7152_v2 = vadd.f32 %v6976_v0, %v14665_v11  ;;  %v14674_v11 = vld [vmem:[#allocation10_spill] sm:$0xff] }
 0xc0f   :  { %v7216_v18 = vadd.f32 %v6619_v13, %v6086_v41  ;;  %v14673_v41 = vld [vmem:[#allocation299_spill] sm:$0xff]  ;;  %v9027_v13 = vld [vmem:[%s14287_s5 + $0x90] sm:$0xff] }
 0xc10   :  { %7653 = vmatpush.msra.mxu1 %v9027_v13 }
 0xc11   :  { %v7280_v32 = vadd.f32 %v7216_v18, %v7152_v2  ;;  %8908 = vmatmul.msk.f32.gmra.mxu2 %vm2118_vm2, %v14659_v44  ;;  %8974 = vmatmul.msk.f32.gmra.mxu3 %vm2118_vm2, %v14666_v55  ;;  %v14675_v2 = vld [vmem:[#allocation130_spill] sm:$0xff]  ;;  %v14676_v18 = vld [vmem:[#allocation131_spill] sm:$0xff] }
 0xc12   :  { %v3709_v42 = vadd.f32 %v14675_v2, %v14674_v11 }
 0xc13   :  { %v7348_v21 = vadd.f32 %v13259_v28, %v7280_v32  ;;  %v4578_v32 = vadd.f32 %v14677_v59, %v14676_v18 }
 0xc14   :  { %v6446_v26 = vpop.f32.mrf.mxu2  ;;  %v6979_v46 = vpop.f32.mrf.mxu3 }
 0xc15   :  { %v7412_v44 = vmax.f32 %v7348_v21, 0.0  ;;  %v6620_v23 = vadd.f32 %v6446_v26, %v4575_v54  ;;  %v7153_v24 = vadd.f32 %v6979_v46, %v14672_v30  ;;  %v14679_v21 = vld [vmem:[#allocation286_spill] sm:$0xff]  ;;  %v7472_v26 = vsel %vm7468_vm3, %v7405_v19, -inf  ;;  %v14680_v30 = vld [vmem:[#allocation301_spill] sm:$0xff] }
 0xc16   :  { %v7342_v46 = vadd.f32 %v13259_v28, %v13187_v22  ;;  %v14683_v22 = vld [vmem:[#allocation134_spill] sm:$0xff] }
 0xc17   :  { %v7470_v5 = vsel %vm7468_vm3, %v7412_v44, -inf  ;;  %v7217_v48 = vadd.f32 %v6620_v23, %v6087_v43 }
 0xc18   :  { %v7471_v0 = vmax.f32 %v7469_v52, %v7470_v5  ;;  %v14682_v52 = vld [vmem:[#allocation133_spill] sm:$0xff]  ;;  %v7406_v11 = vmax.f32 %v7342_v46, 0.0  ;;  %v14688_v46 = vld [vmem:[#allocation12_spill] sm:$0xff] }
 0xc19   :  { %v7281_v33 = vadd.f32 %v7217_v48, %v7153_v24  ;;  %8909 = vmatmul.msk.f32.gmra.mxu2 %vm2118_vm2, %v14666_v55  ;;  %8975 = vmatmul.msk.f32.gmra.mxu3 %vm2118_vm2, %v14673_v41  ;;  %v14678_v55 = vld [vmem:[#allocation144_spill] sm:$0xff]  ;;  %v14681_v24 = vld [vmem:[#allocation11_spill] sm:$0xff] }
 0xc1a   :  { %v6088_v53 = vadd.f32 %v14678_v55, %v3709_v42  ;;  %v3712_v20 = vadd.f32 %v14682_v52, %v14681_v24  ;;  %v13308_v5 = vsel %vm7468_vm3, %v7471_v0, -inf  ;;  %v9039_v42 = vld [vmem:[%s14287_s5 + $0xd0] sm:$0xff]  ;;  %v14685_v0 = vld [vmem:[#allocation147_spill] sm:$0xff]  ;;  %v7475_v55 = vsel %vm7468_vm3, %v7406_v11, -inf }
 0xc1b   :  { %v7349_v62 = vadd.f32 %v13259_v28, %v7281_v33  ;;  %v14684_v33 = vld [vmem:[#allocation45_spill] sm:$0xff]  ;;  %7755 = vmatpush.msra.mxu2 %v9039_v42  ;;  %v14693_v42 = vld [vmem:[#allocation288_spill] sm:$0xff] }
 0xc1c   :  { %v6449_v8 = vpop.f32.mrf.mxu2  ;;  %v6982_v17 = vpop.f32.mrf.mxu3  ;;  %v4581_v13 = vadd.f32 %v14684_v33, %v14683_v22  ;;  %v14692_v33 = vld [vmem:[#allocation150_spill] sm:$0xff] }
 0xc1d   :  { %v7413_v54 = vmax.f32 %v7349_v62, 0.0  ;;  %v6621_v25 = vadd.f32 %v6449_v8, %v4578_v32  ;;  %v7154_v27 = vadd.f32 %v6982_v17, %v14679_v21  ;;  %v6089_v32 = vadd.f32 %v14685_v0, %v3712_v20  ;;  %v14686_v8 = vld [vmem:[#allocation287_spill] sm:$0xff] }
 0xc1f   :  { %v7473_v10 = vsel %vm7468_vm3, %v7413_v54, -inf  ;;  %v7218_v43 = vadd.f32 %v6621_v25, %v6088_v53  ;;  %v7343_v53 = vadd.f32 %v13259_v28, %v13199_v58 }
 0xc20   :  { %v7474_v44 = vmax.f32 %v7472_v26, %v7473_v10  ;;  %v14687_v26 = vld [vmem:[#allocation303_spill] sm:$0xff]  ;;  %v14689_v10 = vld [vmem:[#allocation136_spill] sm:$0xff] }
 0xc21   :  { %v7282_v23 = vadd.f32 %v7218_v43, %v7154_v27  ;;  %8910 = vmatmul.msk.f32.gmra.mxu2 %vm2118_vm2, %v14673_v41  ;;  %8976 = vmatmul.msk.f32.gmra.mxu3 %vm2118_vm2, %v14680_v30  ;;  %v3715_v43 = vadd.f32 %v14689_v10, %v14688_v46  ;;  %v7407_v52 = vmax.f32 %v7343_v53, 0.0 }
 0xc22   :  { %v13311_v48 = vsel %vm7468_vm3, %v7474_v44, -inf  ;;  %v14690_v44 = vld [vmem:[#allocation137_spill] sm:$0xff] }
 0xc23   :  { %v7567_v2 = vmax.f32 %v13308_v5, %v13311_v48  ;;  %v7350_v41 = vadd.f32 %v13259_v28, %v7282_v23  ;;  %v14691_v23 = vld [vmem:[#allocation46_spill] sm:$0xff] }
 0xc24   :  { %v6452_v18 = vpop.f32.mrf.mxu2  ;;  %v6985_v59 = vpop.f32.mrf.mxu3  ;;  %v4584_v24 = vadd.f32 %v14691_v23, %v14690_v44 }
 0xc25   :  { %v7414_v19 = vmax.f32 %v7350_v41, 0.0  ;;  %v6622_v62 = vadd.f32 %v6452_v18, %v4581_v13  ;;  %v7155_v17 = vadd.f32 %v6985_v59, %v14686_v8  ;;  %v6090_v13 = vadd.f32 %v14692_v33, %v3715_v43  ;;  %v14694_v8 = vld [vmem:[#allocation305_spill] sm:$0xff] }
 0xc26   :  { %v7478_v18 = vsel %vm7468_vm3, %v7407_v52, -inf  ;;  %v7344_v59 = vadd.f32 %v13259_v28, %v13211_v7  ;;  %v14697_v7 = vld [vmem:[#allocation140_spill] sm:$0xff] }
 0xc27   :  { %v7476_v54 = vsel %vm7468_vm3, %v7414_v19, -inf  ;;  %v7219_v25 = vadd.f32 %v6622_v62, %v6089_v32 }
 0xc28   :  { %v7477_v21 = vmax.f32 %v7475_v55, %v7476_v54  ;;  %v14696_v55 = vld [vmem:[#allocation139_spill] sm:$0xff]  ;;  %v7408_v10 = vmax.f32 %v7344_v59, 0.0 }
 0xc29   :  { %v7283_v27 = vadd.f32 %v7219_v25, %v7155_v17  ;;  %8911 = vmatmul.msk.f32.gmra.mxu2 %vm2118_vm2, %v14680_v30  ;;  %8977 = vmatmul.msk.f32.gmra.mxu3 %vm2118_vm2, %v14687_v26  ;;  %v14695_v17 = vld [vmem:[#allocation13_spill] sm:$0xff]  ;;  %v14701_v59 = vld [vmem:[#allocation307_spill] sm:$0xff] }
 0xc2a   :  { %v3718_v53 = vadd.f32 %v14696_v55, %v14695_v17  ;;  %v13349_v54 = vsel %vm7468_vm3, %v7477_v21, -inf  ;;  %v14700_v21 = vld [vmem:[#allocation290_spill] sm:$0xff]  ;;  %v7481_v33 = vsel %vm7468_vm3, %v7408_v10, -inf }
 0xc2b   :  { %v7351_v58 = vadd.f32 %v13259_v28, %v7283_v27  ;;  %v14698_v27 = vld [vmem:[#allocation47_spill] sm:$0xff] }
 0xc2c   :  { %v6455_v20 = vpop.f32.mrf.mxu2  ;;  %v6988_v22 = vpop.f32.mrf.mxu3  ;;  %v4587_v46 = vadd.f32 %v14698_v27, %v14697_v7  ;;  %v14706_v27 = vld [vmem:[#allocation156_spill] sm:$0xff] }
 0xc2d   :  { %v7415_v11 = vmax.f32 %v7351_v58, 0.0  ;;  %v6623_v41 = vadd.f32 %v6455_v20, %v4584_v24  ;;  %v7156_v30 = vadd.f32 %v6988_v22, %v14693_v42  ;;  %v14699_v24 = vld [vmem:[#allocation153_spill] sm:$0xff] }
 0xc2e   :  { %v6091_v52 = vadd.f32 %v14699_v24, %v3718_v53  ;;  %v6707_v24 = vld [vmem:[#allocation2 + $0x1d8] sm:$0xff] }
 0xc2f   :  { %v7479_v0 = vsel %vm7468_vm3, %v7415_v11, -inf  ;;  %v7220_v32 = vadd.f32 %v6623_v41, %v6090_v13  ;;  %v7345_v13 = vadd.f32 %v13259_v28, %v13223_v14 }
 0xc30   :  { %v7480_v19 = vmax.f32 %v7478_v18, %v7479_v0  ;;  %v14702_v0 = vld [vmem:[#allocation14_spill] sm:$0xff] }
 0xc31   :  { %v7284_v62 = vadd.f32 %v7220_v32, %v7156_v30  ;;  %8912 = vmatmul.msk.f32.gmra.mxu2 %vm2118_vm2, %v14687_v26  ;;  %8978 = vmatmul.msk.f32.gmra.mxu3 %vm2118_vm2, %v14694_v8  ;;  %v6173_v30 = vld [vmem:[#allocation2 + $0x1c8] sm:$0xff]  ;;  %v14703_v32 = vld [vmem:[#allocation142_spill] sm:$0xff]  ;;  %v7409_v55 = vmax.f32 %v7345_v13, 0.0 }
 0xc32   :  { %v13352_v25 = vsel %vm7468_vm3, %v7480_v19, -inf  ;;  %v3721_v19 = vadd.f32 %v14703_v32, %v14702_v0  ;;  %v14705_v8 = vld [vmem:[#allocation48_spill] sm:$0xff]  ;;  %v14711_v0 = vld [vmem:[#allocation49_spill] sm:$0xff] }
 0xc33   :  { %v7570_v43 = vmax.f32 %v13349_v54, %v13352_v25  ;;  %v7352_v26 = vadd.f32 %v13259_v28, %v7284_v62  ;;  %v14704_v62 = vld [vmem:[#allocation143_spill] sm:$0xff]  ;;  %v9045_v54 = vld [vmem:[%s14287_s5 + $0xf0] sm:$0xff] }
 0xc34   :  { %v6458_v44 = vpop.f32.mrf.mxu2  ;;  %v6991_v23 = vpop.f32.mrf.mxu3  ;;  %v4590_v17 = vadd.f32 %v14705_v8, %v14704_v62 }
 0xc35   :  { %v7416_v58 = vmax.f32 %v7352_v26, 0.0  ;;  %v6624_v20 = vadd.f32 %v6458_v44, %v4587_v46  ;;  %v7157_v22 = vadd.f32 %v6991_v23, %v14700_v21  ;;  %v6092_v46 = vadd.f32 %v14706_v27, %v3721_v19  ;;  %v14707_v44 = vld [vmem:[#allocation292_spill] sm:$0xff] }
 0xc37   :  { %v7482_v11 = vsel %vm7468_vm3, %v7416_v58, -inf  ;;  %v7221_v41 = vadd.f32 %v6624_v20, %v6091_v52  ;;  %v7484_v52 = vsel %vm7468_vm3, %v7409_v55, -inf  ;;  %v7346_v58 = vadd.f32 %v13259_v28, %v13235_v9  ;;  %v14710_v9 = vld [vmem:[#allocation146_spill] sm:$0xff] }
 0xc38   :  { %v7483_v42 = vmax.f32 %v7481_v33, %v7482_v11  ;;  %v6174_v33 = vld [vmem:[#allocation2 + $0x1d0] sm:$0xff]  ;;  %v14708_v11 = vld [vmem:[#allocation15_spill] sm:$0xff]  ;;  %v4593_v32 = vadd.f32 %v14711_v0, %v14710_v9 }
 0xc39   :  { %v7285_v18 = vadd.f32 %v7221_v41, %v7157_v22  ;;  %8913 = vmatmul.msk.f32.gmra.mxu2 %vm2118_vm2, %v6173_v30  ;;  %8979 = vmatmul.msk.f32.gmra.mxu3 %vm2118_vm2, %v14701_v59  ;;  %v14709_v41 = vld [vmem:[#allocation145_spill] sm:$0xff]  ;;  %v7410_v19 = vmax.f32 %v7346_v58, 0.0 }
 0xc3a   :  { %v3724_v30 = vadd.f32 %v14709_v41, %v14708_v11  ;;  %v6708_v58 = vld [vmem:[#allocation2 + $0x1f0] sm:$0xff] }
 0xc3b   :  { %v7353_v14 = vadd.f32 %v13259_v28, %v7285_v18  ;;  %v13384_v18 = vsel %vm7468_vm3, %v7483_v42, -inf  ;;  %v14713_v42 = vld [vmem:[#allocation294_spill] sm:$0xff] }
 0xc3c   :  { %v6461_v53 = vpop.f32.mrf.mxu2  ;;  %v6994_v7 = vpop.f32.mrf.mxu3  ;;  %v14717_v11 = vld [vmem:[#allocation50_spill] sm:$0xff] }
 0xc3d   :  { %v7417_v10 = vmax.f32 %v7353_v14, 0.0  ;;  %v6625_v26 = vadd.f32 %v6461_v53, %v4590_v17  ;;  %v7158_v23 = vadd.f32 %v6994_v7, %v14707_v44  ;;  %v14712_v14 = vld [vmem:[#allocation159_spill] sm:$0xff] }
 0xc3e   :  { %v6093_v53 = vadd.f32 %v14712_v14, %v3724_v30 }
 0xc3f   :  { %v7485_v20 = vsel %vm7468_vm3, %v7417_v10, -inf  ;;  %v7222_v21 = vadd.f32 %v6625_v26, %v6092_v46  ;;  %v7487_v10 = vsel %vm7468_vm3, %v7410_v19, -inf  ;;  %v7347_v26 = vadd.f32 %v13259_v28, %v13247_v57 }
 0xc40   :  { %v7486_v22 = vmax.f32 %v7484_v52, %v7485_v20  ;;  %v6175_v52 = vld [vmem:[#allocation2 + $0x1e8] sm:$0xff] }
 0xc41   :  { %v7286_v13 = vadd.f32 %v7222_v21, %v7158_v23  ;;  %8914 = vmatmul.msk.f32.gmra.mxu2 %vm2118_vm2, %v6174_v33  ;;  %8980 = vmatmul.msk.f32.gmra.mxu3 %vm2118_vm2, %v6707_v24  ;;  %v14714_v21 = vld [vmem:[#allocation16_spill] sm:$0xff]  ;;  %v7411_v30 = vmax.f32 %v7347_v26, 0.0 }
 0xc42   :  { %v13387_v59 = vsel %vm7468_vm3, %v7486_v22, -inf  ;;  %v14715_v22 = vld [vmem:[#allocation148_spill] sm:$0xff] }
 0xc43   :  { %v7354_v8 = vadd.f32 %v13259_v28, %v7286_v13  ;;  %v3727_v33 = vadd.f32 %v14715_v22, %v14714_v21  ;;  %v14716_v13 = vld [vmem:[#allocation149_spill] sm:$0xff]  ;;  %v14722_v21 = vld [vmem:[#allocation152_spill] sm:$0xff]  ;;  %v14723_v22 = vld [vmem:[#allocation51_spill] sm:$0xff] }
 0xc44   :  { %v6464_v17 = vpop.f32.mrf.mxu2  ;;  %v6997_v55 = vpop.f32.mrf.mxu3  ;;  %v4596_v41 = vadd.f32 %v14717_v11, %v14716_v13  ;;  %v14770_v13 = vld [vmem:[#allocation176_spill] sm:$0xff] }
 0xc45   :  { %v7418_v7 = vmax.f32 %v7354_v8, 0.0  ;;  %v6626_v27 = vadd.f32 %v6464_v17, %v4593_v32  ;;  %v7159_v46 = vadd.f32 %v6997_v55, %v14713_v42  ;;  %v14718_v32 = vld [vmem:[#allocation162_spill] sm:$0xff]  ;;  %v14719_v55 = vld [vmem:[#allocation296_spill] sm:$0xff] }
 0xc46   :  { %v6094_v19 = vadd.f32 %v14718_v32, %v3727_v33  ;;  %v4599_v33 = vadd.f32 %v14723_v22, %v14722_v21  ;;  %v6710_v32 = vld [vmem:[#allocation2 + $0x200] sm:$0xff] }
 0xc47   :  { %v7488_v44 = vsel %vm7468_vm3, %v7418_v7, -inf  ;;  %v7223_v23 = vadd.f32 %v6626_v27, %v6093_v53  ;;  %v7490_v53 = vsel %vm7468_vm3, %v7411_v30, -inf  ;;  %v14731_v21 = vld [vmem:[#allocation300_spill] sm:$0xff] }
 0xc48   :  { %v7489_v24 = vmax.f32 %v7487_v10, %v7488_v44 }
 0xc49   :  { %v7287_v20 = vadd.f32 %v7223_v23, %v7159_v46  ;;  %8915 = vmatmul.msk.f32.gmra.mxu2 %vm2118_vm2, %v6175_v52  ;;  %8981 = vmatmul.msk.f32.gmra.mxu3 %vm2118_vm2, %v6708_v58  ;;  %v6709_v46 = vld [vmem:[#allocation2 + $0x1f8] sm:$0xff]  ;;  %v14720_v23 = vld [vmem:[#allocation17_spill] sm:$0xff] }
 0xc4a   :  { %v13416_v26 = vsel %vm7468_vm3, %v7489_v24, -inf  ;;  %v14721_v52 = vld [vmem:[#allocation151_spill] sm:$0xff] }
 0xc4b   :  { %v7355_v57 = vadd.f32 %v13259_v28, %v7287_v20  ;;  %v3730_v20 = vadd.f32 %v14721_v52, %v14720_v23  ;;  %v14730_v23 = vld [vmem:[#allocation168_spill] sm:$0xff] }
 0xc4c   :  { %v6467_v9 = vpop.f32.mrf.mxu2  ;;  %v7000_v0 = vpop.f32.mrf.mxu3 }
 0xc4d   :  { %v7419_v8 = vmax.f32 %v7355_v57, 0.0  ;;  %v6627_v17 = vadd.f32 %v6467_v9, %v4596_v41  ;;  %v7160_v14 = vadd.f32 %v7000_v0, %v14719_v55  ;;  %v14725_v9 = vld [vmem:[#allocation298_spill] sm:$0xff] }
 0xc4f   :  { %v7491_v7 = vsel %vm7468_vm3, %v7419_v8, -inf  ;;  %v7224_v27 = vadd.f32 %v6627_v17, %v6094_v19  ;;  %v14726_v8 = vld [vmem:[#allocation18_spill] sm:$0xff] }
 0xc50   :  { %v7492_v42 = vmax.f32 %v7490_v53, %v7491_v7  ;;  %v14727_v17 = vld [vmem:[#allocation154_spill] sm:$0xff]  ;;  %v14729_v53 = vld [vmem:[#allocation52_spill] sm:$0xff] }
 0xc51   :  { %v13411_v10 = vadd.f32 %v7224_v27, %v7160_v14  ;;  %8916 = vmatmul.msk.f32.gmra.mxu2 %vm2118_vm2, %v6708_v58  ;;  %8982 = vmatmul.msk.f32.gmra.mxu3 %vm2118_vm2, %v6709_v46  ;;  %v14724_v58 = vld [vmem:[#allocation165_spill] sm:$0xff]  ;;  %v3733_v55 = vadd.f32 %v14727_v17, %v14726_v8  ;;  %v14728_v14 = vld [vmem:[#allocation155_spill] sm:$0xff] }
 0xc52   :  { %v13419_v44 = vsel %vm7468_vm3, %v7492_v42, -inf  ;;  %v6095_v30 = vadd.f32 %v14724_v58, %v3730_v20  ;;  %v4602_v7 = vadd.f32 %v14729_v53, %v14728_v14  ;;  %v14733_v58 = vld [vmem:[#allocation157_spill] sm:$0xff]  ;;  %v14736_v17 = vld [vmem:[#allocation171_spill] sm:$0xff]  ;;  %v14737_v53 = vld [vmem:[#allocation302_spill] sm:$0xff] }
 0xc53   :  { %v6096_v52 = vadd.f32 %v14730_v23, %v3733_v55 }
 0xc54   :  { %v6470_v11 = vpop.f32.mrf.mxu2  ;;  %v7003_v41 = vpop.f32.mrf.mxu3 }
 0xc55   :  { %v6628_v57 = vadd.f32 %v6470_v11, %v4599_v33  ;;  %v7161_v24 = vadd.f32 %v7003_v41, %v14725_v9  ;;  %v6711_v11 = vld [vmem:[#allocation2 + $0x208] sm:$0xff] }
 0xc56   :  { %v14735_v9 = vld [vmem:[#allocation53_spill] sm:$0xff] }
 0xc57   :  { %v7225_v0 = vadd.f32 %v6628_v57, %v6095_v30  ;;  %v14734_v57 = vld [vmem:[#allocation158_spill] sm:$0xff] }
 0xc59   :  { %v13429_v19 = vadd.f32 %v7225_v0, %v7161_v24  ;;  %8917 = vmatmul.msk.f32.gmra.mxu2 %vm2118_vm2, %v6709_v46  ;;  %8983 = vmatmul.msk.f32.gmra.mxu3 %vm2118_vm2, %v6710_v32  ;;  %v14732_v46 = vld [vmem:[#allocation19_spill] sm:$0xff]  ;;  %v4605_v24 = vadd.f32 %v14735_v9, %v14734_v57 }
 0xc5a   :  { %v3736_v30 = vadd.f32 %v14733_v58, %v14732_v46 }
 0xc5c   :  { %v6473_v27 = vpop.f32.mrf.mxu2  ;;  %v7006_v42 = vpop.f32.mrf.mxu3  ;;  %v6097_v55 = vadd.f32 %v14736_v17, %v3736_v30  ;;  %v14742_v30 = vld [vmem:[#allocation174_spill] sm:$0xff] }
 0xc5d   :  { %v6629_v20 = vadd.f32 %v6473_v27, %v4602_v7  ;;  %v7162_v22 = vadd.f32 %v7006_v42, %v14731_v21  ;;  %v6712_v42 = vld [vmem:[#allocation2 + $0x210] sm:$0xff]  ;;  %v6713_v17 = vld [vmem:[#allocation2 + $0x218] sm:$0xff] }
 0xc5e   :  { %v14740_v21 = vld [vmem:[#allocation161_spill] sm:$0xff] }
 0xc5f   :  { %v7226_v33 = vadd.f32 %v6629_v20, %v6096_v52  ;;  %v14739_v52 = vld [vmem:[#allocation160_spill] sm:$0xff] }
 0xc61   :  { %v13439_v41 = vadd.f32 %v7226_v33, %v7162_v22  ;;  %8918 = vmatmul.msk.f32.gmra.mxu2 %vm2118_vm2, %v6710_v32  ;;  %8984 = vmatmul.msk.f32.gmra.mxu3 %vm2118_vm2, %v6711_v11  ;;  %v14738_v32 = vld [vmem:[#allocation20_spill] sm:$0xff]  ;;  %v14741_v22 = vld [vmem:[#allocation54_spill] sm:$0xff] }
 0xc62   :  { %v3739_v20 = vadd.f32 %v14739_v52, %v14738_v32  ;;  %v4608_v33 = vadd.f32 %v14741_v22, %v14740_v21 }
 0xc64   :  { %v6476_v0 = vpop.f32.mrf.mxu2  ;;  %v7009_v8 = vpop.f32.mrf.mxu3  ;;  %v6098_v57 = vadd.f32 %v14742_v30, %v3739_v20  ;;  %v14748_v20 = vld [vmem:[#allocation177_spill] sm:$0xff] }
 0xc65   :  { %v6630_v14 = vadd.f32 %v6476_v0, %v4605_v24  ;;  %v7163_v7 = vadd.f32 %v7009_v8, %v14737_v53  ;;  %v14743_v24 = vld [vmem:[#allocation304_spill] sm:$0xff] }
 0xc67   :  { %v7227_v27 = vadd.f32 %v6630_v14, %v6097_v55  ;;  %v14745_v14 = vld [vmem:[#allocation163_spill] sm:$0xff] }
 0xc69   :  { %v13449_v23 = vadd.f32 %v7227_v27, %v7163_v7  ;;  %8919 = vmatmul.msk.f32.gmra.mxu2 %vm2118_vm2, %v6711_v11  ;;  %8985 = vmatmul.msk.f32.gmra.mxu3 %vm2118_vm2, %v6712_v42  ;;  %v14744_v11 = vld [vmem:[#allocation21_spill] sm:$0xff]  ;;  %v14746_v7 = vld [vmem:[#allocation164_spill] sm:$0xff]  ;;  %v14747_v27 = vld [vmem:[#allocation55_spill] sm:$0xff] }
 0xc6a   :  { %v3742_v53 = vadd.f32 %v14745_v14, %v14744_v11  ;;  %v4611_v32 = vadd.f32 %v14747_v27, %v14746_v7  ;;  %v14753_v11 = vld [vmem:[#allocation56_spill] sm:$0xff] }
 0xc6c   :  { %v6479_v46 = vpop.f32.mrf.mxu2  ;;  %v7012_v58 = vpop.f32.mrf.mxu3  ;;  %v6099_v22 = vadd.f32 %v14748_v20, %v3742_v53  ;;  %v14754_v53 = vld [vmem:[#allocation180_spill] sm:$0xff] }
 0xc6d   :  { %v6631_v9 = vadd.f32 %v6479_v46, %v4608_v33  ;;  %v7164_v0 = vadd.f32 %v7012_v58, %v14743_v24  ;;  %v14749_v46 = vld [vmem:[#allocation306_spill] sm:$0xff] }
 0xc6e   :  { %v14751_v24 = vld [vmem:[#allocation166_spill] sm:$0xff] }
 0xc6f   :  { %v7228_v8 = vadd.f32 %v6631_v9, %v6098_v57  ;;  %v6714_v57 = vld [vmem:[#allocation2 + $0x220] sm:$0xff] }
 0xc71   :  { %v13459_v55 = vadd.f32 %v7228_v8, %v7164_v0  ;;  %8920 = vmatmul.msk.f32.gmra.mxu2 %vm2118_vm2, %v6712_v42  ;;  %8986 = vmatmul.msk.f32.gmra.mxu3 %vm2118_vm2, %v6713_v17  ;;  %v14750_v42 = vld [vmem:[#allocation22_spill] sm:$0xff]  ;;  %v14752_v8 = vld [vmem:[#allocation167_spill] sm:$0xff] }
 0xc72   :  { %v3745_v0 = vadd.f32 %v14751_v24, %v14750_v42  ;;  %v4614_v14 = vadd.f32 %v14753_v11, %v14752_v8  ;;  %v14758_v24 = vld [vmem:[#allocation170_spill] sm:$0xff] }
 0xc74   :  { %v6482_v52 = vpop.f32.mrf.mxu2  ;;  %v7015_v21 = vpop.f32.mrf.mxu3 }
 0xc75   :  { %v6632_v33 = vadd.f32 %v6482_v52, %v4611_v32  ;;  %v7165_v58 = vadd.f32 %v7015_v21, %v14749_v46  ;;  %v6100_v32 = vadd.f32 %v14754_v53, %v3745_v0  ;;  %v14755_v21 = vld [vmem:[#allocation308_spill] sm:$0xff]  ;;  %v14759_v0 = vld [vmem:[#allocation57_spill] sm:$0xff] }
 0xc76   :  { %v4617_v8 = vadd.f32 %v14759_v0, %v14758_v24  ;;  %v14763_v24 = vld [vmem:[#allocation172_spill] sm:$0xff] }
 0xc77   :  { %v7229_v30 = vadd.f32 %v6632_v33, %v6099_v22  ;;  %v6715_v22 = vld [vmem:[#allocation2 + $0x228] sm:$0xff] }
 0xc79   :  { %v13469_v9 = vadd.f32 %v7229_v30, %v7165_v58  ;;  %8921 = vmatmul.msk.f32.gmra.mxu2 %vm2118_vm2, %v6713_v17  ;;  %8987 = vmatmul.msk.f32.gmra.mxu3 %vm2118_vm2, %v6714_v57  ;;  %v9026_v17 = vld [vmem:[%s14287_s5 + $0x88] sm:$0xff]  ;;  %v14756_v58 = vld [vmem:[#allocation23_spill] sm:$0xff] }
 0xc7a   :  { %v14757_v30 = vld [vmem:[#allocation169_spill] sm:$0xff]  ;;  %7654 = vmatpush.msra.mxu1 %v9026_v17 }
 0xc7b   :  { %v3748_v42 = vadd.f32 %v14757_v30, %v14756_v58  ;;  %v9015_v17 = vld [vmem:[%s14287_s5 + $0x30] sm:$0xff]  ;;  %v9014_v30 = vld [vmem:[%s14287_s5 + $0x28] sm:$0xff] }
 0xc7c   :  { %v6485_v7 = vpop.f32.mrf.mxu2  ;;  %v7018_v27 = vpop.f32.mrf.mxu3 }
 0xc7d   :  { %v6633_v52 = vadd.f32 %v6485_v7, %v4614_v14  ;;  %v7166_v20 = vadd.f32 %v7018_v27, %v14755_v21  ;;  %v9025_v7 = vld [vmem:[%s14287_s5 + $0x80] sm:$0xff]  ;;  %v9016_v21 = vld [vmem:[%s14287_s5 + $0x38] sm:$0xff] }
 0xc7e   :  { %7655 = vmatpush.msra.mxu1 %v9025_v7 }
 0xc7f   :  { %v7230_v33 = vadd.f32 %v6633_v52, %v6100_v32  ;;  %v14761_v32 = vld [vmem:[#allocation309_spill] sm:$0xff] }
 0xc80   :  { %7726 = vmatpush.msrb.mxu1 %v9016_v21  ;;  %v7356_v21 = vadd.f32 %v13259_v28, %v13411_v10  ;;  %v7614_v10 = vld [vmem:[%s14287_s5 + $0x8] sm:$0xff] }
 0xc81   :  { %v13479_v46 = vadd.f32 %v7230_v33, %v7166_v20  ;;  %8922 = vmatmul.msk.f32.gmra.mxu2 %vm2118_vm2, %v6714_v57  ;;  %8988 = vmatmul.msk.f32.gmra.mxu3 %vm2118_vm2, %v6715_v22  ;;  %v14760_v57 = vld [vmem:[#allocation183_spill] sm:$0xff] }
 0xc82   :  { %v6101_v27 = vadd.f32 %v14760_v57, %v3748_v42  ;;  %v6183_v22 = vld [vmem:[#allocation2 + $0x238] sm:$0xff]  ;;  %v6716_v33 = vld [vmem:[#allocation2 + $0x240] sm:$0xff]  ;;  %7727 = vmatpush.msrb.mxu1 %v9015_v17  ;;  %7677 = vmatpush.msra.mxu3 %v7614_v10 }
 0xc83   :  { %v14762_v42 = vld [vmem:[#allocation24_spill] sm:$0xff]  ;;  %v14776_v10 = vld [vmem:[#allocation179_spill] sm:$0xff] }
 0xc84   :  { %v6488_v11 = vpop.f32.mrf.mxu2  ;;  %v7021_v14 = vpop.f32.mrf.mxu3  ;;  %v3751_v0 = vadd.f32 %v14763_v24, %v14762_v42  ;;  %7728 = vmatpush.msrb.mxu1 %v9014_v30  ;;  %v6717_v42 = vld [vmem:[#allocation2 + $0x248] sm:$0xff]  ;;  %v7420_v30 = vmax.f32 %v7356_v21, 0.0 }
 0xc85   :  { %v6634_v53 = vadd.f32 %v6488_v11, %v4617_v8  ;;  %v7167_v52 = vadd.f32 %v7021_v14, %v14761_v32  ;;  %v14764_v8 = vld [vmem:[#allocation173_spill] sm:$0xff]  ;;  %v14765_v11 = vld [vmem:[#allocation58_spill] sm:$0xff] }
 0xc86   :  { %v4620_v14 = vadd.f32 %v14765_v11, %v14764_v8  ;;  %v14768_v8 = vld [vmem:[#allocation25_spill] sm:$0xff]  ;;  %v14769_v11 = vld [vmem:[#allocation175_spill] sm:$0xff]  ;;  %v7493_v21 = vsel %vm7468_vm3, %v7420_v30, -inf  ;;  %v14777_v30 = vld [vmem:[#allocation60_spill] sm:$0xff] }
 0xc87   :  { %v7231_v20 = vadd.f32 %v6634_v53, %v6101_v27  ;;  %v9013_v27 = vld [vmem:[%s14287_s5 + $0x20] sm:$0xff]  ;;  %v14766_v53 = vld [vmem:[#allocation186_spill] sm:$0xff]  ;;  %v3754_v62 = vadd.f32 %v14769_v11, %v14768_v8 }
 0xc88   :  { %v6102_v32 = vadd.f32 %v14766_v53, %v3751_v0  ;;  %7729 = vmatpush.msrb.mxu1 %v9013_v27  ;;  %v14771_v0 = vld [vmem:[#allocation59_spill] sm:$0xff]  ;;  %v14772_v53 = vld [vmem:[#allocation189_spill] sm:$0xff] }
 0xc89   :  { %v13501_v58 = vadd.f32 %v7231_v20, %v7167_v52  ;;  %8923 = vmatmul.msk.f32.gmra.mxu2 %vm2118_vm2, %v6183_v22  ;;  %8989 = vmatmul.msk.f32.gmra.mxu3 %vm2118_vm2, %v6716_v33  ;;  %v14767_v22 = vld [vmem:[#allocation310_spill] sm:$0xff] }
 0xc8a   :  { %v6718_v11 = vld [vmem:[#allocation2 + $0x250] sm:$0xff] }
 0xc8c   :  { %v6491_v7 = vpop.f32.mrf.mxu2  ;;  %v7024_v57 = vpop.f32.mrf.mxu3 }
 0xc8d   :  { %v6635_v52 = vadd.f32 %v6491_v7, %v4620_v14  ;;  %v7168_v17 = vadd.f32 %v7024_v57, %v14767_v22  ;;  %v4623_v14 = vadd.f32 %v14771_v0, %v14770_v13 }
 0xc8f   :  { %v7232_v20 = vadd.f32 %v6635_v52, %v6102_v32 }
 0xc91   :  { %v7296_v24 = vadd.f32 %v7232_v20, %v7168_v17  ;;  %8924 = vmatmul.msk.f32.gmra.mxu2 %vm2118_vm2, %v6716_v33  ;;  %8990 = vmatmul.msk.f32.gmra.mxu3 %vm2118_vm2, %v6717_v42  ;;  %v6103_v33 = vadd.f32 %v14772_v53, %v3754_v62  ;;  %v7357_v20 = vadd.f32 %v13259_v28, %v13429_v19  ;;  %v14773_v17 = vld [vmem:[#allocation311_spill] sm:$0xff]  ;;  %v14774_v62 = vld [vmem:[#allocation26_spill] sm:$0xff] }
 0xc93   :  { %v7364_v7 = vadd.f32 %v13259_v28, %v7296_v24  ;;  %v7421_v53 = vmax.f32 %v7357_v20, 0.0  ;;  %v6719_v20 = vld [vmem:[#allocation2 + $0x258] sm:$0xff] }
 0xc94   :  { %v6494_v57 = vpop.f32.mrf.mxu2  ;;  %v7027_v27 = vpop.f32.mrf.mxu3 }
 0xc95   :  { %v7428_v32 = vmax.f32 %v7364_v7, 0.0  ;;  %v6636_v52 = vadd.f32 %v6494_v57, %v4623_v14  ;;  %v7169_v24 = vadd.f32 %v7027_v27, %v14773_v17  ;;  %v14775_v7 = vld [vmem:[#allocation178_spill] sm:$0xff]  ;;  %v4626_v57 = vadd.f32 %v14777_v30, %v14776_v10 }
 0xc96   :  { %v3757_v14 = vadd.f32 %v14775_v7, %v14774_v62 }
 0xc97   :  { %v7494_v13 = vsel %vm7468_vm3, %v7428_v32, -inf  ;;  %v7233_v22 = vadd.f32 %v6636_v52, %v6103_v33  ;;  %v14778_v52 = vld [vmem:[#allocation192_spill] sm:$0xff] }
 0xc98   :  { %v7495_v8 = vmax.f32 %v7493_v21, %v7494_v13  ;;  %v6104_v27 = vadd.f32 %v14778_v52, %v3757_v14  ;;  %v14781_v14 = vld [vmem:[#allocation181_spill] sm:$0xff] }
 0xc99   :  { %v7297_v0 = vadd.f32 %v7233_v22, %v7169_v24  ;;  %8925 = vmatmul.msk.f32.gmra.mxu2 %vm2118_vm2, %v6717_v42  ;;  %8991 = vmatmul.msk.f32.gmra.mxu3 %vm2118_vm2, %v6718_v11  ;;  %v14779_v22 = vld [vmem:[#allocation312_spill] sm:$0xff]  ;;  %v7496_v42 = vsel %vm7468_vm3, %v7421_v53, -inf  ;;  %v7358_v24 = vadd.f32 %v13259_v28, %v13439_v41 }
 0xc9b   :  { %v7365_v19 = vadd.f32 %v13259_v28, %v7297_v0  ;;  %v14780_v0 = vld [vmem:[#allocation27_spill] sm:$0xff]  ;;  %v7422_v52 = vmax.f32 %v7358_v24, 0.0 }
 0xc9c   :  { %v6497_v32 = vpop.f32.mrf.mxu2  ;;  %v7030_v33 = vpop.f32.mrf.mxu3 }
 0xc9d   :  { %v7429_v21 = vmax.f32 %v7365_v19, 0.0  ;;  %v6637_v13 = vadd.f32 %v6497_v32, %v4626_v57  ;;  %v7170_v17 = vadd.f32 %v7030_v33, %v14779_v22  ;;  %v3760_v57 = vadd.f32 %v14781_v14, %v14780_v0  ;;  %v14782_v32 = vld [vmem:[#allocation182_spill] sm:$0xff]  ;;  %v14783_v33 = vld [vmem:[#allocation61_spill] sm:$0xff] }
 0xc9e   :  { %v7577_v19 = vsel %vm7468_vm3, %v7495_v8, -inf  ;;  %v4629_v41 = vadd.f32 %v14783_v33, %v14782_v32  ;;  %v7499_v24 = vsel %vm7468_vm3, %v7422_v52, -inf  ;;  %v14787_v33 = vld [vmem:[#allocation184_spill] sm:$0xff] }
 0xc9f   :  { %v7497_v62 = vsel %vm7468_vm3, %v7429_v21, -inf  ;;  %v7234_v7 = vadd.f32 %v6637_v13, %v6104_v27 }
 0xca0   :  { %v7498_v10 = vmax.f32 %v7496_v42, %v7497_v62 }
 0xca1   :  { %v7298_v30 = vadd.f32 %v7234_v7, %v7170_v17  ;;  %8926 = vmatmul.msk.f32.gmra.mxu2 %vm2118_vm2, %v6718_v11  ;;  %8992 = vmatmul.msk.f32.gmra.mxu3 %vm2118_vm2, %v6719_v20  ;;  %v9038_v11 = vld [vmem:[%s14287_s5 + $0xc8] sm:$0xff]  ;;  %v14784_v17 = vld [vmem:[#allocation195_spill] sm:$0xff] }
 0xca2   :  { %v7578_v53 = vsel %vm7468_vm3, %v7498_v10, -inf  ;;  %7756 = vmatpush.msra.mxu2 %v9038_v11  ;;  %v6105_v42 = vadd.f32 %v14784_v17, %v3760_v57  ;;  %v14785_v7 = vld [vmem:[#allocation313_spill] sm:$0xff]  ;;  %v14786_v57 = vld [vmem:[#allocation28_spill] sm:$0xff]  ;;  %v14790_v17 = vld [vmem:[#allocation198_spill] sm:$0xff] }
 0xca3   :  { %v7579_v21 = vmax.f32 %v7577_v19, %v7578_v53  ;;  %v7366_v27 = vadd.f32 %v13259_v28, %v7298_v30  ;;  %v7359_v30 = vadd.f32 %v13259_v28, %v13449_v23  ;;  %v6720_v53 = vld [vmem:[#allocation2 + $0x260] sm:$0xff] }
 0xca4   :  { %v6500_v13 = vpop.f32.mrf.mxu2  ;;  %v7033_v22 = vpop.f32.mrf.mxu3 }
 0xca5   :  { %v7430_v62 = vmax.f32 %v7366_v27, 0.0  ;;  %v6638_v8 = vadd.f32 %v6500_v13, %v4629_v41  ;;  %v7171_v10 = vadd.f32 %v7033_v22, %v14785_v7  ;;  %9029 = vmatmul.msk.f32.vlgmr.msra.gmra.mxu1 %vm7468_vm3, %v7579_v21  ;;  %v3763_v41 = vadd.f32 %v14787_v33, %v14786_v57  ;;  %v14788_v27 = vld [vmem:[#allocation185_spill] sm:$0xff]  ;;  %v14789_v21 = vld [vmem:[#allocation62_spill] sm:$0xff]  ;;  %v14793_v33 = vld [vmem:[#allocation187_spill] sm:$0xff] }
 0xca6   :  { %v4632_v11 = vadd.f32 %v14789_v21, %v14788_v27  ;;  %v7423_v52 = vmax.f32 %v7359_v30, 0.0  ;;  %v14791_v7 = vld [vmem:[#allocation314_spill] sm:$0xff]  ;;  %v7360_v30 = vadd.f32 %v13259_v28, %v13459_v55  ;;  %v6721_v57 = vld [vmem:[#allocation2 + $0x268] sm:$0xff] }
 0xca7   :  { %v7500_v0 = vsel %vm7468_vm3, %v7430_v62, -inf  ;;  %v7235_v14 = vadd.f32 %v6638_v8, %v6105_v42  ;;  %v6106_v42 = vadd.f32 %v14790_v17, %v3763_v41  ;;  %v9044_v21 = vld [vmem:[%s14287_s5 + $0xe8] sm:$0xff] }
 0xca8   :  { %v7501_v19 = vmax.f32 %v7499_v24, %v7500_v0  ;;  %v7502_v24 = vsel %vm7468_vm3, %v7423_v52, -inf  ;;  %v14795_v52 = vld [vmem:[#allocation63_spill] sm:$0xff] }
 0xca9   :  { %v7299_v32 = vadd.f32 %v7235_v14, %v7171_v10  ;;  %8927 = vmatmul.msk.f32.gmra.mxu2 %vm2118_vm2, %v6719_v20  ;;  %8993 = vmatmul.msk.f32.gmra.mxu3 %vm2118_vm2, %v6720_v53  ;;  %v9046_v20 = vld [vmem:[%s14287_s5 + $0xf8] sm:$0xff] }
 0xcaa   :  { %7805 = vmatpush.msra.mxu1 %v9046_v20  ;;  %v13595_v55 = vsel %vm7468_vm3, %v7501_v19, -inf  ;;  %v14797_v20 = vld [vmem:[#allocation315_spill] sm:$0xff] }
 0xcab   :  { %v7367_v13 = vadd.f32 %v13259_v28, %v7299_v32 }
 0xcac   :  { %v6503_v23 = vpop.f32.mrf.mxu2  ;;  %v7036_v22 = vpop.f32.mrf.mxu3  ;;  %7806 = vmatpush.msra.mxu1 %v9045_v54 }
 0xcad   :  { %v7431_v62 = vmax.f32 %v7367_v13, 0.0  ;;  %v6639_v8 = vadd.f32 %v6503_v23, %v4632_v11  ;;  %v7172_v10 = vadd.f32 %v7036_v22, %v14791_v7  ;;  %9036 = vmatmul.msk.f32.vlgmr.msrb.gmra.mxu1 %vm7468_vm3, %v7570_v43  ;;  %v14792_v43 = vld [vmem:[#allocation29_spill] sm:$0xff]  ;;  %v14794_v11 = vld [vmem:[#allocation188_spill] sm:$0xff] }
 0xcae   :  { %v3766_v41 = vadd.f32 %v14793_v33, %v14792_v43  ;;  %v4635_v13 = vadd.f32 %v14795_v52, %v14794_v11  ;;  %7807 = vmatpush.msra.mxu1 %v9044_v21  ;;  %v14798_v33 = vld [vmem:[#allocation30_spill] sm:$0xff]  ;;  %v14800_v11 = vld [vmem:[#allocation191_spill] sm:$0xff]  ;;  %v14801_v52 = vld [vmem:[#allocation64_spill] sm:$0xff] }
 0xcaf   :  { %v7503_v0 = vsel %vm7468_vm3, %v7431_v62, -inf  ;;  %v7236_v14 = vadd.f32 %v6639_v8, %v6106_v42  ;;  %v9043_v42 = vld [vmem:[%s14287_s5 + $0xe0] sm:$0xff]  ;;  %v14796_v62 = vld [vmem:[#allocation201_spill] sm:$0xff] }
 0xcb0   :  { %v7504_v32 = vmax.f32 %v7502_v24, %v7503_v0  ;;  %v6107_v8 = vadd.f32 %v14796_v62, %v3766_v41  ;;  %7808 = vmatpush.msra.mxu1 %v9043_v42  ;;  %v7361_v0 = vadd.f32 %v13259_v28, %v13469_v9  ;;  %v14799_v41 = vld [vmem:[#allocation190_spill] sm:$0xff] }
 0xcb1   :  { %v7300_v25 = vadd.f32 %v7236_v14, %v7172_v10  ;;  %8928 = vmatmul.msk.f32.gmra.mxu2 %vm2118_vm2, %v6720_v53  ;;  %8994 = vmatmul.msk.f32.gmra.mxu3 %vm2118_vm2, %v6721_v57  ;;  %v7424_v53 = vmax.f32 %v7360_v30, 0.0  ;;  %v3769_v21 = vadd.f32 %v14799_v41, %v14798_v33  ;;  %v14804_v41 = vld [vmem:[#allocation31_spill] sm:$0xff] }
 0xcb2   :  { %v13598_v27 = vsel %vm7468_vm3, %v7504_v32, -inf }
 0xcb3   :  { %v7368_v22 = vadd.f32 %v13259_v28, %v7300_v25  ;;  %v7505_v30 = vsel %vm7468_vm3, %v7424_v53, -inf  ;;  %v6722_v25 = vld [vmem:[#allocation2 + $0x270] sm:$0xff]  ;;  %v7425_v53 = vmax.f32 %v7361_v0, 0.0 }
 0xcb4   :  { %v6506_v17 = vpop.f32.mrf.mxu2  ;;  %v7039_v19 = vpop.f32.mrf.mxu3 }
 0xcb5   :  { %v7432_v7 = vmax.f32 %v7368_v22, 0.0  ;;  %v6640_v10 = vadd.f32 %v6506_v17, %v4635_v13  ;;  %v7173_v24 = vadd.f32 %v7039_v19, %v14797_v20  ;;  %v4638_v13 = vadd.f32 %v14801_v52, %v14800_v11  ;;  %v14802_v19 = vld [vmem:[#allocation204_spill] sm:$0xff]  ;;  %v14806_v52 = vld [vmem:[#allocation194_spill] sm:$0xff] }
 0xcb6   :  { %v6108_v42 = vadd.f32 %v14802_v19, %v3769_v21  ;;  %v14805_v21 = vld [vmem:[#allocation193_spill] sm:$0xff]  ;;  %v14808_v19 = vld [vmem:[#allocation207_spill] sm:$0xff] }
 0xcb7   :  { %v7506_v14 = vsel %vm7468_vm3, %v7432_v7, -inf  ;;  %v7237_v32 = vadd.f32 %v6640_v10, %v6107_v8  ;;  %v6723_v7 = vld [vmem:[#allocation2 + $0x278] sm:$0xff]  ;;  %v7508_v10 = vsel %vm7468_vm3, %v7425_v53, -inf  ;;  %v3772_v11 = vadd.f32 %v14805_v21, %v14804_v41  ;;  %v14810_v41 = vld [vmem:[#allocation32_spill] sm:$0xff] }
 0xcb8   :  { %v7507_v54 = vmax.f32 %v7505_v30, %v7506_v14  ;;  %v14803_v30 = vld [vmem:[#allocation316_spill] sm:$0xff] }
 0xcb9   :  { %v7301_v43 = vadd.f32 %v7237_v32, %v7173_v24  ;;  %8929 = vmatmul.msk.f32.gmra.mxu2 %vm2118_vm2, %v6721_v57  ;;  %8995 = vmatmul.msk.f32.gmra.mxu3 %vm2118_vm2, %v6722_v25  ;;  %v7362_v57 = vadd.f32 %v13259_v28, %v13479_v46  ;;  %v14811_v21 = vld [vmem:[#allocation196_spill] sm:$0xff] }
 0xcba   :  { %v13633_v33 = vsel %vm7468_vm3, %v7507_v54, -inf }
 0xcbb   :  { %v7369_v22 = vadd.f32 %v13259_v28, %v7301_v43  ;;  %v7426_v43 = vmax.f32 %v7362_v57, 0.0  ;;  %v7363_v57 = vadd.f32 %v13259_v28, %v13501_v58 }
 0xcbc   :  { %v6509_v9 = vpop.f32.mrf.mxu2  ;;  %v7042_v17 = vpop.f32.mrf.mxu3 }
 0xcbd   :  { %v7433_v62 = vmax.f32 %v7369_v22, 0.0  ;;  %v6641_v8 = vadd.f32 %v6509_v9, %v4638_v13  ;;  %v7174_v14 = vadd.f32 %v7042_v17, %v14803_v30  ;;  %v14807_v13 = vld [vmem:[#allocation65_spill] sm:$0xff]  ;;  %v7427_v58 = vmax.f32 %v7363_v57, 0.0 }
 0xcbe   :  { %v4641_v53 = vadd.f32 %v14807_v13, %v14806_v52  ;;  %v14813_v52 = vld [vmem:[#allocation66_spill] sm:$0xff] }
 0xcbf   :  { %v7509_v20 = vsel %vm7468_vm3, %v7433_v62, -inf  ;;  %v7238_v24 = vadd.f32 %v6641_v8, %v6108_v42  ;;  %v6109_v42 = vadd.f32 %v14808_v19, %v3772_v11  ;;  %v7511_v8 = vsel %vm7468_vm3, %v7426_v43, -inf  ;;  %v14812_v43 = vld [vmem:[#allocation197_spill] sm:$0xff] }
 0xcc0   :  { %v7510_v0 = vmax.f32 %v7508_v10, %v7509_v20  ;;  %v14809_v20 = vld [vmem:[#allocation317_spill] sm:$0xff]  ;;  %v3775_v11 = vadd.f32 %v14811_v21, %v14810_v41  ;;  %v4644_v13 = vadd.f32 %v14813_v52, %v14812_v43  ;;  %v14817_v21 = vld [vmem:[#allocation199_spill] sm:$0xff]  ;;  %v14818_v43 = vld [vmem:[#allocation200_spill] sm:$0xff] }
 0xcc1   :  { %v7302_v32 = vadd.f32 %v7238_v24, %v7174_v14  ;;  %8930 = vmatmul.msk.f32.gmra.mxu2 %vm2118_vm2, %v6722_v25  ;;  %8996 = vmatmul.msk.f32.gmra.mxu3 %vm2118_vm2, %v6723_v7  ;;  %v6191_v14 = vld [vmem:[#allocation2 + $0x288] sm:$0xff]  ;;  %v14819_v52 = vld [vmem:[#allocation67_spill] sm:$0xff] }
 0xcc2   :  { %v13636_v46 = vsel %vm7468_vm3, %v7510_v0, -inf  ;;  %v6724_v0 = vld [vmem:[#allocation2 + $0x290] sm:$0xff] }
 0xcc3   :  { %v7585_v22 = vmax.f32 %v13633_v33, %v13636_v46  ;;  %v7370_v25 = vadd.f32 %v13259_v28, %v7302_v32  ;;  %v9018_v33 = vld [vmem:[%s14287_s5 + $0x48] sm:$0xff] }
 0xcc4   :  { %v6512_v9 = vpop.f32.mrf.mxu2  ;;  %v7045_v17 = vpop.f32.mrf.mxu3  ;;  %v9060_v46 = vld [vmem:[%s14287_s5 + $0x148] sm:$0xff] }
 0xcc5   :  { %v7434_v54 = vmax.f32 %v7370_v25, 0.0  ;;  %v6642_v62 = vadd.f32 %v6512_v9, %v4641_v53  ;;  %v7175_v24 = vadd.f32 %v7045_v17, %v14809_v20  ;;  %v14814_v17 = vld [vmem:[#allocation210_spill] sm:$0xff] }
 0xcc6   :  { %v6110_v19 = vadd.f32 %v14814_v17, %v3775_v11 }
 0xcc7   :  { %v7512_v7 = vsel %vm7468_vm3, %v7434_v54, -inf  ;;  %v7239_v10 = vadd.f32 %v6642_v62, %v6109_v42  ;;  %v14815_v62 = vld [vmem:[#allocation318_spill] sm:$0xff] }
 0xcc8   :  { %v7513_v30 = vmax.f32 %v7511_v8, %v7512_v7  ;;  %v7514_v7 = vsel %vm7468_vm3, %v7427_v58, -inf }
 0xcc9   :  { %v7303_v32 = vadd.f32 %v7239_v10, %v7175_v24  ;;  %8931 = vmatmul.msk.f32.gmra.mxu2 %vm2118_vm2, %v6191_v14  ;;  %8997 = vmatmul.msk.f32.gmra.mxu3 %vm2118_vm2, %v6724_v0  ;;  %v6725_v14 = vld [vmem:[#allocation2 + $0x298] sm:$0xff] }
 0xccb   :  { %v7371_v53 = vadd.f32 %v13259_v28, %v7303_v32  ;;  %v7586_v28 = vsel %vm7468_vm3, %v7513_v30, -inf  ;;  %v14816_v32 = vld [vmem:[#allocation33_spill] sm:$0xff]  ;;  %v6726_v30 = vld [vmem:[#allocation2 + $0x2a0] sm:$0xff] }
 0xccc   :  { %v6515_v25 = vpop.f32.mrf.mxu2  ;;  %v7048_v9 = vpop.f32.mrf.mxu3  ;;  %v3778_v11 = vadd.f32 %v14817_v21, %v14816_v32  ;;  %v14826_v21 = vld [vmem:[#allocation216_spill] sm:$0xff] }
 0xccd   :  { %v7435_v42 = vmax.f32 %v7371_v53, 0.0  ;;  %v6643_v54 = vadd.f32 %v6515_v25, %v4644_v13  ;;  %v7176_v8 = vadd.f32 %v7048_v9, %v14815_v62  ;;  %v4647_v13 = vadd.f32 %v14819_v52, %v14818_v43  ;;  %v14820_v9 = vld [vmem:[#allocation213_spill] sm:$0xff]  ;;  %v14827_v52 = vld [vmem:[#allocation320_spill] sm:$0xff] }
 0xcce   :  { %v6111_v17 = vadd.f32 %v14820_v9, %v3778_v11  ;;  %v14829_v9 = vld [vmem:[#allocation205_spill] sm:$0xff] }
 0xccf   :  { %v7515_v10 = vsel %vm7468_vm3, %v7435_v42, -inf  ;;  %v7240_v20 = vadd.f32 %v6643_v54, %v6110_v19  ;;  %v14821_v42 = vld [vmem:[#allocation319_spill] sm:$0xff] }
 0xcd0   :  { %v7516_v24 = vmax.f32 %v7514_v7, %v7515_v10  ;;  %v14823_v7 = vld [vmem:[#allocation202_spill] sm:$0xff] }
 0xcd1   :  { %v13662_v41 = vadd.f32 %v7240_v20, %v7176_v8  ;;  %8932 = vmatmul.msk.f32.gmra.mxu2 %vm2118_vm2, %v6724_v0  ;;  %8998 = vmatmul.msk.f32.gmra.mxu3 %vm2118_vm2, %v6725_v14  ;;  %v14822_v8 = vld [vmem:[#allocation34_spill] sm:$0xff]  ;;  %v14824_v20 = vld [vmem:[#allocation203_spill] sm:$0xff] }
 0xcd2   :  { %v7587_v57 = vsel %vm7468_vm3, %v7516_v24, -inf  ;;  %v3781_v10 = vadd.f32 %v14823_v7, %v14822_v8  ;;  %v14825_v24 = vld [vmem:[#allocation68_spill] sm:$0xff]  ;;  %v14832_v7 = vld [vmem:[#allocation219_spill] sm:$0xff] }
 0xcd3   :  { %v7588_v58 = vmax.f32 %v7586_v28, %v7587_v57  ;;  %v4650_v28 = vadd.f32 %v14825_v24, %v14824_v20  ;;  %v14833_v24 = vld [vmem:[#allocation321_spill] sm:$0xff] }
 0xcd4   :  { %v6518_v53 = vpop.f32.mrf.mxu2  ;;  %v7051_v25 = vpop.f32.mrf.mxu3  ;;  %v6112_v11 = vadd.f32 %v14826_v21, %v3781_v10 }
 0xcd5   :  { %v6644_v19 = vadd.f32 %v6518_v53, %v4647_v13  ;;  %v7177_v0 = vadd.f32 %v7051_v25, %v14821_v42  ;;  %9047 = vmatmul.msk.f32.vlgmr.msra.gmra.mxu1 %vm7468_vm3, %v7588_v58  ;;  %v6727_v53 = vld [vmem:[#allocation2 + $0x2a8] sm:$0xff] }
 0xcd6   :  { %v14831_v42 = vld [vmem:[#allocation69_spill] sm:$0xff] }
 0xcd7   :  { %v7241_v54 = vadd.f32 %v6644_v19, %v6111_v17  ;;  %v14830_v19 = vld [vmem:[#allocation206_spill] sm:$0xff] }
 0xcd9   :  { %v13675_v62 = vadd.f32 %v7241_v54, %v7177_v0  ;;  %8933 = vmatmul.msk.f32.gmra.mxu2 %vm2118_vm2, %v6725_v14  ;;  %8999 = vmatmul.msk.f32.gmra.mxu3 %vm2118_vm2, %v6726_v30  ;;  %v14828_v14 = vld [vmem:[#allocation35_spill] sm:$0xff]  ;;  %v4653_v0 = vadd.f32 %v14831_v42, %v14830_v19 }
 0xcda   :  { %v3784_v17 = vadd.f32 %v14829_v9, %v14828_v14 }
 0xcdc   :  { %v6521_v57 = vpop.f32.mrf.mxu2  ;;  %v7054_v32 = vpop.f32.mrf.mxu3  ;;  %v6113_v10 = vadd.f32 %v14832_v7, %v3784_v17  ;;  %v14838_v17 = vld [vmem:[#allocation222_spill] sm:$0xff] }
 0xcdd   :  { %v6645_v43 = vadd.f32 %v6521_v57, %v4650_v28  ;;  %v7178_v13 = vadd.f32 %v7054_v32, %v14827_v52  ;;  %v6728_v32 = vld [vmem:[#allocation2 + $0x2b0] sm:$0xff]  ;;  %v6729_v7 = vld [vmem:[#allocation2 + $0x2b8] sm:$0xff] }
 0xcde   :  { %v14836_v52 = vld [vmem:[#allocation209_spill] sm:$0xff] }
 0xcdf   :  { %v7242_v58 = vadd.f32 %v6645_v43, %v6112_v11  ;;  %v14835_v11 = vld [vmem:[#allocation208_spill] sm:$0xff] }
 0xce1   :  { %v13685_v25 = vadd.f32 %v7242_v58, %v7178_v13  ;;  %8934 = vmatmul.msk.f32.gmra.mxu2 %vm2118_vm2, %v6726_v30  ;;  %9000 = vmatmul.msk.f32.gmra.mxu3 %vm2118_vm2, %v6727_v53  ;;  %v14834_v30 = vld [vmem:[#allocation36_spill] sm:$0xff]  ;;  %v14837_v13 = vld [vmem:[#allocation70_spill] sm:$0xff] }
 0xce2   :  { %v3787_v43 = vadd.f32 %v14835_v11, %v14834_v30  ;;  %v4656_v58 = vadd.f32 %v14837_v13, %v14836_v52 }
 0xce4   :  { %v6524_v54 = vpop.f32.mrf.mxu2  ;;  %v7057_v8 = vpop.f32.mrf.mxu3  ;;  %v6114_v19 = vadd.f32 %v14838_v17, %v3787_v43  ;;  %v14844_v43 = vld [vmem:[#allocation225_spill] sm:$0xff] }
 0xce5   :  { %v6646_v20 = vadd.f32 %v6524_v54, %v4653_v0  ;;  %v7179_v28 = vadd.f32 %v7057_v8, %v14833_v24  ;;  %v14839_v0 = vld [vmem:[#allocation322_spill] sm:$0xff] }
 0xce7   :  { %v7243_v57 = vadd.f32 %v6646_v20, %v6113_v10  ;;  %v14841_v20 = vld [vmem:[#allocation211_spill] sm:$0xff] }
 0xce9   :  { %v13695_v21 = vadd.f32 %v7243_v57, %v7179_v28  ;;  %8935 = vmatmul.msk.f32.gmra.mxu2 %vm2118_vm2, %v6727_v53  ;;  %9001 = vmatmul.msk.f32.gmra.mxu3 %vm2118_vm2, %v6728_v32  ;;  %v14840_v53 = vld [vmem:[#allocation37_spill] sm:$0xff]  ;;  %v14842_v28 = vld [vmem:[#allocation212_spill] sm:$0xff]  ;;  %v14843_v57 = vld [vmem:[#allocation71_spill] sm:$0xff] }
 0xcea   :  { %v3790_v24 = vadd.f32 %v14841_v20, %v14840_v53  ;;  %v4659_v30 = vadd.f32 %v14843_v57, %v14842_v28  ;;  %v14849_v53 = vld [vmem:[#allocation72_spill] sm:$0xff] }
 0xcec   :  { %v6527_v14 = vpop.f32.mrf.mxu2  ;;  %v7060_v9 = vpop.f32.mrf.mxu3  ;;  %v6115_v13 = vadd.f32 %v14844_v43, %v3790_v24  ;;  %v14850_v24 = vld [vmem:[#allocation228_spill] sm:$0xff] }
 0xced   :  { %v6647_v42 = vadd.f32 %v6527_v14, %v4656_v58  ;;  %v7180_v54 = vadd.f32 %v7060_v9, %v14839_v0  ;;  %v14845_v14 = vld [vmem:[#allocation323_spill] sm:$0xff]  ;;  %v14847_v0 = vld [vmem:[#allocation214_spill] sm:$0xff] }
 0xcef   :  { %v7244_v8 = vadd.f32 %v6647_v42, %v6114_v19  ;;  %v6730_v19 = vld [vmem:[#allocation2 + $0x2c0] sm:$0xff] }
 0xcf1   :  { %v13705_v10 = vadd.f32 %v7244_v8, %v7180_v54  ;;  %8936 = vmatmul.msk.f32.gmra.mxu2 %vm2118_vm2, %v6728_v32  ;;  %9002 = vmatmul.msk.f32.gmra.mxu3 %vm2118_vm2, %v6729_v7  ;;  %v14846_v32 = vld [vmem:[#allocation81_spill] sm:$0xff]  ;;  %v14848_v8 = vld [vmem:[#allocation215_spill] sm:$0xff] }
 0xcf2   :  { %v3793_v54 = vadd.f32 %v14847_v0, %v14846_v32  ;;  %v4662_v20 = vadd.f32 %v14849_v53, %v14848_v8  ;;  %v14854_v32 = vld [vmem:[#allocation218_spill] sm:$0xff]  ;;  %v14855_v0 = vld [vmem:[#allocation73_spill] sm:$0xff] }
 0xcf3   :  { %v4665_v8 = vadd.f32 %v14855_v0, %v14854_v32  ;;  %v14861_v0 = vld [vmem:[#allocation234_spill] sm:$0xff] }
 0xcf4   :  { %v6530_v11 = vpop.f32.mrf.mxu2  ;;  %v7063_v52 = vpop.f32.mrf.mxu3 }
 0xcf5   :  { %v6648_v58 = vadd.f32 %v6530_v11, %v4659_v30  ;;  %v7181_v9 = vadd.f32 %v7063_v52, %v14845_v14  ;;  %v6116_v30 = vadd.f32 %v14850_v24, %v3793_v54  ;;  %v14851_v52 = vld [vmem:[#allocation324_spill] sm:$0xff]  ;;  %v14856_v54 = vld [vmem:[#allocation231_spill] sm:$0xff] }
 0xcf6   :  { %v6199_v24 = vld [vmem:[#allocation2 + $0x2d8] sm:$0xff] }
 0xcf7   :  { %v7245_v17 = vadd.f32 %v6648_v58, %v6115_v13  ;;  %v6731_v13 = vld [vmem:[#allocation2 + $0x2c8] sm:$0xff] }
 0xcf9   :  { %v13715_v42 = vadd.f32 %v7245_v17, %v7181_v9  ;;  %8937 = vmatmul.msk.f32.gmra.mxu2 %vm2118_vm2, %v6729_v7  ;;  %9003 = vmatmul.msk.f32.gmra.mxu3 %vm2118_vm2, %v6730_v19  ;;  %v14852_v7 = vld [vmem:[#allocation83_spill] sm:$0xff]  ;;  %v14853_v9 = vld [vmem:[#allocation217_spill] sm:$0xff] }
 0xcfa   :  { %v3796_v17 = vadd.f32 %v14853_v9, %v14852_v7  ;;  %v14860_v7 = vld [vmem:[#allocation74_spill] sm:$0xff] }
 0xcfc   :  { %v6533_v28 = vpop.f32.mrf.mxu2  ;;  %v7066_v57 = vpop.f32.mrf.mxu3 }
 0xcfd   :  { %v6649_v11 = vadd.f32 %v6533_v28, %v4662_v20  ;;  %v7182_v43 = vadd.f32 %v7066_v57, %v14851_v52  ;;  %v6117_v20 = vadd.f32 %v14856_v54, %v3796_v17 }
 0xcff   :  { %v7246_v58 = vadd.f32 %v6649_v11, %v6116_v30  ;;  %v6732_v30 = vld [vmem:[#allocation2 + $0x2e0] sm:$0xff] }
 0xd01   :  { %v13725_v14 = vadd.f32 %v7246_v58, %v7182_v43  ;;  %8938 = vmatmul.msk.f32.gmra.mxu2 %vm2118_vm2, %v6730_v19  ;;  %9004 = vmatmul.msk.f32.gmra.mxu3 %vm2118_vm2, %v6731_v13  ;;  %v14857_v19 = vld [vmem:[#allocation85_spill] sm:$0xff]  ;;  %v14858_v43 = vld [vmem:[#allocation220_spill] sm:$0xff] }
 0xd02   :  { %v3799_v13 = vadd.f32 %v14858_v43, %v14857_v19  ;;  %v14859_v58 = vld [vmem:[#allocation221_spill] sm:$0xff]  ;;  %v14862_v19 = vld [vmem:[#allocation87_spill] sm:$0xff] }
 0xd03   :  { %v4668_v9 = vadd.f32 %v14860_v7, %v14859_v58  ;;  %v14863_v43 = vld [vmem:[#allocation223_spill] sm:$0xff]  ;;  %v14864_v58 = vld [vmem:[#allocation224_spill] sm:$0xff] }
 0xd04   :  { %v6536_v53 = vpop.f32.mrf.mxu2  ;;  %v7069_v23 = vpop.f32.mrf.mxu3  ;;  %v14865_v7 = vld [vmem:[#allocation75_spill] sm:$0xff] }
 0xd05   :  { %v6650_v28 = vadd.f32 %v6536_v53, %v4665_v8  ;;  %v7183_v57 = vadd.f32 %v7069_v23, %v13017_v63  ;;  %v6118_v8 = vadd.f32 %v14861_v0, %v3799_v13  ;;  %v13748_v53 = vld [vmem:[%s14286_s4] ss:$0 sm:$0xff]  ;;  %v3802_v13 = vadd.f32 %v14863_v43, %v14862_v19 }
 0xd06   :  { %v7372_v54 = vadd.f32 %v13748_v53, %v13662_v41  ;;  %v9055_v41 = vld [vmem:[%s14287_s5 + $0x128] sm:$0xff] }
 0xd07   :  { %v7247_v11 = vadd.f32 %v6650_v28, %v6117_v20  ;;  %v6733_v20 = vld [vmem:[#allocation2 + $0x2e8] sm:$0xff]  ;;  %v9057_v28 = vld [vmem:[%s14287_s5 + $0x138] sm:$0xff] }
 0xd08   :  { %7885 = vmatpush.msrb.mxu1 %v9057_v28 }
 0xd09   :  { %v13735_v52 = vadd.f32 %v7247_v11, %v7183_v57  ;;  %8939 = vmatmul.msk.f32.gmra.mxu2 %vm2118_vm2, %v6199_v24  ;;  %9005 = vmatmul.msk.f32.gmra.mxu3 %vm2118_vm2, %v6732_v30  ;;  %v9056_v24 = vld [vmem:[%s14287_s5 + $0x130] sm:$0xff]  ;;  %v7436_v11 = vmax.f32 %v7372_v54, 0.0 }
 0xd0a   :  { %7886 = vmatpush.msrb.mxu1 %v9056_v24  ;;  %v6734_v24 = vld [vmem:[#allocation2 + $0x2f0] sm:$0xff] }
 0xd0c   :  { %v6539_v32 = vpop.f32.mrf.mxu2  ;;  %v7072_v17 = vpop.f32.mrf.mxu3  ;;  %7887 = vmatpush.msrb.mxu1 %v9055_v41 }
 0xd0d   :  { %v6651_v63 = vadd.f32 %v6539_v32, %v4668_v9  ;;  %v7184_v23 = vadd.f32 %v7072_v17, %v13021_v51  ;;  %v4671_v9 = vadd.f32 %v14865_v7, %v14864_v58 }
 0xd0f   :  { %v7248_v57 = vadd.f32 %v6651_v63, %v6118_v8  ;;  %v9054_v8 = vld [vmem:[%s14287_s5 + $0x120] sm:$0xff]  ;;  %v14866_v63 = vld [vmem:[#allocation237_spill] sm:$0xff] }
 0xd10   :  { %7888 = vmatpush.msrb.mxu1 %v9054_v8 }
 0xd11   :  { %v7312_v51 = vadd.f32 %v7248_v57, %v7184_v23  ;;  %8940 = vmatmul.msk.f32.gmra.mxu2 %vm2118_vm2, %v6732_v30  ;;  %9006 = vmatmul.msk.f32.gmra.mxu3 %vm2118_vm2, %v6733_v20  ;;  %v7613_v30 = vld [vmem:[%s14287_s5] sm:$0xff]  ;;  %v6119_v23 = vadd.f32 %v14866_v63, %v3802_v13  ;;  %v7517_v57 = vsel %vm7468_vm3, %v7436_v11, -inf  ;;  %v14867_v13 = vld [vmem:[#allocation89_spill] sm:$0xff] }
 0xd12   :  { %7678 = vmatpush.msra.mxu3 %v7613_v30  ;;  %v14869_v11 = vld [vmem:[#allocation227_spill] sm:$0xff]  ;;  %v14870_v30 = vld [vmem:[#allocation76_spill] sm:$0xff] }
 0xd13   :  { %v7380_v32 = vadd.f32 %v13748_v53, %v7312_v51  ;;  %v7373_v51 = vadd.f32 %v13748_v53, %v13675_v62 }
 0xd14   :  { %v6542_v17 = vpop.f32.mrf.mxu2  ;;  %v7075_v0 = vpop.f32.mrf.mxu3 }
 0xd15   :  { %v7444_v54 = vmax.f32 %v7380_v32, 0.0  ;;  %v6652_v28 = vadd.f32 %v6542_v17, %v4671_v9  ;;  %v7185_v41 = vadd.f32 %v7075_v0, %v13025_v4  ;;  %v14868_v9 = vld [vmem:[#allocation226_spill] sm:$0xff]  ;;  %v4674_v17 = vadd.f32 %v14870_v30, %v14869_v11  ;;  %v14872_v11 = vld [vmem:[#allocation91_spill] sm:$0xff]  ;;  %v14873_v30 = vld [vmem:[#allocation229_spill] sm:$0xff] }
 0xd16   :  { %v3805_v32 = vadd.f32 %v14868_v9, %v14867_v13  ;;  %v7437_v8 = vmax.f32 %v7373_v51, 0.0 }
 0xd17   :  { %v7518_v19 = vsel %vm7468_vm3, %v7444_v54, -inf  ;;  %v7249_v43 = vadd.f32 %v6652_v28, %v6119_v23  ;;  %v14871_v23 = vld [vmem:[#allocation240_spill] sm:$0xff] }
 0xd18   :  { %v7519_v58 = vmax.f32 %v7517_v57, %v7518_v19  ;;  %v6120_v28 = vadd.f32 %v14871_v23, %v3805_v32  ;;  %v6735_v57 = vld [vmem:[#allocation2 + $0x2f8] sm:$0xff]  ;;  %v7520_v19 = vsel %vm7468_vm3, %v7437_v8, -inf }
 0xd19   :  { %v7313_v7 = vadd.f32 %v7249_v43, %v7185_v41  ;;  %8941 = vmatmul.msk.f32.gmra.mxu2 %vm2118_vm2, %v6733_v20  ;;  %9007 = vmatmul.msk.f32.gmra.mxu3 %vm2118_vm2, %v6734_v24  ;;  %v7374_v20 = vadd.f32 %v13748_v53, %v13685_v25  ;;  %v14874_v8 = vld [vmem:[#allocation230_spill] sm:$0xff] }
 0xd1a   :  { %v13796_v32 = vsel %vm7468_vm3, %v7519_v58, -inf }
 0xd1b   :  { %v7381_v62 = vadd.f32 %v13748_v53, %v7313_v7  ;;  %v7438_v7 = vmax.f32 %v7374_v20, 0.0 }
 0xd1c   :  { %v6545_v63 = vpop.f32.mrf.mxu2  ;;  %v7078_v54 = vpop.f32.mrf.mxu3 }
 0xd1d   :  { %v7445_v4 = vmax.f32 %v7381_v62, 0.0  ;;  %v6653_v0 = vadd.f32 %v6545_v63, %v4674_v17  ;;  %v7186_v13 = vadd.f32 %v7078_v54, %v13029_v38  ;;  %v3808_v17 = vadd.f32 %v14873_v30, %v14872_v11  ;;  %v14875_v62 = vld [vmem:[#allocation77_spill] sm:$0xff]  ;;  %v9037_v54 = vld [vmem:[%s14287_s5 + $0xc0] sm:$0xff] }
 0xd1e   :  { %v4677_v63 = vadd.f32 %v14875_v62, %v14874_v8  ;;  %7757 = vmatpush.msra.mxu2 %v9037_v54  ;;  %v14878_v8 = vld [vmem:[#allocation232_spill] sm:$0xff] }
 0xd1f   :  { %v7521_v43 = vsel %vm7468_vm3, %v7445_v4, -inf  ;;  %v7250_v41 = vadd.f32 %v6653_v0, %v6120_v28  ;;  %v14876_v28 = vld [vmem:[#allocation243_spill] sm:$0xff] }
 0xd20   :  { %v7522_v51 = vmax.f32 %v7520_v19, %v7521_v43  ;;  %v6121_v4 = vadd.f32 %v14876_v28, %v3808_v17  ;;  %v7523_v19 = vsel %vm7468_vm3, %v7438_v7, -inf  ;;  %v6736_v43 = vld [vmem:[#allocation2 + $0x300] sm:$0xff]  ;;  %v9034_v17 = vld [vmem:[%s14287_s5 + $0xb8] sm:$0xff]  ;;  %v9033_v28 = vld [vmem:[%s14287_s5 + $0xb0] sm:$0xff] }
 0xd21   :  { %v7314_v9 = vadd.f32 %v7250_v41, %v7186_v13  ;;  %8942 = vmatmul.msk.f32.gmra.mxu2 %vm2118_vm2, %v6734_v24  ;;  %9008 = vmatmul.msk.f32.gmra.mxu3 %vm2118_vm2, %v6735_v57  ;;  %v7375_v41 = vadd.f32 %v13748_v53, %v13695_v21  ;;  %v9024_v7 = vld [vmem:[%s14287_s5 + $0x78] sm:$0xff]  ;;  %v14877_v21 = vld [vmem:[#allocation93_spill] sm:$0xff] }
 0xd22   :  { %v13799_v25 = vsel %vm7468_vm3, %v7522_v51, -inf  ;;  %v3811_v62 = vadd.f32 %v14878_v8, %v14877_v21  ;;  %7703 = vmatpush.msrb.mxu3 %v9034_v17  ;;  %7828 = vmatpush.msrb.mxu2 %v9024_v7 }
 0xd23   :  { %v7591_v38 = vmax.f32 %v13796_v32, %v13799_v25  ;;  %v7382_v24 = vadd.f32 %v13748_v53, %v7314_v9  ;;  %v7439_v54 = vmax.f32 %v7375_v41, 0.0  ;;  %v7376_v41 = vadd.f32 %v13748_v53, %v13705_v10  ;;  %v9031_v10 = vld [vmem:[%s14287_s5 + $0xa0] sm:$0xff] }
 0xd24   :  { %v6548_v58 = vpop.f32.mrf.mxu2  ;;  %v7081_v23 = vpop.f32.mrf.mxu3  ;;  %7704 = vmatpush.msrb.mxu3 %v9033_v28  ;;  %v14884_v28 = vld [vmem:[#allocation236_spill] sm:$0xff] }
 0xd25   :  { %v7446_v0 = vmax.f32 %v7382_v24, 0.0  ;;  %v6654_v20 = vadd.f32 %v6548_v58, %v4677_v63  ;;  %v7187_v9 = vadd.f32 %v7081_v23, %v13033_v61  ;;  %v14879_v63 = vld [vmem:[#allocation233_spill] sm:$0xff]  ;;  %v14880_v24 = vld [vmem:[#allocation78_spill] sm:$0xff]  ;;  %v7526_v17 = vsel %vm7468_vm3, %v7439_v54, -inf }
 0xd26   :  { %v4680_v61 = vadd.f32 %v14880_v24, %v14879_v63  ;;  %v9021_v63 = vld [vmem:[%s14287_s5 + $0x60] sm:$0xff] }
 0xd27   :  { %v7524_v13 = vsel %vm7468_vm3, %v7446_v0, -inf  ;;  %v7251_v51 = vadd.f32 %v6654_v20, %v6121_v4  ;;  %v9023_v4 = vld [vmem:[%s14287_s5 + $0x70] sm:$0xff] }
 0xd28   :  { %v7525_v11 = vmax.f32 %v7523_v19, %v7524_v13  ;;  %v14881_v0 = vld [vmem:[#allocation245_spill] sm:$0xff]  ;;  %7829 = vmatpush.msrb.mxu2 %v9023_v4  ;;  %v14885_v4 = vld [vmem:[#allocation79_spill] sm:$0xff] }
 0xd29   :  { %v7315_v30 = vadd.f32 %v7251_v51, %v7187_v9  ;;  %8943 = vmatmul.msk.f32.gmra.mxu2 %vm2118_vm2, %v6735_v57  ;;  %9009 = vmatmul.msk.f32.gmra.mxu3 %vm2118_vm2, %v6736_v43  ;;  %v6122_v20 = vadd.f32 %v14881_v0, %v3811_v62  ;;  %v6737_v51 = vld [vmem:[#allocation2 + $0x308] sm:$0xff]  ;;  %v4683_v0 = vadd.f32 %v14885_v4, %v14884_v28 }
 0xd2a   :  { %v9032_v9 = vld [vmem:[%s14287_s5 + $0xa8] sm:$0xff]  ;;  %v7592_v54 = vsel %vm7468_vm3, %v7525_v11, -inf }
 0xd2b   :  { %v7383_v58 = vadd.f32 %v13748_v53, %v7315_v30  ;;  %v9022_v30 = vld [vmem:[%s14287_s5 + $0x68] sm:$0xff]  ;;  %7705 = vmatpush.msrb.mxu3 %v9032_v9  ;;  %v14886_v9 = vld [vmem:[#allocation247_spill] sm:$0xff] }
 0xd2c   :  { %v6551_v57 = vpop.f32.mrf.mxu2  ;;  %v7084_v23 = vpop.f32.mrf.mxu3  ;;  %7830 = vmatpush.msrb.mxu2 %v9022_v30 }
 0xd2d   :  { %v7447_v19 = vmax.f32 %v7383_v58, 0.0  ;;  %v6655_v13 = vadd.f32 %v6551_v57, %v4680_v61  ;;  %v7188_v8 = vadd.f32 %v7084_v23, %v13037_v12  ;;  %v7440_v61 = vmax.f32 %v7376_v41, 0.0  ;;  %7706 = vmatpush.msrb.mxu3 %v9031_v10  ;;  %v14882_v58 = vld [vmem:[#allocation96_spill] sm:$0xff]  ;;  %v14883_v57 = vld [vmem:[#allocation235_spill] sm:$0xff] }
 0xd2e   :  { %7831 = vmatpush.msrb.mxu2 %v9021_v63  ;;  %v3814_v23 = vadd.f32 %v14883_v57, %v14882_v58  ;;  %v14889_v57 = vld [vmem:[#allocation239_spill] sm:$0xff] }
 0xd2f   :  { %v7527_v7 = vsel %vm7468_vm3, %v7447_v19, -inf  ;;  %v7252_v21 = vadd.f32 %v6655_v13, %v6122_v20  ;;  %v7529_v11 = vsel %vm7468_vm3, %v7440_v61, -inf  ;;  %v14890_v61 = vld [vmem:[#allocation80_spill] sm:$0xff] }
 0xd30   :  { %v7528_v62 = vmax.f32 %v7526_v17, %v7527_v7  ;;  %v6123_v30 = vadd.f32 %v14886_v9, %v3814_v23  ;;  %v6738_v7 = vld [vmem:[#allocation2 + $0x310] sm:$0xff]  ;;  %v4686_v23 = vadd.f32 %v14890_v61, %v14889_v57 }
 0xd31   :  { %v7316_v24 = vadd.f32 %v7252_v21, %v7188_v8  ;;  %8944 = vmatmul.msk.f32.gmra.mxu2 %vm2118_vm2, %v6736_v43  ;;  %9010 = vmatmul.msk.f32.gmra.mxu3 %vm2118_vm2, %v6737_v51  ;;  %v7377_v21 = vadd.f32 %v13748_v53, %v13715_v42 }
 0xd32   :  { %v7593_v12 = vsel %vm7468_vm3, %v7528_v62, -inf }
 0xd33   :  { %v7594_v20 = vmax.f32 %v7592_v54, %v7593_v12  ;;  %v7384_v19 = vadd.f32 %v13748_v53, %v7316_v24  ;;  %v14887_v54 = vld [vmem:[#allocation99_spill] sm:$0xff]  ;;  %v14888_v12 = vld [vmem:[#allocation238_spill] sm:$0xff]  ;;  %v7441_v28 = vmax.f32 %v7377_v21, 0.0 }
 0xd34   :  { %v6554_v13 = vpop.f32.mrf.mxu2  ;;  %v7087_v43 = vpop.f32.mrf.mxu3  ;;  %v3817_v58 = vadd.f32 %v14888_v12, %v14887_v54  ;;  %v14894_v12 = vld [vmem:[#allocation242_spill] sm:$0xff] }
 0xd35   :  { %v7448_v41 = vmax.f32 %v7384_v19, 0.0  ;;  %v6656_v17 = vadd.f32 %v6554_v13, %v4683_v0  ;;  %9058 = vmatmul.msk.f32.vlgmr.msrb.gmra.mxu1 %vm7468_vm3, %v7594_v20  ;;  %v7189_v10 = vadd.f32 %v7087_v43, %v13041_v60  ;;  %v14891_v20 = vld [vmem:[#allocation249_spill] sm:$0xff]  ;;  %v6739_v43 = vld [vmem:[#allocation2 + $0x318] sm:$0xff]  ;;  %v7532_v9 = vsel %vm7468_vm3, %v7441_v28, -inf }
 0xd36   :  { %v6124_v19 = vadd.f32 %v14891_v20, %v3817_v58  ;;  %v14895_v58 = vld [vmem:[#allocation82_spill] sm:$0xff]  ;;  %v14896_v28 = vld [vmem:[#allocation251_spill] sm:$0xff]  ;;  %v7379_v20 = vadd.f32 %v13748_v53, %v13735_v52 }
 0xd37   :  { %v7530_v8 = vsel %vm7468_vm3, %v7448_v41, -inf  ;;  %v7253_v62 = vadd.f32 %v6656_v17, %v6123_v30  ;;  %v4689_v57 = vadd.f32 %v14895_v58, %v14894_v12  ;;  %v9061_v52 = vld [vmem:[%s14287_s5 + $0x150] sm:$0xff] }
 0xd38   :  { %v7531_v63 = vmax.f32 %v7529_v11, %v7530_v8  ;;  %v7443_v48 = vmax.f32 %v7379_v20, 0.0  ;;  %v14902_v20 = vld [vmem:[#allocation246_spill] sm:$0xff] }
 0xd39   :  { %v7317_v24 = vadd.f32 %v7253_v62, %v7189_v10  ;;  %8945 = vmatmul.msk.f32.gmra.mxu2 %vm2118_vm2, %v6737_v51  ;;  %9011 = vmatmul.msk.f32.gmra.mxu3 %vm2118_vm2, %v6738_v7  ;;  %v7378_v51 = vadd.f32 %v13748_v53, %v13725_v14  ;;  %v14892_v10 = vld [vmem:[#allocation101_spill] sm:$0xff] }
 0xd3a   :  { %v13886_v62 = vsel %vm7468_vm3, %v7531_v63, -inf  ;;  %v7538_v12 = vsel %vm7468_vm3, %v7443_v48, -inf }
 0xd3b   :  { %v7385_v42 = vadd.f32 %v13748_v53, %v7317_v24  ;;  %v7442_v8 = vmax.f32 %v7378_v51, 0.0  ;;  %v14893_v24 = vld [vmem:[#allocation241_spill] sm:$0xff]  ;;  %v9020_v51 = vld [vmem:[%s14287_s5 + $0x58] sm:$0xff] }
 0xd3c   :  { %v6557_v4 = vpop.f32.mrf.mxu2  ;;  %v7090_v0 = vpop.f32.mrf.mxu3  ;;  %v3820_v54 = vadd.f32 %v14893_v24, %v14892_v10  ;;  %v9017_v24 = vld [vmem:[%s14287_s5 + $0x40] sm:$0xff] }
 0xd3d   :  { %v7449_v60 = vmax.f32 %v7385_v42, 0.0  ;;  %v6657_v13 = vadd.f32 %v6557_v4, %v4686_v23  ;;  %v7190_v17 = vadd.f32 %v7090_v0, %v13045_v1  ;;  %v7535_v0 = vsel %vm7468_vm3, %v7442_v8, -inf }
 0xd3e   :  { %v6125_v42 = vadd.f32 %v14896_v28, %v3820_v54  ;;  %v9059_v54 = vld [vmem:[%s14287_s5 + $0x140] sm:$0xff]  ;;  %v14900_v28 = vmax.f32 %v13595_v55, %v13598_v27  ;;  %v9050_v27 = vld [vmem:[%s14287_s5 + $0x108] sm:$0xff] }
 0xd3f   :  { %v7533_v30 = vsel %vm7468_vm3, %v7449_v60, -inf  ;;  %v7254_v41 = vadd.f32 %v6657_v13, %v6124_v19 }
 0xd40   :  { %v7534_v11 = vmax.f32 %v7532_v9, %v7533_v30 }
 0xd41   :  { %v7318_v21 = vadd.f32 %v7254_v41, %v7190_v17  ;;  %8946 = vmatmul.msk.f32.gmra.mxu2 %vm2118_vm2, %v6738_v7  ;;  %9012 = vmatmul.msk.f32.gmra.mxu3 %vm2118_vm2, %v6739_v43  ;;  %v9062_v43 = vld [vmem:[%s14287_s5 + $0x158] sm:$0xff]  ;;  %v14897_v41 = vld [vmem:[#allocation244_spill] sm:$0xff] }
 0xd42   :  { %v13889_v14 = vsel %vm7468_vm3, %v7534_v11, -inf  ;;  %v14898_v17 = vld [vmem:[#allocation84_spill] sm:$0xff] }
 0xd43   :  { %v7597_v1 = vmax.f32 %v13886_v62, %v13889_v14  ;;  %v7386_v7 = vadd.f32 %v13748_v53, %v7318_v21  ;;  %v4692_v5 = vadd.f32 %v14898_v17, %v14897_v41  ;;  %v14905_v41 = vmax.f32 %v13384_v18, %v13387_v59  ;;  %v14906_v17 = vld [vmem:[#allocation248_spill] sm:$0xff] }
 0xd44   :  { %v6560_v61 = vpop.f32.mrf.mxu2  ;;  %v7093_v23 = vpop.f32.mrf.mxu3  ;;  %v9064_v14 = vld [vmem:[%s14287_s5 + $0x160] sm:$0xff] }
 0xd45   :  { %v7450_v63 = vmax.f32 %v7386_v7, 0.0  ;;  %v6658_v4 = vadd.f32 %v6560_v61, %v4689_v57  ;;  %v7191_v13 = vadd.f32 %v7093_v23, %v13049_v6  ;;  %v9019_v6 = vld [vmem:[%s14287_s5 + $0x50] sm:$0xff] }
 0xd46   :  { %v14899_v57 = vld [vmem:[#allocation253_spill] sm:$0xff] }
 0xd47   :  { %v7536_v19 = vsel %vm7468_vm3, %v7450_v63, -inf  ;;  %v7255_v60 = vadd.f32 %v6658_v4, %v6125_v42  ;;  %v14901_v42 = vmax.f32 %v13416_v26, %v13419_v44  ;;  %v9051_v63 = vld [vmem:[%s14287_s5 + $0x110] sm:$0xff] }
 0xd48   :  { %v7537_v9 = vmax.f32 %v7535_v0, %v7536_v19  ;;  %v14903_v19 = vld [vmem:[#allocation86_spill] sm:$0xff] }
 0xd49   :  { %v7319_v30 = vadd.f32 %v7255_v60, %v7191_v13  ;;  %9030 = vmatmul.msk.f32.vlgmr.msra.gmra.mxu3 %vm7468_vm3, %v7567_v2  ;;  %9041 = vmatmul.msk.f32.vlgmr.msra.gmra.mxu2 %vm7468_vm3, %v7585_v22  ;;  %v4695_v60 = vadd.f32 %v14903_v19, %v14902_v20 }
 0xd4a   :  { %7777 = vmatpush.msra.mxu3 %v9020_v51  ;;  %7914 = vmatpush.msra.mxu2 %v9062_v43  ;;  %v7598_v4 = vsel %vm7468_vm3, %v7537_v9, -inf  ;;  %v9049_v43 = vld [vmem:[%s14287_s5 + $0x100] sm:$0xff] }
 0xd4b   :  { %v7387_v2 = vadd.f32 %v13748_v53, %v7319_v30  ;;  %v14904_v9 = vld [vmem:[#allocation255_spill] sm:$0xff] }
 0xd4c   :  { %v6563_v22 = vpop.f32.mrf.mxu2  ;;  %v7096_v11 = vpop.f32.mrf.mxu3  ;;  %7778 = vmatpush.msra.mxu3 %v9019_v6  ;;  %7915 = vmatpush.msra.mxu2 %v9061_v52  ;;  %v9067_v6 = vld [vmem:[%s14287_s5 + $0x178] sm:$0xff] }
 0xd4d   :  { %v7451_v21 = vmax.f32 %v7387_v2, 0.0  ;;  %v6659_v8 = vadd.f32 %v6563_v22, %v4692_v5  ;;  %v7192_v10 = vadd.f32 %v7096_v11, %v13054_v29  ;;  %v9052_v29 = vld [vmem:[%s14287_s5 + $0x118] sm:$0xff]  ;;  %v14907_v5 = vld [vmem:[#allocation88_spill] sm:$0xff] }
 0xd4e   :  { %7779 = vmatpush.msra.mxu3 %v9018_v33  ;;  %7916 = vmatpush.msra.mxu2 %v9060_v46  ;;  %v4698_v48 = vadd.f32 %v14907_v5, %v14906_v17  ;;  %v9065_v2 = vld [vmem:[%s14287_s5 + $0x168] sm:$0xff]  ;;  %v14909_v11 = vld [vmem:[#allocation250_spill] sm:$0xff] }
 0xd4f   :  { %v7539_v58 = vsel %vm7468_vm3, %v7451_v21, -inf  ;;  %v7256_v7 = vadd.f32 %v6659_v8, %v14899_v57  ;;  %v14910_v21 = vld [vmem:[#allocation90_spill] sm:$0xff]  ;;  %v14920_v5 = vld [vmem:[#allocation268_spill] sm:$0xff] }
 0xd50   :  { %v7540_v61 = vmax.f32 %v7538_v12, %v7539_v58  ;;  %7780 = vmatpush.msra.mxu3 %v9017_v24  ;;  %7917 = vmatpush.msra.mxu2 %v9059_v54  ;;  %v4701_v8 = vadd.f32 %v14910_v21, %v14909_v11  ;;  %v14911_v12 = vld [vmem:[#allocation259_spill] sm:$0xff] }
 0xd51   :  { %v13946_v23 = vadd.f32 %v7256_v7, %v7192_v10  ;;  %9035 = vmatmul.msk.f32.vlgmr.msrb.gmra.mxu3 %vm7468_vm3, %v14900_v28  ;;  %9048 = vmatmul.msk.f32.vlgmr.msrb.gmra.mxu2 %vm7468_vm3, %v14901_v42  ;;  %v14912_v7 = vld [vmem:[#allocation252_spill] sm:$0xff]  ;;  %v14914_v42 = vld [vmem:[#allocation262_spill] sm:$0xff] }
 0xd52   :  { %v7599_v0 = vsel %vm7468_vm3, %v7540_v61, -inf  ;;  %7856 = vmatpush.msrb.mxu3 %v9052_v29  ;;  %v14913_v29 = vld [vmem:[#allocation92_spill] sm:$0xff]  ;;  %v9072_v17 = vld [vmem:[%s14287_s5 + $0x198] sm:$0xff] }
 0xd53   :  { %v7600_v55 = vmax.f32 %v7598_v4, %v7599_v0  ;;  %v4704_v61 = vadd.f32 %v14913_v29, %v14912_v7  ;;  %v14915_v0 = vld [vmem:[#allocation254_spill] sm:$0xff]  ;;  %7972 = vmatpush.msra.mxu1 %v9072_v17  ;;  %v14927_v7 = vld [vmem:[#allocation105_spill] sm:$0xff] }
 0xd54   :  { %v6566_v26 = vpop.f32.mrf.mxu2  ;;  %v7099_v44 = vpop.f32.mrf.mxu3  ;;  %7857 = vmatpush.msrb.mxu3 %v9051_v63 }
 0xd55   :  { %v6660_v13 = vadd.f32 %v6566_v26, %v4695_v60  ;;  %v7193_v51 = vadd.f32 %v7099_v44, %v13060_v39  ;;  %v9066_v39 = vld [vmem:[%s14287_s5 + $0x170] sm:$0xff] }
 0xd56   :  { %7858 = vmatpush.msrb.mxu3 %v9050_v27  ;;  %v14917_v26 = vld [vmem:[#allocation265_spill] sm:$0xff] }
 0xd57   :  { %v7257_v30 = vadd.f32 %v6660_v13, %v14904_v9 }
 0xd58   :  { %7859 = vmatpush.msrb.mxu3 %v9049_v43  ;;  %v14919_v43 = vld [vmem:[#allocation98_spill] sm:$0xff] }
 0xd59   :  { %v13974_v52 = vadd.f32 %v7257_v30, %v7193_v51  ;;  %9042 = vmatmul.msk.f32.vlgmr.msra.gmra.mxu3 %vm7468_vm3, %v14905_v41  ;;  %9063 = vmatmul.msk.f32.vlgmr.msra.gmra.mxu2 %vm7468_vm3, %v7597_v1  ;;  %v14908_v1 = vld [vmem:[#allocation257_spill] sm:$0xff]  ;;  %v14918_v51 = vld [vmem:[#allocation256_spill] sm:$0xff] }
 0xd5a   :  { %7943 = vmatpush.msra.mxu3 %v9067_v6  ;;  %v4710_v9 = vadd.f32 %v14919_v43, %v14918_v51 }
 0xd5b   :  { %v7389_v17 = vadd.f32 %v13748_v53, %v13974_v52 }
 0xd5c   :  { %v6569_v18 = vpop.f32.mrf.mxu2  ;;  %v7102_v59 = vpop.f32.mrf.mxu3  ;;  %7944 = vmatpush.msra.mxu3 %v9066_v39 }
 0xd5d   :  { %v6661_v33 = vadd.f32 %v6569_v18, %v4698_v48  ;;  %v7194_v62 = vadd.f32 %v7102_v59, %v13066_v31  ;;  %v9070_v18 = vld [vmem:[%s14287_s5 + $0x188] sm:$0xff]  ;;  %v14921_v59 = vld [vmem:[#allocation258_spill] sm:$0xff] }
 0xd5e   :  { %7945 = vmatpush.msra.mxu3 %v9065_v2 }
 0xd5f   :  { %v7258_v46 = vadd.f32 %v6661_v33, %v14908_v1  ;;  %v9069_v1 = vld [vmem:[%s14287_s5 + $0x180] sm:$0xff] }
 0xd60   :  { %7946 = vmatpush.msra.mxu3 %v9064_v14 }
 0xd61   :  { %v13997_v22 = vadd.f32 %v7258_v46, %v7194_v62  ;;  %9053 = vmatmul.msk.f32.vlgmr.msrb.gmra.mxu3 %vm7468_vm3, %v7591_v38 }
 0xd64   :  { %v6572_v10 = vpop.f32.mrf.mxu2  ;;  %v7105_v31 = vpop.f32.mrf.mxu3 }
 0xd65   :  { %v6662_v24 = vadd.f32 %v6572_v10, %v4701_v8  ;;  %v7195_v54 = vadd.f32 %v7105_v31, %v13072_v35  ;;  %v14916_v35 = vld [vmem:[#allocation95_spill] sm:$0xff] }
 0xd66   :  { %v4707_v20 = vadd.f32 %v14916_v35, %v14915_v0  ;;  %v14923_v8 = vld [vmem:[#allocation271_spill] sm:$0xff]  ;;  %v9076_v35 = vld [vmem:[%s14287_s5 + $0x1b0] sm:$0xff] }
 0xd67   :  { %v7259_v58 = vadd.f32 %v6662_v24, %v14911_v12  ;;  %v14924_v24 = vld [vmem:[#allocation94_spill] sm:$0xff] }
 0xd69   :  { %v14007_v57 = vadd.f32 %v7259_v58, %v7195_v54  ;;  %9068 = vmatmul.msk.f32.vlgmr.msra.gmra.mxu3 %vm7468_vm3, %v7600_v55  ;;  %v14925_v54 = vld [vmem:[#allocation260_spill] sm:$0xff]  ;;  %v14926_v58 = vld [vmem:[#allocation261_spill] sm:$0xff] }
 0xd6a   :  { %v3847_v12 = vadd.f32 %v14925_v54, %v14924_v24  ;;  %v4716_v29 = vadd.f32 %v14927_v7, %v14926_v58  ;;  %v9082_v58 = vld [vmem:[%s14287_s5 + $0x1d8] sm:$0xff] }
 0xd6b   :  { %8030 = vmatpush.msrb.mxu3 %v9082_v58  ;;  %v9086_v58 = vld [vmem:[%s14287_s5 + $0x1f0] sm:$0xff] }
 0xd6c   :  { %v6575_v32 = vpop.f32.mrf.mxu2  ;;  %v7108_v25 = vpop.f32.mrf.mxu3 }
 0xd6d   :  { %v6663_v38 = vadd.f32 %v6575_v32, %v4704_v61  ;;  %v7196_v28 = vadd.f32 %v7108_v25, %v13078_v49  ;;  %v6054_v49 = vpop.f32.mrf.mxu1 }
 0xd6e   :  { %v6134_v25 = vadd.f32 %v6054_v49, %v3847_v12  ;;  %v9074_v49 = vld [vmem:[%s14287_s5 + $0x1a0] sm:$0xff] }
 0xd6f   :  { %v7260_v63 = vadd.f32 %v6663_v38, %v14914_v42 }
 0xd71   :  { %v14014_v4 = vadd.f32 %v7260_v63, %v7196_v28  ;;  %v7388_v28 = vadd.f32 %v13748_v53, %v13946_v23  ;;  %v9075_v23 = vld [vmem:[%s14287_s5 + $0x1a8] sm:$0xff] }
 0xd74   :  { %v6578_v19 = vpop.f32.mrf.mxu2  ;;  %v7111_v60 = vpop.f32.mrf.mxu3 }
 0xd75   :  { %v6664_v27 = vadd.f32 %v6578_v19, %v4707_v20  ;;  %v7197_v55 = vadd.f32 %v7111_v60, %v13084_v47  ;;  %v9071_v47 = vld [vmem:[%s14287_s5 + $0x190] sm:$0xff]  ;;  %v6057_v46 = vpop.f32.mrf.mxu1  ;;  %v7452_v19 = vmax.f32 %v7388_v28, 0.0 }
 0xd76   :  { %7973 = vmatpush.msra.mxu1 %v9071_v47  ;;  %v14928_v60 = vld [vmem:[#allocation97_spill] sm:$0xff] }
 0xd77   :  { %v7261_v44 = vadd.f32 %v6664_v27, %v14917_v26  ;;  %v14929_v27 = vld [vmem:[#allocation263_spill] sm:$0xff]  ;;  %v14930_v26 = vld [vmem:[#allocation264_spill] sm:$0xff] }
 0xd78   :  { %7974 = vmatpush.msra.mxu1 %v9070_v18 }
 0xd79   :  { %v14020_v13 = vadd.f32 %v7261_v44, %v7197_v55  ;;  %v3850_v55 = vadd.f32 %v14929_v27, %v14928_v60  ;;  %v14931_v44 = vld [vmem:[#allocation107_spill] sm:$0xff] }
 0xd7a   :  { %7975 = vmatpush.msra.mxu1 %v9069_v1  ;;  %v4719_v51 = vadd.f32 %v14931_v44, %v14930_v26  ;;  %v14934_v1 = vld [vmem:[#allocation267_spill] sm:$0xff] }
 0xd7c   :  { %v6581_v30 = vpop.f32.mrf.mxu2  ;;  %v7114_v6 = vpop.f32.mrf.mxu3 }
 0xd7d   :  { %v6665_v41 = vadd.f32 %v6581_v30, %v4710_v9  ;;  %v7198_v39 = vadd.f32 %v7114_v6, %v13090_v16  ;;  %v14922_v16 = vld [vmem:[#allocation102_spill] sm:$0xff]  ;;  %v6060_v42 = vpop.f32.mrf.mxu1  ;;  %v6135_v30 = vadd.f32 %v6057_v46, %v3850_v55  ;;  %v14935_v46 = vld [vmem:[#allocation109_spill] sm:$0xff] }
 0xd7e   :  { %v4713_v33 = vadd.f32 %v14922_v16, %v14921_v59 }
 0xd7f   :  { %v7262_v48 = vadd.f32 %v6665_v41, %v14920_v5 }
 0xd81   :  { %v14032_v2 = vadd.f32 %v7262_v48, %v7198_v39  ;;  %v7541_v39 = vsel %vm7468_vm3, %v7452_v19, -inf  ;;  %v14939_v19 = vld [vmem:[#allocation111_spill] sm:$0xff] }
 0xd84   :  { %v6584_v62 = vpop.f32.mrf.mxu2  ;;  %v7117_v14 = vpop.f32.mrf.mxu3 }
 0xd85   :  { %v6666_v11 = vadd.f32 %v6584_v62, %v4713_v33  ;;  %v7199_v21 = vadd.f32 %v7117_v14, %v13096_v15  ;;  %v9077_v15 = vld [vmem:[%s14287_s5 + $0x1b8] sm:$0xff]  ;;  %v6063_v59 = vpop.f32.mrf.mxu1  ;;  %v14932_v33 = vld [vmem:[#allocation100_spill] sm:$0xff] }
 0xd86   :  { %8001 = vmatpush.msrb.mxu2 %v9077_v15  ;;  %v14933_v62 = vld [vmem:[#allocation266_spill] sm:$0xff] }
 0xd87   :  { %v7263_v10 = vadd.f32 %v6666_v11, %v14923_v8  ;;  %v3853_v14 = vadd.f32 %v14933_v62, %v14932_v33  ;;  %v4722_v11 = vadd.f32 %v14935_v46, %v14934_v1 }
 0xd88   :  { %8002 = vmatpush.msrb.mxu2 %v9076_v35  ;;  %v14937_v35 = vld [vmem:[#allocation269_spill] sm:$0xff] }
 0xd89   :  { %v14044_v31 = vadd.f32 %v7263_v10, %v7199_v21  ;;  %v7453_v21 = vmax.f32 %v7389_v17, 0.0  ;;  %v6136_v52 = vadd.f32 %v6060_v42, %v3853_v14 }
 0xd8a   :  { %8003 = vmatpush.msrb.mxu2 %v9075_v23 }
 0xd8b   :  { %v7544_v7 = vsel %vm7468_vm3, %v7453_v21, -inf }
 0xd8c   :  { %v6587_v61 = vpop.f32.mrf.mxu2  ;;  %v7120_v32 = vpop.f32.mrf.mxu3  ;;  %8004 = vmatpush.msrb.mxu2 %v9074_v49 }
 0xd8d   :  { %v6667_v38 = vadd.f32 %v6587_v61, %v4716_v29  ;;  %v7200_v0 = vadd.f32 %v7120_v32, %v13104_v56  ;;  %v6066_v60 = vpop.f32.mrf.mxu1 }
 0xd8f   :  { %v7264_v63 = vadd.f32 %v6667_v38, %v6134_v25  ;;  %v9081_v38 = vld [vmem:[%s14287_s5 + $0x1d0] sm:$0xff] }
 0xd90   :  { %8031 = vmatpush.msrb.mxu3 %v9081_v38  ;;  %v14945_v38 = vld [vmem:[#allocation274_spill] sm:$0xff] }
 0xd91   :  { %v7328_v20 = vadd.f32 %v7264_v63, %v7200_v0  ;;  %v9080_v63 = vld [vmem:[%s14287_s5 + $0x1c8] sm:$0xff]  ;;  %v14936_v0 = vld [vmem:[#allocation103_spill] sm:$0xff] }
 0xd92   :  { %8032 = vmatpush.msrb.mxu3 %v9080_v63 }
 0xd93   :  { %v7396_v56 = vadd.f32 %v13748_v53, %v7328_v20  ;;  %v14938_v20 = vld [vmem:[#allocation270_spill] sm:$0xff] }
 0xd94   :  { %v6590_v43 = vpop.f32.mrf.mxu2  ;;  %v7123_v9 = vpop.f32.mrf.mxu3  ;;  %v4725_v23 = vadd.f32 %v14939_v19, %v14938_v20 }
 0xd95   :  { %v7460_v6 = vmax.f32 %v7396_v56, 0.0  ;;  %v6668_v41 = vadd.f32 %v6590_v43, %v4719_v51  ;;  %v7201_v47 = vadd.f32 %v7123_v9, %v13113_v37  ;;  %v7390_v37 = vadd.f32 %v13748_v53, %v13997_v22  ;;  %v9079_v51 = vld [vmem:[%s14287_s5 + $0x1c0] sm:$0xff] }
 0xd96   :  { %8033 = vmatpush.msrb.mxu3 %v9079_v51 }
 0xd97   :  { %v7542_v5 = vsel %vm7468_vm3, %v7460_v6, -inf  ;;  %v7265_v48 = vadd.f32 %v6668_v41, %v6135_v30  ;;  %v7454_v22 = vmax.f32 %v7390_v37, 0.0  ;;  %v7391_v30 = vadd.f32 %v13748_v53, %v14007_v57 }
 0xd98   :  { %v7543_v18 = vmax.f32 %v7541_v39, %v7542_v5 }
 0xd99   :  { %v7329_v16 = vadd.f32 %v7265_v48, %v7201_v47  ;;  %v7547_v49 = vsel %vm7468_vm3, %v7454_v22, -inf  ;;  %v14940_v48 = vld [vmem:[#allocation104_spill] sm:$0xff]  ;;  %v7455_v62 = vmax.f32 %v7391_v30, 0.0  ;;  %v14947_v22 = vld [vmem:[#allocation113_spill] sm:$0xff] }
 0xd9a   :  { %v7601_v15 = vsel %vm7468_vm3, %v7543_v18, -inf  ;;  %v14941_v47 = vld [vmem:[#allocation272_spill] sm:$0xff] }
 0xd9b   :  { %v7397_v8 = vadd.f32 %v13748_v53, %v7329_v16  ;;  %v3859_v18 = vadd.f32 %v14941_v47, %v14940_v48  ;;  %v14943_v16 = vld [vmem:[#allocation112_spill] sm:$0xff] }
 0xd9c   :  { %v6593_v10 = vpop.f32.mrf.mxu2  ;;  %v7126_v24 = vpop.f32.mrf.mxu3 }
 0xd9d   :  { %v7461_v54 = vmax.f32 %v7397_v8, 0.0  ;;  %v6669_v12 = vadd.f32 %v6593_v10, %v4722_v11  ;;  %v7202_v32 = vadd.f32 %v7126_v24, %v13122_v36  ;;  %v3856_v36 = vadd.f32 %v14937_v35, %v14936_v0  ;;  %v6069_v8 = vpop.f32.mrf.mxu1  ;;  %v9087_v10 = vld [vmem:[%s14287_s5 + $0x1f8] sm:$0xff]  ;;  %v9084_v0 = vld [vmem:[%s14287_s5 + $0x1e0] sm:$0xff] }
 0xd9e   :  { %v6138_v11 = vadd.f32 %v6066_v60, %v3859_v18  ;;  %v7550_v24 = vsel %vm7468_vm3, %v7455_v62, -inf  ;;  %8059 = vmatpush.msrb.mxu1 %v9087_v10  ;;  %v14953_v10 = vld [vmem:[#allocation278_spill] sm:$0xff] }
 0xd9f   :  { %v7545_v29 = vsel %vm7468_vm3, %v7461_v54, -inf  ;;  %v7266_v61 = vadd.f32 %v6669_v12, %v6136_v52  ;;  %v6137_v56 = vadd.f32 %v6063_v59, %v3856_v36  ;;  %v14942_v59 = vld [vmem:[#allocation273_spill] sm:$0xff] }
 0xda0   :  { %v7546_v25 = vmax.f32 %v7544_v7, %v7545_v29  ;;  %v4728_v33 = vadd.f32 %v14943_v16, %v14942_v59  ;;  %8060 = vmatpush.msrb.mxu1 %v9086_v58 }
 0xda1   :  { %v7330_v28 = vadd.f32 %v7266_v61, %v7202_v32  ;;  %v9085_v32 = vld [vmem:[%s14287_s5 + $0x1e8] sm:$0xff] }
 0xda2   :  { %v7602_v42 = vsel %vm7468_vm3, %v7546_v25, -inf  ;;  %v14944_v25 = vld [vmem:[#allocation106_spill] sm:$0xff]  ;;  %8061 = vmatpush.msrb.mxu1 %v9085_v32  ;;  %v7395_v32 = vadd.f32 %v13748_v53, %v14044_v31 }
 0xda3   :  { %v7603_v27 = vmax.f32 %v7601_v15, %v7602_v42  ;;  %v7398_v55 = vadd.f32 %v13748_v53, %v7330_v28  ;;  %v14946_v28 = vld [vmem:[#allocation275_spill] sm:$0xff] }
 0xda4   :  { %v6596_v26 = vpop.f32.mrf.mxu2  ;;  %v7129_v44 = vpop.f32.mrf.mxu3  ;;  %v4731_v15 = vadd.f32 %v14947_v22, %v14946_v28  ;;  %8062 = vmatpush.msrb.mxu1 %v9084_v0 }
 0xda5   :  { %v7462_v43 = vmax.f32 %v7398_v55, 0.0  ;;  %v6670_v9 = vadd.f32 %v6596_v26, %v4725_v23  ;;  %9073 = vmatmul.msk.f32.vlgmr.msra.gmra.mxu1 %vm7468_vm3, %v7603_v27  ;;  %v7203_v39 = vadd.f32 %v7129_v44, %v13128_v50  ;;  %v7392_v50 = vadd.f32 %v13748_v53, %v14014_v4  ;;  %v6072_v51 = vpop.f32.mrf.mxu1 }
 0xda6   :  { %v7393_v27 = vadd.f32 %v13748_v53, %v14020_v13 }
 0xda7   :  { %v7548_v6 = vsel %vm7468_vm3, %v7462_v43, -inf  ;;  %v7267_v41 = vadd.f32 %v6670_v9, %v6137_v56  ;;  %v7456_v4 = vmax.f32 %v7392_v50, 0.0  ;;  %v14948_v9 = vld [vmem:[#allocation108_spill] sm:$0xff]  ;;  %v14952_v50 = vld [vmem:[#allocation110_spill] sm:$0xff] }
 0xda8   :  { %v7549_v17 = vmax.f32 %v7547_v49, %v7548_v6  ;;  %v14949_v49 = vld [vmem:[#allocation276_spill] sm:$0xff]  ;;  %v14950_v6 = vld [vmem:[#allocation277_spill] sm:$0xff] }
 0xda9   :  { %v7331_v5 = vadd.f32 %v7267_v41, %v7203_v39  ;;  %v7553_v60 = vsel %vm7468_vm3, %v7456_v4, -inf  ;;  %v3865_v30 = vadd.f32 %v14949_v49, %v14948_v9  ;;  %v14951_v41 = vld [vmem:[#allocation114_spill] sm:$0xff] }
 0xdaa   :  { %v7604_v29 = vsel %vm7468_vm3, %v7549_v17, -inf  ;;  %v4734_v39 = vadd.f32 %v14951_v41, %v14950_v6  ;;  %v7457_v17 = vmax.f32 %v7393_v27, 0.0  ;;  %v8084_v9 = vld [vmem:[%s14290_s7 + $0x38] sm:$0xff]  ;;  %v8083_v49 = vld [vmem:[%s14290_s7 + $0x30] sm:$0xff]  ;;  %v8082_v41 = vld [vmem:[%s14290_s7 + $0x28] sm:$0xff] }
 0xdab   :  { %v7399_v14 = vadd.f32 %v13748_v53, %v7331_v5  ;;  %v6140_v13 = vadd.f32 %v6072_v51, %v3865_v30  ;;  %v8086_v51 = vld [vmem:[%s14290_s7 + $0x48] sm:$0xff] }
 0xdac   :  { %v6599_v1 = vpop.f32.mrf.mxu2  ;;  %v7132_v46 = vpop.f32.mrf.mxu3  ;;  %v7556_v16 = vsel %vm7468_vm3, %v7457_v17, -inf  ;;  %v8081_v17 = vld [vmem:[%s14290_s7 + $0x20] sm:$0xff] }
 0xdad   :  { %v7463_v57 = vmax.f32 %v7399_v14, 0.0  ;;  %v6671_v21 = vadd.f32 %v6599_v1, %v4728_v33  ;;  %v7204_v12 = vadd.f32 %v7132_v46, %v13134_v3  ;;  %v3862_v3 = vadd.f32 %v14945_v38, %v14944_v25 }
 0xdaf   :  { %v7551_v52 = vsel %vm7468_vm3, %v7463_v57, -inf  ;;  %v7268_v54 = vadd.f32 %v6671_v21, %v6138_v11  ;;  %v6139_v20 = vadd.f32 %v6069_v8, %v3862_v3  ;;  %v6075_v11 = vpop.f32.mrf.mxu1 }
 0xdb0   :  { %v7552_v37 = vmax.f32 %v7550_v24, %v7551_v52  ;;  %v3868_v24 = vadd.f32 %v14953_v10, %v14952_v50  ;;  %v14954_v52 = vld [vmem:[#allocation279_spill] sm:$0xff] }
 0xdb1   :  { %v7332_v7 = vadd.f32 %v7268_v54, %v7204_v12  ;;  %v8126_v50 = vld [vmem:[%s14291_s9 + $0x40] sm:$0xff] }
 0xdb2   :  { %v7605_v61 = vsel %vm7468_vm3, %v7552_v37, -inf }
 0xdb3   :  { %v7606_v42 = vmax.f32 %v7604_v29, %v7605_v61  ;;  %v7400_v63 = vadd.f32 %v13748_v53, %v7332_v7 }
 0xdb4   :  { %v6602_v35 = vpop.f32.mrf.mxu2  ;;  %v7135_v36 = vpop.f32.mrf.mxu3 }
 0xdb5   :  { %v7464_v19 = vmax.f32 %v7400_v63, 0.0  ;;  %v6672_v23 = vadd.f32 %v6602_v35, %v4731_v15  ;;  %9078 = vmatmul.msk.f32.vlgmr.msrb.gmra.mxu2 %vm7468_vm3, %v7606_v42  ;;  %v7205_v44 = vadd.f32 %v7135_v36, %v13140_v34  ;;  %v7394_v34 = vadd.f32 %v13748_v53, %v14032_v2  ;;  %v14955_v2 = vld [vmem:[#allocation115_spill] sm:$0xff] }
 0xdb6   :  { %v4737_v54 = vadd.f32 %v14955_v2, %v14954_v52  ;;  %v7459_v15 = vmax.f32 %v7395_v32, 0.0  ;;  %v8125_v52 = vld [vmem:[%s14291_s9 + $0x38] sm:$0xff] }
 0xdb7   :  { %v7554_v55 = vsel %vm7468_vm3, %v7464_v19, -inf  ;;  %v7269_v26 = vadd.f32 %v6672_v23, %v6139_v20  ;;  %v7458_v57 = vmax.f32 %v7394_v34, 0.0  ;;  %v8090_v23 = vld [vmem:[%s14290_s7 + $0x68] sm:$0xff]  ;;  %v8133_v34 = vld [vmem:[%s14291_s9 + $0x78] sm:$0xff] }
 0xdb8   :  { %v7555_v56 = vmax.f32 %v7553_v60, %v7554_v55  ;;  %v7562_v0 = vsel %vm7468_vm3, %v7459_v15, -inf  ;;  %v8089_v60 = vld [vmem:[%s14290_s7 + $0x60] sm:$0xff]  ;;  %v8088_v55 = vld [vmem:[%s14290_s7 + $0x58] sm:$0xff]  ;;  %8138 = vmatpush.msra.mxu3 %v8133_v34 }
 0xdb9   :  { %v7333_v43 = vadd.f32 %v7269_v26, %v7205_v44  ;;  %v7559_v61 = vsel %vm7468_vm3, %v7458_v57, -inf  ;;  %v7657_v26 = vpop.f32.mrf.mxu1  ;;  %v8087_v44 = vld [vmem:[%s14290_s7 + $0x50] sm:$0xff] }
 0xdba   :  { %v7607_v21 = vsel %vm7468_vm3, %v7555_v56, -inf }
 0xdbb   :  { %v7401_v5 = vadd.f32 %v13748_v53, %v7333_v43  ;;  %v8085_v43 = vld [vmem:[%s14290_s7 + $0x40] sm:$0xff] }
 0xdbc   :  { %v6605_v48 = vpop.f32.mrf.mxu2  ;;  %v7138_v47 = vpop.f32.mrf.mxu3 }
 0xdbd   :  { %v7465_v18 = vmax.f32 %v7401_v5, 0.0  ;;  %v6673_v59 = vadd.f32 %v6605_v48, %v4734_v39  ;;  %v7206_v14 = vadd.f32 %v7138_v47, %v13146_v45  ;;  %v6141_v45 = vadd.f32 %v6075_v11, %v3868_v24  ;;  %v8080_v5 = vld [vmem:[%s14290_s7 + $0x18] sm:$0xff]  ;;  %v8079_v48 = vld [vmem:[%s14290_s7 + $0x10] sm:$0xff] }
 0xdbe   :  { %v8128_v11 = vld [vmem:[%s14291_s9 + $0x50] sm:$0xff] }
 0xdbf   :  { %v7557_v33 = vsel %vm7468_vm3, %v7465_v18, -inf  ;;  %v7270_v62 = vadd.f32 %v6673_v59, %v6140_v13  ;;  %v8078_v13 = vld [vmem:[%s14290_s7 + $0x8] sm:$0xff]  ;;  %v8077_v18 = vld [vmem:[%s14290_s7] sm:$0xff] }
 0xdc0   :  { %v7558_v1 = vmax.f32 %v7556_v16, %v7557_v33  ;;  %v8132_v16 = vld [vmem:[%s14291_s9 + $0x70] sm:$0xff] }
 0xdc1   :  { %v7334_v46 = vadd.f32 %v7270_v62, %v7206_v14  ;;  %v7731_v30 = vpop.f32.mrf.mxu1  ;;  %v8131_v62 = vld [vmem:[%s14291_s9 + $0x68] sm:$0xff]  ;;  %8139 = vmatpush.msra.mxu3 %v8132_v16  ;;  %v8130_v14 = vld [vmem:[%s14291_s9 + $0x60] sm:$0xff] }
 0xdc2   :  { %v7608_v8 = vsel %vm7468_vm3, %v7558_v1, -inf }
 0xdc3   :  { %v7609_v12 = vmax.f32 %v7607_v21, %v7608_v8  ;;  %v7402_v37 = vadd.f32 %v13748_v53, %v7334_v46  ;;  %8140 = vmatpush.msra.mxu3 %v8131_v62  ;;  %v8129_v46 = vld [vmem:[%s14291_s9 + $0x58] sm:$0xff]  ;;  %v8127_v21 = vld [vmem:[%s14291_s9 + $0x48] sm:$0xff] }
 0xdc4   :  { %v6608_v58 = vpop.f32.mrf.mxu2  ;;  %v7141_v7 = vpop.f32.mrf.mxu3 }
 0xdc5   :  { %v7466_v4 = vmax.f32 %v7402_v37, 0.0  ;;  %v6674_v29 = vadd.f32 %v6608_v58, %v4737_v54  ;;  %9083 = vmatmul.msk.f32.vlgmr.msrb.gmra.mxu3 %vm7468_vm3, %v7609_v12  ;;  %v7207_v3 = vadd.f32 %v7141_v7, %v13152_v40  ;;  %v8092_v40 = vld [vmem:[%s14290_s7 + $0x78] sm:$0xff]  ;;  %v8124_v54 = vld [vmem:[%s14291_s9 + $0x30] sm:$0xff] }
 0xdc6   :  { %8097 = vmatpush.msra.mxu2 %v8092_v40  ;;  %8141 = vmatpush.msra.mxu3 %v8130_v14  ;;  %v8119_v40 = vld [vmem:[%s14291_s9 + $0x8] sm:$0xff] }
 0xdc7   :  { %v7560_v25 = vsel %vm7468_vm3, %v7466_v4, -inf  ;;  %v7271_v38 = vadd.f32 %v6674_v29, %v6141_v45  ;;  %v8123_v45 = vld [vmem:[%s14291_s9 + $0x28] sm:$0xff] }
 0xdc8   :  { %v7561_v28 = vmax.f32 %v7559_v61, %v7560_v25  ;;  %8142 = vmatpush.msra.mxu3 %v8129_v46 }
 0xdc9   :  { %v7335_v22 = vadd.f32 %v7271_v38, %v7207_v3  ;;  %v7810_v47 = vpop.f32.mrf.mxu1  ;;  %v8122_v38 = vld [vmem:[%s14291_s9 + $0x20] sm:$0xff] }
 0xdca   :  { %v7610_v20 = vsel %vm7468_vm3, %v7561_v28, -inf  ;;  %8143 = vmatpush.msra.mxu3 %v8128_v11 }
 0xdcb   :  { %v7403_v42 = vadd.f32 %v13748_v53, %v7335_v22  ;;  %v8091_v53 = vld [vmem:[%s14290_s7 + $0x70] sm:$0xff] }
 0xdcc   :  { %8098 = vmatpush.msra.mxu2 %v8091_v53  ;;  %v7680_v27 = vpop.f32.mrf.mxu3  ;;  %v7759_v6 = vpop.f32.mrf.mxu2  ;;  %8144 = vmatpush.msra.mxu3 %v8127_v21  ;;  %v8118_v53 = vld [vmem:[%s14291_s9] sm:$0xff] }
 0xdcd   :  { %v7467_v63 = vmax.f32 %v7403_v42, 0.0  ;;  %v7681_v37 = vadd.f32 %v7680_v27, %v7657_v26  ;;  %v8121_v42 = vld [vmem:[%s14291_s9 + $0x18] sm:$0xff] }
 0xdce   :  { %8099 = vmatpush.msra.mxu2 %v8090_v23  ;;  %8145 = vmatpush.msra.mxu3 %v8126_v50  ;;  %v16_v23 = vstv %s14292_s10 }
 0xdcf   :  { %v7563_v35 = vsel %vm7468_vm3, %v7467_v63, -inf  ;;  %17 = vst [vmem:[#allocation3] sm:$0x1] %v16_v23 }
 0xdd0   :  { %v7564_v36 = vmax.f32 %v7562_v0, %v7563_v35  ;;  %8100 = vmatpush.msra.mxu2 %v8089_v60  ;;  %8146 = vmatpush.msra.mxu3 %v8125_v52  ;;  %v9100_v35 = vld [vmem:[%s14288_s6] ss:$0 sm:$0xff] }
 0xdd1   :  { %v7890_v1 = vpop.f32.mrf.mxu1  ;;  %v9101_v60 = vld [vmem:[%s14289_s8] ss:$0 sm:$0xff] }
 0xdd2   :  { %v7611_v31 = vsel %vm7468_vm3, %v7564_v36, -inf  ;;  %8101 = vmatpush.msra.mxu2 %v8088_v55  ;;  %8147 = vmatpush.msra.mxu3 %v8124_v54 }
 0xdd3   :  { %v7612_v19 = vmax.f32 %v7610_v20, %v7611_v31 }
 0xdd4   :  { %8102 = vmatpush.msra.mxu2 %v8087_v44  ;;  %v7708_v56 = vpop.f32.mrf.mxu3  ;;  %v7833_v59 = vpop.f32.mrf.mxu2  ;;  %8148 = vmatpush.msra.mxu3 %v8123_v45 }
 0xdd5   :  { %9088 = vmatmul.msk.f32.vlgmr.msrb.gmra.mxu1 %vm7468_vm3, %v7612_v19  ;;  %v7732_v24 = vadd.f32 %v7731_v30, %v7708_v56  ;;  %v7834_v58 = vadd.f32 %v7833_v59, %v7810_v47  ;;  %v8120_v19 = vld [vmem:[%s14291_s9 + $0x10] sm:$0xff] }
 0xdd6   :  { %8103 = vmatpush.msra.mxu2 %v8086_v51  ;;  %8149 = vmatpush.msra.mxu3 %v8122_v38  ;;  %v9102_v44 = vld [vmem:[#allocation3] ss:$0 sm:$0xff] }
 0xdd7   :  { %v7893_v7 = vadd.f32 %v7890_v1, %v7732_v24 }
 0xdd8   :  { %8104 = vmatpush.msra.mxu2 %v8085_v43  ;;  %8150 = vmatpush.msra.mxu3 %v8121_v42 }
 0xdda   :  { %8105 = vmatpush.msra.mxu2 %v8084_v9  ;;  %8151 = vmatpush.msra.mxu3 %v8120_v19 }
 0xddc   :  { %8106 = vmatpush.msra.mxu2 %v8083_v49  ;;  %v7782_v39 = vpop.f32.mrf.mxu3  ;;  %v7919_v57 = vpop.f32.mrf.mxu2  ;;  %8152 = vmatpush.msra.mxu3 %v8119_v40 }
 0xddd   :  { %v7783_v2 = vadd.f32 %v7782_v39, %v7759_v6 }
 0xdde   :  { %8107 = vmatpush.msra.mxu2 %v8082_v41  ;;  %8153 = vmatpush.msra.mxu3 %v8118_v53 }
 0xddf   :  { %v7922_v29 = vadd.f32 %v7919_v57, %v7783_v2 }
 0xde0   :  { %8108 = vmatpush.msra.mxu2 %v8081_v17 }
 0xde2   :  { %8109 = vmatpush.msra.mxu2 %v8080_v5 }
 0xde4   :  { %8110 = vmatpush.msra.mxu2 %v8079_v48  ;;  %v7861_v33 = vpop.f32.mrf.mxu3 }
 0xde5   :  { %v7864_v61 = vadd.f32 %v7861_v33, %v7681_v37 }
 0xde6   :  { %8111 = vmatpush.msra.mxu2 %v8078_v13 }
 0xde8   :  { %8112 = vmatpush.msra.mxu2 %v8077_v18 }
 0xdec   :  { %v7948_v8 = vpop.f32.mrf.mxu3 }
 0xded   :  { %v7951_v32 = vadd.f32 %v7948_v8, %v7834_v58 }
 0xe22   :  { %v7977_v10 = vpop.f32.mrf.mxu1 }
 0xe23   :  { %v7980_v28 = vadd.f32 %v7977_v10, %v7864_v61 }
 0xe38   :  { %v8006_v12 = vpop.f32.mrf.mxu2 }
 0xe39   :  { %v8009_v25 = vadd.f32 %v8006_v12, %v7893_v7 }
 0xe3b   :  { %v8068_v63 = vadd.f32 %v8009_v25, %v7980_v28 }
 0xe48   :  { %v8035_v4 = vpop.f32.mrf.mxu3 }
 0xe49   :  { %v8038_v22 = vadd.f32 %v8035_v4, %v7922_v29 }
 0xe52   :  { %v8064_v3 = vpop.f32.mrf.mxu1 }
 0xe53   :  { %v8067_v15 = vadd.f32 %v8064_v3, %v7951_v32 }
 0xe55   :  { %v8069_v0 = vadd.f32 %v8067_v15, %v8038_v22 }
 0xe57   :  { %v8070_v36 = vadd.f32 %v8069_v0, %v8068_v63 }
 0xe59   :  { %v8075_v20 = vadd.f32 %v9100_v35, %v8070_v36 }
 0xe5b   :  { %v8076_v31 = vmax.f32 %v8075_v20, 0.0 }
 0xe5d   :  { %8113 = vmatmul.f32.vlgmr.msra.gmra.mxu2 %v8076_v31 }
 0xee0   :  { %v8114_v27 = vpop.f32.mrf.mxu2 }
 0xee1   :  { %v8115_v55 = vadd.f32 %v9101_v60, %v8114_v27 }
 0xee3   :  { %v8117_v26 = vmax.f32 %v8115_v55, 0.0 }
 0xee5   :  { %8154 = vmatmul.f32.vlgmr.msra.gmra.mxu3 %v8117_v26 }
 0xf68   :  { %v8155_v51 = vpop.f32.mrf.mxu3 }
 0xf69   :  { %v8156_v56 = vadd.f32 %v9102_v44, %v8155_v51 }
 0xf6b   :  { %8159 = vst.msk [vmem:[%s14293_s11] sm:$0xff] %vm8158_vm4, %v8156_v56 }

</bundles_post_ra>
